<compile_context>
chip_gen: v7x
topology: tpu7x:2x2x1
jax: 0.10.0
libtpu: 0.0.40
codegen_flags: <defaults>
</compile_context>

<pallas_src>
import functools

import jax
import jax.numpy as jnp
from jax.experimental import pallas as pl
from jax.experimental.pallas import tpu as pltpu

EPS = 1e-5          # nn.LayerNorm default eps
LANE = 128
NEG = -1e30         # softmax mask value for padded query channels
MB = 1 << 20


def _round_up(v, m):
    return (v + m - 1) // m * m


def _layernorm(x, gamma, beta, d_true):
    # x: (M, Dp) with exact zeros in the padded lanes; statistics use the true channel
    # count.  Padded lanes end up (x-mean)*0 + 0 = 0 (gamma/beta pads are 0).
    s = jnp.sum(x, axis=-1, keepdims=True)
    ss = jnp.sum(x * x, axis=-1, keepdims=True)
    mean = s / d_true
    var = ss / d_true - mean * mean
    return (x - mean) * jax.lax.rsqrt(var + EPS) * gamma + beta


def block_kernel(H, W, d_true, kcp, vcp,
                 x_ref,
                 g1_ref, beta1_ref,
                 wqkv_ref, bqkv_ref,
                 wr_ref, br_ref,
                 g2_ref, beta2_ref,
                 w1_ref, b1_ref, wdw_ref, bdw_ref, w2_ref, b2_ref,
                 o_ref,
                 pad_ref):
    TB, N, dp = x_ref.shape
    M = TB * N
    hidp = w1_ref.shape[1]
    bf16 = jnp.bfloat16
    f32 = jnp.float32
    sdt = pad_ref.dtype

    # ---- hoisted, sample-invariant loads (JAX does not CSE these) ----
    g1, be1 = g1_ref[...], beta1_ref[...]
    g2, be2 = g2_ref[...], beta2_ref[...]
    bqkv, br, b1, b2 = bqkv_ref[...], br_ref[...], b1_ref[...], b2_ref[...]
    wdw = wdw_ref[...]                                        # (9, HIDp) f32
    taps = [wdw[i:i + 1, :].reshape(1, 1, hidp) for i in range(9)]
    bdw_b = bdw_ref[...].reshape(1, 1, hidp)

    # Zero only the halo border strips once per grid step; the interior is fully
    # rewritten for every sample below (no full-scratch memset).
    zrow = jnp.zeros((1, W + 2, hidp), sdt)
    pad_ref[0:1, :, :] = zrow
    pad_ref[H + 1:H + 2, :, :] = zrow
    zcol = jnp.zeros((H, 1, hidp), sdt)
    pad_ref[1:H + 1, 0:1, :] = zcol
    pad_ref[1:H + 1, W + 1:W + 2, :] = zcol

    # ---------------- norm1 + EfficientAttention (head_count = 1) ----------------
    # Matmuls batched over all TB samples: M = TB*N rows feed the MXU at once.
    x = x_ref[...].reshape(M, dp)                              # (M, Dp) f32
    n1 = _layernorm(x, g1, be1, d_true)
    qkv = jnp.dot(n1.astype(bf16), wqkv_ref[...],
                  preferred_element_type=f32) + bqkv           # (M, 2*KCp+VCp)
    keys = qkv[:, :kcp]
    queries = qkv[:, kcp:2 * kcp]          # padded channels carry -1e30 bias -> exp == 0
    values = qkv[:, 2 * kcp:2 * kcp + vcp]

    # key softmax over spatial positions (torch dim=2), per sample; kept unnormalised,
    # the per-channel denominator is folded into the query side below.
    keys3 = keys.reshape(TB, N, kcp)
    vals3 = values.reshape(TB, N, vcp)
    kmax = jnp.max(keys3, axis=1, keepdims=True)
    kexp = jnp.exp(keys3 - kmax)                               # (TB, N, KCp)
    ksum = jnp.sum(kexp, axis=1, keepdims=True)                # (TB, 1, KCp)

    # query softmax over key channels (torch dim=1)
    qmax = jnp.max(queries, axis=1, keepdims=True)
    qexp = jnp.exp(queries - qmax)                             # (M, KCp)
    qsum = jnp.sum(qexp, axis=1, keepdims=True)                # (M, 1)

    # context_unnorm[b, k, v] = sum_n kexp[b, n, k] * values[b, n, v]
    # TODO(synk): verify via pl.lower_as_mlir that the sublane contraction of kexp
    # does not insert an extra XLU transpose; pre-transpose kexp if it does.
    context = jnp.einsum('bnk,bnv->bkv', kexp.astype(bf16), vals3.astype(bf16),
                         preferred_element_type=f32)           # (TB, KCp, VCp)

    q_scaled = (qexp.reshape(TB, N, kcp)
                * pl.reciprocal(ksum, approx=True)).astype(bf16)
    attended = jnp.einsum('bnk,bkv->bnv', q_scaled, context.astype(bf16),
                          preferred_element_type=f32)          # (TB, N, VCp)
    attended = attended.reshape(M, vcp) * pl.reciprocal(qsum, approx=True)

    attn = jnp.dot(attended.astype(bf16), wr_ref[...],
                   preferred_element_type=f32) + br            # (M, Dp)
    tx = x + attn

    # ---------------- norm2 + MixFFN: fc1 -> dwconv3x3 -> GELU -> fc2 ----------------
    n2 = _layernorm(tx, g2, be2, d_true)
    h1 = jnp.dot(n2.astype(bf16), w1_ref[...],
                 preferred_element_type=f32) + b1              # (M, HIDp)
    h1 = h1.reshape(TB, N, hidp)

    acts = []
    for t in range(TB):     # per-sample: only the dwconv image needs the 2-D spatial view
        # Write the interior of the zero-bordered image.
        pad_ref[1:H + 1, 1:W + 1, :] = h1[t].reshape(H, W, hidp).astype(sdt)
        # Materialise the three column-shifted bands once; row (dh) shifts on the loaded
        # bands are cheap (major-dim slices), so the 9 taps reuse 3 sublane slices.
        bands = (pad_ref[:, 0:W, :], pad_ref[:, 1:W + 1, :], pad_ref[:, 2:W + 2, :])
        conv = None
        for dh in (-1, 0, 1):
            r0 = 1 + dh
            for j in range(3):
                term = bands[j][r0:r0 + H] * taps[(dh + 1) * 3 + j]
                conv = term if conv is None else conv + term
        conv = conv + bdw_b
        # TODO(synk): PyTorch nn.GELU defaults to exact erf GELU; tanh approx used.
        acts.append(jax.nn.gelu(conv.astype(f32), approximate=True).reshape(N, hidp))
    act = acts[0] if TB == 1 else jnp.concatenate(acts, axis=0)   # (M, HIDp)

    mlp = jnp.dot(act.astype(bf16), w2_ref[...],
                  preferred_element_type=f32) + b2             # (M, Dp)

    o_ref[...] = (tx + mlp).reshape(TB, N, dp).astype(o_ref.dtype)


def _pad2(a, rows, cols, col_fill=0.0):
    """Pad a 2-D array with zeros (rows) and `col_fill` (new columns)."""
    r0, c0 = a.shape
    if cols > c0:
        a = jnp.concatenate([a, jnp.full((r0, cols - c0), col_fill, a.dtype)], axis=1)
    if rows > r0:
        a = jnp.concatenate([a, jnp.zeros((rows - r0, a.shape[1]), a.dtype)], axis=0)
    return a


def prepare_params(params):
    """Pad & cast all weights once; reuse the returned pytree across calls."""
    D, KC = params["wk"].shape
    VC = params["wv"].shape[1]
    HID = params["w1"].shape[1]
    Dp, KCp, VCp, HIDp = (_round_up(v, LANE) for v in (D, KC, VC, HID))
    bf16 = jnp.bfloat16
    return dict(
        D=D, KC=KC, VC=VC, HID=HID, Dp=Dp, KCp=KCp, VCp=VCp, HIDp=HIDp,
        g1=_pad2(params["g1"], 1, Dp), beta1=_pad2(params["beta1"], 1, Dp),
        g2=_pad2(params["g2"], 1, Dp), beta2=_pad2(params["beta2"], 1, Dp),
        # Fused K/Q/V projection.  Padded *query* bias lanes get NEG so the channel
        # softmax zeroes them (this is what makes the garbage key-pad context rows
        # harmless); all other pads are zeros.
        wqkv=jnp.concatenate([_pad2(params["wk"], Dp, KCp),
                              _pad2(params["wq"], Dp, KCp),
                              _pad2(params["wv"], Dp, VCp)], axis=1).astype(bf16),
        bqkv=jnp.concatenate([_pad2(params["bk"], 1, KCp),
                              _pad2(params["bq"], 1, KCp, col_fill=NEG),
                              _pad2(params["bv"], 1, VCp)], axis=1),
        wr=_pad2(params["wr"], VCp, Dp).astype(bf16), br=_pad2(params["br"], 1, Dp),
        w1=_pad2(params["w1"], Dp, HIDp).astype(bf16), b1=_pad2(params["b1"], 1, HIDp),
        wdw=_pad2(params["wdw"], 9, HIDp), bdw=_pad2(params["bdw"], 1, HIDp),
        w2=_pad2(params["w2"], HIDp, Dp).astype(bf16), b2=_pad2(params["b2"], 1, Dp),
    )


def _device_kind():
    try:
        return jax.devices()[0].device_kind.lower()
    except Exception:
        return ""


def _pick_tb(B, per_sample_bytes, fixed_bytes, kind):
    """Samples folded per grid step.

    v5e/v6e: single TensorCore -> fold the whole batch (fewer grid steps, bigger M).
    v7x: 2 TCs -> keep the grid a multiple of 2; also cap by the 64 MiB VMEM budget.
    """
    is_v7 = ("v7" in kind) or ("7x" in kind)
    min_steps = 2 if (is_v7 and B % 2 == 0 and B >= 2) else 1
    phys = 64 * MB if is_v7 else 128 * MB
    budget = int(0.6 * phys)
    for steps in range(min_steps, B + 1):
        if B % steps:
            continue
        tb = B // steps
        if fixed_bytes + tb * per_sample_bytes <= budget:
            return tb
    return 1


def efficient_transformer_block_padded(xp, prep, H, W):
    """Runs one block on lane-padded activations (B, N, Dp) and returns the same
    padded layout, so a stack of blocks de-pads only once at the very end."""
    B, N, Dp = xp.shape
    assert N == H * W and Dp == prep["Dp"]
    D, KCp, VCp, HIDp = prep["D"], prep["KCp"], prep["VCp"], prep["HIDp"]
    kind = _device_kind()
    is_v7 = ("v7" in kind) or ("7x" in kind)

    plist = [prep[k] for k in ("g1", "beta1", "wqkv", "bqkv", "wr", "br",
                               "g2", "beta2", "w1", "b1", "wdw", "bdw", "w2", "b2")]
    wbytes = sum(int(p.size) * p.dtype.itemsize for p in plist)

    # Rough resident-set estimate: double-buffered in/out x blocks + f32 temporaries
    # (qkv / h1 / conv / act) per sample, plus weights (x2 worst case) and the dwconv
    # halo scratch.
    per_sample = 2 * 2 * N * Dp * 4 + 6 * N * HIDp * 4
    fixed = 2 * wbytes + (H + 2) * (W + 2) * HIDp * 4
    tb = _pick_tb(B, per_sample, fixed, kind)

    vmem_limit = int(min(0.9 * (64 * MB if is_v7 else 128 * MB),
                         max(2 * (fixed + tb * per_sample), 32 * MB)))

    flops = 2 * B * N * (Dp * (2 * KCp + VCp) + 2 * KCp * VCp + VCp * Dp
                         + 2 * Dp * HIDp) + 2 * 9 * B * N * HIDp
    cost = pl.CostEstimate(
        flops=int(flops),
        transcendentals=int(B * N * (2 * KCp + HIDp)),
        bytes_accessed=int(2 * xp.size * 4 + wbytes))

    kernel = functools.partial(block_kernel, H, W, D, KCp, VCp)
    x_spec = pl.BlockSpec((tb, N, Dp), lambda b: (b, 0, 0))
    out_spec = pl.BlockSpec((tb, N, Dp), lambda b: (b, 0, 0))

    def full_spec(arr, single_buffer):
        nd = arr.ndim
        idx = lambda b, _nd=nd: (0,) * _nd
        if single_buffer:
            # Grid-invariant weights: one VMEM buffer instead of the default two.
            return pl.BlockSpec(arr.shape, idx, pipeline_mode=pl.Buffered(1))
        return pl.BlockSpec(arr.shape, idx)

    def run(single_buffer):
        call = pl.pallas_call(
            kernel,
            out_shape=jax.ShapeDtypeStruct((B, N, Dp), xp.dtype),
            grid=(B // tb,),
            in_specs=[x_spec] + [full_spec(p, single_buffer) for p in plist],
            out_specs=out_spec,
            scratch_shapes=[pltpu.VMEM((H + 2, W + 2, HIDp), jnp.float32)],
            compiler_params=pltpu.CompilerParams(
                dimension_semantics=("parallel",),
                vmem_limit_bytes=vmem_limit),
            cost_estimate=cost,
        )
        return call(xp, *plist)

    try:
        return jax.block_until_ready(run(True))
    except Exception:
        # pipeline_mode=pl.Buffered(1) not accepted by this jax version -> default buffering.
        return run(False)


def efficient_transformer_block(x, params, H, W):
    """Single-call convenience wrapper (pads input / de-pads output)."""
    prep = prepare_params(params)
    B, N, D = x.shape
    Dp = prep["Dp"]
    xp = x if Dp == D else jnp.pad(x, ((0, 0), (0, 0), (0, Dp - D)))
    out = efficient_transformer_block_padded(xp, prep, H, W)
    return out[:, :, :D]


def reference(x, p, H, W):
    """Pure-JAX f32 reference mirroring the PyTorch forward."""
    B, N, D = x.shape

    def ln(v, g, b):
        m = v.mean(-1, keepdims=True)
        var = ((v - m) ** 2).mean(-1, keepdims=True)
        return (v - m) / jnp.sqrt(var + EPS) * g + b

    n1 = ln(x, p["g1"], p["beta1"])
    keys = n1 @ p["wk"] + p["bk"]
    queries = n1 @ p["wq"] + p["bq"]
    values = n1 @ p["wv"] + p["bv"]
    key_sm = jax.nn.softmax(keys, axis=1)       # over spatial
    query_sm = jax.nn.softmax(queries, axis=2)  # over channels
    context = jnp.einsum("bnk,bnv->bkv", key_sm, values)
    attended = jnp.einsum("bnk,bkv->bnv", query_sm, context)
    attn = attended @ p["wr"] + p["br"]
    tx = x + attn

    n2 = ln(tx, p["g2"], p["beta2"])
    h1 = n2 @ p["w1"] + p["b1"]
    hid = h1.shape[-1]
    img = h1.reshape(B, H, W, hid)
    pad = jnp.pad(img, ((0, 0), (1, 1), (1, 1), (0, 0)))
    conv = jnp.zeros_like(img)
    for dh in (-1, 0, 1):
        for dw in (-1, 0, 1):
            tap = p["wdw"][(dh + 1) * 3 + (dw + 1)]
            conv = conv + pad[:, 1 + dh:1 + dh + H, 1 + dw:1 + dw + W, :] * tap
    conv = conv + p["bdw"]
    act = jax.nn.gelu(conv, approximate=True)
    mlp = act.reshape(B, N, hid) @ p["w2"] + p["b2"]
    return tx + mlp


if __name__ == "__main__":
    B, H, W, D = 2, 8, 8, 32      # x: (b, H*W, d) with in_dim = key_dim = value_dim = 32
    KC, VC = D, D
    HID = 4 * D
    N = H * W

    root = jax.random.PRNGKey(0)
    ks = jax.random.split(root, 20)

    def init(k, shape, scale=0.1):
        return (scale * jax.random.normal(k, shape)).astype(jnp.float32)

    params = {
        "g1":    jnp.ones((1, D), jnp.float32) + init(ks[1], (1, D), 0.02),
        "beta1": init(ks[2], (1, D), 0.02),
        "wk": init(ks[3], (D, KC)),  "bk": init(ks[4], (1, KC), 0.02),
        "wq": init(ks[5], (D, KC)),  "bq": init(ks[6], (1, KC), 0.02),
        "wv": init(ks[7], (D, VC)),  "bv": init(ks[8], (1, VC), 0.02),
        "wr": init(ks[9], (VC, D)),  "br": init(ks[10], (1, D), 0.02),
        "g2":    jnp.ones((1, D), jnp.float32) + init(ks[11], (1, D), 0.02),
        "beta2": init(ks[12], (1, D), 0.02),
        "w1":  init(ks[13], (D, HID)),   "b1":  init(ks[14], (1, HID), 0.02),
        "wdw": init(ks[15], (9, HID)),   "bdw": init(ks[16], (1, HID), 0.02),
        "w2":  init(ks[17], (HID, D)),   "b2":  init(ks[18], (1, D), 0.02),
    }
    x = (0.5 * jax.random.normal(ks[0], (B, N, D))).astype(jnp.float32)

    # Pad/cast the weights once, keep activations lane-padded across (stacked) blocks,
    # de-pad only at the very end.
    prep = prepare_params(params)
    Dp = prep["Dp"]
    xp = x if Dp == D else jnp.pad(x, ((0, 0), (0, 0), (0, Dp - D)))
    out_p = efficient_transformer_block_padded(xp, prep, H, W)
    out = jax.block_until_ready(out_p[:, :, :D])

    ref = reference(x, params, H, W)
    max_err = float(jnp.max(jnp.abs(out - ref)))
    # bf16 MXU operands + approx reciprocals vs. the all-f32 reference -> allow 5e-2.
    if not (out.shape == (B, N, D) and max_err < 5e-2):
        raise AssertionError(f"mismatch: shape={out.shape}, max_err={max_err}")

    print("KERNEL_OK")
</pallas_src>

<mosaic_0001>
module attributes {stable_mosaic.version = 11 : i64} {
  func.func @block_kernel(%arg0: i32, %arg1: memref<2x64x128xf32, #tpu.memory_space<vmem>>, %arg2: memref<1x128xf32, #tpu.memory_space<vmem>>, %arg3: memref<1x128xf32, #tpu.memory_space<vmem>>, %arg4: memref<128x384xbf16, #tpu.memory_space<vmem>>, %arg5: memref<1x384xf32, #tpu.memory_space<vmem>>, %arg6: memref<128x128xbf16, #tpu.memory_space<vmem>>, %arg7: memref<1x128xf32, #tpu.memory_space<vmem>>, %arg8: memref<1x128xf32, #tpu.memory_space<vmem>>, %arg9: memref<1x128xf32, #tpu.memory_space<vmem>>, %arg10: memref<128x128xbf16, #tpu.memory_space<vmem>>, %arg11: memref<1x128xf32, #tpu.memory_space<vmem>>, %arg12: memref<9x128xf32, #tpu.memory_space<vmem>>, %arg13: memref<1x128xf32, #tpu.memory_space<vmem>>, %arg14: memref<128x128xbf16, #tpu.memory_space<vmem>>, %arg15: memref<1x128xf32, #tpu.memory_space<vmem>>, %arg16: memref<2x64x128xf32, #tpu.memory_space<vmem>>, %arg17: memref<10x10x128xf32, #tpu.memory_space<vmem>>) attributes {dimension_semantics = [#tpu.dimension_semantics<parallel>], iteration_bounds = array<i64: 1>, scalar_prefetch = 0 : i64, scratch_operands = 1 : i64, tpu.core_type = #tpu.core_type<tc>, window_params = [{transform_indices = @transform_0, window_bounds = array<i64: 2, 64, 128>}, {pipeline_mode = #tpu.pipeline_mode<synchronous>, transform_indices = @transform_1, window_bounds = array<i64: 1, 128>}, {pipeline_mode = #tpu.pipeline_mode<synchronous>, transform_indices = @transform_2, window_bounds = array<i64: 1, 128>}, {pipeline_mode = #tpu.pipeline_mode<synchronous>, transform_indices = @transform_3, window_bounds = array<i64: 128, 384>}, {pipeline_mode = #tpu.pipeline_mode<synchronous>, transform_indices = @transform_4, window_bounds = array<i64: 1, 384>}, {pipeline_mode = #tpu.pipeline_mode<synchronous>, transform_indices = @transform_5, window_bounds = array<i64: 128, 128>}, {pipeline_mode = #tpu.pipeline_mode<synchronous>, transform_indices = @transform_6, window_bounds = array<i64: 1, 128>}, {pipeline_mode = #tpu.pipeline_mode<synchronous>, transform_indices = @transform_7, window_bounds = array<i64: 1, 128>}, {pipeline_mode = #tpu.pipeline_mode<synchronous>, transform_indices = @transform_8, window_bounds = array<i64: 1, 128>}, {pipeline_mode = #tpu.pipeline_mode<synchronous>, transform_indices = @transform_9, window_bounds = array<i64: 128, 128>}, {pipeline_mode = #tpu.pipeline_mode<synchronous>, transform_indices = @transform_10, window_bounds = array<i64: 1, 128>}, {pipeline_mode = #tpu.pipeline_mode<synchronous>, transform_indices = @transform_11, window_bounds = array<i64: 9, 128>}, {pipeline_mode = #tpu.pipeline_mode<synchronous>, transform_indices = @transform_12, window_bounds = array<i64: 1, 128>}, {pipeline_mode = #tpu.pipeline_mode<synchronous>, transform_indices = @transform_13, window_bounds = array<i64: 128, 128>}, {pipeline_mode = #tpu.pipeline_mode<synchronous>, transform_indices = @transform_14, window_bounds = array<i64: 1, 128>}, {transform_indices = @transform_15, window_bounds = array<i64: 2, 64, 128>}]} {
    %c0 = arith.constant 0 : index
    %c0_0 = arith.constant 0 : index
    %0 = vector.load %arg2[%c0, %c0_0] : memref<1x128xf32, #tpu.memory_space<vmem>>, vector<1x128xf32>
    %c0_1 = arith.constant 0 : index
    %c0_2 = arith.constant 0 : index
    %1 = vector.load %arg3[%c0_1, %c0_2] : memref<1x128xf32, #tpu.memory_space<vmem>>, vector<1x128xf32>
    %c0_3 = arith.constant 0 : index
    %c0_4 = arith.constant 0 : index
    %2 = vector.load %arg8[%c0_3, %c0_4] : memref<1x128xf32, #tpu.memory_space<vmem>>, vector<1x128xf32>
    %c0_5 = arith.constant 0 : index
    %c0_6 = arith.constant 0 : index
    %3 = vector.load %arg9[%c0_5, %c0_6] : memref<1x128xf32, #tpu.memory_space<vmem>>, vector<1x128xf32>
    %c0_7 = arith.constant 0 : index
    %c0_8 = arith.constant 0 : index
    %4 = vector.load %arg5[%c0_7, %c0_8] : memref<1x384xf32, #tpu.memory_space<vmem>>, vector<1x384xf32>
    %c0_9 = arith.constant 0 : index
    %c0_10 = arith.constant 0 : index
    %5 = vector.load %arg7[%c0_9, %c0_10] : memref<1x128xf32, #tpu.memory_space<vmem>>, vector<1x128xf32>
    %c0_11 = arith.constant 0 : index
    %c0_12 = arith.constant 0 : index
    %6 = vector.load %arg11[%c0_11, %c0_12] : memref<1x128xf32, #tpu.memory_space<vmem>>, vector<1x128xf32>
    %c0_13 = arith.constant 0 : index
    %c0_14 = arith.constant 0 : index
    %7 = vector.load %arg15[%c0_13, %c0_14] : memref<1x128xf32, #tpu.memory_space<vmem>>, vector<1x128xf32>
    %c0_15 = arith.constant 0 : index
    %c0_16 = arith.constant 0 : index
    %8 = vector.load %arg12[%c0_15, %c0_16] : memref<9x128xf32, #tpu.memory_space<vmem>>, vector<9x128xf32>
    %9 = vector.extract_strided_slice %8 {offsets = [0, 0], sizes = [1, 128], strides = [1, 1]} : vector<9x128xf32> to vector<1x128xf32>
    %10 = vector.shape_cast %9 : vector<1x128xf32> to vector<1x1x128xf32>
    %11 = vector.extract_strided_slice %8 {offsets = [1, 0], sizes = [1, 128], strides = [1, 1]} : vector<9x128xf32> to vector<1x128xf32>
    %12 = vector.shape_cast %11 : vector<1x128xf32> to vector<1x1x128xf32>
    %13 = vector.extract_strided_slice %8 {offsets = [2, 0], sizes = [1, 128], strides = [1, 1]} : vector<9x128xf32> to vector<1x128xf32>
    %14 = vector.shape_cast %13 : vector<1x128xf32> to vector<1x1x128xf32>
    %15 = vector.extract_strided_slice %8 {offsets = [3, 0], sizes = [1, 128], strides = [1, 1]} : vector<9x128xf32> to vector<1x128xf32>
    %16 = vector.shape_cast %15 : vector<1x128xf32> to vector<1x1x128xf32>
    %17 = vector.extract_strided_slice %8 {offsets = [4, 0], sizes = [1, 128], strides = [1, 1]} : vector<9x128xf32> to vector<1x128xf32>
    %18 = vector.shape_cast %17 : vector<1x128xf32> to vector<1x1x128xf32>
    %19 = vector.extract_strided_slice %8 {offsets = [5, 0], sizes = [1, 128], strides = [1, 1]} : vector<9x128xf32> to vector<1x128xf32>
    %20 = vector.shape_cast %19 : vector<1x128xf32> to vector<1x1x128xf32>
    %21 = vector.extract_strided_slice %8 {offsets = [6, 0], sizes = [1, 128], strides = [1, 1]} : vector<9x128xf32> to vector<1x128xf32>
    %22 = vector.shape_cast %21 : vector<1x128xf32> to vector<1x1x128xf32>
    %23 = vector.extract_strided_slice %8 {offsets = [7, 0], sizes = [1, 128], strides = [1, 1]} : vector<9x128xf32> to vector<1x128xf32>
    %24 = vector.shape_cast %23 : vector<1x128xf32> to vector<1x1x128xf32>
    %25 = vector.extract_strided_slice %8 {offsets = [8, 0], sizes = [1, 128], strides = [1, 1]} : vector<9x128xf32> to vector<1x128xf32>
    %26 = vector.shape_cast %25 : vector<1x128xf32> to vector<1x1x128xf32>
    %c0_17 = arith.constant 0 : index
    %c0_18 = arith.constant 0 : index
    %27 = vector.load %arg13[%c0_17, %c0_18] : memref<1x128xf32, #tpu.memory_space<vmem>>, vector<1x128xf32>
    %28 = vector.shape_cast %27 : vector<1x128xf32> to vector<1x1x128xf32>
    %cst = arith.constant 0.000000e+00 : f32
    %29 = vector.broadcast %cst : f32 to vector<1x10x128xf32>
    %c0_19 = arith.constant 0 : index
    %c0_20 = arith.constant 0 : index
    %c0_21 = arith.constant 0 : index
    %30 = vector.load %arg17[%c0_19, %c0_20, %c0_21] : memref<10x10x128xf32, #tpu.memory_space<vmem>>, vector<1x10x128xf32>
    tpu.vector_store %arg17[%c0_19, %c0_20, %c0_21], %29 {strides = array<i32>} : memref<10x10x128xf32, #tpu.memory_space<vmem>>, vector<1x10x128xf32>,
    %c9 = arith.constant 9 : index
    %c0_22 = arith.constant 0 : index
    %c0_23 = arith.constant 0 : index
    %31 = vector.load %arg17[%c9, %c0_22, %c0_23] : memref<10x10x128xf32, #tpu.memory_space<vmem>>, vector<1x10x128xf32>
    tpu.vector_store %arg17[%c9, %c0_22, %c0_23], %29 {strides = array<i32>} : memref<10x10x128xf32, #tpu.memory_space<vmem>>, vector<1x10x128xf32>,
    %cst_24 = arith.constant 0.000000e+00 : f32
    %32 = vector.broadcast %cst_24 : f32 to vector<8x1x128xf32>
    %c1 = arith.constant 1 : index
    %c0_25 = arith.constant 0 : index
    %c0_26 = arith.constant 0 : index
    %33 = vector.load %arg17[%c1, %c0_25, %c0_26] : memref<10x10x128xf32, #tpu.memory_space<vmem>>, vector<8x1x128xf32>
    tpu.vector_store %arg17[%c1, %c0_25, %c0_26], %32 {strides = array<i32>} : memref<10x10x128xf32, #tpu.memory_space<vmem>>, vector<8x1x128xf32>,
    %c1_27 = arith.constant 1 : index
    %c9_28 = arith.constant 9 : index
    %c0_29 = arith.constant 0 : index
    %34 = vector.load %arg17[%c1_27, %c9_28, %c0_29] : memref<10x10x128xf32, #tpu.memory_space<vmem>>, vector<8x1x128xf32>
    tpu.vector_store %arg17[%c1_27, %c9_28, %c0_29], %32 {strides = array<i32>} : memref<10x10x128xf32, #tpu.memory_space<vmem>>, vector<8x1x128xf32>,
    %c0_30 = arith.constant 0 : index
    %c0_31 = arith.constant 0 : index
    %c0_32 = arith.constant 0 : index
    %35 = vector.load %arg1[%c0_30, %c0_31, %c0_32] : memref<2x64x128xf32, #tpu.memory_space<vmem>>, vector<2x64x128xf32>
    %36 = vector.shape_cast %35 : vector<2x64x128xf32> to vector<128x128xf32>
    %cst_33 = arith.constant dense<0.000000e+00> : vector<128xf32>
    %37 = vector.multi_reduction <add>, %36, %cst_33 [1] : vector<128x128xf32> to vector<128xf32>
    %38 = vector.shape_cast %37 : vector<128xf32> to vector<128x1xf32>
    %39 = arith.mulf %36, %36 : vector<128x128xf32>
    %cst_34 = arith.constant dense<0.000000e+00> : vector<128xf32>
    %40 = vector.multi_reduction <add>, %39, %cst_34 [1] : vector<128x128xf32> to vector<128xf32>
    %41 = vector.shape_cast %40 : vector<128xf32> to vector<128x1xf32>
    %cst_35 = arith.constant 3.200000e+01 : f32
    %42 = vector.broadcast %cst_35 : f32 to vector<128x1xf32>
    %43 = arith.divf %38, %42 : vector<128x1xf32>
    %cst_36 = arith.constant 3.200000e+01 : f32
    %44 = vector.broadcast %cst_36 : f32 to vector<128x1xf32>
    %45 = arith.divf %41, %44 : vector<128x1xf32>
    %46 = arith.mulf %43, %43 : vector<128x1xf32>
    %47 = arith.subf %45, %46 : vector<128x1xf32>
    %48 = vector.broadcast %43 : vector<128x1xf32> to vector<128x128xf32>
    %49 = arith.subf %36, %48 : vector<128x128xf32>
    %cst_37 = arith.constant 9.99999974E-6 : f32
    %50 = vector.broadcast %cst_37 : f32 to vector<128x1xf32>
    %51 = arith.addf %47, %50 : vector<128x1xf32>
    %52 = math.rsqrt %51 : vector<128x1xf32>
    %53 = vector.broadcast %52 : vector<128x1xf32> to vector<128x128xf32>
    %54 = arith.mulf %49, %53 : vector<128x128xf32>
    %55 = vector.broadcast %0 : vector<1x128xf32> to vector<128x128xf32>
    %56 = arith.mulf %54, %55 : vector<128x128xf32>
    %57 = vector.broadcast %1 : vector<1x128xf32> to vector<128x128xf32>
    %58 = arith.addf %56, %57 : vector<128x128xf32>
    %59 = arith.truncf %58 : vector<128x128xf32> to vector<128x128xbf16>
    %c0_38 = arith.constant 0 : index
    %c0_39 = arith.constant 0 : index
    %60 = vector.load %arg4[%c0_38, %c0_39] : memref<128x384xbf16, #tpu.memory_space<vmem>>, vector<128x384xbf16>
    %cst_40 = arith.constant dense<0.000000e+00> : vector<128x384xf32>
    %61 = tpu.matmul %59, %60, %cst_40 {dimension_numbers = #tpu.dot_dimension_numbers<[1], [0], [0], [1], [0, 0, 1, 1], [], []>} : vector<128x128xbf16>, vector<128x384xbf16>, vector<128x384xf32> -> vector<128x384xf32>
    %62 = vector.broadcast %4 : vector<1x384xf32> to vector<128x384xf32>
    %63 = arith.addf %61, %62 : vector<128x384xf32>
    %64 = vector.extract_strided_slice %63 {offsets = [0, 0], sizes = [128, 128], strides = [1, 1]} : vector<128x384xf32> to vector<128x128xf32>
    %65 = vector.extract_strided_slice %63 {offsets = [0, 128], sizes = [128, 128], strides = [1, 1]} : vector<128x384xf32> to vector<128x128xf32>
    %66 = vector.extract_strided_slice %63 {offsets = [0, 256], sizes = [128, 128], strides = [1, 1]} : vector<128x384xf32> to vector<128x128xf32>
    %67 = vector.shape_cast %64 : vector<128x128xf32> to vector<2x64x128xf32>
    %68 = vector.shape_cast %66 : vector<128x128xf32> to vector<2x64x128xf32>
    %cst_41 = arith.constant dense<0xFF800000> : vector<2x128xf32>
    %69 = vector.multi_reduction <maximumf>, %67, %cst_41 [1] : vector<2x64x128xf32> to vector<2x128xf32>
    %70 = vector.shape_cast %69 : vector<2x128xf32> to vector<2x1x128xf32>
    %71 = vector.broadcast %70 : vector<2x1x128xf32> to vector<2x64x128xf32>
    %72 = arith.subf %67, %71 : vector<2x64x128xf32>
    %73 = math.exp %72 : vector<2x64x128xf32>
    %cst_42 = arith.constant dense<0.000000e+00> : vector<2x128xf32>
    %74 = vector.multi_reduction <add>, %73, %cst_42 [1] : vector<2x64x128xf32> to vector<2x128xf32>
    %75 = vector.shape_cast %74 : vector<2x128xf32> to vector<2x1x128xf32>
    %cst_43 = arith.constant dense<0xFF800000> : vector<128xf32>
    %76 = vector.multi_reduction <maximumf>, %65, %cst_43 [1] : vector<128x128xf32> to vector<128xf32>
    %77 = vector.shape_cast %76 : vector<128xf32> to vector<128x1xf32>
    %78 = vector.broadcast %77 : vector<128x1xf32> to vector<128x128xf32>
    %79 = arith.subf %65, %78 : vector<128x128xf32>
    %80 = math.exp %79 : vector<128x128xf32>
    %cst_44 = arith.constant dense<0.000000e+00> : vector<128xf32>
    %81 = vector.multi_reduction <add>, %80, %cst_44 [1] : vector<128x128xf32> to vector<128xf32>
    %82 = vector.shape_cast %81 : vector<128xf32> to vector<128x1xf32>
    %83 = arith.truncf %73 : vector<2x64x128xf32> to vector<2x64x128xbf16>
    %84 = arith.truncf %68 : vector<2x64x128xf32> to vector<2x64x128xbf16>
    "tpu.trace_start"() <{level = 10 : i32, message = "bnk,bnv->bkv"}> : () -> ()
    %cst_45 = arith.constant dense<0.000000e+00> : vector<2x128x128xf32>
    %85 = tpu.matmul %83, %84, %cst_45 {dimension_numbers = #tpu.dot_dimension_numbers<[1], [1], [2], [2], [0, 0, 0, 2, 1, 2], [0], [0]>} : vector<2x64x128xbf16>, vector<2x64x128xbf16>, vector<2x128x128xf32> -> vector<2x128x128xf32>
    "tpu.trace_stop"() : () -> ()
    %86 = vector.shape_cast %80 : vector<128x128xf32> to vector<2x64x128xf32>
    %87 = tpu.reciprocal %75 {approx = true} : vector<2x1x128xf32> -> vector<2x1x128xf32>
    %88 = vector.broadcast %87 : vector<2x1x128xf32> to vector<2x64x128xf32>
    %89 = arith.mulf %86, %88 : vector<2x64x128xf32>
    %90 = arith.truncf %89 : vector<2x64x128xf32> to vector<2x64x128xbf16>
    %91 = arith.truncf %85 : vector<2x128x128xf32> to vector<2x128x128xbf16>
    "tpu.trace_start"() <{level = 10 : i32, message = "bnk,bkv->bnv"}> : () -> ()
    %cst_46 = arith.constant dense<0.000000e+00> : vector<2x64x128xf32>
    %92 = tpu.matmul %90, %91, %cst_46 {dimension_numbers = #tpu.dot_dimension_numbers<[2], [1], [1], [2], [0, 0, 0, 1, 1, 2], [0], [0]>} : vector<2x64x128xbf16>, vector<2x128x128xbf16>, vector<2x64x128xf32> -> vector<2x64x128xf32>
    "tpu.trace_stop"() : () -> ()
    %93 = vector.shape_cast %92 : vector<2x64x128xf32> to vector<128x128xf32>
    %94 = tpu.reciprocal %82 {approx = true} : vector<128x1xf32> -> vector<128x1xf32>
    %95 = vector.broadcast %94 : vector<128x1xf32> to vector<128x128xf32>
    %96 = arith.mulf %93, %95 : vector<128x128xf32>
    %97 = arith.truncf %96 : vector<128x128xf32> to vector<128x128xbf16>
    %c0_47 = arith.constant 0 : index
    %c0_48 = arith.constant 0 : index
    %98 = vector.load %arg6[%c0_47, %c0_48] : memref<128x128xbf16, #tpu.memory_space<vmem>>, vector<128x128xbf16>
    %cst_49 = arith.constant dense<0.000000e+00> : vector<128x128xf32>
    %99 = tpu.matmul %97, %98, %cst_49 {dimension_numbers = #tpu.dot_dimension_numbers<[1], [0], [0], [1], [0, 0, 1, 1], [], []>} : vector<128x128xbf16>, vector<128x128xbf16>, vector<128x128xf32> -> vector<128x128xf32>
    %100 = vector.broadcast %5 : vector<1x128xf32> to vector<128x128xf32>
    %101 = arith.addf %99, %100 : vector<128x128xf32>
    %102 = arith.addf %36, %101 : vector<128x128xf32>
    %cst_50 = arith.constant dense<0.000000e+00> : vector<128xf32>
    %103 = vector.multi_reduction <add>, %102, %cst_50 [1] : vector<128x128xf32> to vector<128xf32>
    %104 = vector.shape_cast %103 : vector<128xf32> to vector<128x1xf32>
    %105 = arith.mulf %102, %102 : vector<128x128xf32>
    %cst_51 = arith.constant dense<0.000000e+00> : vector<128xf32>
    %106 = vector.multi_reduction <add>, %105, %cst_51 [1] : vector<128x128xf32> to vector<128xf32>
    %107 = vector.shape_cast %106 : vector<128xf32> to vector<128x1xf32>
    %cst_52 = arith.constant 3.200000e+01 : f32
    %108 = vector.broadcast %cst_52 : f32 to vector<128x1xf32>
    %109 = arith.divf %104, %108 : vector<128x1xf32>
    %cst_53 = arith.constant 3.200000e+01 : f32
    %110 = vector.broadcast %cst_53 : f32 to vector<128x1xf32>
    %111 = arith.divf %107, %110 : vector<128x1xf32>
    %112 = arith.mulf %109, %109 : vector<128x1xf32>
    %113 = arith.subf %111, %112 : vector<128x1xf32>
    %114 = vector.broadcast %109 : vector<128x1xf32> to vector<128x128xf32>
    %115 = arith.subf %102, %114 : vector<128x128xf32>
    %cst_54 = arith.constant 9.99999974E-6 : f32
    %116 = vector.broadcast %cst_54 : f32 to vector<128x1xf32>
    %117 = arith.addf %113, %116 : vector<128x1xf32>
    %118 = math.rsqrt %117 : vector<128x1xf32>
    %119 = vector.broadcast %118 : vector<128x1xf32> to vector<128x128xf32>
    %120 = arith.mulf %115, %119 : vector<128x128xf32>
    %121 = vector.broadcast %2 : vector<1x128xf32> to vector<128x128xf32>
    %122 = arith.mulf %120, %121 : vector<128x128xf32>
    %123 = vector.broadcast %3 : vector<1x128xf32> to vector<128x128xf32>
    %124 = arith.addf %122, %123 : vector<128x128xf32>
    %125 = arith.truncf %124 : vector<128x128xf32> to vector<128x128xbf16>
    %c0_55 = arith.constant 0 : index
    %c0_56 = arith.constant 0 : index
    %126 = vector.load %arg10[%c0_55, %c0_56] : memref<128x128xbf16, #tpu.memory_space<vmem>>, vector<128x128xbf16>
    %cst_57 = arith.constant dense<0.000000e+00> : vector<128x128xf32>
    %127 = tpu.matmul %125, %126, %cst_57 {dimension_numbers = #tpu.dot_dimension_numbers<[1], [0], [0], [1], [0, 0, 1, 1], [], []>} : vector<128x128xbf16>, vector<128x128xbf16>, vector<128x128xf32> -> vector<128x128xf32>
    %128 = vector.broadcast %6 : vector<1x128xf32> to vector<128x128xf32>
    %129 = arith.addf %127, %128 : vector<128x128xf32>
    %130 = vector.shape_cast %129 : vector<128x128xf32> to vector<2x64x128xf32>
    %131 = vector.extract_strided_slice %130 {offsets = [0, 0, 0], sizes = [1, 64, 128], strides = [1, 1, 1]} : vector<2x64x128xf32> to vector<1x64x128xf32>
    %132 = vector.shape_cast %131 : vector<1x64x128xf32> to vector<64x128xf32>
    %133 = vector.shape_cast %132 : vector<64x128xf32> to vector<8x8x128xf32>
    %c1_58 = arith.constant 1 : index
    %c1_59 = arith.constant 1 : index
    %c0_60 = arith.constant 0 : index
    %134 = vector.load %arg17[%c1_58, %c1_59, %c0_60] : memref<10x10x128xf32, #tpu.memory_space<vmem>>, vector<8x8x128xf32>
    tpu.vector_store %arg17[%c1_58, %c1_59, %c0_60], %133 {strides = array<i32>} : memref<10x10x128xf32, #tpu.memory_space<vmem>>, vector<8x8x128xf32>,
    %c0_61 = arith.constant 0 : index
    %c0_62 = arith.constant 0 : index
    %c0_63 = arith.constant 0 : index
    %135 = vector.load %arg17[%c0_61, %c0_62, %c0_63] : memref<10x10x128xf32, #tpu.memory_space<vmem>>, vector<10x8x128xf32>
    %c0_64 = arith.constant 0 : index
    %c1_65 = arith.constant 1 : index
    %c0_66 = arith.constant 0 : index
    %136 = vector.load %arg17[%c0_64, %c1_65, %c0_66] : memref<10x10x128xf32, #tpu.memory_space<vmem>>, vector<10x8x128xf32>
    %c0_67 = arith.constant 0 : index
    %c2 = arith.constant 2 : index
    %c0_68 = arith.constant 0 : index
    %137 = vector.load %arg17[%c0_67, %c2, %c0_68] : memref<10x10x128xf32, #tpu.memory_space<vmem>>, vector<10x8x128xf32>
    %138 = vector.extract_strided_slice %135 {offsets = [0, 0, 0], sizes = [8, 8, 128], strides = [1, 1, 1]} : vector<10x8x128xf32> to vector<8x8x128xf32>
    %139 = vector.broadcast %10 : vector<1x1x128xf32> to vector<8x8x128xf32>
    %140 = arith.mulf %138, %139 : vector<8x8x128xf32>
    %141 = vector.extract_strided_slice %136 {offsets = [0, 0, 0], sizes = [8, 8, 128], strides = [1, 1, 1]} : vector<10x8x128xf32> to vector<8x8x128xf32>
    %142 = vector.broadcast %12 : vector<1x1x128xf32> to vector<8x8x128xf32>
    %143 = arith.mulf %141, %142 : vector<8x8x128xf32>
    %144 = arith.addf %140, %143 : vector<8x8x128xf32>
    %145 = vector.extract_strided_slice %137 {offsets = [0, 0, 0], sizes = [8, 8, 128], strides = [1, 1, 1]} : vector<10x8x128xf32> to vector<8x8x128xf32>
    %146 = vector.broadcast %14 : vector<1x1x128xf32> to vector<8x8x128xf32>
    %147 = arith.mulf %145, %146 : vector<8x8x128xf32>
    %148 = arith.addf %144, %147 : vector<8x8x128xf32>
    %149 = vector.extract_strided_slice %135 {offsets = [1, 0, 0], sizes = [8, 8, 128], strides = [1, 1, 1]} : vector<10x8x128xf32> to vector<8x8x128xf32>
    %150 = vector.broadcast %16 : vector<1x1x128xf32> to vector<8x8x128xf32>
    %151 = arith.mulf %149, %150 : vector<8x8x128xf32>
    %152 = arith.addf %148, %151 : vector<8x8x128xf32>
    %153 = vector.extract_strided_slice %136 {offsets = [1, 0, 0], sizes = [8, 8, 128], strides = [1, 1, 1]} : vector<10x8x128xf32> to vector<8x8x128xf32>
    %154 = vector.broadcast %18 : vector<1x1x128xf32> to vector<8x8x128xf32>
    %155 = arith.mulf %153, %154 : vector<8x8x128xf32>
    %156 = arith.addf %152, %155 : vector<8x8x128xf32>
    %157 = vector.extract_strided_slice %137 {offsets = [1, 0, 0], sizes = [8, 8, 128], strides = [1, 1, 1]} : vector<10x8x128xf32> to vector<8x8x128xf32>
    %158 = vector.broadcast %20 : vector<1x1x128xf32> to vector<8x8x128xf32>
    %159 = arith.mulf %157, %158 : vector<8x8x128xf32>
    %160 = arith.addf %156, %159 : vector<8x8x128xf32>
    %161 = vector.extract_strided_slice %135 {offsets = [2, 0, 0], sizes = [8, 8, 128], strides = [1, 1, 1]} : vector<10x8x128xf32> to vector<8x8x128xf32>
    %162 = vector.broadcast %22 : vector<1x1x128xf32> to vector<8x8x128xf32>
    %163 = arith.mulf %161, %162 : vector<8x8x128xf32>
    %164 = arith.addf %160, %163 : vector<8x8x128xf32>
    %165 = vector.extract_strided_slice %136 {offsets = [2, 0, 0], sizes = [8, 8, 128], strides = [1, 1, 1]} : vector<10x8x128xf32> to vector<8x8x128xf32>
    %166 = vector.broadcast %24 : vector<1x1x128xf32> to vector<8x8x128xf32>
    %167 = arith.mulf %165, %166 : vector<8x8x128xf32>
    %168 = arith.addf %164, %167 : vector<8x8x128xf32>
    %169 = vector.extract_strided_slice %137 {offsets = [2, 0, 0], sizes = [8, 8, 128], strides = [1, 1, 1]} : vector<10x8x128xf32> to vector<8x8x128xf32>
    %170 = vector.broadcast %26 : vector<1x1x128xf32> to vector<8x8x128xf32>
    %171 = arith.mulf %169, %170 : vector<8x8x128xf32>
    %172 = arith.addf %168, %171 : vector<8x8x128xf32>
    %173 = vector.broadcast %28 : vector<1x1x128xf32> to vector<8x8x128xf32>
    %174 = arith.addf %172, %173 : vector<8x8x128xf32>
    %175 = arith.mulf %174, %174 : vector<8x8x128xf32>
    %176 = arith.mulf %174, %175 : vector<8x8x128xf32>
    %cst_69 = arith.constant 4.471500e-02 : f32
    %177 = vector.broadcast %cst_69 : f32 to vector<8x8x128xf32>
    %178 = arith.mulf %177, %176 : vector<8x8x128xf32>
    %179 = arith.addf %174, %178 : vector<8x8x128xf32>
    %cst_70 = arith.constant 0.797884583 : f32
    %180 = vector.broadcast %cst_70 : f32 to vector<8x8x128xf32>
    %181 = arith.mulf %180, %179 : vector<8x8x128xf32>
    %182 = math.tanh %181 : vector<8x8x128xf32>
    %cst_71 = arith.constant 1.000000e+00 : f32
    %183 = vector.broadcast %cst_71 : f32 to vector<8x8x128xf32>
    %184 = arith.addf %183, %182 : vector<8x8x128xf32>
    %cst_72 = arith.constant 5.000000e-01 : f32
    %185 = vector.broadcast %cst_72 : f32 to vector<8x8x128xf32>
    %186 = arith.mulf %185, %184 : vector<8x8x128xf32>
    %187 = arith.mulf %174, %186 : vector<8x8x128xf32>
    %188 = vector.shape_cast %187 : vector<8x8x128xf32> to vector<64x128xf32>
    %189 = vector.extract_strided_slice %130 {offsets = [1, 0, 0], sizes = [1, 64, 128], strides = [1, 1, 1]} : vector<2x64x128xf32> to vector<1x64x128xf32>
    %190 = vector.shape_cast %189 : vector<1x64x128xf32> to vector<64x128xf32>
    %191 = vector.shape_cast %190 : vector<64x128xf32> to vector<8x8x128xf32>
    %c1_73 = arith.constant 1 : index
    %c1_74 = arith.constant 1 : index
    %c0_75 = arith.constant 0 : index
    %192 = vector.load %arg17[%c1_73, %c1_74, %c0_75] : memref<10x10x128xf32, #tpu.memory_space<vmem>>, vector<8x8x128xf32>
    tpu.vector_store %arg17[%c1_73, %c1_74, %c0_75], %191 {strides = array<i32>} : memref<10x10x128xf32, #tpu.memory_space<vmem>>, vector<8x8x128xf32>,
    %c0_76 = arith.constant 0 : index
    %c0_77 = arith.constant 0 : index
    %c0_78 = arith.constant 0 : index
    %193 = vector.load %arg17[%c0_76, %c0_77, %c0_78] : memref<10x10x128xf32, #tpu.memory_space<vmem>>, vector<10x8x128xf32>
    %c0_79 = arith.constant 0 : index
    %c1_80 = arith.constant 1 : index
    %c0_81 = arith.constant 0 : index
    %194 = vector.load %arg17[%c0_79, %c1_80, %c0_81] : memref<10x10x128xf32, #tpu.memory_space<vmem>>, vector<10x8x128xf32>
    %c0_82 = arith.constant 0 : index
    %c2_83 = arith.constant 2 : index
    %c0_84 = arith.constant 0 : index
    %195 = vector.load %arg17[%c0_82, %c2_83, %c0_84] : memref<10x10x128xf32, #tpu.memory_space<vmem>>, vector<10x8x128xf32>
    %196 = vector.extract_strided_slice %193 {offsets = [0, 0, 0], sizes = [8, 8, 128], strides = [1, 1, 1]} : vector<10x8x128xf32> to vector<8x8x128xf32>
    %197 = vector.broadcast %10 : vector<1x1x128xf32> to vector<8x8x128xf32>
    %198 = arith.mulf %196, %197 : vector<8x8x128xf32>
    %199 = vector.extract_strided_slice %194 {offsets = [0, 0, 0], sizes = [8, 8, 128], strides = [1, 1, 1]} : vector<10x8x128xf32> to vector<8x8x128xf32>
    %200 = vector.broadcast %12 : vector<1x1x128xf32> to vector<8x8x128xf32>
    %201 = arith.mulf %199, %200 : vector<8x8x128xf32>
    %202 = arith.addf %198, %201 : vector<8x8x128xf32>
    %203 = vector.extract_strided_slice %195 {offsets = [0, 0, 0], sizes = [8, 8, 128], strides = [1, 1, 1]} : vector<10x8x128xf32> to vector<8x8x128xf32>
    %204 = vector.broadcast %14 : vector<1x1x128xf32> to vector<8x8x128xf32>
    %205 = arith.mulf %203, %204 : vector<8x8x128xf32>
    %206 = arith.addf %202, %205 : vector<8x8x128xf32>
    %207 = vector.extract_strided_slice %193 {offsets = [1, 0, 0], sizes = [8, 8, 128], strides = [1, 1, 1]} : vector<10x8x128xf32> to vector<8x8x128xf32>
    %208 = vector.broadcast %16 : vector<1x1x128xf32> to vector<8x8x128xf32>
    %209 = arith.mulf %207, %208 : vector<8x8x128xf32>
    %210 = arith.addf %206, %209 : vector<8x8x128xf32>
    %211 = vector.extract_strided_slice %194 {offsets = [1, 0, 0], sizes = [8, 8, 128], strides = [1, 1, 1]} : vector<10x8x128xf32> to vector<8x8x128xf32>
    %212 = vector.broadcast %18 : vector<1x1x128xf32> to vector<8x8x128xf32>
    %213 = arith.mulf %211, %212 : vector<8x8x128xf32>
    %214 = arith.addf %210, %213 : vector<8x8x128xf32>
    %215 = vector.extract_strided_slice %195 {offsets = [1, 0, 0], sizes = [8, 8, 128], strides = [1, 1, 1]} : vector<10x8x128xf32> to vector<8x8x128xf32>
    %216 = vector.broadcast %20 : vector<1x1x128xf32> to vector<8x8x128xf32>
    %217 = arith.mulf %215, %216 : vector<8x8x128xf32>
    %218 = arith.addf %214, %217 : vector<8x8x128xf32>
    %219 = vector.extract_strided_slice %193 {offsets = [2, 0, 0], sizes = [8, 8, 128], strides = [1, 1, 1]} : vector<10x8x128xf32> to vector<8x8x128xf32>
    %220 = vector.broadcast %22 : vector<1x1x128xf32> to vector<8x8x128xf32>
    %221 = arith.mulf %219, %220 : vector<8x8x128xf32>
    %222 = arith.addf %218, %221 : vector<8x8x128xf32>
    %223 = vector.extract_strided_slice %194 {offsets = [2, 0, 0], sizes = [8, 8, 128], strides = [1, 1, 1]} : vector<10x8x128xf32> to vector<8x8x128xf32>
    %224 = vector.broadcast %24 : vector<1x1x128xf32> to vector<8x8x128xf32>
    %225 = arith.mulf %223, %224 : vector<8x8x128xf32>
    %226 = arith.addf %222, %225 : vector<8x8x128xf32>
    %227 = vector.extract_strided_slice %195 {offsets = [2, 0, 0], sizes = [8, 8, 128], strides = [1, 1, 1]} : vector<10x8x128xf32> to vector<8x8x128xf32>
    %228 = vector.broadcast %26 : vector<1x1x128xf32> to vector<8x8x128xf32>
    %229 = arith.mulf %227, %228 : vector<8x8x128xf32>
    %230 = arith.addf %226, %229 : vector<8x8x128xf32>
    %231 = vector.broadcast %28 : vector<1x1x128xf32> to vector<8x8x128xf32>
    %232 = arith.addf %230, %231 : vector<8x8x128xf32>
    %233 = arith.mulf %232, %232 : vector<8x8x128xf32>
    %234 = arith.mulf %232, %233 : vector<8x8x128xf32>
    %cst_85 = arith.constant 4.471500e-02 : f32
    %235 = vector.broadcast %cst_85 : f32 to vector<8x8x128xf32>
    %236 = arith.mulf %235, %234 : vector<8x8x128xf32>
    %237 = arith.addf %232, %236 : vector<8x8x128xf32>
    %cst_86 = arith.constant 0.797884583 : f32
    %238 = vector.broadcast %cst_86 : f32 to vector<8x8x128xf32>
    %239 = arith.mulf %238, %237 : vector<8x8x128xf32>
    %240 = math.tanh %239 : vector<8x8x128xf32>
    %cst_87 = arith.constant 1.000000e+00 : f32
    %241 = vector.broadcast %cst_87 : f32 to vector<8x8x128xf32>
    %242 = arith.addf %241, %240 : vector<8x8x128xf32>
    %cst_88 = arith.constant 5.000000e-01 : f32
    %243 = vector.broadcast %cst_88 : f32 to vector<8x8x128xf32>
    %244 = arith.mulf %243, %242 : vector<8x8x128xf32>
    %245 = arith.mulf %232, %244 : vector<8x8x128xf32>
    %246 = vector.shape_cast %245 : vector<8x8x128xf32> to vector<64x128xf32>
    %247 = tpu.concatenate %188, %246 in 0 : vector<64x128xf32>, vector<64x128xf32> -> vector<128x128xf32>
    %248 = arith.truncf %247 : vector<128x128xf32> to vector<128x128xbf16>
    %c0_89 = arith.constant 0 : index
    %c0_90 = arith.constant 0 : index
    %249 = vector.load %arg14[%c0_89, %c0_90] : memref<128x128xbf16, #tpu.memory_space<vmem>>, vector<128x128xbf16>
    %cst_91 = arith.constant dense<0.000000e+00> : vector<128x128xf32>
    %250 = tpu.matmul %248, %249, %cst_91 {dimension_numbers = #tpu.dot_dimension_numbers<[1], [0], [0], [1], [0, 0, 1, 1], [], []>} : vector<128x128xbf16>, vector<128x128xbf16>, vector<128x128xf32> -> vector<128x128xf32>
    %251 = vector.broadcast %7 : vector<1x128xf32> to vector<128x128xf32>
    %252 = arith.addf %250, %251 : vector<128x128xf32>
    %253 = arith.addf %102, %252 : vector<128x128xf32>
    %254 = vector.shape_cast %253 : vector<128x128xf32> to vector<2x64x128xf32>
    %c0_92 = arith.constant 0 : index
    %c0_93 = arith.constant 0 : index
    %c0_94 = arith.constant 0 : index
    %255 = vector.load %arg16[%c0_92, %c0_93, %c0_94] : memref<2x64x128xf32, #tpu.memory_space<vmem>>, vector<2x64x128xf32>
    tpu.vector_store %arg16[%c0_92, %c0_93, %c0_94], %254 {strides = array<i32>} : memref<2x64x128xf32, #tpu.memory_space<vmem>>, vector<2x64x128xf32>,
    return
  }
  func.func @transform_0(%arg0: i32) -> (i32, i32, i32) {
    %c0_i32 = arith.constant 0 : i32
    %c0_i32_0 = arith.constant 0 : i32
    %c0_i32_1 = arith.constant 0 : i32
    return %arg0, %c0_i32, %c0_i32_0 : i32, i32, i32
  }
  func.func @transform_1(%arg0: i32) -> (i32, i32) {
    %c0_i32 = arith.constant 0 : i32
    %c0_i32_0 = arith.constant 0 : i32
    %c0_i32_1 = arith.constant 0 : i32
    return %c0_i32, %c0_i32_0 : i32, i32
  }
  func.func @transform_2(%arg0: i32) -> (i32, i32) {
    %c0_i32 = arith.constant 0 : i32
    %c0_i32_0 = arith.constant 0 : i32
    %c0_i32_1 = arith.constant 0 : i32
    return %c0_i32, %c0_i32_0 : i32, i32
  }
  func.func @transform_3(%arg0: i32) -> (i32, i32) {
    %c0_i32 = arith.constant 0 : i32
    %c0_i32_0 = arith.constant 0 : i32
    %c0_i32_1 = arith.constant 0 : i32
    return %c0_i32, %c0_i32_0 : i32, i32
  }
  func.func @transform_4(%arg0: i32) -> (i32, i32) {
    %c0_i32 = arith.constant 0 : i32
    %c0_i32_0 = arith.constant 0 : i32
    %c0_i32_1 = arith.constant 0 : i32
    return %c0_i32, %c0_i32_0 : i32, i32
  }
  func.func @transform_5(%arg0: i32) -> (i32, i32) {
    %c0_i32 = arith.constant 0 : i32
    %c0_i32_0 = arith.constant 0 : i32
    %c0_i32_1 = arith.constant 0 : i32
    return %c0_i32, %c0_i32_0 : i32, i32
  }
  func.func @transform_6(%arg0: i32) -> (i32, i32) {
    %c0_i32 = arith.constant 0 : i32
    %c0_i32_0 = arith.constant 0 : i32
    %c0_i32_1 = arith.constant 0 : i32
    return %c0_i32, %c0_i32_0 : i32, i32
  }
  func.func @transform_7(%arg0: i32) -> (i32, i32) {
    %c0_i32 = arith.constant 0 : i32
    %c0_i32_0 = arith.constant 0 : i32
    %c0_i32_1 = arith.constant 0 : i32
    return %c0_i32, %c0_i32_0 : i32, i32
  }
  func.func @transform_8(%arg0: i32) -> (i32, i32) {
    %c0_i32 = arith.constant 0 : i32
    %c0_i32_0 = arith.constant 0 : i32
    %c0_i32_1 = arith.constant 0 : i32
    return %c0_i32, %c0_i32_0 : i32, i32
  }
  func.func @transform_9(%arg0: i32) -> (i32, i32) {
    %c0_i32 = arith.constant 0 : i32
    %c0_i32_0 = arith.constant 0 : i32
    %c0_i32_1 = arith.constant 0 : i32
    return %c0_i32, %c0_i32_0 : i32, i32
  }
  func.func @transform_10(%arg0: i32) -> (i32, i32) {
    %c0_i32 = arith.constant 0 : i32
    %c0_i32_0 = arith.constant 0 : i32
    %c0_i32_1 = arith.constant 0 : i32
    return %c0_i32, %c0_i32_0 : i32, i32
  }
  func.func @transform_11(%arg0: i32) -> (i32, i32) {
    %c0_i32 = arith.constant 0 : i32
    %c0_i32_0 = arith.constant 0 : i32
    %c0_i32_1 = arith.constant 0 : i32
    return %c0_i32, %c0_i32_0 : i32, i32
  }
  func.func @transform_12(%arg0: i32) -> (i32, i32) {
    %c0_i32 = arith.constant 0 : i32
    %c0_i32_0 = arith.constant 0 : i32
    %c0_i32_1 = arith.constant 0 : i32
    return %c0_i32, %c0_i32_0 : i32, i32
  }
  func.func @transform_13(%arg0: i32) -> (i32, i32) {
    %c0_i32 = arith.constant 0 : i32
    %c0_i32_0 = arith.constant 0 : i32
    %c0_i32_1 = arith.constant 0 : i32
    return %c0_i32, %c0_i32_0 : i32, i32
  }
  func.func @transform_14(%arg0: i32) -> (i32, i32) {
    %c0_i32 = arith.constant 0 : i32
    %c0_i32_0 = arith.constant 0 : i32
    %c0_i32_1 = arith.constant 0 : i32
    return %c0_i32, %c0_i32_0 : i32, i32
  }
  func.func @transform_15(%arg0: i32) -> (i32, i32, i32) {
    %c0_i32 = arith.constant 0 : i32
    %c0_i32_0 = arith.constant 0 : i32
    %c0_i32_1 = arith.constant 0 : i32
    return %arg0, %c0_i32, %c0_i32_0 : i32, i32, i32
  }
}

module attributes {stable_mosaic.version = 11 : i64} {
  func.func @block_kernel(%arg0: i32, %arg1: memref<2x64x128xf32, #tpu.memory_space<vmem>>, %arg2: memref<1x128xf32, #tpu.memory_space<vmem>>, %arg3: memref<1x128xf32, #tpu.memory_space<vmem>>, %arg4: memref<128x384xbf16, #tpu.memory_space<vmem>>, %arg5: memref<1x384xf32, #tpu.memory_space<vmem>>, %arg6: memref<128x128xbf16, #tpu.memory_space<vmem>>, %arg7: memref<1x128xf32, #tpu.memory_space<vmem>>, %arg8: memref<1x128xf32, #tpu.memory_space<vmem>>, %arg9: memref<1x128xf32, #tpu.memory_space<vmem>>, %arg10: memref<128x128xbf16, #tpu.memory_space<vmem>>, %arg11: memref<1x128xf32, #tpu.memory_space<vmem>>, %arg12: memref<9x128xf32, #tpu.memory_space<vmem>>, %arg13: memref<1x128xf32, #tpu.memory_space<vmem>>, %arg14: memref<128x128xbf16, #tpu.memory_space<vmem>>, %arg15: memref<1x128xf32, #tpu.memory_space<vmem>>, %arg16: memref<2x64x128xf32, #tpu.memory_space<vmem>>, %arg17: memref<10x10x128xf32, #tpu.memory_space<vmem>>) attributes {dimension_semantics = [#tpu.dimension_semantics<parallel>], iteration_bounds = array<i64: 1>, scalar_prefetch = 0 : i64, scratch_operands = 1 : i64, tpu.core_type = #tpu.core_type<tc>, window_params = [{transform_indices = @transform_0, window_bounds = array<i64: 2, 64, 128>}, {pipeline_mode = #tpu.pipeline_mode<synchronous>, transform_indices = @transform_1, window_bounds = array<i64: 1, 128>}, {pipeline_mode = #tpu.pipeline_mode<synchronous>, transform_indices = @transform_2, window_bounds = array<i64: 1, 128>}, {pipeline_mode = #tpu.pipeline_mode<synchronous>, transform_indices = @transform_3, window_bounds = array<i64: 128, 384>}, {pipeline_mode = #tpu.pipeline_mode<synchronous>, transform_indices = @transform_4, window_bounds = array<i64: 1, 384>}, {pipeline_mode = #tpu.pipeline_mode<synchronous>, transform_indices = @transform_5, window_bounds = array<i64: 128, 128>}, {pipeline_mode = #tpu.pipeline_mode<synchronous>, transform_indices = @transform_6, window_bounds = array<i64: 1, 128>}, {pipeline_mode = #tpu.pipeline_mode<synchronous>, transform_indices = @transform_7, window_bounds = array<i64: 1, 128>}, {pipeline_mode = #tpu.pipeline_mode<synchronous>, transform_indices = @transform_8, window_bounds = array<i64: 1, 128>}, {pipeline_mode = #tpu.pipeline_mode<synchronous>, transform_indices = @transform_9, window_bounds = array<i64: 128, 128>}, {pipeline_mode = #tpu.pipeline_mode<synchronous>, transform_indices = @transform_10, window_bounds = array<i64: 1, 128>}, {pipeline_mode = #tpu.pipeline_mode<synchronous>, transform_indices = @transform_11, window_bounds = array<i64: 9, 128>}, {pipeline_mode = #tpu.pipeline_mode<synchronous>, transform_indices = @transform_12, window_bounds = array<i64: 1, 128>}, {pipeline_mode = #tpu.pipeline_mode<synchronous>, transform_indices = @transform_13, window_bounds = array<i64: 128, 128>}, {pipeline_mode = #tpu.pipeline_mode<synchronous>, transform_indices = @transform_14, window_bounds = array<i64: 1, 128>}, {transform_indices = @transform_15, window_bounds = array<i64: 2, 64, 128>}]} {
    %c0 = arith.constant 0 : index
    %c0_0 = arith.constant 0 : index
    %0 = vector.load %arg2[%c0, %c0_0] : memref<1x128xf32, #tpu.memory_space<vmem>>, vector<1x128xf32>
    %c0_1 = arith.constant 0 : index
    %c0_2 = arith.constant 0 : index
    %1 = vector.load %arg3[%c0_1, %c0_2] : memref<1x128xf32, #tpu.memory_space<vmem>>, vector<1x128xf32>
    %c0_3 = arith.constant 0 : index
    %c0_4 = arith.constant 0 : index
    %2 = vector.load %arg8[%c0_3, %c0_4] : memref<1x128xf32, #tpu.memory_space<vmem>>, vector<1x128xf32>
    %c0_5 = arith.constant 0 : index
    %c0_6 = arith.constant 0 : index
    %3 = vector.load %arg9[%c0_5, %c0_6] : memref<1x128xf32, #tpu.memory_space<vmem>>, vector<1x128xf32>
    %c0_7 = arith.constant 0 : index
    %c0_8 = arith.constant 0 : index
    %4 = vector.load %arg5[%c0_7, %c0_8] : memref<1x384xf32, #tpu.memory_space<vmem>>, vector<1x384xf32>
    %c0_9 = arith.constant 0 : index
    %c0_10 = arith.constant 0 : index
    %5 = vector.load %arg7[%c0_9, %c0_10] : memref<1x128xf32, #tpu.memory_space<vmem>>, vector<1x128xf32>
    %c0_11 = arith.constant 0 : index
    %c0_12 = arith.constant 0 : index
    %6 = vector.load %arg11[%c0_11, %c0_12] : memref<1x128xf32, #tpu.memory_space<vmem>>, vector<1x128xf32>
    %c0_13 = arith.constant 0 : index
    %c0_14 = arith.constant 0 : index
    %7 = vector.load %arg15[%c0_13, %c0_14] : memref<1x128xf32, #tpu.memory_space<vmem>>, vector<1x128xf32>
    %c0_15 = arith.constant 0 : index
    %c0_16 = arith.constant 0 : index
    %8 = vector.load %arg12[%c0_15, %c0_16] : memref<9x128xf32, #tpu.memory_space<vmem>>, vector<9x128xf32>
    %9 = vector.extract_strided_slice %8 {offsets = [0, 0], sizes = [1, 128], strides = [1, 1]} : vector<9x128xf32> to vector<1x128xf32>
    %10 = vector.shape_cast %9 : vector<1x128xf32> to vector<1x1x128xf32>
    %11 = vector.extract_strided_slice %8 {offsets = [1, 0], sizes = [1, 128], strides = [1, 1]} : vector<9x128xf32> to vector<1x128xf32>
    %12 = vector.shape_cast %11 : vector<1x128xf32> to vector<1x1x128xf32>
    %13 = vector.extract_strided_slice %8 {offsets = [2, 0], sizes = [1, 128], strides = [1, 1]} : vector<9x128xf32> to vector<1x128xf32>
    %14 = vector.shape_cast %13 : vector<1x128xf32> to vector<1x1x128xf32>
    %15 = vector.extract_strided_slice %8 {offsets = [3, 0], sizes = [1, 128], strides = [1, 1]} : vector<9x128xf32> to vector<1x128xf32>
    %16 = vector.shape_cast %15 : vector<1x128xf32> to vector<1x1x128xf32>
    %17 = vector.extract_strided_slice %8 {offsets = [4, 0], sizes = [1, 128], strides = [1, 1]} : vector<9x128xf32> to vector<1x128xf32>
    %18 = vector.shape_cast %17 : vector<1x128xf32> to vector<1x1x128xf32>
    %19 = vector.extract_strided_slice %8 {offsets = [5, 0], sizes = [1, 128], strides = [1, 1]} : vector<9x128xf32> to vector<1x128xf32>
    %20 = vector.shape_cast %19 : vector<1x128xf32> to vector<1x1x128xf32>
    %21 = vector.extract_strided_slice %8 {offsets = [6, 0], sizes = [1, 128], strides = [1, 1]} : vector<9x128xf32> to vector<1x128xf32>
    %22 = vector.shape_cast %21 : vector<1x128xf32> to vector<1x1x128xf32>
    %23 = vector.extract_strided_slice %8 {offsets = [7, 0], sizes = [1, 128], strides = [1, 1]} : vector<9x128xf32> to vector<1x128xf32>
    %24 = vector.shape_cast %23 : vector<1x128xf32> to vector<1x1x128xf32>
    %25 = vector.extract_strided_slice %8 {offsets = [8, 0], sizes = [1, 128], strides = [1, 1]} : vector<9x128xf32> to vector<1x128xf32>
    %26 = vector.shape_cast %25 : vector<1x128xf32> to vector<1x1x128xf32>
    %c0_17 = arith.constant 0 : index
    %c0_18 = arith.constant 0 : index
    %27 = vector.load %arg13[%c0_17, %c0_18] : memref<1x128xf32, #tpu.memory_space<vmem>>, vector<1x128xf32>
    %28 = vector.shape_cast %27 : vector<1x128xf32> to vector<1x1x128xf32>
    %cst = arith.constant 0.000000e+00 : f32
    %29 = vector.broadcast %cst : f32 to vector<1x10x128xf32>
    %c0_19 = arith.constant 0 : index
    %c0_20 = arith.constant 0 : index
    %c0_21 = arith.constant 0 : index
    %30 = vector.load %arg17[%c0_19, %c0_20, %c0_21] : memref<10x10x128xf32, #tpu.memory_space<vmem>>, vector<1x10x128xf32>
    tpu.vector_store %arg17[%c0_19, %c0_20, %c0_21], %29 {strides = array<i32>} : memref<10x10x128xf32, #tpu.memory_space<vmem>>, vector<1x10x128xf32>,
    %c9 = arith.constant 9 : index
    %c0_22 = arith.constant 0 : index
    %c0_23 = arith.constant 0 : index
    %31 = vector.load %arg17[%c9, %c0_22, %c0_23] : memref<10x10x128xf32, #tpu.memory_space<vmem>>, vector<1x10x128xf32>
    tpu.vector_store %arg17[%c9, %c0_22, %c0_23], %29 {strides = array<i32>} : memref<10x10x128xf32, #tpu.memory_space<vmem>>, vector<1x10x128xf32>,
    %cst_24 = arith.constant 0.000000e+00 : f32
    %32 = vector.broadcast %cst_24 : f32 to vector<8x1x128xf32>
    %c1 = arith.constant 1 : index
    %c0_25 = arith.constant 0 : index
    %c0_26 = arith.constant 0 : index
    %33 = vector.load %arg17[%c1, %c0_25, %c0_26] : memref<10x10x128xf32, #tpu.memory_space<vmem>>, vector<8x1x128xf32>
    tpu.vector_store %arg17[%c1, %c0_25, %c0_26], %32 {strides = array<i32>} : memref<10x10x128xf32, #tpu.memory_space<vmem>>, vector<8x1x128xf32>,
    %c1_27 = arith.constant 1 : index
    %c9_28 = arith.constant 9 : index
    %c0_29 = arith.constant 0 : index
    %34 = vector.load %arg17[%c1_27, %c9_28, %c0_29] : memref<10x10x128xf32, #tpu.memory_space<vmem>>, vector<8x1x128xf32>
    tpu.vector_store %arg17[%c1_27, %c9_28, %c0_29], %32 {strides = array<i32>} : memref<10x10x128xf32, #tpu.memory_space<vmem>>, vector<8x1x128xf32>,
    %c0_30 = arith.constant 0 : index
    %c0_31 = arith.constant 0 : index
    %c0_32 = arith.constant 0 : index
    %35 = vector.load %arg1[%c0_30, %c0_31, %c0_32] : memref<2x64x128xf32, #tpu.memory_space<vmem>>, vector<2x64x128xf32>
    %36 = vector.shape_cast %35 : vector<2x64x128xf32> to vector<128x128xf32>
    %cst_33 = arith.constant dense<0.000000e+00> : vector<128xf32>
    %37 = vector.multi_reduction <add>, %36, %cst_33 [1] : vector<128x128xf32> to vector<128xf32>
    %38 = vector.shape_cast %37 : vector<128xf32> to vector<128x1xf32>
    %39 = arith.mulf %36, %36 : vector<128x128xf32>
    %cst_34 = arith.constant dense<0.000000e+00> : vector<128xf32>
    %40 = vector.multi_reduction <add>, %39, %cst_34 [1] : vector<128x128xf32> to vector<128xf32>
    %41 = vector.shape_cast %40 : vector<128xf32> to vector<128x1xf32>
    %cst_35 = arith.constant 3.200000e+01 : f32
    %42 = vector.broadcast %cst_35 : f32 to vector<128x1xf32>
    %43 = arith.divf %38, %42 : vector<128x1xf32>
    %cst_36 = arith.constant 3.200000e+01 : f32
    %44 = vector.broadcast %cst_36 : f32 to vector<128x1xf32>
    %45 = arith.divf %41, %44 : vector<128x1xf32>
    %46 = arith.mulf %43, %43 : vector<128x1xf32>
    %47 = arith.subf %45, %46 : vector<128x1xf32>
    %48 = vector.broadcast %43 : vector<128x1xf32> to vector<128x128xf32>
    %49 = arith.subf %36, %48 : vector<128x128xf32>
    %cst_37 = arith.constant 9.99999974E-6 : f32
    %50 = vector.broadcast %cst_37 : f32 to vector<128x1xf32>
    %51 = arith.addf %47, %50 : vector<128x1xf32>
    %52 = math.rsqrt %51 : vector<128x1xf32>
    %53 = vector.broadcast %52 : vector<128x1xf32> to vector<128x128xf32>
    %54 = arith.mulf %49, %53 : vector<128x128xf32>
    %55 = vector.broadcast %0 : vector<1x128xf32> to vector<128x128xf32>
    %56 = arith.mulf %54, %55 : vector<128x128xf32>
    %57 = vector.broadcast %1 : vector<1x128xf32> to vector<128x128xf32>
    %58 = arith.addf %56, %57 : vector<128x128xf32>
    %59 = arith.truncf %58 : vector<128x128xf32> to vector<128x128xbf16>
    %c0_38 = arith.constant 0 : index
    %c0_39 = arith.constant 0 : index
    %60 = vector.load %arg4[%c0_38, %c0_39] : memref<128x384xbf16, #tpu.memory_space<vmem>>, vector<128x384xbf16>
    %cst_40 = arith.constant dense<0.000000e+00> : vector<128x384xf32>
    %61 = tpu.matmul %59, %60, %cst_40 {dimension_numbers = #tpu.dot_dimension_numbers<[1], [0], [0], [1], [0, 0, 1, 1], [], []>} : vector<128x128xbf16>, vector<128x384xbf16>, vector<128x384xf32> -> vector<128x384xf32>
    %62 = vector.broadcast %4 : vector<1x384xf32> to vector<128x384xf32>
    %63 = arith.addf %61, %62 : vector<128x384xf32>
    %64 = vector.extract_strided_slice %63 {offsets = [0, 0], sizes = [128, 128], strides = [1, 1]} : vector<128x384xf32> to vector<128x128xf32>
    %65 = vector.extract_strided_slice %63 {offsets = [0, 128], sizes = [128, 128], strides = [1, 1]} : vector<128x384xf32> to vector<128x128xf32>
    %66 = vector.extract_strided_slice %63 {offsets = [0, 256], sizes = [128, 128], strides = [1, 1]} : vector<128x384xf32> to vector<128x128xf32>
    %67 = vector.shape_cast %64 : vector<128x128xf32> to vector<2x64x128xf32>
    %68 = vector.shape_cast %66 : vector<128x128xf32> to vector<2x64x128xf32>
    %cst_41 = arith.constant dense<0xFF800000> : vector<2x128xf32>
    %69 = vector.multi_reduction <maximumf>, %67, %cst_41 [1] : vector<2x64x128xf32> to vector<2x128xf32>
    %70 = vector.shape_cast %69 : vector<2x128xf32> to vector<2x1x128xf32>
    %71 = vector.broadcast %70 : vector<2x1x128xf32> to vector<2x64x128xf32>
    %72 = arith.subf %67, %71 : vector<2x64x128xf32>
    %73 = math.exp %72 : vector<2x64x128xf32>
    %cst_42 = arith.constant dense<0.000000e+00> : vector<2x128xf32>
    %74 = vector.multi_reduction <add>, %73, %cst_42 [1] : vector<2x64x128xf32> to vector<2x128xf32>
    %75 = vector.shape_cast %74 : vector<2x128xf32> to vector<2x1x128xf32>
    %cst_43 = arith.constant dense<0xFF800000> : vector<128xf32>
    %76 = vector.multi_reduction <maximumf>, %65, %cst_43 [1] : vector<128x128xf32> to vector<128xf32>
    %77 = vector.shape_cast %76 : vector<128xf32> to vector<128x1xf32>
    %78 = vector.broadcast %77 : vector<128x1xf32> to vector<128x128xf32>
    %79 = arith.subf %65, %78 : vector<128x128xf32>
    %80 = math.exp %79 : vector<128x128xf32>
    %cst_44 = arith.constant dense<0.000000e+00> : vector<128xf32>
    %81 = vector.multi_reduction <add>, %80, %cst_44 [1] : vector<128x128xf32> to vector<128xf32>
    %82 = vector.shape_cast %81 : vector<128xf32> to vector<128x1xf32>
    %83 = arith.truncf %73 : vector<2x64x128xf32> to vector<2x64x128xbf16>
    %84 = arith.truncf %68 : vector<2x64x128xf32> to vector<2x64x128xbf16>
    "tpu.trace_start"() <{level = 10 : i32, message = "bnk,bnv->bkv"}> : () -> ()
    %cst_45 = arith.constant dense<0.000000e+00> : vector<2x128x128xf32>
    %85 = tpu.matmul %83, %84, %cst_45 {dimension_numbers = #tpu.dot_dimension_numbers<[1], [1], [2], [2], [0, 0, 0, 2, 1, 2], [0], [0]>} : vector<2x64x128xbf16>, vector<2x64x128xbf16>, vector<2x128x128xf32> -> vector<2x128x128xf32>
    "tpu.trace_stop"() : () -> ()
    %86 = vector.shape_cast %80 : vector<128x128xf32> to vector<2x64x128xf32>
    %87 = tpu.reciprocal %75 {approx = true} : vector<2x1x128xf32> -> vector<2x1x128xf32>
    %88 = vector.broadcast %87 : vector<2x1x128xf32> to vector<2x64x128xf32>
    %89 = arith.mulf %86, %88 : vector<2x64x128xf32>
    %90 = arith.truncf %89 : vector<2x64x128xf32> to vector<2x64x128xbf16>
    %91 = arith.truncf %85 : vector<2x128x128xf32> to vector<2x128x128xbf16>
    "tpu.trace_start"() <{level = 10 : i32, message = "bnk,bkv->bnv"}> : () -> ()
    %cst_46 = arith.constant dense<0.000000e+00> : vector<2x64x128xf32>
    %92 = tpu.matmul %90, %91, %cst_46 {dimension_numbers = #tpu.dot_dimension_numbers<[2], [1], [1], [2], [0, 0, 0, 1, 1, 2], [0], [0]>} : vector<2x64x128xbf16>, vector<2x128x128xbf16>, vector<2x64x128xf32> -> vector<2x64x128xf32>
    "tpu.trace_stop"() : () -> ()
    %93 = vector.shape_cast %92 : vector<2x64x128xf32> to vector<128x128xf32>
    %94 = tpu.reciprocal %82 {approx = true} : vector<128x1xf32> -> vector<128x1xf32>
    %95 = vector.broadcast %94 : vector<128x1xf32> to vector<128x128xf32>
    %96 = arith.mulf %93, %95 : vector<128x128xf32>
    %97 = arith.truncf %96 : vector<128x128xf32> to vector<128x128xbf16>
    %c0_47 = arith.constant 0 : index
    %c0_48 = arith.constant 0 : index
    %98 = vector.load %arg6[%c0_47, %c0_48] : memref<128x128xbf16, #tpu.memory_space<vmem>>, vector<128x128xbf16>
    %cst_49 = arith.constant dense<0.000000e+00> : vector<128x128xf32>
    %99 = tpu.matmul %97, %98, %cst_49 {dimension_numbers = #tpu.dot_dimension_numbers<[1], [0], [0], [1], [0, 0, 1, 1], [], []>} : vector<128x128xbf16>, vector<128x128xbf16>, vector<128x128xf32> -> vector<128x128xf32>
    %100 = vector.broadcast %5 : vector<1x128xf32> to vector<128x128xf32>
    %101 = arith.addf %99, %100 : vector<128x128xf32>
    %102 = arith.addf %36, %101 : vector<128x128xf32>
    %cst_50 = arith.constant dense<0.000000e+00> : vector<128xf32>
    %103 = vector.multi_reduction <add>, %102, %cst_50 [1] : vector<128x128xf32> to vector<128xf32>
    %104 = vector.shape_cast %103 : vector<128xf32> to vector<128x1xf32>
    %105 = arith.mulf %102, %102 : vector<128x128xf32>
    %cst_51 = arith.constant dense<0.000000e+00> : vector<128xf32>
    %106 = vector.multi_reduction <add>, %105, %cst_51 [1] : vector<128x128xf32> to vector<128xf32>
    %107 = vector.shape_cast %106 : vector<128xf32> to vector<128x1xf32>
    %cst_52 = arith.constant 3.200000e+01 : f32
    %108 = vector.broadcast %cst_52 : f32 to vector<128x1xf32>
    %109 = arith.divf %104, %108 : vector<128x1xf32>
    %cst_53 = arith.constant 3.200000e+01 : f32
    %110 = vector.broadcast %cst_53 : f32 to vector<128x1xf32>
    %111 = arith.divf %107, %110 : vector<128x1xf32>
    %112 = arith.mulf %109, %109 : vector<128x1xf32>
    %113 = arith.subf %111, %112 : vector<128x1xf32>
    %114 = vector.broadcast %109 : vector<128x1xf32> to vector<128x128xf32>
    %115 = arith.subf %102, %114 : vector<128x128xf32>
    %cst_54 = arith.constant 9.99999974E-6 : f32
    %116 = vector.broadcast %cst_54 : f32 to vector<128x1xf32>
    %117 = arith.addf %113, %116 : vector<128x1xf32>
    %118 = math.rsqrt %117 : vector<128x1xf32>
    %119 = vector.broadcast %118 : vector<128x1xf32> to vector<128x128xf32>
    %120 = arith.mulf %115, %119 : vector<128x128xf32>
    %121 = vector.broadcast %2 : vector<1x128xf32> to vector<128x128xf32>
    %122 = arith.mulf %120, %121 : vector<128x128xf32>
    %123 = vector.broadcast %3 : vector<1x128xf32> to vector<128x128xf32>
    %124 = arith.addf %122, %123 : vector<128x128xf32>
    %125 = arith.truncf %124 : vector<128x128xf32> to vector<128x128xbf16>
    %c0_55 = arith.constant 0 : index
    %c0_56 = arith.constant 0 : index
    %126 = vector.load %arg10[%c0_55, %c0_56] : memref<128x128xbf16, #tpu.memory_space<vmem>>, vector<128x128xbf16>
    %cst_57 = arith.constant dense<0.000000e+00> : vector<128x128xf32>
    %127 = tpu.matmul %125, %126, %cst_57 {dimension_numbers = #tpu.dot_dimension_numbers<[1], [0], [0], [1], [0, 0, 1, 1], [], []>} : vector<128x128xbf16>, vector<128x128xbf16>, vector<128x128xf32> -> vector<128x128xf32>
    %128 = vector.broadcast %6 : vector<1x128xf32> to vector<128x128xf32>
    %129 = arith.addf %127, %128 : vector<128x128xf32>
    %130 = vector.shape_cast %129 : vector<128x128xf32> to vector<2x64x128xf32>
    %131 = vector.extract_strided_slice %130 {offsets = [0, 0, 0], sizes = [1, 64, 128], strides = [1, 1, 1]} : vector<2x64x128xf32> to vector<1x64x128xf32>
    %132 = vector.shape_cast %131 : vector<1x64x128xf32> to vector<64x128xf32>
    %133 = vector.shape_cast %132 : vector<64x128xf32> to vector<8x8x128xf32>
    %c1_58 = arith.constant 1 : index
    %c1_59 = arith.constant 1 : index
    %c0_60 = arith.constant 0 : index
    %134 = vector.load %arg17[%c1_58, %c1_59, %c0_60] : memref<10x10x128xf32, #tpu.memory_space<vmem>>, vector<8x8x128xf32>
    tpu.vector_store %arg17[%c1_58, %c1_59, %c0_60], %133 {strides = array<i32>} : memref<10x10x128xf32, #tpu.memory_space<vmem>>, vector<8x8x128xf32>,
    %c0_61 = arith.constant 0 : index
    %c0_62 = arith.constant 0 : index
    %c0_63 = arith.constant 0 : index
    %135 = vector.load %arg17[%c0_61, %c0_62, %c0_63] : memref<10x10x128xf32, #tpu.memory_space<vmem>>, vector<10x8x128xf32>
    %c0_64 = arith.constant 0 : index
    %c1_65 = arith.constant 1 : index
    %c0_66 = arith.constant 0 : index
    %136 = vector.load %arg17[%c0_64, %c1_65, %c0_66] : memref<10x10x128xf32, #tpu.memory_space<vmem>>, vector<10x8x128xf32>
    %c0_67 = arith.constant 0 : index
    %c2 = arith.constant 2 : index
    %c0_68 = arith.constant 0 : index
    %137 = vector.load %arg17[%c0_67, %c2, %c0_68] : memref<10x10x128xf32, #tpu.memory_space<vmem>>, vector<10x8x128xf32>
    %138 = vector.extract_strided_slice %135 {offsets = [0, 0, 0], sizes = [8, 8, 128], strides = [1, 1, 1]} : vector<10x8x128xf32> to vector<8x8x128xf32>
    %139 = vector.broadcast %10 : vector<1x1x128xf32> to vector<8x8x128xf32>
    %140 = arith.mulf %138, %139 : vector<8x8x128xf32>
    %141 = vector.extract_strided_slice %136 {offsets = [0, 0, 0], sizes = [8, 8, 128], strides = [1, 1, 1]} : vector<10x8x128xf32> to vector<8x8x128xf32>
    %142 = vector.broadcast %12 : vector<1x1x128xf32> to vector<8x8x128xf32>
    %143 = arith.mulf %141, %142 : vector<8x8x128xf32>
    %144 = arith.addf %140, %143 : vector<8x8x128xf32>
    %145 = vector.extract_strided_slice %137 {offsets = [0, 0, 0], sizes = [8, 8, 128], strides = [1, 1, 1]} : vector<10x8x128xf32> to vector<8x8x128xf32>
    %146 = vector.broadcast %14 : vector<1x1x128xf32> to vector<8x8x128xf32>
    %147 = arith.mulf %145, %146 : vector<8x8x128xf32>
    %148 = arith.addf %144, %147 : vector<8x8x128xf32>
    %149 = vector.extract_strided_slice %135 {offsets = [1, 0, 0], sizes = [8, 8, 128], strides = [1, 1, 1]} : vector<10x8x128xf32> to vector<8x8x128xf32>
    %150 = vector.broadcast %16 : vector<1x1x128xf32> to vector<8x8x128xf32>
    %151 = arith.mulf %149, %150 : vector<8x8x128xf32>
    %152 = arith.addf %148, %151 : vector<8x8x128xf32>
    %153 = vector.extract_strided_slice %136 {offsets = [1, 0, 0], sizes = [8, 8, 128], strides = [1, 1, 1]} : vector<10x8x128xf32> to vector<8x8x128xf32>
    %154 = vector.broadcast %18 : vector<1x1x128xf32> to vector<8x8x128xf32>
    %155 = arith.mulf %153, %154 : vector<8x8x128xf32>
    %156 = arith.addf %152, %155 : vector<8x8x128xf32>
    %157 = vector.extract_strided_slice %137 {offsets = [1, 0, 0], sizes = [8, 8, 128], strides = [1, 1, 1]} : vector<10x8x128xf32> to vector<8x8x128xf32>
    %158 = vector.broadcast %20 : vector<1x1x128xf32> to vector<8x8x128xf32>
    %159 = arith.mulf %157, %158 : vector<8x8x128xf32>
    %160 = arith.addf %156, %159 : vector<8x8x128xf32>
    %161 = vector.extract_strided_slice %135 {offsets = [2, 0, 0], sizes = [8, 8, 128], strides = [1, 1, 1]} : vector<10x8x128xf32> to vector<8x8x128xf32>
    %162 = vector.broadcast %22 : vector<1x1x128xf32> to vector<8x8x128xf32>
    %163 = arith.mulf %161, %162 : vector<8x8x128xf32>
    %164 = arith.addf %160, %163 : vector<8x8x128xf32>
    %165 = vector.extract_strided_slice %136 {offsets = [2, 0, 0], sizes = [8, 8, 128], strides = [1, 1, 1]} : vector<10x8x128xf32> to vector<8x8x128xf32>
    %166 = vector.broadcast %24 : vector<1x1x128xf32> to vector<8x8x128xf32>
    %167 = arith.mulf %165, %166 : vector<8x8x128xf32>
    %168 = arith.addf %164, %167 : vector<8x8x128xf32>
    %169 = vector.extract_strided_slice %137 {offsets = [2, 0, 0], sizes = [8, 8, 128], strides = [1, 1, 1]} : vector<10x8x128xf32> to vector<8x8x128xf32>
    %170 = vector.broadcast %26 : vector<1x1x128xf32> to vector<8x8x128xf32>
    %171 = arith.mulf %169, %170 : vector<8x8x128xf32>
    %172 = arith.addf %168, %171 : vector<8x8x128xf32>
    %173 = vector.broadcast %28 : vector<1x1x128xf32> to vector<8x8x128xf32>
    %174 = arith.addf %172, %173 : vector<8x8x128xf32>
    %175 = arith.mulf %174, %174 : vector<8x8x128xf32>
    %176 = arith.mulf %174, %175 : vector<8x8x128xf32>
    %cst_69 = arith.constant 4.471500e-02 : f32
    %177 = vector.broadcast %cst_69 : f32 to vector<8x8x128xf32>
    %178 = arith.mulf %177, %176 : vector<8x8x128xf32>
    %179 = arith.addf %174, %178 : vector<8x8x128xf32>
    %cst_70 = arith.constant 0.797884583 : f32
    %180 = vector.broadcast %cst_70 : f32 to vector<8x8x128xf32>
    %181 = arith.mulf %180, %179 : vector<8x8x128xf32>
    %182 = math.tanh %181 : vector<8x8x128xf32>
    %cst_71 = arith.constant 1.000000e+00 : f32
    %183 = vector.broadcast %cst_71 : f32 to vector<8x8x128xf32>
    %184 = arith.addf %183, %182 : vector<8x8x128xf32>
    %cst_72 = arith.constant 5.000000e-01 : f32
    %185 = vector.broadcast %cst_72 : f32 to vector<8x8x128xf32>
    %186 = arith.mulf %185, %184 : vector<8x8x128xf32>
    %187 = arith.mulf %174, %186 : vector<8x8x128xf32>
    %188 = vector.shape_cast %187 : vector<8x8x128xf32> to vector<64x128xf32>
    %189 = vector.extract_strided_slice %130 {offsets = [1, 0, 0], sizes = [1, 64, 128], strides = [1, 1, 1]} : vector<2x64x128xf32> to vector<1x64x128xf32>
    %190 = vector.shape_cast %189 : vector<1x64x128xf32> to vector<64x128xf32>
    %191 = vector.shape_cast %190 : vector<64x128xf32> to vector<8x8x128xf32>
    %c1_73 = arith.constant 1 : index
    %c1_74 = arith.constant 1 : index
    %c0_75 = arith.constant 0 : index
    %192 = vector.load %arg17[%c1_73, %c1_74, %c0_75] : memref<10x10x128xf32, #tpu.memory_space<vmem>>, vector<8x8x128xf32>
    tpu.vector_store %arg17[%c1_73, %c1_74, %c0_75], %191 {strides = array<i32>} : memref<10x10x128xf32, #tpu.memory_space<vmem>>, vector<8x8x128xf32>,
    %c0_76 = arith.constant 0 : index
    %c0_77 = arith.constant 0 : index
    %c0_78 = arith.constant 0 : index
    %193 = vector.load %arg17[%c0_76, %c0_77, %c0_78] : memref<10x10x128xf32, #tpu.memory_space<vmem>>, vector<10x8x128xf32>
    %c0_79 = arith.constant 0 : index
    %c1_80 = arith.constant 1 : index
    %c0_81 = arith.constant 0 : index
    %194 = vector.load %arg17[%c0_79, %c1_80, %c0_81] : memref<10x10x128xf32, #tpu.memory_space<vmem>>, vector<10x8x128xf32>
    %c0_82 = arith.constant 0 : index
    %c2_83 = arith.constant 2 : index
    %c0_84 = arith.constant 0 : index
    %195 = vector.load %arg17[%c0_82, %c2_83, %c0_84] : memref<10x10x128xf32, #tpu.memory_space<vmem>>, vector<10x8x128xf32>
    %196 = vector.extract_strided_slice %193 {offsets = [0, 0, 0], sizes = [8, 8, 128], strides = [1, 1, 1]} : vector<10x8x128xf32> to vector<8x8x128xf32>
    %197 = vector.broadcast %10 : vector<1x1x128xf32> to vector<8x8x128xf32>
    %198 = arith.mulf %196, %197 : vector<8x8x128xf32>
    %199 = vector.extract_strided_slice %194 {offsets = [0, 0, 0], sizes = [8, 8, 128], strides = [1, 1, 1]} : vector<10x8x128xf32> to vector<8x8x128xf32>
    %200 = vector.broadcast %12 : vector<1x1x128xf32> to vector<8x8x128xf32>
    %201 = arith.mulf %199, %200 : vector<8x8x128xf32>
    %202 = arith.addf %198, %201 : vector<8x8x128xf32>
    %203 = vector.extract_strided_slice %195 {offsets = [0, 0, 0], sizes = [8, 8, 128], strides = [1, 1, 1]} : vector<10x8x128xf32> to vector<8x8x128xf32>
    %204 = vector.broadcast %14 : vector<1x1x128xf32> to vector<8x8x128xf32>
    %205 = arith.mulf %203, %204 : vector<8x8x128xf32>
    %206 = arith.addf %202, %205 : vector<8x8x128xf32>
    %207 = vector.extract_strided_slice %193 {offsets = [1, 0, 0], sizes = [8, 8, 128], strides = [1, 1, 1]} : vector<10x8x128xf32> to vector<8x8x128xf32>
    %208 = vector.broadcast %16 : vector<1x1x128xf32> to vector<8x8x128xf32>
    %209 = arith.mulf %207, %208 : vector<8x8x128xf32>
    %210 = arith.addf %206, %209 : vector<8x8x128xf32>
    %211 = vector.extract_strided_slice %194 {offsets = [1, 0, 0], sizes = [8, 8, 128], strides = [1, 1, 1]} : vector<10x8x128xf32> to vector<8x8x128xf32>
    %212 = vector.broadcast %18 : vector<1x1x128xf32> to vector<8x8x128xf32>
    %213 = arith.mulf %211, %212 : vector<8x8x128xf32>
    %214 = arith.addf %210, %213 : vector<8x8x128xf32>
    %215 = vector.extract_strided_slice %195 {offsets = [1, 0, 0], sizes = [8, 8, 128], strides = [1, 1, 1]} : vector<10x8x128xf32> to vector<8x8x128xf32>
    %216 = vector.broadcast %20 : vector<1x1x128xf32> to vector<8x8x128xf32>
    %217 = arith.mulf %215, %216 : vector<8x8x128xf32>
    %218 = arith.addf %214, %217 : vector<8x8x128xf32>
    %219 = vector.extract_strided_slice %193 {offsets = [2, 0, 0], sizes = [8, 8, 128], strides = [1, 1, 1]} : vector<10x8x128xf32> to vector<8x8x128xf32>
    %220 = vector.broadcast %22 : vector<1x1x128xf32> to vector<8x8x128xf32>
    %221 = arith.mulf %219, %220 : vector<8x8x128xf32>
    %222 = arith.addf %218, %221 : vector<8x8x128xf32>
    %223 = vector.extract_strided_slice %194 {offsets = [2, 0, 0], sizes = [8, 8, 128], strides = [1, 1, 1]} : vector<10x8x128xf32> to vector<8x8x128xf32>
    %224 = vector.broadcast %24 : vector<1x1x128xf32> to vector<8x8x128xf32>
    %225 = arith.mulf %223, %224 : vector<8x8x128xf32>
    %226 = arith.addf %222, %225 : vector<8x8x128xf32>
    %227 = vector.extract_strided_slice %195 {offsets = [2, 0, 0], sizes = [8, 8, 128], strides = [1, 1, 1]} : vector<10x8x128xf32> to vector<8x8x128xf32>
    %228 = vector.broadcast %26 : vector<1x1x128xf32> to vector<8x8x128xf32>
    %229 = arith.mulf %227, %228 : vector<8x8x128xf32>
    %230 = arith.addf %226, %229 : vector<8x8x128xf32>
    %231 = vector.broadcast %28 : vector<1x1x128xf32> to vector<8x8x128xf32>
    %232 = arith.addf %230, %231 : vector<8x8x128xf32>
    %233 = arith.mulf %232, %232 : vector<8x8x128xf32>
    %234 = arith.mulf %232, %233 : vector<8x8x128xf32>
    %cst_85 = arith.constant 4.471500e-02 : f32
    %235 = vector.broadcast %cst_85 : f32 to vector<8x8x128xf32>
    %236 = arith.mulf %235, %234 : vector<8x8x128xf32>
    %237 = arith.addf %232, %236 : vector<8x8x128xf32>
    %cst_86 = arith.constant 0.797884583 : f32
    %238 = vector.broadcast %cst_86 : f32 to vector<8x8x128xf32>
    %239 = arith.mulf %238, %237 : vector<8x8x128xf32>
    %240 = math.tanh %239 : vector<8x8x128xf32>
    %cst_87 = arith.constant 1.000000e+00 : f32
    %241 = vector.broadcast %cst_87 : f32 to vector<8x8x128xf32>
    %242 = arith.addf %241, %240 : vector<8x8x128xf32>
    %cst_88 = arith.constant 5.000000e-01 : f32
    %243 = vector.broadcast %cst_88 : f32 to vector<8x8x128xf32>
    %244 = arith.mulf %243, %242 : vector<8x8x128xf32>
    %245 = arith.mulf %232, %244 : vector<8x8x128xf32>
    %246 = vector.shape_cast %245 : vector<8x8x128xf32> to vector<64x128xf32>
    %247 = tpu.concatenate %188, %246 in 0 : vector<64x128xf32>, vector<64x128xf32> -> vector<128x128xf32>
    %248 = arith.truncf %247 : vector<128x128xf32> to vector<128x128xbf16>
    %c0_89 = arith.constant 0 : index
    %c0_90 = arith.constant 0 : index
    %249 = vector.load %arg14[%c0_89, %c0_90] : memref<128x128xbf16, #tpu.memory_space<vmem>>, vector<128x128xbf16>
    %cst_91 = arith.constant dense<0.000000e+00> : vector<128x128xf32>
    %250 = tpu.matmul %248, %249, %cst_91 {dimension_numbers = #tpu.dot_dimension_numbers<[1], [0], [0], [1], [0, 0, 1, 1], [], []>} : vector<128x128xbf16>, vector<128x128xbf16>, vector<128x128xf32> -> vector<128x128xf32>
    %251 = vector.broadcast %7 : vector<1x128xf32> to vector<128x128xf32>
    %252 = arith.addf %250, %251 : vector<128x128xf32>
    %253 = arith.addf %102, %252 : vector<128x128xf32>
    %254 = vector.shape_cast %253 : vector<128x128xf32> to vector<2x64x128xf32>
    %c0_92 = arith.constant 0 : index
    %c0_93 = arith.constant 0 : index
    %c0_94 = arith.constant 0 : index
    %255 = vector.load %arg16[%c0_92, %c0_93, %c0_94] : memref<2x64x128xf32, #tpu.memory_space<vmem>>, vector<2x64x128xf32>
    tpu.vector_store %arg16[%c0_92, %c0_93, %c0_94], %254 {strides = array<i32>} : memref<2x64x128xf32, #tpu.memory_space<vmem>>, vector<2x64x128xf32>,
    return
  }
  func.func @transform_0(%arg0: i32) -> (i32, i32, i32) {
    %c0_i32 = arith.constant 0 : i32
    %c0_i32_0 = arith.constant 0 : i32
    %c0_i32_1 = arith.constant 0 : i32
    return %arg0, %c0_i32, %c0_i32_0 : i32, i32, i32
  }
  func.func @transform_1(%arg0: i32) -> (i32, i32) {
    %c0_i32 = arith.constant 0 : i32
    %c0_i32_0 = arith.constant 0 : i32
    %c0_i32_1 = arith.constant 0 : i32
    return %c0_i32, %c0_i32_0 : i32, i32
  }
  func.func @transform_2(%arg0: i32) -> (i32, i32) {
    %c0_i32 = arith.constant 0 : i32
    %c0_i32_0 = arith.constant 0 : i32
    %c0_i32_1 = arith.constant 0 : i32
    return %c0_i32, %c0_i32_0 : i32, i32
  }
  func.func @transform_3(%arg0: i32) -> (i32, i32) {
    %c0_i32 = arith.constant 0 : i32
    %c0_i32_0 = arith.constant 0 : i32
    %c0_i32_1 = arith.constant 0 : i32
    return %c0_i32, %c0_i32_0 : i32, i32
  }
  func.func @transform_4(%arg0: i32) -> (i32, i32) {
    %c0_i32 = arith.constant 0 : i32
    %c0_i32_0 = arith.constant 0 : i32
    %c0_i32_1 = arith.constant 0 : i32
    return %c0_i32, %c0_i32_0 : i32, i32
  }
  func.func @transform_5(%arg0: i32) -> (i32, i32) {
    %c0_i32 = arith.constant 0 : i32
    %c0_i32_0 = arith.constant 0 : i32
    %c0_i32_1 = arith.constant 0 : i32
    return %c0_i32, %c0_i32_0 : i32, i32
  }
  func.func @transform_6(%arg0: i32) -> (i32, i32) {
    %c0_i32 = arith.constant 0 : i32
    %c0_i32_0 = arith.constant 0 : i32
    %c0_i32_1 = arith.constant 0 : i32
    return %c0_i32, %c0_i32_0 : i32, i32
  }
  func.func @transform_7(%arg0: i32) -> (i32, i32) {
    %c0_i32 = arith.constant 0 : i32
    %c0_i32_0 = arith.constant 0 : i32
    %c0_i32_1 = arith.constant 0 : i32
    return %c0_i32, %c0_i32_0 : i32, i32
  }
  func.func @transform_8(%arg0: i32) -> (i32, i32) {
    %c0_i32 = arith.constant 0 : i32
    %c0_i32_0 = arith.constant 0 : i32
    %c0_i32_1 = arith.constant 0 : i32
    return %c0_i32, %c0_i32_0 : i32, i32
  }
  func.func @transform_9(%arg0: i32) -> (i32, i32) {
    %c0_i32 = arith.constant 0 : i32
    %c0_i32_0 = arith.constant 0 : i32
    %c0_i32_1 = arith.constant 0 : i32
    return %c0_i32, %c0_i32_0 : i32, i32
  }
  func.func @transform_10(%arg0: i32) -> (i32, i32) {
    %c0_i32 = arith.constant 0 : i32
    %c0_i32_0 = arith.constant 0 : i32
    %c0_i32_1 = arith.constant 0 : i32
    return %c0_i32, %c0_i32_0 : i32, i32
  }
  func.func @transform_11(%arg0: i32) -> (i32, i32) {
    %c0_i32 = arith.constant 0 : i32
    %c0_i32_0 = arith.constant 0 : i32
    %c0_i32_1 = arith.constant 0 : i32
    return %c0_i32, %c0_i32_0 : i32, i32
  }
  func.func @transform_12(%arg0: i32) -> (i32, i32) {
    %c0_i32 = arith.constant 0 : i32
    %c0_i32_0 = arith.constant 0 : i32
    %c0_i32_1 = arith.constant 0 : i32
    return %c0_i32, %c0_i32_0 : i32, i32
  }
  func.func @transform_13(%arg0: i32) -> (i32, i32) {
    %c0_i32 = arith.constant 0 : i32
    %c0_i32_0 = arith.constant 0 : i32
    %c0_i32_1 = arith.constant 0 : i32
    return %c0_i32, %c0_i32_0 : i32, i32
  }
  func.func @transform_14(%arg0: i32) -> (i32, i32) {
    %c0_i32 = arith.constant 0 : i32
    %c0_i32_0 = arith.constant 0 : i32
    %c0_i32_1 = arith.constant 0 : i32
    return %c0_i32, %c0_i32_0 : i32, i32
  }
  func.func @transform_15(%arg0: i32) -> (i32, i32, i32) {
    %c0_i32 = arith.constant 0 : i32
    %c0_i32_0 = arith.constant 0 : i32
    %c0_i32_1 = arith.constant 0 : i32
    return %arg0, %c0_i32, %c0_i32_0 : i32, i32, i32
  }
}

</mosaic_0001>

<bundles_post_ra>
// kernel: tpu_custom_call.1
= control target key start
LH: loop header
LB: loop body
LE: loop exit
PB: predicated region body
PF: predicated region fallthrough
CT: control target
= control target key end

     0   :  { %s5132_s0 = inlined_call_operand.hbm [shape: f32[2,64,128], index: 0, kind: input, shape index: {}]   ;;  %s5133_s1 = inlined_call_operand.vmem [shape: f32[1,128], index: 1, kind: input, shape index: {}]   ;;  %s5134_s2 = inlined_call_operand.vmem [shape: f32[1,128], index: 2, kind: input, shape index: {}]   ;;  %s5135_s3 = inlined_call_operand.hbm [shape: bf16[128,384], index: 3, kind: input, shape index: {}]   ;;  %s5136_s4 = inlined_call_operand.vmem [shape: f32[1,384], index: 4, kind: input, shape index: {}]   ;;  %s5137_s5 = inlined_call_operand.hbm [shape: bf16[128,128], index: 5, kind: input, shape index: {}]   ;;  %s5138_s6 = inlined_call_operand.vmem [shape: f32[1,128], index: 6, kind: input, shape index: {}]   ;;  %s5139_s7 = inlined_call_operand.vmem [shape: f32[1,128], index: 7, kind: input, shape index: {}]   ;;  %s5140_s8 = inlined_call_operand.vmem [shape: f32[1,128], index: 8, kind: input, shape index: {}]   ;;  %s5141_s9 = inlined_call_operand.hbm [shape: bf16[128,128], index: 9, kind: input, shape index: {}]   ;;  %s5142_s10 = inlined_call_operand.vmem [shape: f32[1,128], index: 10, kind: input, shape index: {}]   ;;  %s5143_s11 = inlined_call_operand.vmem [shape: f32[9,128], index: 11, kind: input, shape index: {}]   ;;  %s5144_s12 = inlined_call_operand.vmem [shape: f32[1,128], index: 12, kind: input, shape index: {}]   ;;  %s5145_s13 = inlined_call_operand.hbm [shape: bf16[128,128], index: 13, kind: input, shape index: {}]   ;;  %s5146_s14 = inlined_call_operand.vmem [shape: f32[1,128], index: 14, kind: input, shape index: {}]   ;;  %s5147_s15 = inlined_call_operand.hbm [shape: f32[2,64,128], index: 15, kind: output, shape index: {}]  }
   0x1   :  { %5160 = sst [smem:[#allocation28_spill]] %s5147_s15 }
   0x2   :  { %20 = vsyncpa [#allocation4], 0 }
   0x3   :  { %21 = vsyncpa [#allocation7], 0 }
   0x4   :  { %22 = vsyncpa [#allocation10], 0 }
   0x5   :  { %23 = vsyncpa [#allocation5], 0  ;;  %s3748_s18 = smov [#allocation6]   ;;  %s3608_s22 = scalar_lea.hbm %s5135_s3, 3072 }
   0x6   :  { %s45_s19 = sshll.u32 %s3748_s18, 4  ;;  %p3609_p0 = scmp.ne.s32.totalorder %s5135_s3, %s3608_s22  ;;  %s46_s19 = int_to_ptr.vmem [resolvable:$true] %s45_s19 }
   0x7   :  { %p3612_p1 = scmp.lt.u32.totalorder %s3608_s22, %s5135_s3 }
   0x9   :  { %p3614_p2 = pnand %p3612_p1, %p3609_p0 }
   0xb   :  { %3617 = shalt.err (!%p3614_p2)
}
   0xc   :  { %s3618_s27 = scalar_lea.vmem %s46_s19, 3072  ;;  %p3623_p4 = scmp.lt.s32.totalorder %s46_s19, %s46_s19 }
   0xd   :  { %p3619_p3 = scmp.ne.s32.totalorder %s46_s19, %s3618_s27  ;;  %p3624_p5 = scmp.lt.s32.totalorder %s3618_s27, %s3618_s27 }
   0xf   :  { %p3625_p6 = por %p3624_p5, %p3623_p4 }
  0x11   :  { %p3626_p7 = pnand %p3625_p6, %p3619_p3 }
  0x13   :  { %3629 = shalt.err (!%p3626_p7)
}
  0x14   :  { %s3749_s28 = smov 192   ;;  %s3750_s29 = smov 12  }
  0x15   :  { %51 = dma.hbm_to_vmem [thread:$0]  %s5135_s3, 3072, %s46_s19, [#allocation7], %s3749_s28, %s3749_s28, %s3750_s29  }
  0x16   :  { %s3751_s17 = smov [#allocation9]   ;;  %s3752_s20 = smov [#allocation3]  }
  0x17   :  { %s77_s18 = sshll.u32 %s3751_s17, 4  ;;  %s29_s21 = sshll.u32 %s3752_s20, 4  ;;  %s78_s18 = int_to_ptr.vmem [resolvable:$true] %s77_s18  ;;  %s30_s21 = int_to_ptr.vmem [resolvable:$true] %s29_s21 }
  0x18   :  { %s3630_s24 = scalar_lea.hbm %s5141_s9, 1024 }
  0x19   :  { %p3631_p8 = scmp.ne.s32.totalorder %s5141_s9, %s3630_s24  ;;  %p3634_p9 = scmp.lt.u32.totalorder %s3630_s24, %s5141_s9 }
  0x1b   :  { %p3636_p10 = pnand %p3634_p9, %p3631_p8 }
  0x1d   :  { %3639 = shalt.err (!%p3636_p10)
}
  0x1e   :  { %s3640_s3 = scalar_lea.vmem %s78_s18, 1024  ;;  %p3645_p12 = scmp.lt.s32.totalorder %s78_s18, %s78_s18 }
  0x1f   :  { %p3641_p11 = scmp.ne.s32.totalorder %s78_s18, %s3640_s3  ;;  %p3646_p13 = scmp.lt.s32.totalorder %s3640_s3, %s3640_s3 }
  0x21   :  { %p3647_p0 = por %p3646_p13, %p3645_p12 }
  0x23   :  { %p3648_p1 = pnand %p3647_p0, %p3641_p11 }
  0x25   :  { %3651 = shalt.err (!%p3648_p1)
}
  0x26   :  { %s3753_s19 = smov 64   ;;  %s3754_s28 = smov 4  }
  0x27   :  { %83 = dma.hbm_to_vmem [thread:$0]  %s5141_s9, 1024, %s78_s18, [#allocation10], %s3753_s19, %s3753_s19, %s3754_s28  }
  0x28   :  { %s3652_s17 = scalar_lea.hbm %s5132_s0, 2048 }
  0x29   :  { %p3653_p2 = scmp.ne.s32.totalorder %s5132_s0, %s3652_s17  ;;  %p3656_p3 = scmp.lt.u32.totalorder %s3652_s17, %s5132_s0 }
  0x2b   :  { %p3658_p4 = pnand %p3656_p3, %p3653_p2 }
  0x2d   :  { %3661 = shalt.err (!%p3658_p4)
}
  0x2e   :  { %s3662_s25 = scalar_lea.vmem %s30_s21, 2048  ;;  %p3667_p6 = scmp.lt.s32.totalorder %s30_s21, %s30_s21 }
  0x2f   :  { %p3663_p5 = scmp.ne.s32.totalorder %s30_s21, %s3662_s25  ;;  %p3668_p7 = scmp.lt.s32.totalorder %s3662_s25, %s3662_s25 }
  0x31   :  { %p3669_p8 = por %p3668_p7, %p3667_p6 }
  0x33   :  { %p3670_p9 = pnand %p3669_p8, %p3663_p5 }
  0x35   :  { %3673 = shalt.err (!%p3670_p9)
}
  0x36   :  { %s3755_s9 = smov 128   ;;  %s3756_s18 = smov 8  }
  0x37   :  { %35 = dma.hbm_to_vmem [thread:$0]  %s5132_s0, 2048, %s30_s21, [#allocation4], %s3755_s9, %s3755_s9, %s3756_s18  }
  0x38   :  { %s3757_s3 = smov [#allocation8]   ;;  %s3758_s30 = smov [#allocation11]  }
  0x39   :  { %s59_s29 = sshll.u32 %s3757_s3, 4  ;;  %s95_s15 = sshll.u32 %s3758_s30, 4  ;;  %s60_s29 = int_to_ptr.vmem [resolvable:$true] %s59_s29  ;;  %s96_s15 = int_to_ptr.vmem [resolvable:$true] %s95_s15 }
  0x3a   :  { %s3674_s20 = scalar_lea.hbm %s5137_s5, 1024 }
  0x3b   :  { %p3675_p10 = scmp.ne.s32.totalorder %s5137_s5, %s3674_s20  ;;  %p3678_p11 = scmp.lt.u32.totalorder %s3674_s20, %s5137_s5 }
  0x3d   :  { %p3680_p12 = pnand %p3678_p11, %p3675_p10 }
  0x3f   :  { %3683 = shalt.err (!%p3680_p12)
}
  0x40   :  { %s3684_s0 = scalar_lea.vmem %s60_s29, 1024  ;;  %p3689_p0 = scmp.lt.s32.totalorder %s60_s29, %s60_s29 }
  0x41   :  { %p3685_p13 = scmp.ne.s32.totalorder %s60_s29, %s3684_s0  ;;  %p3690_p1 = scmp.lt.s32.totalorder %s3684_s0, %s3684_s0 }
  0x43   :  { %p3691_p2 = por %p3690_p1, %p3689_p0 }
  0x45   :  { %p3692_p3 = pnand %p3691_p2, %p3685_p13 }
  0x47   :  { %3695 = shalt.err (!%p3692_p3)
}
  0x48   :  { %65 = dma.hbm_to_vmem [thread:$0]  %s5137_s5, 1024, %s60_s29, [#allocation7], %s3753_s19, %s3753_s19, %s3754_s28  }
  0x49   :  { %s3696_s30 = scalar_lea.hbm %s5145_s13, 1024 }
  0x4a   :  { %p3697_p4 = scmp.ne.s32.totalorder %s5145_s13, %s3696_s30  ;;  %p3700_p5 = scmp.lt.u32.totalorder %s3696_s30, %s5145_s13 }
  0x4c   :  { %p3702_p6 = pnand %p3700_p5, %p3697_p4 }
  0x4e   :  { %3705 = shalt.err (!%p3702_p6)
}
  0x4f   :  { %s3706_s23 = scalar_lea.vmem %s96_s15, 1024  ;;  %p3711_p8 = scmp.lt.s32.totalorder %s96_s15, %s96_s15 }
  0x50   :  { %p3707_p7 = scmp.ne.s32.totalorder %s96_s15, %s3706_s23  ;;  %p3712_p9 = scmp.lt.s32.totalorder %s3706_s23, %s3706_s23 }
  0x52   :  { %p3713_p10 = por %p3712_p9, %p3711_p8 }
  0x54   :  { %p3714_p11 = pnand %p3713_p10, %p3707_p7 }
  0x56   :  { %3717 = shalt.err (!%p3714_p11)
}
  0x57   :  { %101 = dma.hbm_to_vmem [thread:$0]  %s5145_s13, 1024, %s96_s15, [#allocation10], %s3753_s19, %s3753_s19, %s3754_s28  }
  0x58   :  { %3740 = dma.done.wait [#allocation4], 2048  }
  0x59   :  { %3741 = vsyncadd [#allocation4], 4294965248 }
  0x5a   :  { %3742 = dma.done.wait [#allocation7], 4096  }
  0x5b   :  { %3743 = vsyncadd [#allocation7], 4294963200 }
  0x5c   :  { %3744 = dma.done.wait [#allocation10], 2048  }
  0x5d   :  { %3745 = vsyncadd [#allocation10], 4294965248  ;;  %v3914_v0 = vld [vmem:[#allocation3] sm:$0xff]  ;;  %v3916_v1 = vld [vmem:[#allocation3 + $0x8] sm:$0xff]  ;;  %v3759_v48 = vmov 0   ;;  %vm1060_vm0 = vcmask 523264  }
  0x5e   :  { %169 = vadd.xlane.f32.xlu0 %v3914_v0  ;;  %v201_v2 = vmul.f32 %v3914_v0, %v3914_v0  ;;  %v202_v3 = vmul.f32 %v3916_v1, %v3916_v1  ;;  %v3924_v4 = vld [vmem:[#allocation3 + $0x10] sm:$0xff]  ;;  %v3926_v5 = vld [vmem:[#allocation3 + $0x18] sm:$0xff]  ;;  %v3934_v9 = vld [vmem:[#allocation3 + $0x20] sm:$0xff]  ;;  %638 = vmatprep.mubr.bf16.mxu0 %v3759_v48 }
  0x5f   :  { %v3340_v6 = vld [vmem:[#allocation6 + $0x4] ss:$12 sps:$4 sm:$0xff]   ;;  %v203_v7 = vmul.f32 %v3924_v4, %v3924_v4  ;;  %v204_v8 = vmul.f32 %v3926_v5, %v3926_v5  ;;  %v3342_v10 = vld [vmem:[#allocation6] ss:$12 sps:$4 sm:$0xff]   ;;  %v3343_v12 = vld [vmem:[#allocation6 + $0x1c] ss:$12 sps:$4 sm:$0xff]   ;;  %v205_v13 = vmul.f32 %v3934_v9, %v3934_v9 }
  0x60   :  { %217 = vadd.xlane.f32.xlu1 %v201_v2  ;;  %606 = vmatprep.subr.bf16.mxu0 %v3340_v6  ;;  %v3936_v11 = vld [vmem:[#allocation3 + $0x28] sm:$0xff]  ;;  %v3345_v14 = vld [vmem:[#allocation6 + $0x18] ss:$12 sps:$4 sm:$0xff]   ;;  %v3944_v16 = vld [vmem:[#allocation3 + $0x30] sm:$0xff] }
  0x61   :  { %607 = vmatpush1.bf16.msra.mxu0 %v3342_v10  ;;  %v206_v15 = vmul.f32 %v3936_v11, %v3936_v11  ;;  %v3346_v17 = vld [vmem:[#allocation6 + $0x34] ss:$12 sps:$4 sm:$0xff]   ;;  %v3349_v19 = vld [vmem:[#allocation6 + $0x30] ss:$12 sps:$4 sm:$0xff]   ;;  %v3350_v21 = vld [vmem:[#allocation6 + $0x4c] ss:$12 sps:$4 sm:$0xff]   ;;  %v207_v23 = vmul.f32 %v3944_v16, %v3944_v16 }
  0x62   :  { %171 = vadd.xlane.f32.xlu0 %v3916_v1  ;;  %608 = vmatprep.subr.bf16.mxu0 %v3343_v12  ;;  %v3348_v18 = vld [vmem:[#allocation6 + $0x8] ss:$12 sps:$4 sm:$0xff]   ;;  %v3946_v20 = vld [vmem:[#allocation3 + $0x38] sm:$0xff]  ;;  %v3352_v22 = vld [vmem:[#allocation6 + $0x20] ss:$12 sps:$4 sm:$0xff]  }
  0x63   :  { %3102 = vmatprep.subr.bf16.mxu1 %v3348_v18  ;;  %v3353_v24 = vld [vmem:[#allocation6 + $0x48] ss:$12 sps:$4 sm:$0xff]   ;;  %v208_v25 = vmul.f32 %v3946_v20, %v3946_v20  ;;  %v3954_v26 = vld [vmem:[#allocation3 + $0x40] sm:$0xff]  ;;  %v3360_v33 = vld [vmem:[#allocation6 + $0x50] ss:$12 sps:$4 sm:$0xff]  }
  0x64   :  { %219 = vadd.xlane.f32.xlu1 %v202_v3  ;;  %3103 = vmatpush3.bf16.msra.mxu1 %v3348_v18  ;;  %v3354_v27 = vld [vmem:[#allocation6 + $0x64] ss:$12 sps:$4 sm:$0xff]   ;;  %v3357_v29 = vld [vmem:[#allocation6 + $0x60] ss:$12 sps:$4 sm:$0xff]   ;;  %v209_v31 = vmul.f32 %v3954_v26, %v3954_v26  ;;  %v3358_v32 = vld [vmem:[#allocation6 + $0x7c] ss:$12 sps:$4 sm:$0xff]  }
  0x65   :  { %609 = vmatpush1.bf16.msra.mxu0 %v3345_v14  ;;  %3104 = vmatprep.subr.bf16.mxu1 %v3352_v22  ;;  %v3356_v28 = vld [vmem:[#allocation6 + $0x38] ss:$12 sps:$4 sm:$0xff]   ;;  %v3956_v30 = vld [vmem:[#allocation3 + $0x48] sm:$0xff]  ;;  %v3362_v36 = vld [vmem:[#allocation6 + $0x94] ss:$12 sps:$4 sm:$0xff]  }
  0x66   :  { %173 = vadd.xlane.f32.xlu0 %v3924_v4  ;;  %610 = vmatprep.subr.bf16.mxu0 %v3346_v17  ;;  %v3361_v34 = vld [vmem:[#allocation6 + $0x78] ss:$12 sps:$4 sm:$0xff]   ;;  %v210_v35 = vmul.f32 %v3956_v30, %v3956_v30  ;;  %v3364_v37 = vld [vmem:[#allocation6 + $0x68] ss:$12 sps:$4 sm:$0xff]   ;;  %v3365_v39 = vld [vmem:[#allocation6 + $0x90] ss:$12 sps:$4 sm:$0xff]  }
  0x67   :  { %v3964_v38 = vld [vmem:[#allocation3 + $0x50] sm:$0xff]  ;;  %v3966_v40 = vld [vmem:[#allocation3 + $0x58] sm:$0xff]  ;;  %v3368_v43 = vld [vmem:[#allocation6 + $0x80] ss:$12 sps:$4 sm:$0xff]  }
  0x68   :  { %175 = vadd.xlane.f32.xlu1 %v3926_v5  ;;  %3105 = vmatpush3.bf16.msra.mxu1 %v3352_v22  ;;  %v211_v41 = vmul.f32 %v3964_v38, %v3964_v38  ;;  %v3366_v42 = vld [vmem:[#allocation6 + $0xac] ss:$12 sps:$4 sm:$0xff]   ;;  %v3369_v44 = vld [vmem:[#allocation6 + $0xa8] ss:$12 sps:$4 sm:$0xff]   ;;  %v212_v45 = vmul.f32 %v3966_v40, %v3966_v40  ;;  %v3974_v47 = vld [vmem:[#allocation3 + $0x60] sm:$0xff] }
  0x69   :  { %611 = vmatpush1.bf16.msra.mxu0 %v3349_v19  ;;  %3106 = vmatprep.subr.bf16.mxu1 %v3356_v28  ;;  %v3370_v46 = vld [vmem:[#allocation6 + $0x98] ss:$12 sps:$4 sm:$0xff]   ;;  %v3977_v49 = vld [vmem:[#allocation3 + $0x68] sm:$0xff]  ;;  %v213_v50 = vmul.f32 %v3974_v47, %v3974_v47  ;;  %v3371_v51 = vld [vmem:[#allocation6 + $0xb0] ss:$12 sps:$4 sm:$0xff]  }
  0x6a   :  { %221 = vadd.xlane.f32.xlu0 %v203_v7  ;;  %612 = vmatprep.subr.bf16.mxu0 %v3350_v21  ;;  %v214_v52 = vmul.f32 %v3977_v49, %v3977_v49  ;;  %v3985_v53 = vld [vmem:[#allocation3 + $0x70] sm:$0xff]  ;;  %v3987_v54 = vld [vmem:[#allocation3 + $0x78] sm:$0xff] }
  0x6b   :  { %v215_v55 = vmul.f32 %v3985_v53, %v3985_v53  ;;  %v216_v56 = vmul.f32 %v3987_v54, %v3987_v54 }
  0x6c   :  { %223 = vadd.xlane.f32.xlu1 %v204_v8  ;;  %3107 = vmatpush3.bf16.msra.mxu1 %v3356_v28 }
  0x6d   :  { %613 = vmatpush1.bf16.msra.mxu0 %v3353_v24  ;;  %3108 = vmatprep.subr.bf16.mxu1 %v3360_v33 }
  0x6e   :  { %177 = vadd.xlane.f32.xlu0 %v3934_v9  ;;  %614 = vmatprep.subr.bf16.mxu0 %v3354_v27 }
  0x70   :  { %179 = vadd.xlane.f32.xlu1 %v3936_v11  ;;  %3109 = vmatpush3.bf16.msra.mxu1 %v3360_v33 }
  0x71   :  { %615 = vmatpush1.bf16.msra.mxu0 %v3357_v29  ;;  %3110 = vmatprep.subr.bf16.mxu1 %v3364_v37 }
  0x72   :  { %225 = vadd.xlane.f32.xlu0 %v205_v13  ;;  %616 = vmatprep.subr.bf16.mxu0 %v3358_v32 }
  0x74   :  { %227 = vadd.xlane.f32.xlu1 %v206_v15  ;;  %3111 = vmatpush3.bf16.msra.mxu1 %v3364_v37 }
  0x75   :  { %617 = vmatpush1.bf16.msra.mxu0 %v3361_v34  ;;  %3112 = vmatprep.subr.bf16.mxu1 %v3368_v43 }
  0x76   :  { %181 = vadd.xlane.f32.xlu0 %v3944_v16  ;;  %618 = vmatprep.subr.bf16.mxu0 %v3362_v36 }
  0x78   :  { %183 = vadd.xlane.f32.xlu1 %v3946_v20  ;;  %3113 = vmatpush3.bf16.msra.mxu1 %v3368_v43  ;;  %v4005_v43 = vld [vmem:[%s5133_s1] ss:$0 sm:$0xff] }
  0x79   :  { %619 = vmatpush1.bf16.msra.mxu0 %v3365_v39  ;;  %3114 = vmatprep.subr.bf16.mxu1 %v3370_v46 }
  0x7a   :  { %229 = vadd.xlane.f32.xlu0 %v207_v23  ;;  %620 = vmatprep.subr.bf16.mxu0 %v3366_v42 }
  0x7c   :  { %231 = vadd.xlane.f32.xlu1 %v208_v25  ;;  %3115 = vmatpush3.bf16.msra.mxu1 %v3370_v46 }
  0x7d   :  { %621 = vmatpush1.bf16.msra.mxu0 %v3369_v44  ;;  %3116 = vmatprep.subr.bf16.mxu1 %v3371_v51 }
  0x7e   :  { %185 = vadd.xlane.f32.xlu0 %v3954_v26 }
  0x80   :  { %187 = vadd.xlane.f32.xlu1 %v3956_v30  ;;  %3117 = vmatpush3.bf16.msra.mxu1 %v3371_v51 }
  0x82   :  { %233 = vadd.xlane.f32.xlu0 %v209_v31 }
  0x84   :  { %235 = vadd.xlane.f32.xlu1 %v210_v35 }
  0x86   :  { %189 = vadd.xlane.f32.xlu0 %v3964_v38 }
  0x88   :  { %191 = vadd.xlane.f32.xlu1 %v3966_v40 }
  0x8a   :  { %237 = vadd.xlane.f32.xlu0 %v211_v41 }
  0x8c   :  { %239 = vadd.xlane.f32.xlu1 %v212_v45 }
  0x8e   :  { %193 = vadd.xlane.f32.xlu0 %v3974_v47 }
  0x90   :  { %195 = vadd.xlane.f32.xlu1 %v3977_v49 }
  0x92   :  { %241 = vadd.xlane.f32.xlu0 %v213_v50 }
  0x94   :  { %243 = vadd.xlane.f32.xlu1 %v214_v52 }
  0x96   :  { %197 = vadd.xlane.f32.xlu0 %v3985_v53 }
  0x98   :  { %199 = vadd.xlane.f32.xlu1 %v3987_v54 }
  0x9a   :  { %245 = vadd.xlane.f32.xlu0 %v215_v55 }
  0x9c   :  { %247 = vadd.xlane.f32.xlu1 %v216_v56 }
  0xeb   :  { %v170_v57 = vpop.xlane.xlu0 %169 }
  0xec   :  { %v250_v58 = vmul.f32 0.03125, %v170_v57 }
  0xed   :  { %v218_v59 = vpop.xlane.xlu1 %217 }
  0xee   :  { %v282_v60 = vmul.f32 %v250_v58, %v250_v58  ;;  %v266_v61 = vmul.f32 0.03125, %v218_v59  ;;  %v314_v32 = vsub.f32 %v3914_v0, %v250_v58 }
  0xef   :  { %v172_v62 = vpop.xlane.xlu0 %171 }
  0xf0   :  { %v298_v63 = vsub.f32 %v266_v61, %v282_v60  ;;  %v251_v2 = vmul.f32 0.03125, %v172_v62  ;;  %v4016_v60 = vld [vmem:[%s5134_s2] ss:$0 sm:$0xff] }
  0xf1   :  { %v220_v3 = vpop.xlane.xlu1 %219 }
  0xf2   :  { %v330_v6 = vadd.f32 1e-05, %v298_v63  ;;  %v283_v7 = vmul.f32 %v251_v2, %v251_v2  ;;  %v267_v8 = vmul.f32 0.03125, %v220_v3  ;;  %v315_v0 = vsub.f32 %v3916_v1, %v251_v2 }
  0xf3   :  { %v174_v10 = vpop.xlane.xlu0 %173 }
  0xf4   :  { %3396 = vrsqrt.f32 %v330_v6  ;;  %v299_v12 = vsub.f32 %v267_v8, %v283_v7  ;;  %v252_v13 = vmul.f32 0.03125, %v174_v10 }
  0xf5   :  { %v176_v14 = vpop.xlane.xlu1 %175 }
  0xf6   :  { %v331_v15 = vadd.f32 1e-05, %v299_v12  ;;  %v284_v17 = vmul.f32 %v252_v13, %v252_v13  ;;  %v253_v18 = vmul.f32 0.03125, %v176_v14  ;;  %v316_v2 = vsub.f32 %v3924_v4, %v252_v13 }
  0xf7   :  { %v222_v19 = vpop.xlane.xlu0 %221 }
  0xf8   :  { %3398 = vrsqrt.f32 %v331_v15  ;;  %v268_v21 = vmul.f32 0.03125, %v222_v19  ;;  %v285_v23 = vmul.f32 %v253_v18, %v253_v18  ;;  %v317_v14 = vsub.f32 %v3926_v5, %v253_v18 }
  0xf9   :  { %v224_v22 = vpop.xlane.xlu1 %223 }
  0xfa   :  { %v300_v24 = vsub.f32 %v268_v21, %v284_v17  ;;  %v269_v25 = vmul.f32 0.03125, %v224_v22 }
  0xfb   :  { %v178_v27 = vpop.xlane.xlu0 %177 }
  0xfc   :  { %v332_v28 = vadd.f32 1e-05, %v300_v24  ;;  %v301_v29 = vsub.f32 %v269_v25, %v285_v23  ;;  %v3995_v31 = vmul.f32 0.03125, %v178_v27 }
  0xfd   :  { %v180_v33 = vpop.xlane.xlu1 %179 }
  0xfe   :  { %v3397_v34 = vpop.eup %3396  ;;  %3400 = vrsqrt.f32 %v332_v28  ;;  %v333_v35 = vadd.f32 1e-05, %v301_v29  ;;  %v286_v36 = vmul.f32 %v3995_v31, %v3995_v31  ;;  %v4000_v37 = vmul.f32 0.03125, %v180_v33 }
  0xff   :  { %v226_v39 = vpop.xlane.xlu0 %225  ;;  %v362_v41 = vmul.f32 %v3397_v34, %v314_v32  ;;  %v318_v34 = vsub.f32 %v3934_v9, %v3995_v31 }
 0x100   :  { %3402 = vrsqrt.f32 %v333_v35  ;;  %v270_v42 = vmul.f32 0.03125, %v226_v39  ;;  %v287_v46 = vmul.f32 %v4000_v37, %v4000_v37 }
 0x101   :  { %v228_v44 = vpop.xlane.xlu1 %227  ;;  %v384_v56 = vmul.f32 %v4005_v43, %v362_v41 }
 0x102   :  { %v3399_v45 = vpop.eup %3398  ;;  %v302_v50 = vsub.f32 %v270_v42, %v286_v36  ;;  %v271_v51 = vmul.f32 0.03125, %v228_v44  ;;  %v319_v44 = vsub.f32 %v3936_v11, %v4000_v37 }
 0x103   :  { %v182_v52 = vpop.xlane.xlu0 %181  ;;  %v363_v55 = vmul.f32 %v3399_v45, %v315_v0  ;;  %v406_v7 = vadd.f32 %v4016_v60, %v384_v56 }
 0x104   :  { %v334_v57 = vadd.f32 1e-05, %v302_v50  ;;  %v303_v58 = vsub.f32 %v271_v51, %v287_v46  ;;  %v4011_v59 = vmul.f32 0.03125, %v182_v52 }
 0x105   :  { %v184_v1 = vpop.xlane.xlu1 %183  ;;  %v385_v61 = vmul.f32 %v4005_v43, %v363_v55 }
 0x106   :  { %3404 = vrsqrt.f32 %v334_v57  ;;  %v335_v62 = vadd.f32 1e-05, %v303_v58  ;;  %v288_v63 = vmul.f32 %v4011_v59, %v4011_v59  ;;  %v4022_v3 = vmul.f32 0.03125, %v184_v1 }
 0x107   :  { %v230_v6 = vpop.xlane.xlu0 %229  ;;  %v407_v8 = vadd.f32 %v4016_v60, %v385_v61 }
 0x108   :  { %v3401_v10 = vpop.eup %3400  ;;  %3406 = vrsqrt.f32 %v335_v62  ;;  %v272_v12 = vmul.f32 0.03125, %v230_v6  ;;  %v289_v22 = vmul.f32 %v4022_v3, %v4022_v3 }
 0x109   :  { %v232_v15 = vpop.xlane.xlu1 %231  ;;  %v422_v17 = vpack.c.bf16 %v407_v8, %v406_v7  ;;  %v364_v19 = vmul.f32 %v3401_v10, %v316_v2  ;;  %v320_v2 = vsub.f32 %v3944_v16, %v4011_v59 }
 0x10a   :  { %v3403_v21 = vpop.eup %3402  ;;  %v304_v4 = vsub.f32 %v272_v12, %v288_v63  ;;  %v273_v13 = vmul.f32 0.03125, %v232_v15  ;;  %v321_v15 = vsub.f32 %v3946_v20, %v4022_v3 }
 0x10b   :  { %v186_v23 = vpop.xlane.xlu0 %185  ;;  %639 = vmatmul.mubr.bf16.vlgmr.msra.gmra.mrb[0].mxu0 %v422_v17  ;;  %3118 = vmatprep.mubr.bf16.mxu1 %v422_v17  ;;  %v365_v24 = vmul.f32 %v3403_v21, %v317_v14  ;;  %v386_v25 = vmul.f32 %v4005_v43, %v364_v19 }
 0x10c   :  { %v336_v27 = vadd.f32 1e-05, %v304_v4  ;;  %v305_v28 = vsub.f32 %v273_v13, %v289_v22  ;;  %v4030_v29 = vmul.f32 0.03125, %v186_v23  ;;  %648 = vmatprep.mubr.bf16.mxu0 %v3759_v48 }
 0x10d   :  { %v188_v5 = vpop.xlane.xlu1 %187  ;;  %v387_v18 = vmul.f32 %v4005_v43, %v365_v24  ;;  %v408_v39 = vadd.f32 %v4016_v60, %v386_v25 }
 0x10e   :  { %3408 = vrsqrt.f32 %v336_v27  ;;  %v337_v32 = vadd.f32 1e-05, %v305_v28  ;;  %v290_v33 = vmul.f32 %v4030_v29, %v4030_v29  ;;  %v4038_v35 = vmul.f32 0.03125, %v188_v5 }
 0x10f   :  { %v234_v36 = vpop.xlane.xlu0 %233  ;;  %v409_v41 = vadd.f32 %v4016_v60, %v387_v18 }
 0x110   :  { %v3405_v42 = vpop.eup %3404  ;;  %3410 = vrsqrt.f32 %v337_v32  ;;  %v274_v0 = vmul.f32 0.03125, %v234_v36  ;;  %v291_v9 = vmul.f32 %v4038_v35, %v4038_v35  ;;  %v322_v32 = vsub.f32 %v3954_v26, %v4030_v29 }
 0x111   :  { %v236_v45 = vpop.xlane.xlu1 %235  ;;  %v423_v46 = vpack.c.bf16 %v409_v41, %v408_v39  ;;  %v366_v50 = vmul.f32 %v3405_v42, %v318_v34 }
 0x112   :  { %v3407_v51 = vpop.eup %3406  ;;  %v306_v31 = vsub.f32 %v274_v0, %v290_v33  ;;  %v275_v52 = vmul.f32 0.03125, %v236_v45  ;;  %v323_v0 = vsub.f32 %v3956_v30, %v4038_v35 }
 0x113   :  { %v190_v55 = vpop.xlane.xlu0 %189  ;;  %649 = vmatmul.mubr.bf16.gmra.mrb[4].mxu0 %v423_v46  ;;  %3119 = vmatmul.mubr.bf16.vlgmr.msra.gmra.mrb[0].mxu1 %v423_v46  ;;  %v367_v56 = vmul.f32 %v3407_v51, %v319_v44  ;;  %v388_v57 = vmul.f32 %v4005_v43, %v366_v50 }
 0x114   :  { %v338_v58 = vadd.f32 1e-05, %v306_v31  ;;  %v307_v1 = vsub.f32 %v275_v52, %v291_v9  ;;  %v4047_v61 = vmul.f32 0.03125, %v190_v55  ;;  %658 = vmatprep.mubr.bf16.mxu0 %v3759_v48 }
 0x115   :  { %v192_v11 = vpop.xlane.xlu1 %191  ;;  %v389_v37 = vmul.f32 %v4005_v43, %v367_v56  ;;  %v410_v8 = vadd.f32 %v4016_v60, %v388_v57 }
 0x116   :  { %3412 = vrsqrt.f32 %v338_v58  ;;  %v339_v62 = vadd.f32 1e-05, %v307_v1  ;;  %v292_v63 = vmul.f32 %v4047_v61, %v4047_v61  ;;  %v4055_v6 = vmul.f32 0.03125, %v192_v11 }
 0x117   :  { %v238_v7 = vpop.xlane.xlu0 %237  ;;  %v411_v10 = vadd.f32 %v4016_v60, %v389_v37  ;;  %v324_v11 = vsub.f32 %v3964_v38, %v4047_v61 }
 0x118   :  { %v3409_v12 = vpop.eup %3408  ;;  %3414 = vrsqrt.f32 %v339_v62  ;;  %v276_v14 = vmul.f32 0.03125, %v238_v7  ;;  %v293_v16 = vmul.f32 %v4055_v6, %v4055_v6 }
 0x119   :  { %v240_v17 = vpop.xlane.xlu1 %239  ;;  %v424_v19 = vpack.c.bf16 %v411_v10, %v410_v8  ;;  %v368_v21 = vmul.f32 %v3409_v12, %v320_v2  ;;  %v325_v10 = vsub.f32 %v3966_v40, %v4055_v6 }
 0x11a   :  { %v3411_v22 = vpop.eup %3410  ;;  %v308_v59 = vsub.f32 %v276_v14, %v292_v63  ;;  %v277_v4 = vmul.f32 0.03125, %v240_v17 }
 0x11b   :  { %v194_v13 = vpop.xlane.xlu0 %193  ;;  %659 = vmatmul.mubr.bf16.gmra.mrb[8].mxu0 %v424_v19  ;;  %3122 = vmatprep.mubr.bf16.mxu1 %v424_v19  ;;  %v369_v23 = vmul.f32 %v3411_v22, %v321_v15  ;;  %v390_v24 = vmul.f32 %v4005_v43, %v368_v21 }
 0x11c   :  { %v340_v25 = vadd.f32 1e-05, %v308_v59  ;;  %v309_v27 = vsub.f32 %v277_v4, %v293_v16  ;;  %v4064_v28 = vmul.f32 0.03125, %v194_v13  ;;  %668 = vmatprep.mubr.bf16.mxu0 %v3759_v48 }
 0x11d   :  { %v196_v20 = vpop.xlane.xlu1 %195  ;;  %v391_v3 = vmul.f32 %v4005_v43, %v369_v23  ;;  %v412_v36 = vadd.f32 %v4016_v60, %v390_v24 }
 0x11e   :  { %3416 = vrsqrt.f32 %v340_v25  ;;  %v341_v5 = vadd.f32 1e-05, %v309_v27  ;;  %v294_v18 = vmul.f32 %v4064_v28, %v4064_v28  ;;  %v4072_v33 = vmul.f32 0.03125, %v196_v20 }
 0x11f   :  { %v242_v34 = vpop.xlane.xlu0 %241  ;;  %v413_v39 = vadd.f32 %v4016_v60, %v391_v3  ;;  %v326_v6 = vsub.f32 %v3974_v47, %v4064_v28 }
 0x120   :  { %v3413_v41 = vpop.eup %3412  ;;  %3418 = vrsqrt.f32 %v341_v5  ;;  %v278_v42 = vmul.f32 0.03125, %v242_v34  ;;  %v295_v26 = vmul.f32 %v4072_v33, %v4072_v33  ;;  %v327_v25 = vsub.f32 %v3977_v49, %v4072_v33 }
 0x121   :  { %v244_v44 = vpop.xlane.xlu1 %243  ;;  %v425_v45 = vpack.c.bf16 %v413_v39, %v412_v36  ;;  %v370_v46 = vmul.f32 %v3413_v41, %v322_v32 }
 0x122   :  { %v3415_v50 = vpop.eup %3414  ;;  %v310_v29 = vsub.f32 %v278_v42, %v294_v18  ;;  %v279_v51 = vmul.f32 0.03125, %v244_v44 }
 0x123   :  { %v198_v9 = vpop.xlane.xlu0 %197  ;;  %669 = vmatmul.mubr.bf16.gmra.mrb[12].mxu0 %v425_v45  ;;  %3123 = vmatmul.mubr.bf16.gmra.mrb[4].mxu1 %v425_v45  ;;  %v371_v31 = vmul.f32 %v3415_v50, %v323_v0  ;;  %v392_v52 = vmul.f32 %v4005_v43, %v370_v46 }
 0x124   :  { %v342_v55 = vadd.f32 1e-05, %v310_v29  ;;  %v311_v56 = vsub.f32 %v279_v51, %v295_v26  ;;  %v264_v57 = vmul.f32 0.03125, %v198_v9  ;;  %678 = vmatprep.mubr.bf16.mxu0 %v3759_v48 }
 0x125   :  { %v200_v30 = vpop.xlane.xlu1 %199  ;;  %v393_v35 = vmul.f32 %v4005_v43, %v371_v31  ;;  %v414_v63 = vadd.f32 %v4016_v60, %v392_v52 }
 0x126   :  { %3420 = vrsqrt.f32 %v342_v55  ;;  %v343_v58 = vadd.f32 1e-05, %v311_v56  ;;  %v296_v1 = vmul.f32 %v264_v57, %v264_v57  ;;  %v265_v37 = vmul.f32 0.03125, %v200_v30 }
 0x127   :  { %v246_v62 = vpop.xlane.xlu0 %245  ;;  %v415_v2 = vadd.f32 %v4016_v60, %v393_v35  ;;  %v328_v28 = vsub.f32 %v3985_v53, %v264_v57 }
 0x128   :  { %v3417_v7 = vpop.eup %3416  ;;  %3422 = vrsqrt.f32 %v343_v58  ;;  %v280_v8 = vmul.f32 0.03125, %v246_v62  ;;  %v297_v19 = vmul.f32 %v265_v37, %v265_v37  ;;  %v329_v49 = vsub.f32 %v3987_v54, %v265_v37 }
 0x129   :  { %v248_v12 = vpop.xlane.xlu1 %247  ;;  %v426_v14 = vpack.c.bf16 %v415_v2, %v414_v63  ;;  %v372_v15 = vmul.f32 %v3417_v7, %v324_v11  ;;  %v463_v54 = vlaneseq }
 0x12a   :  { %v3419_v17 = vpop.eup %3418  ;;  %v312_v21 = vsub.f32 %v280_v8, %v296_v1  ;;  %v281_v22 = vmul.f32 0.03125, %v248_v12 }
 0x12b   :  { %679 = vmatmul.mubr.bf16.gmra.mrb[16].mxu0 %v426_v14  ;;  %3126 = vmatprep.mubr.bf16.mxu1 %v426_v14  ;;  %v373_v38 = vmul.f32 %v3419_v17, %v325_v10  ;;  %v394_v61 = vmul.f32 %v4005_v43, %v372_v15  ;;  %v4110_v50 = vshrl.u32 %v463_v54, 7 }
 0x12c   :  { %v344_v16 = vadd.f32 1e-05, %v312_v21  ;;  %v313_v59 = vsub.f32 %v281_v22, %v297_v19  ;;  %688 = vmatprep.mubr.bf16.mxu0 %v3759_v48 }
 0x12d   :  { %v395_v4 = vmul.f32 %v4005_v43, %v373_v38  ;;  %v416_v13 = vadd.f32 %v4016_v60, %v394_v61  ;;  %v465_v29 = vsub.s32 0, %v4110_v50 }
 0x12e   :  { %3424 = vrsqrt.f32 %v344_v16  ;;  %v345_v40 = vadd.f32 1e-05, %v313_v59 }
 0x12f   :  { %v417_v23 = vadd.f32 %v4016_v60, %v395_v4 }
 0x130   :  { %v3421_v24 = vpop.eup %3420  ;;  %3426 = vrsqrt.f32 %v345_v40 }
 0x131   :  { %v427_v27 = vpack.c.bf16 %v417_v23, %v416_v13  ;;  %v374_v20 = vmul.f32 %v3421_v24, %v326_v6 }
 0x132   :  { %v3423_v3 = vpop.eup %3422 }
 0x133   :  { %689 = vmatmul.mubr.bf16.gmra.mrb[20].mxu0 %v427_v27  ;;  %3127 = vmatmul.mubr.bf16.gmra.mrb[8].mxu1 %v427_v27  ;;  %v375_v5 = vmul.f32 %v3423_v3, %v327_v25  ;;  %v396_v18 = vmul.f32 %v4005_v43, %v374_v20 }
 0x134   :  { %698 = vmatprep.mubr.bf16.mxu0 %v3759_v48 }
 0x135   :  { %v397_v47 = vmul.f32 %v4005_v43, %v375_v5  ;;  %v418_v32 = vadd.f32 %v4016_v60, %v396_v18 }
 0x137   :  { %v419_v34 = vadd.f32 %v4016_v60, %v397_v47 }
 0x138   :  { %v3425_v36 = vpop.eup %3424 }
 0x139   :  { %v428_v33 = vpack.c.bf16 %v419_v34, %v418_v32  ;;  %v376_v39 = vmul.f32 %v3425_v36, %v328_v28 }
 0x13a   :  { %v3427_v41 = vpop.eup %3426 }
 0x13b   :  { %699 = vmatmul.mubr.bf16.gmra.mrb[24].mxu0 %v428_v33  ;;  %3130 = vmatprep.mubr.bf16.mxu1 %v428_v33  ;;  %v377_v42 = vmul.f32 %v3427_v41, %v329_v49  ;;  %v398_v0 = vmul.f32 %v4005_v43, %v376_v39 }
 0x13c   :  { %708 = vmatprep.mubr.bf16.mxu0 %v3759_v48  ;;  %v4118_v48 = vld [vmem:[%s5136_s4] sm:$0x7] }
 0x13d   :  { %v399_v44 = vmul.f32 %v4005_v43, %v377_v42  ;;  %v420_v53 = vadd.f32 %v4016_v60, %v398_v0  ;;  %v4126_v31 = vrot.slane %v4118_v48, %v465_v29 }
 0x13f   :  { %v421_v45 = vadd.f32 %v4016_v60, %v399_v44  ;;  %v473_v60 = vsub.s32 2, %v4110_v50 }
 0x141   :  { %v429_v46 = vpack.c.bf16 %v421_v45, %v420_v53  ;;  %v4131_v52 = vrot.slane %v4118_v48, %v473_v60 }
 0x143   :  { %709 = vmatmul.mubr.bf16.gmra.mrb[28].mxu0 %v429_v46  ;;  %3131 = vmatmul.mubr.bf16.gmra.mrb[12].mxu1 %v429_v46 }
 0x1de   :  { %v640_v26 = vpop.f32.mrb[0].mxu0 }
 0x1df   :  { %v4113_v51 = vpop.f32.mrb[1].mxu0  ;;  %v4134_v57 = vadd.f32 %v640_v26, %v4126_v31 }
 0x1e0   :  { %v644_v43 = vpop.f32.mrb[2].mxu0 }
 0x1e1   :  { %v4120_v9 = vpop.f32.mrb[3].mxu0  ;;  %v4142_v1 = vadd.f32 %v644_v43, %v4126_v31 }
 0x1e6   :  { %v650_v55 = vpop.f32.mrb[4].mxu0  ;;  %v3120_v56 = vpop.f32.mrb[0].mxu1 }
 0x1e7   :  { %v4137_v30 = vadd.f32 %v650_v55, %v4126_v31  ;;  %v4139_v35 = vpop.f32.mrb[5].mxu0  ;;  %v753_v58 = vpop.f32.mrb[1].mxu1  ;;  %v762_v63 = vadd.f32 %v3120_v56, %v4131_v52 }
 0x1e8   :  { %v654_v11 = vpop.f32.mrb[6].mxu0  ;;  %v3121_v37 = vpop.f32.mrb[2].mxu1  ;;  %v754_v12 = vadd.f32 %v753_v58, %v4131_v52 }
 0x1e9   :  { %v816_v62 = vmax.f32 %v4134_v57, %v4137_v30  ;;  %v4148_v2 = vadd.f32 %v654_v11, %v4126_v31  ;;  %v765_v7 = vadd.f32 %v3121_v37, %v4131_v52  ;;  %v4151_v8 = vpop.f32.mrb[7].mxu0  ;;  %v756_v10 = vpop.f32.mrb[3].mxu1 }
 0x1ea   :  { %v757_v14 = vadd.f32 %v756_v10, %v4131_v52 }
 0x1eb   :  { %v817_v15 = vmax.f32 %v4142_v1, %v4148_v2  ;;  %v1037_v17 = vpack.c.bf16 %v765_v7, %v762_v63 }
 0x1ec   :  { %v1036_v19 = vpack.c.bf16 %v757_v14, %v754_v12 }
 0x1ee   :  { %v660_v21 = vpop.f32.mrb[8].mxu0  ;;  %3134 = vmatprep.subr.bf16.mxu1 %v1036_v19 }
 0x1ef   :  { %v4158_v22 = vadd.f32 %v660_v21, %v4126_v31  ;;  %v4160_v38 = vpop.f32.mrb[9].mxu0  ;;  %3135 = vmatpush3.bf16.msra.mxu1 %v1036_v19 }
 0x1f0   :  { %v664_v61 = vpop.f32.mrb[10].mxu0  ;;  %3136 = vmatprep.subr.bf16.mxu1 %v1037_v17 }
 0x1f1   :  { %v818_v16 = vmax.f32 %v816_v62, %v4158_v22  ;;  %v4164_v59 = vadd.f32 %v664_v61, %v4126_v31  ;;  %v4166_v4 = vpop.f32.mrb[11].mxu0 }
 0x1f3   :  { %v819_v40 = vmax.f32 %v817_v15, %v4164_v59  ;;  %3137 = vmatpush3.bf16.msra.mxu1 %v1037_v17 }
 0x1f6   :  { %v670_v6 = vpop.f32.mrb[12].mxu0  ;;  %v3124_v13 = vpop.f32.mrb[4].mxu1 }
 0x1f7   :  { %v4170_v23 = vadd.f32 %v670_v6, %v4126_v31  ;;  %v4172_v24 = vpop.f32.mrb[13].mxu0  ;;  %v769_v25 = vpop.f32.mrb[5].mxu1  ;;  %v778_v5 = vadd.f32 %v3124_v13, %v4131_v52 }
 0x1f8   :  { %v674_v27 = vpop.f32.mrb[14].mxu0  ;;  %v3125_v20 = vpop.f32.mrb[6].mxu1  ;;  %v770_v34 = vadd.f32 %v769_v25, %v4131_v52 }
 0x1f9   :  { %v820_v3 = vmax.f32 %v818_v16, %v4170_v23  ;;  %v675_v18 = vadd.f32 %v674_v27, %v4126_v31  ;;  %v781_v47 = vadd.f32 %v3125_v20, %v4131_v52  ;;  %v4178_v28 = vpop.f32.mrb[15].mxu0  ;;  %v772_v32 = vpop.f32.mrb[7].mxu1 }
 0x1fa   :  { %v773_v36 = vadd.f32 %v772_v32, %v4131_v52 }
 0x1fb   :  { %v821_v49 = vmax.f32 %v819_v40, %v675_v18  ;;  %v1039_v33 = vpack.c.bf16 %v781_v47, %v778_v5 }
 0x1fc   :  { %v1038_v39 = vpack.c.bf16 %v773_v36, %v770_v34 }
 0x1fd   :  { %v822_v41 = vmax.f32 %v820_v3, %v821_v49 }
 0x1fe   :  { %v680_v42 = vpop.f32.mrb[16].mxu0  ;;  %3138 = vmatprep.subr.bf16.mxu1 %v1038_v39 }
 0x1ff   :  { %v823_v0 = vrot.slane %v822_v41, 4  ;;  %v4182_v44 = vpop.f32.mrb[17].mxu0  ;;  %3139 = vmatpush3.bf16.msra.mxu1 %v1038_v39  ;;  %v4187_v58 = vadd.f32 %v680_v42, %v4126_v31 }
 0x200   :  { %v684_v53 = vpop.f32.mrb[18].mxu0  ;;  %3140 = vmatprep.subr.bf16.mxu1 %v1039_v33 }
 0x201   :  { %v824_v45 = vmax.f32 %v822_v41, %v823_v0  ;;  %v4184_v46 = vpop.f32.mrb[19].mxu0  ;;  %v4203_v21 = vadd.f32 %v684_v53, %v4126_v31 }
 0x203   :  { %v825_v54 = vrot.slane %v824_v45, 2  ;;  %3141 = vmatpush3.bf16.msra.mxu1 %v1039_v33 }
 0x205   :  { %v826_v26 = vmax.f32 %v824_v45, %v825_v54 }
 0x206   :  { %v690_v43 = vpop.f32.mrb[20].mxu0  ;;  %v3128_v55 = vpop.f32.mrb[8].mxu1 }
 0x207   :  { %v827_v56 = vrot.slane %v826_v26, 1  ;;  %v4190_v11 = vadd.f32 %v690_v43, %v4126_v31  ;;  %v4192_v37 = vpop.f32.mrb[21].mxu0  ;;  %v785_v62 = vpop.f32.mrb[9].mxu1  ;;  %v794_v61 = vadd.f32 %v3128_v55, %v4131_v52 }
 0x208   :  { %v694_v63 = vpop.f32.mrb[22].mxu0  ;;  %v3129_v7 = vpop.f32.mrb[10].mxu1  ;;  %v786_v16 = vadd.f32 %v785_v62, %v4131_v52 }
 0x209   :  { %v828_v10 = vmax.f32 %v826_v26, %v827_v56  ;;  %v829_v12 = vmax.f32 %v4187_v58, %v4190_v11  ;;  %v4197_v14 = vadd.f32 %v694_v63, %v4126_v31  ;;  %v797_v15 = vadd.f32 %v3129_v7, %v4131_v52  ;;  %v4200_v17 = vpop.f32.mrb[23].mxu0  ;;  %v788_v19 = vpop.f32.mrb[11].mxu1 }
 0x20a   :  { %v789_v40 = vadd.f32 %v788_v19, %v4131_v52 }
 0x20b   :  { %v844_v6 = vsub.f32 %v4137_v30, %v828_v10  ;;  %v845_v13 = vsub.f32 %v4148_v2, %v828_v10  ;;  %v846_v25 = vsub.f32 %v4158_v22, %v828_v10  ;;  %v847_v27 = vsub.f32 %v4164_v59, %v828_v10 }
 0x20c   :  { %v848_v20 = vsub.f32 %v4170_v23, %v828_v10  ;;  %v849_v3 = vsub.f32 %v675_v18, %v828_v10  ;;  %v830_v5 = vmax.f32 %v4203_v21, %v4197_v14  ;;  %v1041_v47 = vpack.c.bf16 %v797_v15, %v794_v61 }
 0x20d   :  { %v862_v32 = vmul.f32 1.442695, %v844_v6  ;;  %v864_v34 = vmul.f32 1.442695, %v845_v13  ;;  %v866_v36 = vmul.f32 1.442695, %v846_v25  ;;  %v1040_v49 = vpack.c.bf16 %v789_v40, %v786_v16 }
 0x20e   :  { %v868_v33 = vmul.f32 1.442695, %v847_v27  ;;  %v842_v30 = vsub.f32 %v4134_v57, %v828_v10  ;;  %v870_v2 = vmul.f32 1.442695, %v848_v20  ;;  %v700_v39 = vpop.f32.mrb[24].mxu0  ;;  %v843_v22 = vsub.f32 %v4142_v1, %v828_v10 }
 0x20f   :  { %3428 = vpow2.f32 %v862_v32  ;;  %3158 = vmatprep.subr.bf16.mxu0 %v1040_v49  ;;  %v872_v59 = vmul.f32 1.442695, %v849_v3  ;;  %v4218_v23 = vadd.f32 %v700_v39, %v4126_v31  ;;  %v4220_v18 = vpop.f32.mrb[25].mxu0 }
 0x210   :  { %3430 = vpow2.f32 %v864_v34  ;;  %3159 = vmatpush3.bf16.msra.mxu0 %v1040_v49  ;;  %v704_v41 = vpop.f32.mrb[26].mxu0  ;;  %v858_v42 = vmul.f32 1.442695, %v842_v30  ;;  %v860_v1 = vmul.f32 1.442695, %v843_v22 }
 0x211   :  { %3432 = vpow2.f32 %v866_v36  ;;  %3160 = vmatprep.subr.bf16.mxu0 %v1041_v47  ;;  %v831_v57 = vmax.f32 %v829_v12, %v4218_v23  ;;  %v4224_v0 = vadd.f32 %v704_v41, %v4126_v31  ;;  %v4226_v53 = vpop.f32.mrb[27].mxu0 }
 0x212   :  { %3434 = vpow2.f32 %v868_v33 }
 0x213   :  { %3436 = vpow2.f32 %v870_v2  ;;  %v832_v45 = vmax.f32 %v830_v5, %v4224_v0 }
 0x214   :  { %3438 = vpow2.f32 %v872_v59  ;;  %3161 = vmatpush3.bf16.msra.mxu0 %v1041_v47 }
 0x215   :  { %3440 = vpow2.f32 %v858_v42 }
 0x216   :  { %v710_v54 = vpop.f32.mrb[28].mxu0  ;;  %v3132_v26 = vpop.f32.mrb[12].mxu1  ;;  %3442 = vpow2.f32 %v860_v1 }
 0x217   :  { %v711_v43 = vadd.f32 %v710_v54, %v4126_v31  ;;  %v4230_v55 = vpop.f32.mrb[29].mxu0  ;;  %v801_v56 = vpop.f32.mrb[13].mxu1  ;;  %v810_v12 = vadd.f32 %v3132_v26, %v4131_v52 }
 0x218   :  { %v714_v62 = vpop.f32.mrb[30].mxu0  ;;  %v3133_v63 = vpop.f32.mrb[14].mxu1  ;;  %v802_v6 = vadd.f32 %v801_v56, %v4131_v52 }
 0x219   :  { %v3429_v7 = vpop.eup %3428  ;;  %v833_v10 = vmax.f32 %v831_v57, %v711_v43  ;;  %v715_v15 = vadd.f32 %v714_v62, %v4126_v31  ;;  %v813_v19 = vadd.f32 %v3133_v63, %v4131_v52  ;;  %v4235_v61 = vpop.f32.mrb[31].mxu0 }
 0x21a   :  { %v804_v16 = vpop.f32.mrb[15].mxu1  ;;  %v3431_v40 = vpop.eup %3430 }
 0x21b   :  { %v805_v13 = vadd.f32 %v804_v16, %v4131_v52  ;;  %v3433_v25 = vpop.eup %3432  ;;  %v834_v27 = vmax.f32 %v832_v45, %v715_v15  ;;  %v1043_v20 = vpack.c.bf16 %v813_v19, %v810_v12  ;;  %v1029_v3 = vpack.c.bf16 %v3431_v40, %v3429_v7 }
 0x21c   :  { %v3435_v5 = vpop.eup %3434 }
 0x21d   :  { %v1042_v47 = vpack.c.bf16 %v805_v13, %v802_v6  ;;  %v3437_v32 = vpop.eup %3436  ;;  %v835_v34 = vmax.f32 %v833_v10, %v834_v27  ;;  %v1030_v36 = vpack.c.bf16 %v3435_v5, %v3433_v25 }
 0x21e   :  { %v3439_v31 = vpop.eup %3438 }
 0x21f   :  { %3162 = vmatprep.subr.bf16.mxu0 %v1042_v47  ;;  %v3441_v49 = vpop.eup %3440  ;;  %v836_v33 = vrot.slane %v835_v34, 4  ;;  %v1031_v30 = vpack.c.bf16 %v3439_v31, %v3437_v32 }
 0x220   :  { %3163 = vmatpush3.bf16.msra.mxu0 %v1042_v47  ;;  %v3443_v2 = vpop.eup %3442 }
 0x221   :  { %3164 = vmatprep.subr.bf16.mxu0 %v1043_v20  ;;  %v837_v39 = vmax.f32 %v835_v34, %v836_v33  ;;  %v1028_v22 = vpack.c.bf16 %v3443_v2, %v3441_v49  ;;  %v890_v52 = vadd.f32 %v3443_v2, %v3441_v49 }
 0x223   :  { %v838_v59 = vrot.slane %v837_v39, 2  ;;  %1044 = vxpose.xlu0.c.b16.start [1/4] (short) %v1028_v22, 128  ;;  %v891_v41 = vadd.f32 %v3429_v7, %v890_v52 }
 0x224   :  { %3165 = vmatpush3.bf16.msra.mxu0 %v1043_v20 }
 0x225   :  { %v839_v42 = vmax.f32 %v837_v39, %v838_v59  ;;  %v892_v57 = vadd.f32 %v3431_v40, %v891_v41 }
 0x227   :  { %v840_v1 = vrot.slane %v839_v42, 1  ;;  %v893_v45 = vadd.f32 %v3433_v25, %v892_v57  ;;  %1045 = vxpose.xlu0.c.b16.cont [2/4] (short) %v1029_v3, 128 }
 0x229   :  { %v841_v54 = vmax.f32 %v839_v42, %v840_v1  ;;  %v894_v26 = vadd.f32 %v3435_v5, %v893_v45 }
 0x22b   :  { %v852_v56 = vsub.f32 %v4190_v11, %v841_v54  ;;  %v853_v62 = vsub.f32 %v4197_v14, %v841_v54  ;;  %v854_v63 = vsub.f32 %v4218_v23, %v841_v54  ;;  %v855_v10 = vsub.f32 %v4224_v0, %v841_v54  ;;  %1046 = vxpose.xlu0.c.b16.cont [3/4] (short) %v1030_v36, 128 }
 0x22c   :  { %v856_v12 = vsub.f32 %v711_v43, %v841_v54  ;;  %v857_v19 = vsub.f32 %v715_v15, %v841_v54  ;;  %v895_v7 = vadd.f32 %v3437_v32, %v894_v26  ;;  %v850_v16 = vsub.f32 %v4187_v58, %v841_v54 }
 0x22d   :  { %v878_v40 = vmul.f32 1.442695, %v852_v56  ;;  %v880_v6 = vmul.f32 1.442695, %v853_v62  ;;  %v882_v13 = vmul.f32 1.442695, %v854_v63  ;;  %v851_v25 = vsub.f32 %v4203_v21, %v841_v54 }
 0x22e   :  { %v884_v27 = vmul.f32 1.442695, %v855_v10  ;;  %v4245_v20 = vadd.f32 %v3439_v31, %v895_v7  ;;  %v886_v11 = vmul.f32 1.442695, %v856_v12  ;;  %v888_v14 = vmul.f32 1.442695, %v857_v19 }
 0x22f   :  { %3444 = vpow2.f32 %v878_v40  ;;  %1047 = vxpose.xlu0.c.b16.end [4/4] (short) %v1031_v30, 128  ;;  %v874_v23 = vmul.f32 1.442695, %v850_v16  ;;  %v876_v0 = vmul.f32 1.442695, %v851_v25  ;;  %v469_v30 = vsub.s32 1, %v4110_v50 }
 0x230   :  { %3446 = vpow2.f32 %v880_v6 }
 0x231   :  { %3448 = vpow2.f32 %v882_v13  ;;  %v470_v22 = vrot.slane %v4118_v48, %v469_v30  ;;  %v897_v13 = vrot.slane %v4245_v20, 4 }
 0x232   :  { %3450 = vpow2.f32 %v884_v27 }
 0x233   :  { %3452 = vpow2.f32 %v886_v11  ;;  %v4252_v41 = vadd.f32 %v4113_v51, %v470_v22  ;;  %v4258_v1 = vadd.f32 %v4139_v35, %v470_v22  ;;  %v4262_v48 = vadd.f32 %v4160_v38, %v470_v22 }
 0x234   :  { %3454 = vpow2.f32 %v888_v14  ;;  %v4266_v51 = vadd.f32 %v4172_v24, %v470_v22  ;;  %v4270_v45 = vadd.f32 %v4182_v44, %v470_v22  ;;  %v4274_v35 = vadd.f32 %v4192_v37, %v470_v22 }
 0x235   :  { %3456 = vpow2.f32 %v874_v23  ;;  %v4278_v38 = vadd.f32 %v4220_v18, %v470_v22  ;;  %v4282_v24 = vadd.f32 %v4230_v55, %v470_v22  ;;  %v4286_v44 = vadd.f32 %v4120_v9, %v470_v22 }
 0x236   :  { %3458 = vpow2.f32 %v876_v0  ;;  %v4290_v37 = vadd.f32 %v4151_v8, %v470_v22  ;;  %v4294_v18 = vadd.f32 %v4166_v4, %v470_v22  ;;  %v4298_v55 = vadd.f32 %v4178_v28, %v470_v22 }
 0x237   :  { %v4302_v9 = vadd.f32 %v4184_v46, %v470_v22  ;;  %v4306_v8 = vadd.f32 %v4200_v17, %v470_v22  ;;  %v4310_v4 = vadd.f32 %v4226_v53, %v470_v22  ;;  %v4314_v28 = vadd.f32 %v4235_v61, %v470_v22 }
 0x238   :  { %v898_v25 = vadd.f32 %v897_v13, %v4245_v20 }
 0x239   :  { %v3445_v58 = vpop.eup %3444 }
 0x23a   :  { %v3447_v43 = vpop.eup %3446  ;;  %v899_v27 = vrot.slane %v898_v25, 2 }
 0x23b   :  { %v3449_v15 = vpop.eup %3448  ;;  %v1033_v21 = vpack.c.bf16 %v3447_v43, %v3445_v58 }
 0x23c   :  { %v3451_v3 = vpop.eup %3450  ;;  %v900_v11 = vadd.f32 %v899_v27, %v898_v25 }
 0x23d   :  { %v3453_v5 = vpop.eup %3452  ;;  %v1034_v47 = vpack.c.bf16 %v3451_v3, %v3449_v15 }
 0x23e   :  { %v3455_v32 = vpop.eup %3454  ;;  %v901_v14 = vrot.slane %v900_v11, 1 }
 0x23f   :  { %v3457_v34 = vpop.eup %3456  ;;  %v1035_v36 = vpack.c.bf16 %v3455_v32, %v3453_v5 }
 0x240   :  { %v3459_v31 = vpop.eup %3458 }
 0x241   :  { %v1032_v49 = vpack.c.bf16 %v3459_v31, %v3457_v34  ;;  %v903_v33 = vadd.f32 %v3459_v31, %v3457_v34 }
 0x243   :  { %1182 = vxpose.xlu1.c.b16.start [1/4] (short) %v1032_v49, 128  ;;  %v904_v2 = vadd.f32 %v3445_v58, %v903_v33 }
 0x245   :  { %v905_v39 = vadd.f32 %v3447_v43, %v904_v2 }
 0x247   :  { %v906_v52 = vadd.f32 %v3449_v15, %v905_v39  ;;  %1183 = vxpose.xlu1.c.b16.cont [2/4] (short) %v1033_v21, 128  ;;  %v902_v15 = vadd.f32 %v901_v14, %v900_v11 }
 0x249   :  { %v907_v59 = vadd.f32 %v3451_v3, %v906_v52 }
 0x24b   :  { %v908_v42 = vadd.f32 %v3453_v5, %v907_v59  ;;  %1184 = vxpose.xlu1.c.b16.cont [3/4] (short) %v1034_v47, 128 }
 0x24c   :  { %916 = vmax.xlane.f32.xlu0 %v4252_v41 }
 0x24d   :  { %v4255_v57 = vadd.f32 %v3455_v32, %v908_v42 }
 0x24f   :  { %1185 = vxpose.xlu1.c.b16.end [4/4] (short) %v1035_v36, 128  ;;  %v910_v23 = vrot.slane %v4255_v57, 4 }
 0x250   :  { %920 = vmax.xlane.f32.xlu0 %v4258_v1 }
 0x251   :  { %v911_v21 = vadd.f32 %v910_v23, %v4255_v57 }
 0x253   :  { %v912_v32 = vrot.slane %v911_v21, 2 }
 0x254   :  { %924 = vmax.xlane.f32.xlu0 %v4262_v48 }
 0x255   :  { %v913_v31 = vadd.f32 %v912_v32, %v911_v21 }
 0x257   :  { %v914_v22 = vrot.slane %v913_v31, 1 }
 0x258   :  { %928 = vmax.xlane.f32.xlu0 %v4266_v51 }
 0x25c   :  { %932 = vmax.xlane.f32.xlu0 %v4270_v45 }
 0x260   :  { %936 = vmax.xlane.f32.xlu0 %v4274_v35 }
 0x264   :  { %940 = vmax.xlane.f32.xlu0 %v4278_v38 }
 0x268   :  { %944 = vmax.xlane.f32.xlu0 %v4282_v24 }
 0x26c   :  { %918 = vmax.xlane.f32.xlu1 %v4286_v44 }
 0x270   :  { %922 = vmax.xlane.f32.xlu1 %v4290_v37 }
 0x274   :  { %926 = vmax.xlane.f32.xlu1 %v4294_v18 }
 0x278   :  { %930 = vmax.xlane.f32.xlu1 %v4298_v55 }
 0x27c   :  { %934 = vmax.xlane.f32.xlu1 %v4302_v9 }
 0x280   :  { %938 = vmax.xlane.f32.xlu1 %v4306_v8 }
 0x284   :  { %942 = vmax.xlane.f32.xlu1 %v4310_v4 }
 0x288   :  { %946 = vmax.xlane.f32.xlu1 %v4314_v28 }
 0x289   :  { %v1052_v46 = vpop.trf.xlu0 }
 0x28a   :  { %3142 = vmatprep.mubr.msk.bf16.mxu1 %vm1060_vm0, %v1052_v46 }
 0x28d   :  { %v1053_v54 = vpop.trf.xlu0 }
 0x28e   :  { %3143 = vmatmul.mubr.msk.bf16.vlgmr.msra.gmra.mrb[16].mxu1 %vm1060_vm0, %v1053_v54 }
 0x291   :  { %v1054_v17 = vpop.trf.xlu0 }
 0x292   :  { %3146 = vmatprep.mubr.msk.bf16.mxu1 %vm1060_vm0, %v1054_v17 }
 0x295   :  { %v1055_v26 = vpop.trf.xlu0 }
 0x296   :  { %3147 = vmatmul.mubr.msk.bf16.gmra.mrb[20].mxu1 %vm1060_vm0, %v1055_v26 }
 0x299   :  { %v1056_v53 = vpop.trf.xlu0 }
 0x29a   :  { %3150 = vmatprep.mubr.msk.bf16.mxu1 %vm1060_vm0, %v1056_v53 }
 0x29d   :  { %v1057_v61 = vpop.trf.xlu0 }
 0x29e   :  { %3151 = vmatmul.mubr.msk.bf16.gmra.mrb[24].mxu1 %vm1060_vm0, %v1057_v61 }
 0x2a1   :  { %v1058_v56 = vpop.trf.xlu0 }
 0x2a2   :  { %3154 = vmatprep.mubr.msk.bf16.mxu1 %vm1060_vm0, %v1058_v56 }
 0x2a5   :  { %v1059_v62 = vpop.trf.xlu0 }
 0x2a6   :  { %3155 = vmatmul.mubr.msk.bf16.gmra.mrb[28].mxu1 %vm1060_vm0, %v1059_v62 }
 0x2a9   :  { %v1190_v63 = vpop.trf.xlu1 }
 0x2aa   :  { %3166 = vmatprep.mubr.msk.bf16.mxu0 %vm1060_vm0, %v1190_v63 }
 0x2ad   :  { %v1191_v10 = vpop.trf.xlu1 }
 0x2ae   :  { %3167 = vmatmul.mubr.msk.bf16.vlgmr.msra.gmra.mrb[32].mxu0 %vm1060_vm0, %v1191_v10 }
 0x2b1   :  { %v1192_v12 = vpop.trf.xlu1 }
 0x2b2   :  { %3170 = vmatprep.mubr.msk.bf16.mxu0 %vm1060_vm0, %v1192_v12 }
 0x2b5   :  { %v1193_v19 = vpop.trf.xlu1 }
 0x2b6   :  { %3171 = vmatmul.mubr.msk.bf16.gmra.mrb[36].mxu0 %vm1060_vm0, %v1193_v19 }
 0x2b9   :  { %v1194_v7 = vpop.trf.xlu1 }
 0x2ba   :  { %3174 = vmatprep.mubr.msk.bf16.mxu0 %vm1060_vm0, %v1194_v7 }
 0x2bd   :  { %v1195_v16 = vpop.trf.xlu1 }
 0x2be   :  { %3175 = vmatmul.mubr.msk.bf16.gmra.mrb[40].mxu0 %vm1060_vm0, %v1195_v16 }
 0x2c1   :  { %v1196_v40 = vpop.trf.xlu1 }
 0x2c2   :  { %3178 = vmatprep.mubr.msk.bf16.mxu0 %vm1060_vm0, %v1196_v40 }
 0x2c5   :  { %v1197_v6 = vpop.trf.xlu1 }
 0x2c6   :  { %3179 = vmatmul.mubr.msk.bf16.gmra.mrb[44].mxu0 %vm1060_vm0, %v1197_v6 }
 0x2d9   :  { %v917_v0 = vpop.xlane.xlu0 %916 }
 0x2da   :  { %v948_v58 = vsub.f32 %v4252_v41, %v917_v0 }
 0x2dc   :  { %v964_v43 = vmul.f32 1.442695, %v948_v58 }
 0x2dd   :  { %v921_v3 = vpop.xlane.xlu0 %920 }
 0x2de   :  { %3460 = vpow2.f32 %v964_v43  ;;  %v950_v5 = vsub.f32 %v4258_v1, %v921_v3  ;;  %v915_v1 = vadd.f32 %v914_v22, %v913_v31 }
 0x2df   :  { %3462 = vrcp.f32 %v902_v15 }
 0x2e0   :  { %v968_v47 = vmul.f32 1.442695, %v950_v5 }
 0x2e1   :  { %v925_v20 = vpop.xlane.xlu0 %924 }
 0x2e2   :  { %3464 = vpow2.f32 %v968_v47  ;;  %v952_v34 = vsub.f32 %v4262_v48, %v925_v20 }
 0x2e4   :  { %v972_v36 = vmul.f32 1.442695, %v952_v34 }
 0x2e5   :  { %v929_v49 = vpop.xlane.xlu0 %928 }
 0x2e6   :  { %3466 = vpow2.f32 %v972_v36  ;;  %v954_v33 = vsub.f32 %v4266_v51, %v929_v49 }
 0x2e8   :  { %v4341_v2 = vpop.eup %3460  ;;  %v976_v39 = vmul.f32 1.442695, %v954_v33 }
 0x2e9   :  { %996 = vadd.xlane.f32.xlu0 %v4341_v2  ;;  %v933_v52 = vpop.xlane.xlu0 %932  ;;  %v4345_v41 = vpop.eup %3462 }
 0x2ea   :  { %3468 = vpow2.f32 %v976_v39  ;;  %v956_v59 = vsub.f32 %v4270_v45, %v933_v52  ;;  %v1321_v5 = vmul.f32 %v4345_v41, %v4341_v2 }
 0x2ec   :  { %v3465_v42 = vpop.eup %3464  ;;  %v980_v57 = vmul.f32 1.442695, %v956_v59 }
 0x2ed   :  { %v4348_v48 = vmul.f32 %v3465_v42, %v4345_v41  ;;  %1000 = vadd.xlane.f32.xlu0 %v3465_v42  ;;  %v937_v51 = vpop.xlane.xlu0 %936 }
 0x2ee   :  { %3470 = vpow2.f32 %v980_v57  ;;  %v958_v46 = vsub.f32 %v4274_v35, %v937_v51 }
 0x2ef   :  { %3472 = vrcp.f32 %v915_v1 }
 0x2f0   :  { %v3467_v54 = vpop.eup %3466  ;;  %v984_v17 = vmul.f32 1.442695, %v958_v46 }
 0x2f1   :  { %1004 = vadd.xlane.f32.xlu0 %v3467_v54  ;;  %v941_v26 = vpop.xlane.xlu0 %940  ;;  %v4352_v45 = vmul.f32 %v3467_v54, %v4345_v41 }
 0x2f2   :  { %3474 = vpow2.f32 %v984_v17  ;;  %v960_v53 = vsub.f32 %v4278_v38, %v941_v26 }
 0x2f4   :  { %v3469_v61 = vpop.eup %3468  ;;  %v988_v56 = vmul.f32 1.442695, %v960_v53 }
 0x2f5   :  { %1008 = vadd.xlane.f32.xlu0 %v3469_v61  ;;  %v945_v62 = vpop.xlane.xlu0 %944  ;;  %v4356_v63 = vmul.f32 %v3469_v61, %v4345_v41 }
 0x2f6   :  { %3476 = vpow2.f32 %v988_v56  ;;  %v962_v35 = vsub.f32 %v4282_v24, %v945_v62 }
 0x2f8   :  { %v4359_v10 = vpop.eup %3470  ;;  %v992_v12 = vmul.f32 1.442695, %v962_v35 }
 0x2f9   :  { %v919_v19 = vpop.xlane.xlu1 %918  ;;  %1012 = vadd.xlane.f32.xlu0 %v4359_v10  ;;  %v4363_v38 = vpop.eup %3472 }
 0x2fa   :  { %3478 = vpow2.f32 %v992_v12  ;;  %v949_v7 = vsub.f32 %v4286_v44, %v919_v19 }
 0x2fc   :  { %v3475_v16 = vpop.eup %3474  ;;  %v966_v40 = vmul.f32 1.442695, %v949_v7 }
 0x2fd   :  { %v4366_v6 = vmul.f32 %v3475_v16, %v4363_v38  ;;  %v923_v13 = vpop.xlane.xlu1 %922  ;;  %1016 = vadd.xlane.f32.xlu0 %v3475_v16 }
 0x2fe   :  { %3480 = vpow2.f32 %v966_v40  ;;  %v951_v24 = vsub.f32 %v4290_v37, %v923_v13 }
 0x300   :  { %v3477_v25 = vpop.eup %3476  ;;  %v970_v27 = vmul.f32 1.442695, %v951_v24 }
 0x301   :  { %v927_v11 = vpop.xlane.xlu1 %926  ;;  %1020 = vadd.xlane.f32.xlu0 %v3477_v25  ;;  %v4370_v14 = vmul.f32 %v3477_v25, %v4363_v38 }
 0x302   :  { %3482 = vpow2.f32 %v970_v27  ;;  %v953_v44 = vsub.f32 %v4294_v18, %v927_v11 }
 0x304   :  { %v3479_v23 = vpop.eup %3478  ;;  %v974_v0 = vmul.f32 1.442695, %v953_v44 }
 0x305   :  { %v931_v58 = vpop.xlane.xlu1 %930  ;;  %1024 = vadd.xlane.f32.xlu0 %v3479_v23  ;;  %v4374_v43 = vmul.f32 %v3479_v23, %v4363_v38 }
 0x306   :  { %3484 = vpow2.f32 %v974_v0  ;;  %v955_v37 = vsub.f32 %v4298_v55, %v931_v58 }
 0x308   :  { %v3481_v15 = vpop.eup %3480  ;;  %v978_v21 = vmul.f32 1.442695, %v955_v37 }
 0x309   :  { %998 = vadd.xlane.f32.xlu1 %v3481_v15  ;;  %v935_v3 = vpop.xlane.xlu1 %934  ;;  %v1322_v47 = vmul.f32 %v3481_v15, %v4345_v41 }
 0x30a   :  { %3486 = vpow2.f32 %v978_v21  ;;  %v957_v18 = vsub.f32 %v4302_v9, %v935_v3 }
 0x30b   :  { %v1337_v32 = vpack.c.bf16 %v1322_v47, %v1321_v5 }
 0x30c   :  { %v3483_v20 = vpop.eup %3482  ;;  %v982_v34 = vmul.f32 1.442695, %v957_v18 }
 0x30d   :  { %v4382_v36 = vmul.f32 %v3483_v20, %v4345_v41  ;;  %1002 = vadd.xlane.f32.xlu1 %v3483_v20  ;;  %v939_v55 = vpop.xlane.xlu1 %938  ;;  %3198 = vmatprep.mubr.bf16.mxu1 %v1337_v32 }
 0x30e   :  { %3488 = vpow2.f32 %v982_v34  ;;  %v959_v31 = vsub.f32 %v4306_v8, %v939_v55 }
 0x30f   :  { %v1338_v49 = vpack.c.bf16 %v4382_v36, %v4348_v48  ;;  %v3375_v48 = vld [vmem:[#allocation8 + $0x18] sm:$0xff]  }
 0x310   :  { %v3485_v33 = vpop.eup %3484  ;;  %v986_v2 = vmul.f32 1.442695, %v959_v31  ;;  %v3372_v31 = vld [vmem:[#allocation8] sm:$0xff]  }
 0x311   :  { %1006 = vadd.xlane.f32.xlu1 %v3485_v33  ;;  %v943_v39 = vpop.xlane.xlu1 %942  ;;  %v4388_v9 = vmul.f32 %v3485_v33, %v4345_v41 }
 0x312   :  { %3490 = vpow2.f32 %v986_v2  ;;  %v961_v22 = vsub.f32 %v4310_v4, %v943_v39  ;;  %v1329_v4 = vmul.f32 %v4363_v38, %v4359_v10 }
 0x313   :  { %v1339_v52 = vpack.c.bf16 %v4388_v9, %v4352_v45 }
 0x314   :  { %v3487_v59 = vpop.eup %3486  ;;  %v990_v42 = vmul.f32 1.442695, %v961_v22 }
 0x315   :  { %1010 = vadd.xlane.f32.xlu1 %v3487_v59  ;;  %v947_v8 = vpop.xlane.xlu1 %946  ;;  %v4394_v57 = vmul.f32 %v3487_v59, %v4345_v41 }
 0x316   :  { %3492 = vpow2.f32 %v990_v42  ;;  %v963_v1 = vsub.f32 %v4314_v28, %v947_v8  ;;  %v3373_v42 = vld [vmem:[#allocation8 + $0x8] sm:$0xff]  }
 0x317   :  { %v1340_v51 = vpack.c.bf16 %v4394_v57, %v4356_v63 }
 0x318   :  { %v3489_v46 = vpop.eup %3488  ;;  %v994_v54 = vmul.f32 1.442695, %v963_v1 }
 0x319   :  { %1014 = vadd.xlane.f32.xlu1 %v3489_v46  ;;  %v1330_v17 = vmul.f32 %v3489_v46, %v4363_v38  ;;  %v3374_v46 = vld [vmem:[#allocation8 + $0x10] sm:$0xff]  }
 0x31a   :  { %3494 = vpow2.f32 %v994_v54 }
 0x31b   :  { %v1341_v26 = vpack.c.bf16 %v1330_v17, %v1329_v4 }
 0x31c   :  { %v3491_v53 = vpop.eup %3490 }
 0x31d   :  { %v4403_v41 = vmul.f32 %v3491_v53, %v4363_v38  ;;  %1018 = vadd.xlane.f32.xlu1 %v3491_v53  ;;  %3222 = vmatprep.mubr.bf16.mxu0 %v1341_v26 }
 0x31f   :  { %v1342_v28 = vpack.c.bf16 %v4403_v41, %v4366_v6 }
 0x320   :  { %v3493_v61 = vpop.eup %3492 }
 0x321   :  { %1022 = vadd.xlane.f32.xlu1 %v3493_v61  ;;  %v4408_v56 = vmul.f32 %v3493_v61, %v4363_v38 }
 0x323   :  { %v1343_v62 = vpack.c.bf16 %v4408_v56, %v4370_v14 }
 0x324   :  { %v3495_v35 = vpop.eup %3494 }
 0x325   :  { %1026 = vadd.xlane.f32.xlu1 %v3495_v35  ;;  %v4413_v10 = vmul.f32 %v3495_v35, %v4363_v38  ;;  %v3377_v35 = vld [vmem:[#allocation8 + $0x28] sm:$0xff]  }
 0x327   :  { %v1344_v12 = vpack.c.bf16 %v4413_v10, %v4374_v43 }
 0x361   :  { %v3144_v19 = vpop.f32.mrb[16].mxu1 }
 0x362   :  { %v1119_v7 = vpop.f32.mrb[17].mxu1 }
 0x363   :  { %v3145_v16 = vpop.f32.mrb[18].mxu1 }
 0x364   :  { %v1346_v40 = vpack.c.bf16 %v3145_v16, %v3144_v19  ;;  %v1122_v13 = vpop.f32.mrb[19].mxu1 }
 0x365   :  { %v1345_v24 = vpack.c.bf16 %v1122_v13, %v1119_v7  ;;  %v3379_v13 = vld [vmem:[#allocation8 + $0x38] sm:$0xff]  }
 0x367   :  { %3182 = vmatprep.subr.bf16.mxu1 %v1345_v24 }
 0x368   :  { %3183 = vmatpush3.bf16.msra.mxu1 %v1345_v24 }
 0x369   :  { %v3148_v25 = vpop.f32.mrb[20].mxu1  ;;  %3184 = vmatprep.subr.bf16.mxu1 %v1346_v40 }
 0x36a   :  { %v1135_v27 = vpop.f32.mrb[21].mxu1 }
 0x36b   :  { %v3149_v11 = vpop.f32.mrb[22].mxu1 }
 0x36c   :  { %v1348_v44 = vpack.c.bf16 %v3149_v11, %v3148_v25  ;;  %v1138_v23 = vpop.f32.mrb[23].mxu1  ;;  %3185 = vmatpush3.bf16.msra.mxu1 %v1346_v40  ;;  %v3378_v40 = vld [vmem:[#allocation8 + $0x30] sm:$0xff]  }
 0x36d   :  { %v1347_v38 = vpack.c.bf16 %v1138_v23, %v1135_v27 }
 0x36f   :  { %3186 = vmatprep.subr.bf16.mxu1 %v1347_v38 }
 0x370   :  { %3187 = vmatpush3.bf16.msra.mxu1 %v1347_v38 }
 0x371   :  { %v3152_v0 = vpop.f32.mrb[24].mxu1  ;;  %3188 = vmatprep.subr.bf16.mxu1 %v1348_v44 }
 0x372   :  { %v1151_v58 = vpop.f32.mrb[25].mxu1 }
 0x373   :  { %v3153_v37 = vpop.f32.mrb[26].mxu1 }
 0x374   :  { %v1350_v15 = vpack.c.bf16 %v3153_v37, %v3152_v0  ;;  %v1154_v21 = vpop.f32.mrb[27].mxu1  ;;  %3189 = vmatpush3.bf16.msra.mxu1 %v1348_v44 }
 0x375   :  { %v1349_v3 = vpack.c.bf16 %v1154_v21, %v1151_v58 }
 0x376   :  { %v997_v24 = vpop.xlane.xlu0 %996 }
 0x377   :  { %3190 = vmatprep.subr.bf16.mxu1 %v1349_v3  ;;  %3496 = vrcp.f32 %v997_v24 }
 0x378   :  { %3191 = vmatpush3.bf16.msra.mxu1 %v1349_v3 }
 0x379   :  { %v3156_v5 = vpop.f32.mrb[28].mxu1  ;;  %3192 = vmatprep.subr.bf16.mxu1 %v1350_v15 }
 0x37a   :  { %v1167_v47 = vpop.f32.mrb[29].mxu1  ;;  %v1001_v27 = vpop.xlane.xlu0 %1000 }
 0x37b   :  { %v3157_v18 = vpop.f32.mrb[30].mxu1  ;;  %3498 = vrcp.f32 %v1001_v27 }
 0x37c   :  { %v1352_v32 = vpack.c.bf16 %v3157_v18, %v3156_v5  ;;  %v1170_v20 = vpop.f32.mrb[31].mxu1  ;;  %3193 = vmatpush3.bf16.msra.mxu1 %v1350_v15 }
 0x37d   :  { %v1351_v34 = vpack.c.bf16 %v1170_v20, %v1167_v47 }
 0x37e   :  { %v1005_v6 = vpop.xlane.xlu0 %1004 }
 0x37f   :  { %3194 = vmatprep.subr.bf16.mxu1 %v1351_v34 }
 0x380   :  { %3195 = vmatpush3.bf16.msra.mxu1 %v1351_v34 }
 0x381   :  { %v3168_v55 = vpop.f32.mrb[32].mxu0  ;;  %3196 = vmatprep.subr.bf16.mxu1 %v1352_v32  ;;  %v3497_v43 = vpop.eup %3496 }
 0x382   :  { %v1256_v33 = vpop.f32.mrb[33].mxu0  ;;  %v1009_v14 = vpop.xlane.xlu0 %1008 }
 0x383   :  { %v3169_v2 = vpop.f32.mrb[34].mxu0 }
 0x384   :  { %v1354_v39 = vpack.c.bf16 %v3169_v2, %v3168_v55  ;;  %v1259_v22 = vpop.f32.mrb[35].mxu0  ;;  %3197 = vmatpush3.bf16.msra.mxu1 %v1352_v32 }
 0x385   :  { %v1353_v59 = vpack.c.bf16 %v1259_v22, %v1256_v33  ;;  %3230 = vmatprep.subr.bf16.mxu1 %v3372_v31 }
 0x386   :  { %v1013_v34 = vpop.xlane.xlu0 %1012 }
 0x387   :  { %3199 = vmatmul.mubr.bf16.vlgmr.msra.gmra.mrb[32].mxu1 %v1338_v49  ;;  %3206 = vmatprep.subr.bf16.mxu0 %v1353_v59  ;;  %v3376_v49 = vld [vmem:[#allocation8 + $0x20] sm:$0xff]  }
 0x388   :  { %3202 = vmatprep.mubr.bf16.mxu1 %v1339_v52  ;;  %3207 = vmatpush3.bf16.msra.mxu0 %v1353_v59 }
 0x389   :  { %v3172_v8 = vpop.f32.mrb[36].mxu0  ;;  %3208 = vmatprep.subr.bf16.mxu0 %v1354_v39  ;;  %3231 = vmatpush3.bf16.msra.mxu1 %v3372_v31 }
 0x38a   :  { %v1272_v1 = vpop.f32.mrb[37].mxu0  ;;  %3232 = vmatprep.subr.bf16.mxu1 %v3373_v42 }
 0x38b   :  { %v3173_v54 = vpop.f32.mrb[38].mxu0 }
 0x38c   :  { %v1356_v4 = vpack.c.bf16 %v3173_v54, %v3172_v8  ;;  %v1275_v17 = vpop.f32.mrb[39].mxu0  ;;  %3209 = vmatpush3.bf16.msra.mxu0 %v1354_v39 }
 0x38d   :  { %v1355_v26 = vpack.c.bf16 %v1275_v17, %v1272_v1  ;;  %3233 = vmatpush3.bf16.msra.mxu1 %v3373_v42 }
 0x38e   :  { %3234 = vmatprep.subr.bf16.mxu1 %v3374_v46 }
 0x38f   :  { %3203 = vmatmul.mubr.bf16.gmra.mrb[36].mxu1 %v1340_v51  ;;  %3210 = vmatprep.subr.bf16.mxu0 %v1355_v26 }
 0x390   :  { %3211 = vmatpush3.bf16.msra.mxu0 %v1355_v26 }
 0x391   :  { %v3176_v45 = vpop.f32.mrb[40].mxu0  ;;  %3212 = vmatprep.subr.bf16.mxu0 %v1356_v4  ;;  %3235 = vmatpush3.bf16.msra.mxu1 %v3374_v46  ;;  %v1017_v46 = vpop.xlane.xlu0 %1016 }
 0x392   :  { %v1288_v36 = vpop.f32.mrb[41].mxu0  ;;  %3236 = vmatprep.subr.bf16.mxu1 %v3375_v48 }
 0x393   :  { %v3177_v9 = vpop.f32.mrb[42].mxu0 }
 0x394   :  { %v1358_v52 = vpack.c.bf16 %v3177_v9, %v3176_v45  ;;  %v1291_v53 = vpop.f32.mrb[43].mxu0  ;;  %3213 = vmatpush3.bf16.msra.mxu0 %v1356_v4 }
 0x395   :  { %v1357_v61 = vpack.c.bf16 %v1291_v53, %v1288_v36  ;;  %3237 = vmatpush3.bf16.msra.mxu1 %v3375_v48  ;;  %v1021_v4 = vpop.xlane.xlu0 %1020 }
 0x396   :  { %3238 = vmatprep.subr.bf16.mxu1 %v3376_v49  ;;  %v999_v25 = vpop.xlane.xlu1 %998 }
 0x397   :  { %3214 = vmatprep.subr.bf16.mxu0 %v1357_v61 }
 0x398   :  { %3215 = vmatpush3.bf16.msra.mxu0 %v1357_v61 }
 0x399   :  { %v3180_v63 = vpop.f32.mrb[44].mxu0  ;;  %3216 = vmatprep.subr.bf16.mxu0 %v1358_v52  ;;  %3239 = vmatpush3.bf16.msra.mxu1 %v3376_v49  ;;  %v1025_v26 = vpop.xlane.xlu0 %1024 }
 0x39a   :  { %v1304_v57 = vpop.f32.mrb[45].mxu0  ;;  %3240 = vmatprep.subr.bf16.mxu1 %v3377_v35  ;;  %v1003_v11 = vpop.xlane.xlu1 %1002 }
 0x39b   :  { %v3181_v51 = vpop.f32.mrb[46].mxu0  ;;  %3500 = vrcp.f32 %v1003_v11 }
 0x39c   :  { %v1360_v19 = vpack.c.bf16 %v3181_v51, %v3180_v63  ;;  %v1307_v7 = vpop.f32.mrb[47].mxu0  ;;  %3217 = vmatpush3.bf16.msra.mxu0 %v1358_v52  ;;  %3502 = vrcp.f32 %v999_v25 }
 0x39d   :  { %v1359_v16 = vpack.c.bf16 %v1307_v7, %v1304_v57  ;;  %3241 = vmatpush3.bf16.msra.mxu1 %v3377_v35  ;;  %3504 = vrcp.f32 %v1005_v6 }
 0x39e   :  { %3242 = vmatprep.subr.bf16.mxu1 %v3378_v40  ;;  %v1007_v41 = vpop.xlane.xlu1 %1006  ;;  %3506 = vrcp.f32 %v1009_v14 }
 0x39f   :  { %3218 = vmatprep.subr.bf16.mxu0 %v1359_v16 }
 0x3a0   :  { %3219 = vmatpush3.bf16.msra.mxu0 %v1359_v16 }
 0x3a1   :  { %3220 = vmatprep.subr.bf16.mxu0 %v1360_v19  ;;  %3243 = vmatpush3.bf16.msra.mxu1 %v3378_v40 }
 0x3a2   :  { %3244 = vmatprep.subr.bf16.mxu1 %v3379_v13 }
 0x3a4   :  { %3221 = vmatpush3.bf16.msra.mxu0 %v1360_v19 }
 0x3a5   :  { %3245 = vmatpush3.bf16.msra.mxu1 %v3379_v13 }
 0x3a7   :  { %3223 = vmatmul.mubr.bf16.vlgmr.msra.gmra.mrb[48].mxu0 %v1342_v28  ;;  %v1011_v28 = vpop.xlane.xlu1 %1010 }
 0x3a8   :  { %3226 = vmatprep.mubr.bf16.mxu0 %v1343_v62  ;;  %3508 = vrcp.f32 %v1011_v28  ;;  %v3499_v62 = vpop.eup %3498 }
 0x3a9   :  { %3510 = vrcp.f32 %v1007_v41 }
 0x3aa   :  { %3512 = vrcp.f32 %v1013_v34 }
 0x3ab   :  { %v1015_v33 = vpop.xlane.xlu1 %1014  ;;  %3514 = vrcp.f32 %v1017_v46 }
 0x3af   :  { %3227 = vmatmul.mubr.bf16.gmra.mrb[52].mxu0 %v1344_v12  ;;  %v3501_v12 = vpop.eup %3500  ;;  %v1019_v54 = vpop.xlane.xlu1 %1018 }
 0x3b0   :  { %v3503_v23 = vpop.eup %3502  ;;  %3516 = vrcp.f32 %v1019_v54  ;;  %v3596_v54 = vld [vmem:[#allocation3 + $0x30] sm:$0xff] }
 0x3b1   :  { %v3505_v5 = vpop.eup %3504  ;;  %3518 = vrcp.f32 %v1015_v33 }
 0x3b2   :  { %v3507_v18 = vpop.eup %3506  ;;  %3520 = vrcp.f32 %v1021_v4 }
 0x3b3   :  { %v3509_v20 = vpop.eup %3508  ;;  %v1023_v17 = vpop.xlane.xlu1 %1022  ;;  %3522 = vrcp.f32 %v1025_v26  ;;  %v3597_v26 = vld [vmem:[#allocation3 + $0x38] sm:$0xff] }
 0x3b4   :  { %v3511_v31 = vpop.eup %3510 }
 0x3b5   :  { %v3513_v45 = vpop.eup %3512 }
 0x3b6   :  { %v3515_v49 = vpop.eup %3514 }
 0x3b7   :  { %v1027_v48 = vpop.xlane.xlu1 %1026 }
 0x3b8   :  { %3524 = vrcp.f32 %v1027_v48 }
 0x3b9   :  { %3526 = vrcp.f32 %v1023_v17 }
 0x3ba   :  { %v3517_v52 = vpop.eup %3516 }
 0x3bb   :  { %v3519_v61 = vpop.eup %3518 }
 0x3bc   :  { %v3521_v40 = vpop.eup %3520 }
 0x3bd   :  { %v3523_v24 = vpop.eup %3522 }
 0x3c2   :  { %v3525_v27 = vpop.eup %3524 }
 0x3c3   :  { %v3527_v6 = vpop.eup %3526 }
 0x45a   :  { %v3200_v56 = vpop.f32.mrb[32].mxu1 }
 0x45b   :  { %v1395_v10 = vpop.f32.mrb[33].mxu1  ;;  %v1509_v38 = vmul.f32 %v3499_v62, %v3200_v56 }
 0x45c   :  { %v3201_v44 = vpop.f32.mrb[34].mxu1  ;;  %v1507_v37 = vmul.f32 %v3497_v43, %v1395_v10 }
 0x45d   :  { %v1510_v0 = vmul.f32 %v3501_v12, %v3201_v44  ;;  %v1398_v58 = vpop.f32.mrb[35].mxu1  ;;  %v4438_v12 = vld [vmem:[%s5138_s6] ss:$0 sm:$0xff] }
 0x45e   :  { %v1508_v15 = vmul.f32 %v3503_v23, %v1398_v58  ;;  %v3592_v58 = vld [vmem:[#allocation3 + $0x10] sm:$0xff] }
 0x45f   :  { %v1524_v21 = vpack.c.bf16 %v1510_v0, %v1509_v38 }
 0x460   :  { %v1523_v3 = vpack.c.bf16 %v1508_v15, %v1507_v37 }
 0x462   :  { %v3204_v47 = vpop.f32.mrb[36].mxu1  ;;  %3246 = vmatprep.mubr.bf16.mxu1 %v1523_v3 }
 0x463   :  { %v1411_v32 = vpop.f32.mrb[37].mxu1  ;;  %3247 = vmatmul.mubr.bf16.vlgmr.msra.gmra.mrb[40].mxu1 %v1524_v21  ;;  %v1513_v2 = vmul.f32 %v3507_v18, %v3204_v47 }
 0x464   :  { %v3205_v55 = vpop.f32.mrb[38].mxu1  ;;  %v1511_v59 = vmul.f32 %v3505_v5, %v1411_v32  ;;  %v3593_v5 = vld [vmem:[#allocation3 + $0x18] sm:$0xff]  ;;  %v3594_v32 = vld [vmem:[#allocation3] sm:$0xff] }
 0x465   :  { %v1514_v39 = vmul.f32 %v3509_v20, %v3205_v55  ;;  %v1414_v22 = vpop.f32.mrb[39].mxu1  ;;  %v3595_v55 = vld [vmem:[#allocation3 + $0x8] sm:$0xff] }
 0x466   :  { %v1512_v42 = vmul.f32 %v3511_v31, %v1414_v22 }
 0x467   :  { %v1526_v8 = vpack.c.bf16 %v1514_v39, %v1513_v2 }
 0x468   :  { %v1525_v1 = vpack.c.bf16 %v1512_v42, %v1511_v59 }
 0x46a   :  { %3250 = vmatprep.mubr.bf16.mxu1 %v1525_v1 }
 0x46b   :  { %3251 = vmatmul.mubr.bf16.gmra.mrb[44].mxu1 %v1526_v8 }
 0x47a   :  { %v3224_v36 = vpop.f32.mrb[48].mxu0 }
 0x47b   :  { %v1460_v9 = vpop.f32.mrb[49].mxu0  ;;  %v1517_v35 = vmul.f32 %v3515_v49, %v3224_v36  ;;  %v3598_v36 = vld [vmem:[#allocation3 + $0x20] sm:$0xff] }
 0x47c   :  { %v3225_v53 = vpop.f32.mrb[50].mxu0  ;;  %v1515_v51 = vmul.f32 %v3513_v45, %v1460_v9  ;;  %v3599_v9 = vld [vmem:[#allocation3 + $0x28] sm:$0xff] }
 0x47d   :  { %v1518_v63 = vmul.f32 %v3517_v52, %v3225_v53  ;;  %v1463_v57 = vpop.f32.mrb[51].mxu0  ;;  %v3380_v53 = vld [vmem:[#allocation9] sm:$0xff]  }
 0x47e   :  { %v1516_v19 = vmul.f32 %v3519_v61, %v1463_v57  ;;  %3262 = vmatprep.subr.bf16.mxu0 %v3380_v53 }
 0x47f   :  { %v1528_v7 = vpack.c.bf16 %v1518_v63, %v1517_v35  ;;  %3263 = vmatpush3.bf16.msra.mxu0 %v3380_v53  ;;  %v3381_v63 = vld [vmem:[#allocation9 + $0x8] sm:$0xff]  }
 0x480   :  { %v1527_v16 = vpack.c.bf16 %v1516_v19, %v1515_v51  ;;  %3264 = vmatprep.subr.bf16.mxu0 %v3381_v63 }
 0x482   :  { %v3228_v13 = vpop.f32.mrb[52].mxu0  ;;  %3254 = vmatprep.mubr.bf16.mxu1 %v1527_v16 }
 0x483   :  { %v1476_v25 = vpop.f32.mrb[53].mxu0  ;;  %3255 = vmatmul.mubr.bf16.gmra.mrb[48].mxu1 %v1528_v7  ;;  %v1521_v41 = vmul.f32 %v3523_v24, %v3228_v13  ;;  %3265 = vmatpush3.bf16.msra.mxu0 %v3381_v63  ;;  %v3382_v13 = vld [vmem:[#allocation9 + $0x10] sm:$0xff]  }
 0x484   :  { %v3229_v11 = vpop.f32.mrb[54].mxu0  ;;  %v1519_v43 = vmul.f32 %v3521_v40, %v1476_v25  ;;  %v3600_v24 = vld [vmem:[#allocation3 + $0x50] sm:$0xff]  ;;  %3266 = vmatprep.subr.bf16.mxu0 %v3382_v13 }
 0x485   :  { %v1522_v14 = vmul.f32 %v3525_v27, %v3229_v11  ;;  %v1479_v28 = vpop.f32.mrb[55].mxu0 }
 0x486   :  { %v1520_v56 = vmul.f32 %v3527_v6, %v1479_v28 }
 0x487   :  { %v1530_v62 = vpack.c.bf16 %v1522_v14, %v1521_v41  ;;  %v3601_v41 = vld [vmem:[#allocation3 + $0x58] sm:$0xff]  ;;  %3267 = vmatpush3.bf16.msra.mxu0 %v3382_v13 }
 0x488   :  { %v1529_v10 = vpack.c.bf16 %v1520_v56, %v1519_v43  ;;  %v3383_v43 = vld [vmem:[#allocation9 + $0x18] sm:$0xff]   ;;  %v3602_v56 = vld [vmem:[#allocation3 + $0x40] sm:$0xff] }
 0x489   :  { %3268 = vmatprep.subr.bf16.mxu0 %v3383_v43 }
 0x48a   :  { %3258 = vmatprep.mubr.bf16.mxu1 %v1529_v10 }
 0x48b   :  { %3259 = vmatmul.mubr.bf16.gmra.mrb[52].mxu1 %v1530_v62  ;;  %3269 = vmatpush3.bf16.msra.mxu0 %v3383_v43 }
 0x536   :  { %v3248_v44 = vpop.f32.mrb[40].mxu1 }
 0x537   :  { %v1644_v23 = vadd.f32 %v3248_v44, %v4438_v12  ;;  %v1635_v38 = vpop.f32.mrb[41].mxu1  ;;  %v3603_v44 = vld [vmem:[#allocation3 + $0x48] sm:$0xff] }
 0x538   :  { %v3249_v0 = vpop.f32.mrb[42].mxu1  ;;  %v1636_v15 = vadd.f32 %v4438_v12, %v1635_v38 }
 0x539   :  { %v4441_v37 = vadd.f32 %v3592_v58, %v1644_v23  ;;  %v1647_v21 = vadd.f32 %v3249_v0, %v4438_v12  ;;  %v1638_v3 = vpop.f32.mrb[43].mxu1  ;;  %v3384_v58 = vld [vmem:[#allocation9 + $0x20] sm:$0xff]  }
 0x53a   :  { %v1639_v18 = vadd.f32 %v4438_v12, %v1638_v3  ;;  %v4449_v20 = vadd.f32 %v3594_v32, %v1636_v15  ;;  %3270 = vmatprep.subr.bf16.mxu0 %v3384_v58 }
 0x53b   :  { %v4445_v47 = vadd.f32 %v3593_v5, %v1647_v21  ;;  %1718 = vadd.xlane.f32.xlu0 %v4441_v37  ;;  %v1748_v22 = vmul.f32 %v4441_v37, %v4441_v37  ;;  %3271 = vmatpush3.bf16.msra.mxu0 %v3384_v58  ;;  %v3385_v5 = vld [vmem:[#allocation9 + $0x28] sm:$0xff]  }
 0x53c   :  { %v4452_v31 = vadd.f32 %v3595_v55, %v1639_v18  ;;  %v1746_v8 = vmul.f32 %v4449_v20, %v4449_v20  ;;  %3272 = vmatprep.subr.bf16.mxu0 %v3385_v5 }
 0x53d   :  { %1720 = vadd.xlane.f32.xlu1 %v4445_v47  ;;  %v1749_v59 = vmul.f32 %v4445_v47, %v4445_v47 }
 0x53e   :  { %v3252_v34 = vpop.f32.mrb[44].mxu1  ;;  %v1747_v46 = vmul.f32 %v4452_v31, %v4452_v31 }
 0x53f   :  { %1714 = vadd.xlane.f32.xlu0 %v4449_v20  ;;  %v1651_v33 = vpop.f32.mrb[45].mxu1  ;;  %v1660_v42 = vadd.f32 %v3252_v34, %v4438_v12  ;;  %3273 = vmatpush3.bf16.msra.mxu0 %v3385_v5 }
 0x540   :  { %v3253_v2 = vpop.f32.mrb[46].mxu1  ;;  %v1652_v17 = vadd.f32 %v4438_v12, %v1651_v33  ;;  %v3386_v33 = vld [vmem:[#allocation9 + $0x30] sm:$0xff]  }
 0x541   :  { %1716 = vadd.xlane.f32.xlu1 %v4452_v31  ;;  %v1654_v39 = vpop.f32.mrb[47].mxu1  ;;  %v1663_v1 = vadd.f32 %v3253_v2, %v4438_v12  ;;  %v4466_v4 = vadd.f32 %v3596_v54, %v1660_v42  ;;  %v3604_v2 = vld [vmem:[#allocation3 + $0x70] sm:$0xff]  ;;  %3274 = vmatprep.subr.bf16.mxu0 %v3386_v33 }
 0x542   :  { %v1655_v45 = vadd.f32 %v4438_v12, %v1654_v39  ;;  %v4473_v49 = vadd.f32 %v3598_v36, %v1652_v17  ;;  %v3607_v17 = vld [vmem:[#allocation3 + $0x68] sm:$0xff] }
 0x543   :  { %1766 = vadd.xlane.f32.xlu0 %v1748_v22  ;;  %v4469_v48 = vadd.f32 %v3597_v26, %v1663_v1  ;;  %v1752_v61 = vmul.f32 %v4466_v4, %v4466_v4  ;;  %3275 = vmatpush3.bf16.msra.mxu0 %v3386_v33  ;;  %v3387_v1 = vld [vmem:[#allocation9 + $0x38] sm:$0xff]  }
 0x544   :  { %5162 = vst [vmem:[#allocation18_spill] sm:$0xff] %v4473_v49  ;;  %v4476_v52 = vadd.f32 %v3599_v9, %v1655_v45  ;;  %v1750_v57 = vmul.f32 %v4473_v49, %v4473_v49  ;;  %3276 = vmatprep.subr.bf16.mxu0 %v3387_v1 }
 0x545   :  { %1768 = vadd.xlane.f32.xlu1 %v1749_v59  ;;  %5161 = vst [vmem:[#allocation17_spill] sm:$0xff] %v4469_v48  ;;  %v1753_v35 = vmul.f32 %v4469_v48, %v4469_v48  ;;  %v3605_v59 = vld [vmem:[#allocation3 + $0x78] sm:$0xff] }
 0x546   :  { %5163 = vst [vmem:[#allocation19_spill] sm:$0xff] %v4476_v52  ;;  %v1751_v16 = vmul.f32 %v4476_v52, %v4476_v52 }
 0x547   :  { %1762 = vadd.xlane.f32.xlu0 %v1746_v8  ;;  %3277 = vmatpush3.bf16.msra.mxu0 %v3387_v1 }
 0x549   :  { %1764 = vadd.xlane.f32.xlu1 %v1747_v46  ;;  %v3606_v46 = vld [vmem:[#allocation3 + $0x60] sm:$0xff] }
 0x54b   :  { %1726 = vadd.xlane.f32.xlu0 %v4466_v4 }
 0x54d   :  { %1728 = vadd.xlane.f32.xlu1 %v4469_v48 }
 0x54f   :  { %1722 = vadd.xlane.f32.xlu0 %v4473_v49 }
 0x551   :  { %1724 = vadd.xlane.f32.xlu1 %v4476_v52 }
 0x553   :  { %1774 = vadd.xlane.f32.xlu0 %v1752_v61 }
 0x555   :  { %1776 = vadd.xlane.f32.xlu1 %v1753_v35 }
 0x556   :  { %v3256_v51 = vpop.f32.mrb[48].mxu1 }
 0x557   :  { %v1676_v19 = vadd.f32 %v3256_v51, %v4438_v12  ;;  %v1667_v7 = vpop.f32.mrb[49].mxu1  ;;  %1770 = vadd.xlane.f32.xlu0 %v1750_v57 }
 0x558   :  { %v3257_v40 = vpop.f32.mrb[50].mxu1  ;;  %v1668_v27 = vadd.f32 %v4438_v12, %v1667_v7 }
 0x559   :  { %v4489_v25 = vadd.f32 %v3600_v24, %v1676_v19  ;;  %v1679_v11 = vadd.f32 %v3257_v40, %v4438_v12  ;;  %v1670_v6 = vpop.f32.mrb[51].mxu1  ;;  %1772 = vadd.xlane.f32.xlu1 %v1751_v16 }
 0x55a   :  { %v1671_v28 = vadd.f32 %v4438_v12, %v1670_v6  ;;  %v4497_v62 = vadd.f32 %v3602_v56, %v1668_v27 }
 0x55b   :  { %5164 = vst [vmem:[#allocation20_spill] sm:$0xff] %v4489_v25  ;;  %v4493_v14 = vadd.f32 %v3601_v41, %v1679_v11  ;;  %1734 = vadd.xlane.f32.xlu0 %v4489_v25  ;;  %v1756_v21 = vmul.f32 %v4489_v25, %v4489_v25 }
 0x55c   :  { %5166 = vst [vmem:[#allocation22_spill] sm:$0xff] %v4497_v62  ;;  %v4500_v23 = vadd.f32 %v3603_v44, %v1671_v28  ;;  %v1754_v32 = vmul.f32 %v4497_v62, %v4497_v62 }
 0x55d   :  { %5165 = vst [vmem:[#allocation21_spill] sm:$0xff] %v4493_v14  ;;  %1736 = vadd.xlane.f32.xlu1 %v4493_v14  ;;  %v1757_v3 = vmul.f32 %v4493_v14, %v4493_v14 }
 0x55e   :  { %v3260_v10 = vpop.f32.mrb[52].mxu1  ;;  %5167 = vst [vmem:[#allocation23_spill] sm:$0xff] %v4500_v23  ;;  %v1755_v55 = vmul.f32 %v4500_v23, %v4500_v23 }
 0x55f   :  { %v1683_v38 = vpop.f32.mrb[53].mxu1  ;;  %1730 = vadd.xlane.f32.xlu0 %v4497_v62  ;;  %v1692_v18 = vadd.f32 %v3260_v10, %v4438_v12 }
 0x560   :  { %v3261_v0 = vpop.f32.mrb[54].mxu1  ;;  %v1684_v22 = vadd.f32 %v4438_v12, %v1683_v38 }
 0x561   :  { %v1686_v15 = vpop.f32.mrb[55].mxu1  ;;  %1732 = vadd.xlane.f32.xlu1 %v4500_v23  ;;  %v1695_v34 = vadd.f32 %v3261_v0, %v4438_v12  ;;  %v4514_v39 = vadd.f32 %v3604_v2, %v1692_v18 }
 0x562   :  { %v1687_v8 = vadd.f32 %v4438_v12, %v1686_v15  ;;  %v4521_v54 = vadd.f32 %v3606_v46, %v1684_v22 }
 0x563   :  { %1782 = vadd.xlane.f32.xlu0 %v1756_v21  ;;  %5168 = vst [vmem:[#allocation24_spill] sm:$0xff] %v4514_v39  ;;  %v4517_v42 = vadd.f32 %v3605_v59, %v1695_v34  ;;  %v1760_v36 = vmul.f32 %v4514_v39, %v4514_v39 }
 0x564   :  { %5170 = vst [vmem:[#allocation26_spill] sm:$0xff] %v4521_v54  ;;  %v4524_v26 = vadd.f32 %v3607_v17, %v1687_v8  ;;  %v1758_v12 = vmul.f32 %v4521_v54, %v4521_v54 }
 0x565   :  { %1784 = vadd.xlane.f32.xlu1 %v1757_v3  ;;  %5169 = vst [vmem:[#allocation25_spill] sm:$0xff] %v4517_v42  ;;  %v1761_v9 = vmul.f32 %v4517_v42, %v4517_v42 }
 0x566   :  { %5171 = vst [vmem:[#allocation27_spill] sm:$0xff] %v4524_v26  ;;  %v1759_v45 = vmul.f32 %v4524_v26, %v4524_v26 }
 0x567   :  { %1778 = vadd.xlane.f32.xlu0 %v1754_v32 }
 0x569   :  { %1780 = vadd.xlane.f32.xlu1 %v1755_v55 }
 0x56b   :  { %1742 = vadd.xlane.f32.xlu0 %v4514_v39 }
 0x56d   :  { %1744 = vadd.xlane.f32.xlu1 %v4517_v42 }
 0x56f   :  { %1738 = vadd.xlane.f32.xlu0 %v4521_v54 }
 0x571   :  { %1740 = vadd.xlane.f32.xlu1 %v4524_v26 }
 0x573   :  { %1786 = vadd.xlane.f32.xlu0 %v1758_v12 }
 0x575   :  { %1788 = vadd.xlane.f32.xlu1 %v1759_v45 }
 0x577   :  { %1790 = vadd.xlane.f32.xlu0 %v1760_v36 }
 0x579   :  { %1792 = vadd.xlane.f32.xlu1 %v1761_v9 }
 0x5c8   :  { %v1719_v53 = vpop.xlane.xlu0 %1718 }
 0x5c9   :  { %v1796_v63 = vmul.f32 0.03125, %v1719_v53 }
 0x5ca   :  { %v1721_v61 = vpop.xlane.xlu1 %1720 }
 0x5cb   :  { %v1797_v51 = vmul.f32 0.03125, %v1721_v61  ;;  %v1828_v7 = vmul.f32 %v1796_v63, %v1796_v63  ;;  %v1860_v9 = vsub.f32 %v4441_v37, %v1796_v63 }
 0x5cc   :  { %v1715_v35 = vpop.xlane.xlu0 %1714 }
 0x5cd   :  { %v1794_v16 = vmul.f32 0.03125, %v1715_v35  ;;  %v1829_v24 = vmul.f32 %v1797_v51, %v1797_v51  ;;  %v1861_v17 = vsub.f32 %v4445_v47, %v1797_v51 }
 0x5ce   :  { %v1717_v57 = vpop.xlane.xlu1 %1716 }
 0x5cf   :  { %v1795_v27 = vmul.f32 0.03125, %v1717_v57  ;;  %v1826_v28 = vmul.f32 %v1794_v16, %v1794_v16  ;;  %v1858_v57 = vsub.f32 %v4449_v20, %v1794_v16  ;;  %v4559_v16 = vld [vmem:[%s5139_s7] ss:$0 sm:$0xff] }
 0x5d0   :  { %v1767_v19 = vpop.xlane.xlu0 %1766 }
 0x5d1   :  { %v1812_v40 = vmul.f32 0.03125, %v1767_v19  ;;  %v1827_v38 = vmul.f32 %v1795_v27, %v1795_v27 }
 0x5d2   :  { %v1769_v13 = vpop.xlane.xlu1 %1768 }
 0x5d3   :  { %v1844_v11 = vsub.f32 %v1812_v40, %v1828_v7  ;;  %v1813_v6 = vmul.f32 0.03125, %v1769_v13 }
 0x5d4   :  { %v1763_v41 = vpop.xlane.xlu0 %1762 }
 0x5d5   :  { %v1876_v43 = vadd.f32 1e-05, %v1844_v11  ;;  %v1845_v56 = vsub.f32 %v1813_v6, %v1829_v24  ;;  %v1810_v10 = vmul.f32 0.03125, %v1763_v41  ;;  %v1859_v41 = vsub.f32 %v4452_v31, %v1795_v27 }
 0x5d6   :  { %v1765_v44 = vpop.xlane.xlu1 %1764 }
 0x5d7   :  { %v1877_v0 = vadd.f32 1e-05, %v1845_v56  ;;  %v1842_v58 = vsub.f32 %v1810_v10, %v1826_v28  ;;  %v1811_v15 = vmul.f32 0.03125, %v1765_v44  ;;  %3528 = vrsqrt.f32 %v1876_v43 }
 0x5d8   :  { %v1727_v21 = vpop.xlane.xlu0 %1726 }
 0x5d9   :  { %3530 = vrsqrt.f32 %v1877_v0  ;;  %v1874_v3 = vadd.f32 1e-05, %v1842_v58  ;;  %v1843_v5 = vsub.f32 %v1811_v15, %v1827_v38  ;;  %v4536_v55 = vmul.f32 0.03125, %v1727_v21 }
 0x5da   :  { %v1729_v18 = vpop.xlane.xlu1 %1728 }
 0x5db   :  { %3532 = vrsqrt.f32 %v1874_v3  ;;  %v1875_v32 = vadd.f32 1e-05, %v1843_v5  ;;  %v4538_v2 = vmul.f32 0.03125, %v1729_v18  ;;  %v1832_v8 = vmul.f32 %v4536_v55, %v4536_v55 }
 0x5dc   :  { %v1723_v34 = vpop.xlane.xlu0 %1722 }
 0x5dd   :  { %3534 = vrsqrt.f32 %v1875_v32  ;;  %v4540_v22 = vmul.f32 0.03125, %v1723_v34  ;;  %v1833_v53 = vmul.f32 %v4538_v2, %v4538_v2  ;;  %v4567_v32 = vld [vmem:[%s5140_s8] ss:$0 sm:$0xff] }
 0x5de   :  { %v1725_v33 = vpop.xlane.xlu1 %1724 }
 0x5df   :  { %v4545_v12 = vmul.f32 0.03125, %v1725_v33  ;;  %v1830_v7 = vmul.f32 %v4540_v22, %v4540_v22 }
 0x5e0   :  { %v1775_v59 = vpop.xlane.xlu0 %1774 }
 0x5e1   :  { %v1816_v1 = vmul.f32 0.03125, %v1775_v59  ;;  %v3529_v46 = vpop.eup %3528  ;;  %v1831_v63 = vmul.f32 %v4545_v12, %v4545_v12 }
 0x5e2   :  { %v1777_v45 = vpop.xlane.xlu1 %1776  ;;  %v1908_v51 = vmul.f32 %v3529_v46, %v1860_v9 }
 0x5e3   :  { %v3531_v36 = vpop.eup %3530  ;;  %v1848_v61 = vsub.f32 %v1816_v1, %v1832_v8  ;;  %v1817_v35 = vmul.f32 0.03125, %v1777_v45 }
 0x5e4   :  { %v1909_v19 = vmul.f32 %v3531_v36, %v1861_v17  ;;  %v1771_v40 = vpop.xlane.xlu0 %1770  ;;  %v1930_v5 = vmul.f32 %v4559_v16, %v1908_v51 }
 0x5e5   :  { %v3533_v13 = vpop.eup %3532  ;;  %v1880_v24 = vadd.f32 1e-05, %v1848_v61  ;;  %v1849_v11 = vsub.f32 %v1817_v35, %v1833_v53  ;;  %v1814_v6 = vmul.f32 0.03125, %v1771_v40 }
 0x5e6   :  { %v1773_v28 = vpop.xlane.xlu1 %1772  ;;  %v1906_v43 = vmul.f32 %v3533_v13, %v1858_v57  ;;  %v1931_v0 = vmul.f32 %v4559_v16, %v1909_v19  ;;  %v1952_v45 = vadd.f32 %v4567_v32, %v1930_v5  ;;  %v1865_v13 = vsub.f32 %v4469_v48, %v4538_v2 }
 0x5e7   :  { %v3535_v56 = vpop.eup %3534  ;;  %v1881_v10 = vadd.f32 1e-05, %v1849_v11  ;;  %v1846_v44 = vsub.f32 %v1814_v6, %v1830_v7  ;;  %v1815_v38 = vmul.f32 0.03125, %v1773_v28  ;;  %3536 = vrsqrt.f32 %v1880_v24 }
 0x5e8   :  { %v1735_v58 = vpop.xlane.xlu0 %1734  ;;  %v1907_v15 = vmul.f32 %v3535_v56, %v1859_v41  ;;  %v1928_v27 = vmul.f32 %v4559_v16, %v1906_v43  ;;  %v1953_v59 = vadd.f32 %v4567_v32, %v1931_v0  ;;  %v1864_v6 = vsub.f32 %v4466_v4, %v4536_v55 }
 0x5e9   :  { %3538 = vrsqrt.f32 %v1881_v10  ;;  %v1878_v21 = vadd.f32 1e-05, %v1846_v44  ;;  %v1847_v3 = vsub.f32 %v1815_v38, %v1831_v63  ;;  %v4573_v17 = vmul.f32 0.03125, %v1735_v58 }
 0x5ea   :  { %v1737_v18 = vpop.xlane.xlu1 %1736  ;;  %v1929_v34 = vmul.f32 %v4559_v16, %v1907_v15  ;;  %v1950_v1 = vadd.f32 %v4567_v32, %v1928_v27  ;;  %v1967_v61 = vpack.c.bf16 %v1953_v59, %v1952_v45  ;;  %v1862_v43 = vsub.f32 %v4473_v49, %v4540_v22 }
 0x5eb   :  { %3540 = vrsqrt.f32 %v1878_v21  ;;  %v1879_v33 = vadd.f32 1e-05, %v1847_v3  ;;  %v4576_v53 = vmul.f32 0.03125, %v1737_v18  ;;  %v1836_v19 = vmul.f32 %v4573_v17, %v4573_v17 }
 0x5ec   :  { %v1731_v8 = vpop.xlane.xlu0 %1730  ;;  %v1951_v46 = vadd.f32 %v4567_v32, %v1929_v34  ;;  %v1863_v55 = vsub.f32 %v4476_v52, %v4545_v12 }
 0x5ed   :  { %3542 = vrsqrt.f32 %v1879_v33  ;;  %v4578_v35 = vmul.f32 0.03125, %v1731_v8  ;;  %v1837_v41 = vmul.f32 %v4576_v53, %v4576_v53 }
 0x5ee   :  { %v1733_v36 = vpop.xlane.xlu1 %1732  ;;  %v1966_v9 = vpack.c.bf16 %v1951_v46, %v1950_v1 }
 0x5ef   :  { %v4584_v51 = vmul.f32 0.03125, %v1733_v36  ;;  %v1834_v56 = vmul.f32 %v4578_v35, %v4578_v35 }
 0x5f0   :  { %3278 = vmatprep.mubr.bf16.mxu0 %v1966_v9  ;;  %v1783_v57 = vpop.xlane.xlu0 %1782 }
 0x5f1   :  { %v1820_v7 = vmul.f32 0.03125, %v1783_v57  ;;  %3279 = vmatmul.mubr.bf16.vlgmr.msra.gmra.mrb[56].mxu0 %v1967_v61  ;;  %v3537_v40 = vpop.eup %3536  ;;  %v1835_v27 = vmul.f32 %v4584_v51, %v4584_v51 }
 0x5f2   :  { %v1785_v24 = vpop.xlane.xlu1 %1784  ;;  %v1912_v15 = vmul.f32 %v3537_v40, %v1864_v6 }
 0x5f3   :  { %v3539_v11 = vpop.eup %3538  ;;  %v1852_v63 = vsub.f32 %v1820_v7, %v1836_v19  ;;  %v1821_v28 = vmul.f32 0.03125, %v1785_v24 }
 0x5f4   :  { %v1779_v10 = vpop.xlane.xlu0 %1778  ;;  %v1913_v2 = vmul.f32 %v3539_v11, %v1865_v13  ;;  %v1934_v12 = vmul.f32 %v4559_v16, %v1912_v15  ;;  %v1868_v15 = vsub.f32 %v4489_v25, %v4573_v17 }
 0x5f5   :  { %v3541_v44 = vpop.eup %3540  ;;  %v1884_v38 = vadd.f32 1e-05, %v1852_v63  ;;  %v1853_v0 = vsub.f32 %v1821_v28, %v1837_v41  ;;  %v1818_v58 = vmul.f32 0.03125, %v1779_v10 }
 0x5f6   :  { %v1781_v21 = vpop.xlane.xlu1 %1780  ;;  %v1910_v3 = vmul.f32 %v3541_v44, %v1862_v43  ;;  %v1935_v33 = vmul.f32 %v4559_v16, %v1913_v2  ;;  %v1956_v24 = vadd.f32 %v4567_v32, %v1934_v12  ;;  %v1869_v44 = vsub.f32 %v4493_v14, %v4576_v53 }
 0x5f7   :  { %v3543_v5 = vpop.eup %3542  ;;  %v1885_v22 = vadd.f32 1e-05, %v1853_v0  ;;  %v1850_v18 = vsub.f32 %v1818_v58, %v1834_v56  ;;  %v1819_v34 = vmul.f32 0.03125, %v1781_v21  ;;  %3544 = vrsqrt.f32 %v1884_v38 }
 0x5f8   :  { %v1743_v59 = vpop.xlane.xlu0 %1742  ;;  %v1911_v8 = vmul.f32 %v3543_v5, %v1863_v55  ;;  %v1932_v1 = vmul.f32 %v4559_v16, %v1910_v3  ;;  %v1957_v57 = vadd.f32 %v4567_v32, %v1935_v33  ;;  %v1866_v3 = vsub.f32 %v4497_v62, %v4578_v35 }
 0x5f9   :  { %3546 = vrsqrt.f32 %v1885_v22  ;;  %v1882_v46 = vadd.f32 1e-05, %v1850_v18  ;;  %v1851_v45 = vsub.f32 %v1819_v34, %v1835_v27  ;;  %v4606_v28 = vmul.f32 0.03125, %v1743_v59 }
 0x5fa   :  { %v1745_v36 = vpop.xlane.xlu1 %1744  ;;  %v1933_v9 = vmul.f32 %v4559_v16, %v1911_v8  ;;  %v1954_v7 = vadd.f32 %v4567_v32, %v1932_v1  ;;  %v1969_v63 = vpack.c.bf16 %v1957_v57, %v1956_v24  ;;  %v1867_v1 = vsub.f32 %v4500_v23, %v4584_v51 }
 0x5fb   :  { %3548 = vrsqrt.f32 %v1882_v46  ;;  %v1883_v61 = vadd.f32 1e-05, %v1851_v45  ;;  %v1809_v38 = vmul.f32 0.03125, %v1745_v36  ;;  %v1840_v5 = vmul.f32 %v4606_v28, %v4606_v28 }
 0x5fc   :  { %v1739_v19 = vpop.xlane.xlu0 %1738  ;;  %v1955_v40 = vadd.f32 %v4567_v32, %v1933_v9 }
 0x5fd   :  { %3550 = vrsqrt.f32 %v1883_v61  ;;  %v1806_v13 = vmul.f32 0.03125, %v1739_v19  ;;  %v1841_v17 = vmul.f32 %v1809_v38, %v1809_v38 }
 0x5fe   :  { %v1741_v11 = vpop.xlane.xlu1 %1740  ;;  %v1968_v6 = vpack.c.bf16 %v1955_v40, %v1954_v7 }
 0x5ff   :  { %v1807_v41 = vmul.f32 0.03125, %v1741_v11  ;;  %v1838_v56 = vmul.f32 %v1806_v13, %v1806_v13 }
 0x600   :  { %3282 = vmatprep.mubr.bf16.mxu0 %v1968_v6  ;;  %v1787_v43 = vpop.xlane.xlu0 %1786 }
 0x601   :  { %v1822_v10 = vmul.f32 0.03125, %v1787_v43  ;;  %3283 = vmatmul.mubr.bf16.gmra.mrb[60].mxu0 %v1969_v63  ;;  %v3545_v2 = vpop.eup %3544  ;;  %v1839_v55 = vmul.f32 %v1807_v41, %v1807_v41 }
 0x602   :  { %v1789_v0 = vpop.xlane.xlu1 %1788  ;;  %v1916_v8 = vmul.f32 %v3545_v2, %v1868_v15 }
 0x603   :  { %v3547_v58 = vpop.eup %3546  ;;  %v1854_v27 = vsub.f32 %v1822_v10, %v1838_v56  ;;  %v1823_v21 = vmul.f32 0.03125, %v1789_v0 }
 0x604   :  { %v1791_v22 = vpop.xlane.xlu0 %1790  ;;  %v1917_v18 = vmul.f32 %v3547_v58, %v1869_v44  ;;  %v1938_v24 = vmul.f32 %v4559_v16, %v1916_v8  ;;  %v1870_v44 = vsub.f32 %v4521_v54, %v1806_v13  ;;  %v1871_v58 = vsub.f32 %v4524_v26, %v1807_v41 }
 0x605   :  { %v3549_v34 = vpop.eup %3548  ;;  %v1886_v33 = vadd.f32 1e-05, %v1854_v27  ;;  %v1855_v53 = vsub.f32 %v1823_v21, %v1839_v55  ;;  %v1824_v59 = vmul.f32 0.03125, %v1791_v22  ;;  %v1872_v27 = vsub.f32 %v4514_v39, %v4606_v28 }
 0x606   :  { %v1793_v46 = vpop.xlane.xlu1 %1792  ;;  %v1914_v45 = vmul.f32 %v3549_v34, %v1866_v3  ;;  %v1939_v12 = vmul.f32 %v4559_v16, %v1917_v18  ;;  %v1960_v56 = vadd.f32 %v4567_v32, %v1938_v24  ;;  %v1873_v22 = vsub.f32 %v4517_v42, %v1809_v38  ;;  %v4653_v24 = vld [vmem:[%s5142_s10] ss:$0 sm:$0xff] }
 0x607   :  { %v3551_v36 = vpop.eup %3550  ;;  %3552 = vrsqrt.f32 %v1886_v33  ;;  %v1887_v35 = vadd.f32 1e-05, %v1855_v53  ;;  %v1856_v9 = vsub.f32 %v1824_v59, %v1840_v5  ;;  %v1825_v61 = vmul.f32 0.03125, %v1793_v46 }
 0x608   :  { %v1915_v57 = vmul.f32 %v3551_v36, %v1867_v1  ;;  %v1936_v19 = vmul.f32 %v4559_v16, %v1914_v45  ;;  %v1961_v6 = vadd.f32 %v4567_v32, %v1939_v12  ;;  %v3760_v46 = vmov 0.0   ;;  %v3390_v45 = vld [vmem:[#allocation11 + $0x10] sm:$0xff]   ;;  %v3391_v12 = vld [vmem:[#allocation11 + $0x18] sm:$0xff]   ;;  %v3392_v36 = vld [vmem:[#allocation11 + $0x20] sm:$0xff]  }
 0x609   :  { %3554 = vrsqrt.f32 %v1887_v35  ;;  %v1888_v7 = vadd.f32 1e-05, %v1856_v9  ;;  %v1857_v40 = vsub.f32 %v1825_v61, %v1841_v17  ;;  %139 = vst [vmem:[#allocation2 + $0x30] sm:$0x1] %v3760_v46  ;;  %147 = vst [vmem:[#allocation2 + $0x39] sm:$0x1] %v3760_v46 }
 0x60a   :  { %v1937_v51 = vmul.f32 %v4559_v16, %v1915_v57  ;;  %v1958_v63 = vadd.f32 %v4567_v32, %v1936_v19  ;;  %v1971_v2 = vpack.c.bf16 %v1961_v6, %v1960_v56  ;;  %131 = vst [vmem:[#allocation2] sm:$0xff] %v3760_v46  ;;  %132 = vst [vmem:[#allocation2 + $0x8] sm:$0x3] %v3760_v46  ;;  %v3393_v35 = vld [vmem:[#allocation11 + $0x28] sm:$0xff]   ;;  %v3394_v9 = vld [vmem:[#allocation11 + $0x30] sm:$0xff]  }
 0x60b   :  { %3556 = vrsqrt.f32 %v1888_v7  ;;  %v1889_v11 = vadd.f32 1e-05, %v1857_v40  ;;  %134 = vst [vmem:[#allocation2 + $0x90] sm:$0xff] %v3760_v46  ;;  %135 = vst [vmem:[#allocation2 + $0x98] sm:$0x3] %v3760_v46  ;;  %v3395_v61 = vld [vmem:[#allocation11 + $0x38] sm:$0xff]  }
 0x60c   :  { %v1959_v43 = vadd.f32 %v4567_v32, %v1937_v51  ;;  %137 = vst [vmem:[#allocation2 + $0x10] sm:$0x1] %v3760_v46  ;;  %138 = vst [vmem:[#allocation2 + $0x20] sm:$0x1] %v3760_v46  ;;  %v128_v57 = vld [vmem:[%s5143_s11] sm:$0xff] }
 0x60d   :  { %3558 = vrsqrt.f32 %v1889_v11  ;;  %140 = vst [vmem:[#allocation2 + $0x40] sm:$0x1] %v3760_v46  ;;  %141 = vst [vmem:[#allocation2 + $0x50] sm:$0x1] %v3760_v46  ;;  %v4644_v19 = vrot.slane %v128_v57, %v465_v29  ;;  %v4648_v40 = vrot.slane %v128_v57, %v469_v30  ;;  %v4657_v51 = vrot.slane %v128_v57, %v473_v60 }
 0x60e   :  { %v1970_v10 = vpack.c.bf16 %v1959_v43, %v1958_v63  ;;  %142 = vst [vmem:[#allocation2 + $0x60] sm:$0x1] %v3760_v46  ;;  %143 = vst [vmem:[#allocation2 + $0x70] sm:$0x1] %v3760_v46  ;;  %v2253_v63 = vsub.s32 4, %v4110_v50  ;;  %v2233_v60 = vsub.s32 3, %v4110_v50 }
 0x60f   :  { %144 = vst [vmem:[#allocation2 + $0x80] sm:$0x1] %v3760_v46  ;;  %145 = vst [vmem:[#allocation2 + $0x19] sm:$0x1] %v3760_v46  ;;  %v2183_v11 = vmul.f32 0.0, %v4644_v19 }
 0x610   :  { %3286 = vmatprep.mubr.bf16.mxu0 %v1970_v10  ;;  %146 = vst [vmem:[#allocation2 + $0x29] sm:$0x1] %v3760_v46  ;;  %148 = vst [vmem:[#allocation2 + $0x49] sm:$0x1] %v3760_v46  ;;  %v2293_v10 = vsub.s32 6, %v4110_v50 }
 0x611   :  { %v3553_v0 = vpop.eup %3552  ;;  %3287 = vmatmul.mubr.bf16.gmra.mrb[64].mxu0 %v1971_v2  ;;  %149 = vst [vmem:[#allocation2 + $0x59] sm:$0x1] %v3760_v46  ;;  %150 = vst [vmem:[#allocation2 + $0x69] sm:$0x1] %v3760_v46  ;;  %v2159_v7 = vld [vmem:[#allocation2 + $0x1] sm:$0xff]  ;;  %v2313_v2 = vsub.s32 7, %v4110_v50 }
 0x612   :  { %v1918_v15 = vmul.f32 %v3553_v0, %v1870_v44  ;;  %151 = vst [vmem:[#allocation2 + $0x79] sm:$0x1] %v3760_v46  ;;  %152 = vst [vmem:[#allocation2 + $0x89] sm:$0x1] %v3760_v46  ;;  %v2195_v6 = vmul.f32 %v4648_v40, %v2159_v7  ;;  %v2169_v43 = vld [vmem:[#allocation2 + $0x2] sm:$0xff] }
 0x613   :  { %v3555_v55 = vpop.eup %3554 }
 0x614   :  { %v1919_v21 = vmul.f32 %v3555_v55, %v1871_v58  ;;  %v1940_v3 = vmul.f32 %v4559_v16, %v1918_v15  ;;  %v2273_v58 = vsub.s32 5, %v4110_v50  ;;  %v4677_v50 = vrot.slane %v128_v57, %v2233_v60 }
 0x615   :  { %v3557_v5 = vpop.eup %3556 }
 0x616   :  { %v1941_v18 = vmul.f32 %v4559_v16, %v1919_v21  ;;  %v1920_v34 = vmul.f32 %v3557_v5, %v1872_v27  ;;  %v1962_v33 = vadd.f32 %v4567_v32, %v1940_v3  ;;  %v2203_v27 = vadd.f32 %v2195_v6, %v2183_v11 }
 0x617   :  { %v3559_v13 = vpop.eup %3558  ;;  %v2215_v21 = vmul.f32 %v4657_v51, %v2169_v43  ;;  %v4671_v5 = vrot.slane %v128_v57, %v2253_v63 }
 0x618   :  { %v1963_v53 = vadd.f32 %v4567_v32, %v1941_v18  ;;  %v1921_v41 = vmul.f32 %v3559_v13, %v1873_v22  ;;  %v1942_v59 = vmul.f32 %v4559_v16, %v1920_v34  ;;  %v2168_v22 = vld [vmem:[#allocation2 + $0x91] sm:$0xff]  ;;  %v4673_v34 = vrot.slane %v128_v57, %v2293_v10 }
 0x619   :  { %v2178_v18 = vld [vmem:[#allocation2 + $0x92] sm:$0xff]  ;;  %v4675_v13 = vrot.slane %v128_v57, %v2313_v2 }
 0x61a   :  { %v1972_v8 = vpack.c.bf16 %v1963_v53, %v1962_v33  ;;  %v1943_v28 = vmul.f32 %v4559_v16, %v1921_v41  ;;  %v1964_v1 = vadd.f32 %v4567_v32, %v1942_v59  ;;  %v3388_v16 = vld [vmem:[#allocation11] sm:$0xff]   ;;  %v4679_v33 = vrot.slane %v128_v57, %v2273_v58  ;;  %v4684_v53 = vld [vmem:[%s5143_s11 + $0x8] ss:$0 sm:$0xff] }
 0x61b   :  { %3294 = vmatprep.subr.bf16.mxu1 %v3388_v16  ;;  %v4686_v41 = vadd.f32 %v2215_v21, %v2203_v27  ;;  %v4689_v59 = vmul.f32 0.0, %v4673_v34 }
 0x61c   :  { %3290 = vmatprep.mubr.bf16.mxu0 %v1972_v8  ;;  %v1965_v17 = vadd.f32 %v4567_v32, %v1943_v28  ;;  %3295 = vmatpush3.bf16.msra.mxu1 %v3388_v16  ;;  %v3389_v32 = vld [vmem:[#allocation11 + $0x8] sm:$0xff]   ;;  %v4692_v8 = vmul.f32 %v4675_v13, %v2168_v22  ;;  %v4695_v28 = vmul.f32 %v4684_v53, %v2178_v18 }
 0x61d   :  { %3296 = vmatprep.subr.bf16.mxu1 %v3389_v32 }
 0x61e   :  { %v1973_v38 = vpack.c.bf16 %v1965_v17, %v1964_v1 }
 0x620   :  { %3291 = vmatmul.mubr.bf16.gmra.mrb[68].mxu0 %v1973_v38  ;;  %3297 = vmatpush3.bf16.msra.mxu1 %v3389_v32 }
 0x621   :  { %3298 = vmatprep.subr.bf16.mxu1 %v3390_v45 }
 0x624   :  { %3299 = vmatpush3.bf16.msra.mxu1 %v3390_v45 }
 0x625   :  { %3300 = vmatprep.subr.bf16.mxu1 %v3391_v12 }
 0x628   :  { %3301 = vmatpush3.bf16.msra.mxu1 %v3391_v12 }
 0x629   :  { %3302 = vmatprep.subr.bf16.mxu1 %v3392_v36 }
 0x62c   :  { %3303 = vmatpush3.bf16.msra.mxu1 %v3392_v36 }
 0x62d   :  { %3304 = vmatprep.subr.bf16.mxu1 %v3393_v35 }
 0x630   :  { %3305 = vmatpush3.bf16.msra.mxu1 %v3393_v35 }
 0x631   :  { %3306 = vmatprep.subr.bf16.mxu1 %v3394_v9 }
 0x634   :  { %3307 = vmatpush3.bf16.msra.mxu1 %v3394_v9 }
 0x635   :  { %3308 = vmatprep.subr.bf16.mxu1 %v3395_v61 }
 0x638   :  { %3309 = vmatpush3.bf16.msra.mxu1 %v3395_v61 }
 0x6c4   :  { %v3280_v29 = vpop.f32.mrb[56].mxu0 }
 0x6c5   :  { %v2087_v30 = vadd.f32 %v3280_v29, %v4653_v24  ;;  %v2078_v56 = vpop.f32.mrb[57].mxu0 }
 0x6c6   :  { %v2079_v44 = vadd.f32 %v4653_v24, %v2078_v56  ;;  %v3281_v0 = vpop.f32.mrb[58].mxu0 }
 0x6c7   :  { %2143 = vst [vmem:[#allocation2 + $0x31] sm:$0xff] %v2087_v30  ;;  %v2090_v15 = vadd.f32 %v3281_v0, %v4653_v24  ;;  %v2081_v55 = vpop.f32.mrb[59].mxu0  ;;  %v2198_v1 = vmul.f32 %v4648_v40, %v2087_v30  ;;  %v4699_v17 = vmul.f32 %v4671_v5, %v2087_v30  ;;  %v4707_v32 = vmul.f32 %v4675_v13, %v2087_v30 }
 0x6c8   :  { %2141 = vst [vmem:[#allocation2 + $0x11] sm:$0xff] %v2079_v44  ;;  %v2082_v3 = vadd.f32 %v4653_v24, %v2081_v55  ;;  %v2196_v38 = vmul.f32 %v4648_v40, %v2079_v44  ;;  %v2255_v16 = vmul.f32 %v4671_v5, %v2079_v44 }
 0x6c9   :  { %2144 = vst [vmem:[#allocation2 + $0x41] sm:$0xff] %v2090_v15  ;;  %v4703_v46 = vmul.f32 %v4648_v40, %v2090_v15  ;;  %v2258_v36 = vmul.f32 %v4671_v5, %v2090_v15  ;;  %v4713_v61 = vmul.f32 %v4675_v13, %v2090_v15 }
 0x6ca   :  { %2142 = vst [vmem:[#allocation2 + $0x21] sm:$0xff] %v2082_v3  ;;  %v2197_v35 = vmul.f32 %v4648_v40, %v2082_v3  ;;  %v2256_v9 = vmul.f32 %v4671_v5, %v2082_v3  ;;  %v2315_v63 = vmul.f32 %v4675_v13, %v2082_v3 }
 0x6ce   :  { %v2152_v45 = vld [vmem:[#allocation2 + $0x30] sm:$0xff] }
 0x6cf   :  { %v2172_v12 = vld [vmem:[#allocation2 + $0x32] sm:$0xff]  ;;  %v2186_v57 = vmul.f32 %v4644_v19, %v2152_v45  ;;  %v2237_v11 = vmul.f32 %v4677_v50, %v2152_v45 }
 0x6d0   :  { %v2218_v7 = vmul.f32 %v4657_v51, %v2172_v12  ;;  %v2150_v6 = vld [vmem:[#allocation2 + $0x10] sm:$0xff]  ;;  %v2277_v43 = vmul.f32 %v4679_v33, %v2172_v12  ;;  %v2153_v10 = vld [vmem:[#allocation2 + $0x40] sm:$0xff]  ;;  %v2336_v48 = vmul.f32 %v4684_v53, %v2172_v12 }
 0x6d1   :  { %v2170_v29 = vld [vmem:[#allocation2 + $0x12] sm:$0xff]  ;;  %v2184_v30 = vmul.f32 %v4644_v19, %v2150_v6  ;;  %v2173_v2 = vld [vmem:[#allocation2 + $0x42] sm:$0xff]  ;;  %v2235_v44 = vmul.f32 %v4677_v50, %v2150_v6  ;;  %v2206_v0 = vadd.f32 %v2198_v1, %v2186_v57  ;;  %v2187_v60 = vmul.f32 %v4644_v19, %v2153_v10 }
 0x6d2   :  { %v2216_v56 = vmul.f32 %v4657_v51, %v2170_v29  ;;  %v2238_v58 = vmul.f32 %v4677_v50, %v2153_v10  ;;  %v2151_v15 = vld [vmem:[#allocation2 + $0x20] sm:$0xff]  ;;  %v2275_v27 = vmul.f32 %v4679_v33, %v2170_v29  ;;  %v2278_v21 = vmul.f32 %v4679_v33, %v2173_v2 }
 0x6d3   :  { %v2171_v55 = vld [vmem:[#allocation2 + $0x22] sm:$0xff]  ;;  %v2185_v3 = vmul.f32 %v4644_v19, %v2151_v15  ;;  %v2204_v18 = vadd.f32 %v2196_v38, %v2184_v30  ;;  %v2226_v26 = vadd.f32 %v2218_v7, %v2206_v0  ;;  %v2236_v42 = vmul.f32 %v4677_v50, %v2151_v15 }
 0x6d4   :  { %v2217_v22 = vmul.f32 %v4657_v51, %v2171_v55  ;;  %v2243_v1 = vadd.f32 %v2235_v44, %v4686_v41  ;;  %v2276_v57 = vmul.f32 %v4679_v33, %v2171_v55  ;;  %v3284_v6 = vpop.f32.mrb[60].mxu0  ;;  %v2295_v23 = vmul.f32 %v4673_v34, %v2151_v15 }
 0x6d5   :  { %v2205_v54 = vadd.f32 %v2197_v35, %v2185_v3  ;;  %v2224_v39 = vadd.f32 %v2216_v56, %v2204_v18  ;;  %v2296_v29 = vmul.f32 %v4673_v34, %v2152_v45  ;;  %v2103_v14 = vadd.f32 %v3284_v6, %v4653_v24  ;;  %v2094_v62 = vpop.f32.mrb[61].mxu0 }
 0x6d6   :  { %v2246_v25 = vadd.f32 %v2238_v58, %v2226_v26  ;;  %v2263_v52 = vadd.f32 %v2255_v16, %v2243_v1  ;;  %v2335_v38 = vmul.f32 %v4684_v53, %v2171_v55  ;;  %v2095_v7 = vadd.f32 %v4653_v24, %v2094_v62  ;;  %v3285_v30 = vpop.f32.mrb[62].mxu0 }
 0x6d7   :  { %v2225_v44 = vadd.f32 %v2217_v22, %v2205_v54  ;;  %v2244_v0 = vadd.f32 %v2236_v42, %v2224_v39  ;;  %2147 = vst [vmem:[#allocation2 + $0x71] sm:$0xff] %v2103_v14  ;;  %v2106_v35 = vadd.f32 %v3285_v30, %v4653_v24  ;;  %v2097_v56 = vpop.f32.mrb[63].mxu0  ;;  %v2297_v3 = vmul.f32 %v4673_v34, %v2153_v10 }
 0x6d8   :  { %v2283_v15 = vadd.f32 %v2275_v27, %v2263_v52  ;;  %v2266_v45 = vadd.f32 %v2258_v36, %v2246_v25  ;;  %2145 = vst [vmem:[#allocation2 + $0x51] sm:$0xff] %v2095_v7  ;;  %v2098_v26 = vadd.f32 %v4653_v24, %v2097_v56  ;;  %v4742_v16 = vmul.f32 %v4648_v40, %v2103_v14 }
 0x6d9   :  { %v2264_v62 = vadd.f32 %v2256_v9, %v2244_v0  ;;  %v2245_v58 = vadd.f32 %v2237_v11, %v2225_v44  ;;  %2148 = vst [vmem:[#allocation2 + $0x81] sm:$0xff] %v2106_v35  ;;  %v2200_v39 = vmul.f32 %v4648_v40, %v2095_v7  ;;  %v2318_v12 = vmul.f32 %v4675_v13, %v2095_v7 }
 0x6da   :  { %v2303_v42 = vadd.f32 %v2295_v23, %v2283_v15  ;;  %v2286_v54 = vadd.f32 %v2278_v21, %v2266_v45  ;;  %2146 = vst [vmem:[#allocation2 + $0x61] sm:$0xff] %v2098_v26  ;;  %v2337_v36 = vmul.f32 %v4684_v53, %v2173_v2  ;;  %v2207_v10 = vadd.f32 %v4703_v46, %v2187_v60  ;;  %v4757_v23 = vld [vmem:[%s5144_s12] ss:$0 sm:$0xff] }
 0x6db   :  { %v2284_v52 = vadd.f32 %v2276_v57, %v2264_v62  ;;  %v2265_v25 = vadd.f32 %v4699_v17, %v2245_v58  ;;  %v4750_v55 = vmul.f32 %v4648_v40, %v2098_v26  ;;  %v2219_v11 = vmul.f32 %v4657_v51, %v2173_v2 }
 0x6dc   :  { %v2323_v9 = vadd.f32 %v2315_v63, %v2303_v42  ;;  %v2259_v27 = vmul.f32 %v4671_v5, %v2095_v7  ;;  %v4760_v17 = vmul.f32 %v4671_v5, %v2098_v26  ;;  %v4763_v46 = vmul.f32 %v4675_v13, %v2098_v26 }
 0x6dd   :  { %v2304_v21 = vadd.f32 %v2296_v29, %v2284_v52  ;;  %v2285_v22 = vadd.f32 %v2277_v43, %v2265_v25  ;;  %v2227_v18 = vadd.f32 %v2219_v11, %v2207_v10  ;;  %v4766_v63 = vmul.f32 %v4675_v13, %v2103_v14 }
 0x6de   :  { %v2343_v60 = vadd.f32 %v2335_v38, %v2323_v9  ;;  %v4769_v2 = vmul.f32 %v4671_v5, %v2103_v14  ;;  %v4771_v1 = vld [vmem:[#allocation2 + $0x70] sm:$0xff]  ;;  %v4777_v29 = vmul.f32 %v4671_v5, %v2106_v35  ;;  %v4780_v7 = vmul.f32 %v4675_v13, %v2106_v35 }
 0x6df   :  { %v4773_v57 = vld [vmem:[#allocation2 + $0x72] sm:$0xff]  ;;  %v2324_v43 = vadd.f32 %v4707_v32, %v2304_v21  ;;  %v2305_v6 = vadd.f32 %v2297_v3, %v2285_v22  ;;  %v4784_v38 = vmul.f32 %v4644_v19, %v4771_v1  ;;  %v4791_v0 = vmul.f32 %v4673_v34, %v4771_v1 }
 0x6e0   :  { %v2154_v30 = vld [vmem:[#allocation2 + $0x50] sm:$0xff]  ;;  %v4787_v44 = vadd.f32 %v4757_v23, %v2343_v60  ;;  %v4795_v32 = vmul.f32 %v4684_v53, %v4773_v57 }
 0x6e1   :  { %v2174_v14 = vld [vmem:[#allocation2 + $0x52] sm:$0xff]  ;;  %v2188_v35 = vmul.f32 %v4644_v19, %v2154_v30  ;;  %v2344_v56 = vadd.f32 %v2336_v48, %v2324_v43  ;;  %v2298_v15 = vmul.f32 %v4673_v34, %v2154_v30  ;;  %v2325_v45 = vadd.f32 %v4713_v61, %v2305_v6  ;;  %v2155_v3 = vld [vmem:[#allocation2 + $0x60] sm:$0xff] }
 0x6e2   :  { %v2365_v26 = vmul.f32 %v4787_v44, %v4787_v44  ;;  %v2338_v62 = vmul.f32 %v4684_v53, %v2174_v14  ;;  %v2220_v58 = vmul.f32 %v4657_v51, %v2174_v14  ;;  %v2239_v42 = vmul.f32 %v4677_v50, %v2154_v30  ;;  %v2175_v60 = vld [vmem:[#allocation2 + $0x62] sm:$0xff] }
 0x6e3   :  { %v2189_v52 = vmul.f32 %v4644_v19, %v2155_v3  ;;  %v4807_v25 = vadd.f32 %v4757_v23, %v2344_v56  ;;  %v2306_v48 = vadd.f32 %v2298_v15, %v2286_v54  ;;  %v2345_v10 = vadd.f32 %v2337_v36, %v2325_v45 }
 0x6e4   :  { %v2373_v9 = vmul.f32 %v2365_v26, %v4787_v44  ;;  %v2208_v61 = vadd.f32 %v2200_v39, %v2188_v35  ;;  %v2240_v11 = vmul.f32 %v4677_v50, %v2155_v3  ;;  %v2247_v21 = vadd.f32 %v2239_v42, %v2227_v18  ;;  %v3288_v22 = vpop.f32.mrb[64].mxu0 }
 0x6e5   :  { %v2366_v43 = vmul.f32 %v4807_v25, %v4807_v25  ;;  %v2326_v6 = vadd.f32 %v2318_v12, %v2306_v48  ;;  %v4814_v30 = vadd.f32 %v4757_v23, %v2345_v10  ;;  %v2279_v56 = vmul.f32 %v4679_v33, %v2174_v14  ;;  %v2110_v36 = vpop.f32.mrb[65].mxu0 }
 0x6e6   :  { %v4818_v54 = vadd.f32 %v3288_v22, %v4653_v24  ;;  %v2381_v15 = vmul.f32 0.044715, %v2373_v9  ;;  %v2228_v39 = vadd.f32 %v2220_v58, %v2208_v61  ;;  %v2267_v35 = vadd.f32 %v2259_v27, %v2247_v21  ;;  %v3289_v45 = vpop.f32.mrb[66].mxu0 }
 0x6e7   :  { %v4821_v18 = vadd.f32 %v4653_v24, %v2110_v36  ;;  %v2374_v26 = vmul.f32 %v2366_v43, %v4807_v25  ;;  %v2346_v42 = vadd.f32 %v2338_v62, %v2326_v6  ;;  %v2367_v12 = vmul.f32 %v4814_v30, %v4814_v30  ;;  %v2113_v48 = vpop.f32.mrb[67].mxu0 }
 0x6e8   :  { %2439 = vst [vmem:[#allocation2 + $0x31] sm:$0xff] %v4818_v54  ;;  %v4828_v14 = vadd.f32 %v3289_v45, %v4653_v24  ;;  %v2389_v10 = vadd.f32 %v2381_v15, %v4787_v44  ;;  %v2248_v58 = vadd.f32 %v2240_v11, %v2228_v39  ;;  %v2280_v27 = vmul.f32 %v4679_v33, %v2175_v60 }
 0x6e9   :  { %2437 = vst [vmem:[#allocation2 + $0x11] sm:$0xff] %v4821_v18  ;;  %v4834_v9 = vadd.f32 %v4653_v24, %v2113_v48  ;;  %v2382_v62 = vmul.f32 0.044715, %v2374_v26  ;;  %v4837_v61 = vadd.f32 %v4757_v23, %v2346_v42  ;;  %v2375_v21 = vmul.f32 %v2367_v12, %v4814_v30 }
 0x6ea   :  { %2440 = vst [vmem:[#allocation2 + $0x41] sm:$0xff] %v4828_v14  ;;  %v2397_v22 = vmul.f32 0.7978846, %v2389_v10  ;;  %v2268_v43 = vadd.f32 %v4760_v17, %v2248_v58  ;;  %v2287_v6 = vadd.f32 %v2279_v56, %v2267_v35  ;;  %v2299_v11 = vmul.f32 %v4673_v34, %v2155_v3  ;;  %v2157_v35 = vld [vmem:[#allocation2 + $0x80] sm:$0xff] }
 0x6eb   :  { %2438 = vst [vmem:[#allocation2 + $0x21] sm:$0xff] %v4834_v9  ;;  %v2390_v36 = vadd.f32 %v2382_v62, %v4807_v25  ;;  %v2368_v15 = vmul.f32 %v4837_v61, %v4837_v61  ;;  %v2383_v39 = vmul.f32 0.044715, %v2375_v21  ;;  %v2339_v45 = vmul.f32 %v4684_v53, %v2175_v60  ;;  %v2177_v21 = vld [vmem:[#allocation2 + $0x82] sm:$0xff] }
 0x6ec   :  { %3560 = vtanh.f32 %v2397_v22  ;;  %v2288_v26 = vadd.f32 %v2280_v27, %v2268_v43  ;;  %v2307_v42 = vadd.f32 %v2299_v11, %v2287_v6  ;;  %v2209_v12 = vadd.f32 %v4750_v55, %v2189_v52 }
 0x6ed   :  { %v2398_v48 = vmul.f32 0.7978846, %v2390_v36  ;;  %v2376_v17 = vmul.f32 %v2368_v15, %v4837_v61  ;;  %v2391_v3 = vadd.f32 %v2383_v39, %v4814_v30  ;;  %v2210_v56 = vadd.f32 %v4742_v16, %v4784_v38 }
 0x6ee   :  { %v2308_v10 = vadd.f32 %v4791_v0, %v2288_v26  ;;  %v2327_v58 = vadd.f32 %v4763_v46, %v2307_v42  ;;  %v2221_v62 = vmul.f32 %v4657_v51, %v2175_v60  ;;  %v2222_v27 = vmul.f32 %v4657_v51, %v4773_v57 }
 0x6ef   :  { %3562 = vtanh.f32 %v2398_v48  ;;  %v2384_v55 = vmul.f32 0.044715, %v2376_v17  ;;  %v2399_v52 = vmul.f32 0.7978846, %v2391_v3  ;;  %v2241_v22 = vmul.f32 %v4677_v50, %v4771_v1  ;;  %v4882_v3 = vld [vmem:[#allocation2 + $0x30] sm:$0xff] }
 0x6f0   :  { %v2328_v43 = vadd.f32 %v4766_v63, %v2308_v10  ;;  %v2347_v16 = vadd.f32 %v2339_v45, %v2327_v58  ;;  %v2229_v38 = vadd.f32 %v2221_v62, %v2209_v12  ;;  %v2230_v6 = vadd.f32 %v2222_v27, %v2210_v56  ;;  %v4865_v11 = vld [vmem:[#allocation2 + $0x10] sm:$0xff] }
 0x6f1   :  { %v2392_v0 = vadd.f32 %v2384_v55, %v4837_v61  ;;  %3564 = vtanh.f32 %v2399_v52  ;;  %v2242_v46 = vmul.f32 %v4677_v50, %v2157_v35  ;;  %v2281_v60 = vmul.f32 %v4679_v33, %v4773_v57  ;;  %v2468_v49 = vld [vmem:[#allocation2 + $0x32] sm:$0xff] }
 0x6f2   :  { %v2348_v36 = vadd.f32 %v4795_v32, %v2328_v43  ;;  %v4869_v15 = vadd.f32 %v4757_v23, %v2347_v16  ;;  %v2249_v1 = vadd.f32 %v2241_v22, %v2229_v38  ;;  %v2282_v63 = vmul.f32 %v4679_v33, %v2177_v21  ;;  %v4872_v39 = vld [vmem:[#allocation2 + $0x20] sm:$0xff] }
 0x6f3   :  { %v2400_v45 = vmul.f32 0.7978846, %v2392_v0  ;;  %v2250_v26 = vadd.f32 %v2242_v46, %v2230_v6  ;;  %v2301_v42 = vmul.f32 %v4673_v34, %v2157_v35  ;;  %v2341_v12 = vmul.f32 %v4684_v53, %v2177_v21  ;;  %v3292_v48 = vpop.f32.mrb[68].mxu0 }
 0x6f4   :  { %v4877_v57 = vadd.f32 %v4757_v23, %v2348_v36  ;;  %v2369_v32 = vmul.f32 %v4869_v15, %v4869_v15  ;;  %v2269_v17 = vadd.f32 %v4769_v2, %v2249_v1  ;;  %v2476_v56 = vmul.f32 %v4865_v11, %v4644_v19  ;;  %v2126_v35 = vpop.f32.mrb[69].mxu0 }
 0x6f5   :  { %v4887_v10 = vadd.f32 %v3292_v48, %v4653_v24  ;;  %3566 = vtanh.f32 %v2400_v45  ;;  %v2270_v58 = vadd.f32 %v4777_v29, %v2250_v26  ;;  %v2477_v62 = vmul.f32 %v4872_v39, %v4644_v19  ;;  %v3293_v2 = vpop.f32.mrb[70].mxu0 }
 0x6f6   :  { %v3561_v27 = vpop.eup %3560  ;;  %v4893_v21 = vadd.f32 %v4653_v24, %v2126_v35  ;;  %v2370_v55 = vmul.f32 %v4877_v57, %v4877_v57  ;;  %v2377_v52 = vmul.f32 %v2369_v32, %v4869_v15  ;;  %v2289_v22 = vadd.f32 %v2281_v60, %v2269_v17  ;;  %v2129_v29 = vpop.f32.mrb[71].mxu0 }
 0x6f7   :  { %2443 = vst [vmem:[#allocation2 + $0x71] sm:$0xff] %v4887_v10  ;;  %v4900_v43 = vadd.f32 %v3293_v2, %v4653_v24  ;;  %v2413_v16 = vadd.f32 1.0, %v3561_v27  ;;  %v2290_v38 = vadd.f32 %v2282_v63, %v2270_v58  ;;  %v2478_v6 = vmul.f32 %v4882_v3, %v4644_v19 }
 0x6f8   :  { %2441 = vst [vmem:[#allocation2 + $0x51] sm:$0xff] %v4893_v21  ;;  %v4906_v0 = vadd.f32 %v4653_v24, %v2129_v29  ;;  %v2378_v46 = vmul.f32 %v2370_v55, %v4877_v57  ;;  %v2385_v36 = vmul.f32 0.044715, %v2377_v52  ;;  %v2309_v60 = vadd.f32 %v2301_v42, %v2289_v22 }
 0x6f9   :  { %v3563_v1 = vpop.eup %3562  ;;  %2444 = vst [vmem:[#allocation2 + $0x81] sm:$0xff] %v4900_v43  ;;  %v2421_v45 = vmul.f32 0.5, %v2413_v16  ;;  %v2310_v26 = vadd.f32 %v4689_v59, %v2290_v38  ;;  %v2484_v63 = vmul.f32 %v4648_v40, %v4821_v18  ;;  %v2485_v48 = vmul.f32 %v4648_v40, %v4834_v9  ;;  %v2466_v38 = vld [vmem:[#allocation2 + $0x12] sm:$0xff] }
 0x6fa   :  { %2442 = vst [vmem:[#allocation2 + $0x61] sm:$0xff] %v4906_v0  ;;  %v2414_v24 = vadd.f32 1.0, %v3563_v1  ;;  %v2386_v32 = vmul.f32 0.044715, %v2378_v46  ;;  %v2393_v17 = vadd.f32 %v2385_v36, %v4869_v15  ;;  %v2329_v42 = vadd.f32 %v4780_v7, %v2309_v60  ;;  %v4923_v46 = vld [vmem:[#allocation2 + $0x22] sm:$0xff] }
 0x6fb   :  { %v3565_v35 = vpop.eup %3564  ;;  %v2429_v58 = vmul.f32 %v2421_v45, %v4787_v44  ;;  %v2330_v27 = vadd.f32 %v4692_v8, %v2310_v26  ;;  %v2486_v2 = vmul.f32 %v4648_v40, %v4818_v54  ;;  %v2492_v55 = vadd.f32 %v2484_v63, %v2476_v56 }
 0x6fc   :  { %v2422_v52 = vmul.f32 0.5, %v2414_v24  ;;  %v2415_v22 = vadd.f32 1.0, %v3565_v35  ;;  %v2394_v29 = vadd.f32 %v2386_v32, %v4877_v57  ;;  %v2401_v16 = vmul.f32 0.7978846, %v2393_v17 }
 0x6fd   :  { %v2349_v36 = vadd.f32 %v2341_v12, %v2329_v42  ;;  %v2350_v7 = vadd.f32 %v4695_v28, %v2330_v27  ;;  %v2493_v60 = vadd.f32 %v2485_v48, %v2477_v62  ;;  %v2494_v1 = vadd.f32 %v2486_v2, %v2478_v6 }
 0x6fe   :  { %v2430_v44 = vmul.f32 %v2422_v52, %v4807_v25  ;;  %v2423_v45 = vmul.f32 0.5, %v2415_v22  ;;  %v2402_v26 = vmul.f32 0.7978846, %v2394_v29  ;;  %3568 = vtanh.f32 %v2401_v16 }
 0x6ff   :  { %v3567_v56 = vpop.eup %3566  ;;  %v4928_v63 = vadd.f32 %v4757_v23, %v2349_v36  ;;  %v4931_v24 = vadd.f32 %v4757_v23, %v2350_v7  ;;  %v2500_v32 = vmul.f32 %v2466_v38, %v4657_v51  ;;  %v2501_v12 = vmul.f32 %v4923_v46, %v4657_v51 }
 0x700   :  { %v2691_v62 = vpack.c.bf16 %v2430_v44, %v2429_v58  ;;  %v2416_v6 = vadd.f32 1.0, %v3567_v56  ;;  %v2431_v25 = vmul.f32 %v2423_v45, %v4814_v30  ;;  %3570 = vtanh.f32 %v2402_v26 }
 0x701   :  { %v2371_v48 = vmul.f32 %v4928_v63, %v4928_v63  ;;  %v2372_v17 = vmul.f32 %v4931_v24, %v4931_v24  ;;  %v2502_v42 = vmul.f32 %v2468_v49, %v4657_v51  ;;  %v2508_v35 = vadd.f32 %v2500_v32, %v2492_v55 }
 0x702   :  { %3310 = vmatprep.mubr.bf16.mxu1 %v2691_v62  ;;  %v2424_v27 = vmul.f32 0.5, %v2416_v6  ;;  %v4942_v2 = vadd.f32 %v2501_v12, %v2493_v60  ;;  %v2515_v58 = vmul.f32 %v4865_v11, %v4677_v50  ;;  %v2516_v30 = vmul.f32 %v4872_v39, %v4677_v50 }
 0x703   :  { %v2379_v52 = vmul.f32 %v2371_v48, %v4928_v63  ;;  %v2380_v22 = vmul.f32 %v2372_v17, %v4931_v24  ;;  %v4950_v29 = vadd.f32 %v2502_v42, %v2494_v1  ;;  %v2517_v16 = vmul.f32 %v4882_v3, %v4677_v50  ;;  %v2449_v42 = vld [vmem:[#allocation2 + $0x40] sm:$0xff] }
 0x704   :  { %v2432_v55 = vmul.f32 %v2424_v27, %v4837_v61  ;;  %v2523_v36 = vadd.f32 %v2515_v58, %v4686_v41  ;;  %v2524_v7 = vadd.f32 %v2516_v30, %v2508_v35  ;;  %v2531_v11 = vmul.f32 %v4671_v5, %v4821_v18 }
 0x705   :  { %v2387_v60 = vmul.f32 0.044715, %v2379_v52  ;;  %v2388_v44 = vmul.f32 0.044715, %v2380_v22  ;;  %v2532_v45 = vmul.f32 %v4671_v5, %v4834_v9  ;;  %v2533_v1 = vmul.f32 %v4671_v5, %v4818_v54  ;;  %v2450_v52 = vld [vmem:[#allocation2 + $0x50] sm:$0xff] }
 0x706   :  { %v2692_v26 = vpack.c.bf16 %v2432_v55, %v2431_v25  ;;  %v2539_v56 = vadd.f32 %v2531_v11, %v2523_v36  ;;  %v2547_v32 = vmul.f32 %v2466_v38, %v4679_v33  ;;  %v2548_v61 = vmul.f32 %v4923_v46, %v4679_v33 }
 0x707   :  { %v2395_v41 = vadd.f32 %v2387_v60, %v4928_v63  ;;  %v2396_v12 = vadd.f32 %v2388_v44, %v4931_v24  ;;  %v2540_v18 = vadd.f32 %v2532_v45, %v2524_v7  ;;  %v4968_v62 = vmul.f32 %v2468_v49, %v4679_v33  ;;  %v2469_v60 = vld [vmem:[#allocation2 + $0x42] sm:$0xff]  ;;  %v2470_v44 = vld [vmem:[#allocation2 + $0x52] sm:$0xff] }
 0x708   :  { %v3569_v6 = vpop.eup %3568  ;;  %3311 = vmatmul.mubr.bf16.vlgmr.msra.gmra.mrb[56].mxu1 %v2692_v26  ;;  %v2555_v48 = vadd.f32 %v2547_v32, %v2539_v56  ;;  %v2563_v25 = vmul.f32 %v4872_v39, %v4673_v34  ;;  %v2564_v38 = vmul.f32 %v4882_v3, %v4673_v34  ;;  %v2579_v17 = vmul.f32 %v4675_v13, %v4834_v9 }
 0x709   :  { %v2417_v35 = vadd.f32 1.0, %v3569_v6  ;;  %v2403_v27 = vmul.f32 0.7978846, %v2395_v41  ;;  %v2404_v58 = vmul.f32 0.7978846, %v2396_v12  ;;  %v2556_v30 = vadd.f32 %v2548_v61, %v2540_v18 }
 0x70a   :  { %v3571_v22 = vpop.eup %3570  ;;  %v2571_v55 = vadd.f32 %v2563_v25, %v2555_v48  ;;  %v2580_v36 = vmul.f32 %v4675_v13, %v4818_v54  ;;  %v2595_v39 = vmul.f32 %v4684_v53, %v4923_v46  ;;  %v2596_v7 = vmul.f32 %v4684_v53, %v2468_v49 }
 0x70b   :  { %v2418_v3 = vadd.f32 1.0, %v3571_v22  ;;  %v2425_v11 = vmul.f32 0.5, %v2417_v35  ;;  %3572 = vtanh.f32 %v2403_v27  ;;  %v2572_v9 = vadd.f32 %v2564_v38, %v2556_v30 }
 0x70c   :  { %3574 = vtanh.f32 %v2404_v58  ;;  %v2587_v45 = vadd.f32 %v2579_v17, %v2571_v55  ;;  %v2479_v26 = vmul.f32 %v2449_v42, %v4644_v19  ;;  %v2480_v56 = vmul.f32 %v2450_v52, %v4644_v19 }
 0x70d   :  { %v2426_v32 = vmul.f32 0.5, %v2418_v3  ;;  %v2433_v54 = vmul.f32 %v2425_v11, %v4869_v15  ;;  %v2588_v61 = vadd.f32 %v2580_v36, %v2572_v9  ;;  %v2487_v46 = vmul.f32 %v4648_v40, %v4828_v14 }
 0x70e   :  { %v2603_v49 = vadd.f32 %v2595_v39, %v2587_v45  ;;  %v2488_v41 = vmul.f32 %v4648_v40, %v4893_v21  ;;  %v2503_v12 = vmul.f32 %v2469_v60, %v4657_v51  ;;  %v2504_v18 = vmul.f32 %v2470_v44, %v4657_v51 }
 0x70f   :  { %v2434_v6 = vmul.f32 %v2426_v32, %v4877_v57  ;;  %v2604_v48 = vadd.f32 %v2596_v7, %v2588_v61  ;;  %v2495_v25 = vadd.f32 %v2487_v46, %v2479_v26  ;;  %v2518_v38 = vmul.f32 %v2449_v42, %v4677_v50  ;;  %v2451_v46 = vld [vmem:[#allocation2 + $0x60] sm:$0xff] }
 0x710   :  { %v4993_v15 = vadd.f32 %v4757_v23, %v2603_v49  ;;  %v2496_v17 = vadd.f32 %v2488_v41, %v2480_v56  ;;  %v4996_v35 = vmul.f32 %v2450_v52, %v4677_v50  ;;  %v2525_v27 = vadd.f32 %v2517_v16, %v4942_v2 }
 0x711   :  { %v2693_v58 = vpack.c.bf16 %v2434_v6, %v2433_v54  ;;  %v5000_v30 = vadd.f32 %v4757_v23, %v2604_v48  ;;  %v5002_v22 = vadd.f32 %v2503_v12, %v2495_v25  ;;  %v2526_v57 = vadd.f32 %v2518_v38, %v4950_v29  ;;  %v2452_v6 = vld [vmem:[#allocation2 + $0x70] sm:$0xff] }
 0x712   :  { %v2619_v55 = vmul.f32 %v4993_v15, %v4993_v15  ;;  %v5007_v36 = vadd.f32 %v2504_v18, %v2496_v17  ;;  %v2534_v39 = vmul.f32 %v4671_v5, %v4828_v14  ;;  %v5013_v7 = vmul.f32 %v4671_v5, %v4893_v21 }
 0x713   :  { %3314 = vmatprep.mubr.bf16.mxu1 %v2693_v58  ;;  %v2620_v2 = vmul.f32 %v5000_v30, %v5000_v30  ;;  %v2541_v16 = vadd.f32 %v2533_v1, %v2525_v27  ;;  %v2550_v3 = vmul.f32 %v2469_v60, %v4679_v33  ;;  %v5019_v29 = vmul.f32 %v2470_v44, %v4679_v33 }
 0x714   :  { %v2627_v11 = vmul.f32 %v2619_v55, %v4993_v15  ;;  %v2542_v9 = vadd.f32 %v2534_v39, %v2526_v57  ;;  %v2565_v45 = vmul.f32 %v2449_v42, %v4673_v34  ;;  %v2566_v26 = vmul.f32 %v2450_v52, %v4673_v34  ;;  %v2471_v55 = vld [vmem:[#allocation2 + $0x62] sm:$0xff] }
 0x715   :  { %v3573_v56 = vpop.eup %3572  ;;  %v2628_v32 = vmul.f32 %v2620_v2, %v5000_v30  ;;  %v2557_v54 = vadd.f32 %v4968_v62, %v2541_v16  ;;  %v2581_v1 = vmul.f32 %v4675_v13, %v4828_v14  ;;  %v2582_v61 = vmul.f32 %v4675_v13, %v4893_v21 }
 0x716   :  { %v3575_v49 = vpop.eup %3574  ;;  %v2419_v41 = vadd.f32 1.0, %v3573_v56  ;;  %v2635_v12 = vmul.f32 0.044715, %v2627_v11  ;;  %v2558_v18 = vadd.f32 %v2550_v3, %v2542_v9  ;;  %v2597_v42 = vmul.f32 %v4684_v53, %v2469_v60 }
 0x717   :  { %v2420_v52 = vadd.f32 1.0, %v3575_v49  ;;  %v2636_v48 = vmul.f32 0.044715, %v2628_v32  ;;  %v2573_v25 = vadd.f32 %v2565_v45, %v2557_v54  ;;  %v2598_v38 = vmul.f32 %v4684_v53, %v2470_v44  ;;  %v2472_v45 = vld [vmem:[#allocation2 + $0x72] sm:$0xff] }
 0x718   :  { %v2427_v62 = vmul.f32 0.5, %v2419_v41  ;;  %v2643_v17 = vadd.f32 %v2635_v12, %v4993_v15  ;;  %v2574_v14 = vadd.f32 %v2566_v26, %v2558_v18  ;;  %v2481_v27 = vmul.f32 %v2451_v46, %v4644_v19 }
 0x719   :  { %v2428_v21 = vmul.f32 0.5, %v2420_v52  ;;  %v2644_v58 = vadd.f32 %v2636_v48, %v5000_v30  ;;  %v2589_v57 = vadd.f32 %v2581_v1, %v2573_v25  ;;  %v2482_v39 = vmul.f32 %v2452_v6, %v4644_v19 }
 0x71a   :  { %v2435_v60 = vmul.f32 %v2427_v62, %v4928_v63  ;;  %v2651_v2 = vmul.f32 0.7978846, %v2643_v17  ;;  %v2590_v16 = vadd.f32 %v2582_v61, %v2574_v14  ;;  %v2489_v44 = vmul.f32 %v4648_v40, %v4906_v0 }
 0x71b   :  { %v2436_v3 = vmul.f32 %v2428_v21, %v4931_v24  ;;  %v2652_v11 = vmul.f32 0.7978846, %v2644_v58  ;;  %v2605_v9 = vadd.f32 %v2597_v42, %v2589_v57  ;;  %v2490_v26 = vmul.f32 %v4648_v40, %v4887_v10  ;;  %v2453_v58 = vld [vmem:[#allocation2 + $0x80] sm:$0xff] }
 0x71c   :  { %3576 = vtanh.f32 %v2651_v2  ;;  %v2606_v56 = vadd.f32 %v2598_v38, %v2590_v16  ;;  %v2497_v32 = vadd.f32 %v2489_v44, %v2481_v27  ;;  %v2505_v19 = vmul.f32 %v2471_v55, %v4657_v51 }
 0x71d   :  { %v2694_v54 = vpack.c.bf16 %v2436_v3, %v2435_v60  ;;  %3578 = vtanh.f32 %v2652_v11  ;;  %v5044_v63 = vadd.f32 %v4757_v23, %v2605_v9  ;;  %v2498_v1 = vadd.f32 %v2490_v26, %v2482_v39  ;;  %v2473_v60 = vld [vmem:[#allocation2 + $0x82] sm:$0xff] }
 0x71e   :  { %v5047_v61 = vadd.f32 %v4757_v23, %v2606_v56  ;;  %v2506_v24 = vmul.f32 %v2472_v45, %v4657_v51  ;;  %v2513_v49 = vadd.f32 %v2505_v19, %v2497_v32  ;;  %v2520_v41 = vmul.f32 %v2451_v46, %v4677_v50 }
 0x71f   :  { %3315 = vmatmul.mubr.bf16.gmra.mrb[60].mxu1 %v2694_v54  ;;  %v2621_v40 = vmul.f32 %v5044_v63, %v5044_v63  ;;  %v2521_v12 = vmul.f32 %v2452_v6, %v4677_v50  ;;  %v2527_v18 = vadd.f32 %v4996_v35, %v5002_v22  ;;  %v2536_v42 = vmul.f32 %v4671_v5, %v4906_v0 }
 0x720   :  { %v2622_v52 = vmul.f32 %v5047_v61, %v5047_v61  ;;  %v2514_v48 = vadd.f32 %v2506_v24, %v2498_v1  ;;  %v2528_v51 = vadd.f32 %v2520_v41, %v5007_v36  ;;  %v2537_v25 = vmul.f32 %v4671_v5, %v4887_v10 }
 0x721   :  { %v2629_v38 = vmul.f32 %v2621_v40, %v5044_v63  ;;  %v2543_v62 = vadd.f32 %v5013_v7, %v2527_v18  ;;  %v2552_v17 = vmul.f32 %v2471_v55, %v4679_v33  ;;  %v2553_v35 = vmul.f32 %v2472_v45, %v4679_v33 }
 0x722   :  { %v2630_v22 = vmul.f32 %v2622_v52, %v5047_v61  ;;  %v2544_v14 = vadd.f32 %v2536_v42, %v2528_v51  ;;  %v2567_v27 = vmul.f32 %v2451_v46, %v4673_v34  ;;  %v2568_v21 = vmul.f32 %v2452_v6, %v4673_v34 }
 0x723   :  { %v2637_v36 = vmul.f32 0.044715, %v2629_v38  ;;  %v2559_v57 = vadd.f32 %v5019_v29, %v2543_v62  ;;  %v2583_v39 = vmul.f32 %v4675_v13, %v4906_v0  ;;  %v2584_v7 = vmul.f32 %v4675_v13, %v4887_v10 }
 0x724   :  { %v2638_v2 = vmul.f32 0.044715, %v2630_v22  ;;  %v2560_v16 = vadd.f32 %v2552_v17, %v2544_v14  ;;  %v2599_v44 = vmul.f32 %v4684_v53, %v2471_v55  ;;  %v2600_v3 = vmul.f32 %v4684_v53, %v2472_v45 }
 0x725   :  { %v2645_v46 = vadd.f32 %v2637_v36, %v5044_v63  ;;  %v2575_v6 = vadd.f32 %v2567_v27, %v2559_v57  ;;  %v2522_v11 = vmul.f32 %v2453_v58, %v4677_v50  ;;  %v2529_v9 = vadd.f32 %v2521_v12, %v2513_v49 }
 0x726   :  { %v3577_v29 = vpop.eup %3576  ;;  %v2646_v26 = vadd.f32 %v2638_v2, %v5047_v61  ;;  %v2576_v0 = vadd.f32 %v2568_v21, %v2560_v16  ;;  %v2538_v10 = vmul.f32 %v4671_v5, %v4900_v43  ;;  %v2554_v56 = vmul.f32 %v2473_v60, %v4679_v33 }
 0x727   :  { %v3579_v32 = vpop.eup %3578  ;;  %v2667_v19 = vadd.f32 1.0, %v3577_v29  ;;  %v2653_v55 = vmul.f32 0.7978846, %v2645_v46  ;;  %v2591_v54 = vadd.f32 %v2583_v39, %v2575_v6  ;;  %v2530_v45 = vadd.f32 %v2522_v11, %v2514_v48 }
 0x728   :  { %v2668_v1 = vadd.f32 1.0, %v3579_v32  ;;  %v2654_v24 = vmul.f32 0.7978846, %v2646_v26  ;;  %v2592_v41 = vadd.f32 %v2584_v7, %v2576_v0  ;;  %v2545_v40 = vadd.f32 %v2537_v25, %v2529_v9 }
 0x729   :  { %v2675_v50 = vmul.f32 0.5, %v2667_v19  ;;  %3580 = vtanh.f32 %v2653_v55  ;;  %v2607_v49 = vadd.f32 %v2599_v44, %v2591_v54  ;;  %v2546_v12 = vadd.f32 %v2538_v10, %v2530_v45 }
 0x72a   :  { %v2676_v18 = vmul.f32 0.5, %v2668_v1  ;;  %3582 = vtanh.f32 %v2654_v24  ;;  %v2608_v42 = vadd.f32 %v2600_v3, %v2592_v41  ;;  %v2561_v52 = vadd.f32 %v2553_v35, %v2545_v40 }
 0x72b   :  { %v2615_v5 = vadd.f32 %v4757_v23, %v2607_v49  ;;  %v2562_v33 = vadd.f32 %v2554_v56, %v2546_v12  ;;  %v2569_v51 = vmul.f32 %v2453_v58, %v4673_v34  ;;  %v2683_v38 = vmul.f32 %v2675_v50, %v4993_v15 }
 0x72c   :  { %v2684_v48 = vmul.f32 %v2676_v18, %v5000_v30  ;;  %v2616_v62 = vadd.f32 %v4757_v23, %v2608_v42  ;;  %v2585_v14 = vmul.f32 %v4675_v13, %v4900_v43  ;;  %v2601_v34 = vmul.f32 %v4684_v53, %v2473_v60 }
 0x72d   :  { %v2623_v25 = vmul.f32 %v2615_v5, %v2615_v5  ;;  %v2577_v17 = vadd.f32 %v2569_v51, %v2561_v52  ;;  %v2578_v22 = vadd.f32 %v2562_v33, %v4689_v59 }
 0x72e   :  { %v2695_v27 = vpack.c.bf16 %v2684_v48, %v2683_v38  ;;  %v2624_v35 = vmul.f32 %v2616_v62, %v2616_v62 }
 0x72f   :  { %v2631_v21 = vmul.f32 %v2623_v25, %v2615_v5  ;;  %v2593_v36 = vadd.f32 %v2585_v14, %v2577_v17  ;;  %v2594_v57 = vadd.f32 %v2578_v22, %v4692_v8  ;;  %v2981_v17 = vld [vmem:[%s5146_s14] ss:$0 sm:$0xff]  ;;  %s3761_s14 = smov [#allocation12]  }
 0x730   :  { %3318 = vmatprep.mubr.bf16.mxu1 %v2695_v27  ;;  %v2632_v15 = vmul.f32 %v2624_v35, %v2616_v62  ;;  %s2903_s17 = sshll.u32 %s3761_s14, 4  ;;  %s2904_s17 = int_to_ptr.vmem [resolvable:$true] %s2903_s17 }
 0x731   :  { %v2639_v30 = vmul.f32 0.044715, %v2631_v21  ;;  %v2609_v58 = vadd.f32 %v2601_v34, %v2593_v36  ;;  %v2610_v39 = vadd.f32 %v2594_v57, %v4695_v28  ;;  %s3718_s20 = scalar_lea.vmem %s2904_s17, 2048  ;;  %p3723_p13 = scmp.lt.s32.totalorder %s2904_s17, %s2904_s17 }
 0x732   :  { %v2640_v7 = vmul.f32 0.044715, %v2632_v15  ;;  %p3719_p12 = scmp.ne.s32.totalorder %s2904_s17, %s3718_s20  ;;  %p3724_p0 = scmp.lt.s32.totalorder %s3718_s20, %s3718_s20 }
 0x733   :  { %v3581_v2 = vpop.eup %3580  ;;  %v2647_v59 = vadd.f32 %v2639_v30, %v2615_v5  ;;  %v2617_v16 = vadd.f32 %v4757_v23, %v2609_v58  ;;  %v2618_v13 = vadd.f32 %v4757_v23, %v2610_v39 }
 0x734   :  { %v3583_v43 = vpop.eup %3582  ;;  %v2669_v44 = vadd.f32 1.0, %v3581_v2  ;;  %v2648_v3 = vadd.f32 %v2640_v7, %v2616_v62  ;;  %p3725_p1 = por %p3724_p0, %p3723_p13 }
 0x735   :  { %v2670_v46 = vadd.f32 1.0, %v3583_v43  ;;  %v2655_v8 = vmul.f32 0.7978846, %v2647_v59  ;;  %v2625_v6 = vmul.f32 %v2617_v16, %v2617_v16  ;;  %v2626_v53 = vmul.f32 %v2618_v13, %v2618_v13  ;;  %v5172_v43 = vld [vmem:[#allocation18_spill] sm:$0xff] }
 0x736   :  { %v2677_v60 = vmul.f32 0.5, %v2669_v44  ;;  %v2656_v11 = vmul.f32 0.7978846, %v2648_v3  ;;  %v5173_v3 = vld [vmem:[#allocation17_spill] sm:$0xff]  ;;  %p3726_p2 = pnand %p3725_p1, %p3719_p12 }
 0x737   :  { %v2678_v9 = vmul.f32 0.5, %v2670_v46  ;;  %3584 = vtanh.f32 %v2655_v8  ;;  %v2633_v29 = vmul.f32 %v2625_v6, %v2617_v16  ;;  %v2634_v28 = vmul.f32 %v2626_v53, %v2618_v13  ;;  %v5174_v46 = vld [vmem:[#allocation19_spill] sm:$0xff] }
 0x738   :  { %3586 = vtanh.f32 %v2656_v11  ;;  %v2685_v26 = vmul.f32 %v2677_v60, %v5044_v63 }
 0x739   :  { %v2686_v0 = vmul.f32 %v2678_v9, %v5047_v61  ;;  %v2641_v10 = vmul.f32 0.044715, %v2633_v29  ;;  %v2642_v23 = vmul.f32 0.044715, %v2634_v28  ;;  %v5175_v9 = vld [vmem:[#allocation20_spill] sm:$0xff] }
 0x73b   :  { %v2696_v56 = vpack.c.bf16 %v2686_v0, %v2685_v26  ;;  %v2649_v32 = vadd.f32 %v2641_v10, %v2617_v16  ;;  %v2650_v19 = vadd.f32 %v2642_v23, %v2618_v13  ;;  %v5176_v26 = vld [vmem:[#allocation22_spill] sm:$0xff]  ;;  %v5177_v23 = vld [vmem:[#allocation21_spill] sm:$0xff] }
 0x73d   :  { %3319 = vmatmul.mubr.bf16.gmra.mrb[64].mxu1 %v2696_v56  ;;  %v2657_v55 = vmul.f32 0.7978846, %v2649_v32  ;;  %v2658_v54 = vmul.f32 0.7978846, %v2650_v19  ;;  %v5178_v32 = vld [vmem:[#allocation23_spill] sm:$0xff] }
 0x73f   :  { %3588 = vtanh.f32 %v2657_v55 }
 0x740   :  { %3590 = vtanh.f32 %v2658_v54 }
 0x741   :  { %v3585_v45 = vpop.eup %3584 }
 0x742   :  { %v3587_v1 = vpop.eup %3586  ;;  %v2671_v24 = vadd.f32 1.0, %v3585_v45 }
 0x743   :  { %v2672_v41 = vadd.f32 1.0, %v3587_v1 }
 0x744   :  { %v2679_v40 = vmul.f32 0.5, %v2671_v24 }
 0x745   :  { %v2680_v50 = vmul.f32 0.5, %v2672_v41  ;;  %v5179_v41 = vld [vmem:[#allocation24_spill] sm:$0xff] }
 0x746   :  { %v2687_v49 = vmul.f32 %v2679_v40, %v2615_v5 }
 0x747   :  { %v2688_v63 = vmul.f32 %v2680_v50, %v2616_v62 }
 0x749   :  { %v3589_v12 = vpop.eup %3588  ;;  %v2697_v61 = vpack.c.bf16 %v2688_v63, %v2687_v49  ;;  %v5180_v63 = vld [vmem:[#allocation26_spill] sm:$0xff] }
 0x74a   :  { %v3591_v18 = vpop.eup %3590  ;;  %v2673_v42 = vadd.f32 1.0, %v3589_v12 }
 0x74b   :  { %3322 = vmatprep.mubr.bf16.mxu1 %v2697_v61  ;;  %v2674_v52 = vadd.f32 1.0, %v3591_v18  ;;  %v5181_v18 = vld [vmem:[#allocation25_spill] sm:$0xff] }
 0x74c   :  { %v2681_v33 = vmul.f32 0.5, %v2673_v42 }
 0x74d   :  { %v2682_v51 = vmul.f32 0.5, %v2674_v52  ;;  %v5182_v52 = vld [vmem:[#allocation27_spill] sm:$0xff] }
 0x74e   :  { %v2689_v38 = vmul.f32 %v2681_v33, %v2617_v16 }
 0x74f   :  { %v2690_v48 = vmul.f32 %v2682_v51, %v2618_v13 }
 0x751   :  { %v2698_v25 = vpack.c.bf16 %v2690_v48, %v2689_v38 }
 0x753   :  { %3323 = vmatmul.mubr.bf16.gmra.mrb[68].mxu1 %v2698_v25 }
 0x7db   :  { %v3312_v22 = vpop.f32.mrb[56].mxu1 }
 0x7dc   :  { %v2812_v14 = vadd.f32 %v3312_v22, %v2981_v17  ;;  %v2803_v5 = vpop.f32.mrb[57].mxu1 }
 0x7dd   :  { %v2804_v62 = vadd.f32 %v2981_v17, %v2803_v5  ;;  %v3313_v27 = vpop.f32.mrb[58].mxu1 }
 0x7de   :  { %v2868_v35 = vadd.f32 %v2812_v14, %v4441_v37  ;;  %v2815_v21 = vadd.f32 %v3313_v27, %v2981_v17  ;;  %v2806_v36 = vpop.f32.mrb[59].mxu1 }
 0x7df   :  { %v2866_v57 = vadd.f32 %v2804_v62, %v4449_v20  ;;  %v2807_v34 = vadd.f32 %v2981_v17, %v2806_v36 }
 0x7e0   :  { %2884 = vst [vmem:[#allocation12 + $0x10] sm:$0xff] %v2868_v35  ;;  %v2869_v15 = vadd.f32 %v2815_v21, %v4445_v47 }
 0x7e1   :  { %2882 = vst [vmem:[#allocation12] sm:$0xff] %v2866_v57  ;;  %v2867_v30 = vadd.f32 %v2807_v34, %v4452_v31 }
 0x7e2   :  { %2885 = vst [vmem:[#allocation12 + $0x18] sm:$0xff] %v2869_v15 }
 0x7e3   :  { %2883 = vst [vmem:[#allocation12 + $0x8] sm:$0xff] %v2867_v30 }
 0x7f2   :  { %v3316_v58 = vpop.f32.mrb[60].mxu1 }
 0x7f3   :  { %v2828_v39 = vadd.f32 %v3316_v58, %v2981_v17  ;;  %v2819_v7 = vpop.f32.mrb[61].mxu1 }
 0x7f4   :  { %v2820_v2 = vadd.f32 %v2981_v17, %v2819_v7  ;;  %v3317_v59 = vpop.f32.mrb[62].mxu1 }
 0x7f5   :  { %v2872_v37 = vadd.f32 %v2828_v39, %v4466_v4  ;;  %v2831_v16 = vadd.f32 %v3317_v59, %v2981_v17  ;;  %v2822_v13 = vpop.f32.mrb[63].mxu1 }
 0x7f6   :  { %v2870_v20 = vadd.f32 %v2820_v2, %v5172_v43  ;;  %v2823_v44 = vadd.f32 %v2981_v17, %v2822_v13 }
 0x7f7   :  { %2888 = vst [vmem:[#allocation12 + $0x30] sm:$0xff] %v2872_v37  ;;  %v2873_v47 = vadd.f32 %v2831_v16, %v5173_v3 }
 0x7f8   :  { %2886 = vst [vmem:[#allocation12 + $0x20] sm:$0xff] %v2870_v20  ;;  %v2871_v31 = vadd.f32 %v2823_v44, %v5174_v46 }
 0x7f9   :  { %2889 = vst [vmem:[#allocation12 + $0x38] sm:$0xff] %v2873_v47 }
 0x7fa   :  { %2887 = vst [vmem:[#allocation12 + $0x28] sm:$0xff] %v2871_v31 }
 0x810   :  { %v3320_v8 = vpop.f32.mrb[64].mxu1 }
 0x811   :  { %v2844_v6 = vadd.f32 %v3320_v8, %v2981_v17  ;;  %v2835_v53 = vpop.f32.mrb[65].mxu1 }
 0x812   :  { %v2836_v60 = vadd.f32 %v2981_v17, %v2835_v53  ;;  %v3321_v11 = vpop.f32.mrb[66].mxu1 }
 0x813   :  { %v2876_v4 = vadd.f32 %v2844_v6, %v5175_v9  ;;  %v2847_v29 = vadd.f32 %v3321_v11, %v2981_v17  ;;  %v2838_v28 = vpop.f32.mrb[67].mxu1 }
 0x814   :  { %v2874_v0 = vadd.f32 %v2836_v60, %v5176_v26  ;;  %v2839_v10 = vadd.f32 %v2981_v17, %v2838_v28 }
 0x815   :  { %2892 = vst [vmem:[#allocation12 + $0x50] sm:$0xff] %v2876_v4  ;;  %v2877_v56 = vadd.f32 %v2847_v29, %v5177_v23 }
 0x816   :  { %2890 = vst [vmem:[#allocation12 + $0x40] sm:$0xff] %v2874_v0  ;;  %v2875_v19 = vadd.f32 %v2839_v10, %v5178_v32 }
 0x817   :  { %2893 = vst [vmem:[#allocation12 + $0x58] sm:$0xff] %v2877_v56 }
 0x818   :  { %2891 = vst [vmem:[#allocation12 + $0x48] sm:$0xff] %v2875_v19 }
 0x826   :  { %v3324_v55 = vpop.f32.mrb[68].mxu1 }
 0x827   :  { %v2860_v54 = vadd.f32 %v3324_v55, %v2981_v17  ;;  %v2851_v45 = vpop.f32.mrb[69].mxu1 }
 0x828   :  { %v2852_v1 = vadd.f32 %v2981_v17, %v2851_v45  ;;  %v3325_v24 = vpop.f32.mrb[70].mxu1 }
 0x829   :  { %v2880_v40 = vadd.f32 %v2860_v54, %v5179_v41  ;;  %v2863_v50 = vadd.f32 %v3325_v24, %v2981_v17  ;;  %v2854_v49 = vpop.f32.mrb[71].mxu1 }
 0x82a   :  { %v2878_v12 = vadd.f32 %v2852_v1, %v5180_v63  ;;  %v2855_v61 = vadd.f32 %v2981_v17, %v2854_v49 }
 0x82b   :  { %2896 = vst [vmem:[#allocation12 + $0x70] sm:$0xff] %v2880_v40  ;;  %v2881_v42 = vadd.f32 %v2863_v50, %v5181_v18 }
 0x82c   :  { %2894 = vst [vmem:[#allocation12 + $0x60] sm:$0xff] %v2878_v12  ;;  %v2879_v33 = vadd.f32 %v2855_v61, %v5182_v52 }
 0x82d   :  { %2897 = vst [vmem:[#allocation12 + $0x78] sm:$0xff] %v2881_v42 }
 0x82e   :  { %2895 = vst [vmem:[#allocation12 + $0x68] sm:$0xff] %v2879_v33 }
 0x82f   :  { %3729 = shalt.err (!%p3726_p2)
}
 0x830   :  { %s5183_s5 = sld [smem:[#allocation28_spill]] }
 0x836   :  { %s3730_s29 = scalar_lea.hbm %s5183_s5, 2048 }
 0x837   :  { %p3731_p3 = scmp.ne.s32.totalorder %s5183_s5, %s3730_s29  ;;  %p3734_p4 = scmp.lt.u32.totalorder %s3730_s29, %s5183_s5 }
 0x839   :  { %p3736_p5 = pnand %p3734_p4, %p3731_p3 }
 0x83b   :  { %3739 = shalt.err (!%p3736_p5)
}
 0x83c   :  { %2909 = dma.vmem_to_hbm [thread:$0]  %s2904_s17, 2048, %s5183_s5, [#allocation5], %s3755_s9, %s3755_s9, %s3756_s18  }
 0x83d   :  { %3746 = dma.done.wait [#allocation5], 2048  }
 0x83e   :  { %3747 = vsyncadd [#allocation5], 4294965248 }
 0x83f   :  { %2913 = vsyncpa [#allocation4], 1 }
 0x840   :  { %2914 = vsyncpa [#allocation7], 1 }
 0x841   :  { %2915 = vsyncpa [#allocation10], 1 }
 0x842   :  { %2916 = vsyncpa [#allocation5], 1 }

// kernel: tpu_custom_call.1
= control target key start
LH: loop header
LB: loop body
LE: loop exit
PB: predicated region body
PF: predicated region fallthrough
CT: control target
= control target key end

     0   :  { %s5132_s0 = inlined_call_operand.hbm [shape: f32[2,64,128], index: 0, kind: input, shape index: {}]   ;;  %s5133_s1 = inlined_call_operand.vmem [shape: f32[1,128], index: 1, kind: input, shape index: {}]   ;;  %s5134_s2 = inlined_call_operand.vmem [shape: f32[1,128], index: 2, kind: input, shape index: {}]   ;;  %s5135_s3 = inlined_call_operand.hbm [shape: bf16[128,384], index: 3, kind: input, shape index: {}]   ;;  %s5136_s4 = inlined_call_operand.vmem [shape: f32[1,384], index: 4, kind: input, shape index: {}]   ;;  %s5137_s5 = inlined_call_operand.hbm [shape: bf16[128,128], index: 5, kind: input, shape index: {}]   ;;  %s5138_s6 = inlined_call_operand.vmem [shape: f32[1,128], index: 6, kind: input, shape index: {}]   ;;  %s5139_s7 = inlined_call_operand.vmem [shape: f32[1,128], index: 7, kind: input, shape index: {}]   ;;  %s5140_s8 = inlined_call_operand.vmem [shape: f32[1,128], index: 8, kind: input, shape index: {}]   ;;  %s5141_s9 = inlined_call_operand.hbm [shape: bf16[128,128], index: 9, kind: input, shape index: {}]   ;;  %s5142_s10 = inlined_call_operand.vmem [shape: f32[1,128], index: 10, kind: input, shape index: {}]   ;;  %s5143_s11 = inlined_call_operand.vmem [shape: f32[9,128], index: 11, kind: input, shape index: {}]   ;;  %s5144_s12 = inlined_call_operand.vmem [shape: f32[1,128], index: 12, kind: input, shape index: {}]   ;;  %s5145_s13 = inlined_call_operand.hbm [shape: bf16[128,128], index: 13, kind: input, shape index: {}]   ;;  %s5146_s14 = inlined_call_operand.vmem [shape: f32[1,128], index: 14, kind: input, shape index: {}]   ;;  %s5147_s15 = inlined_call_operand.hbm [shape: f32[2,64,128], index: 15, kind: output, shape index: {}]  }
   0x1   :  { %5160 = sst [smem:[#allocation28_spill]] %s5147_s15 }
   0x2   :  { %20 = vsyncpa [#allocation4], 0 }
   0x3   :  { %21 = vsyncpa [#allocation7], 0 }
   0x4   :  { %22 = vsyncpa [#allocation10], 0 }
   0x5   :  { %23 = vsyncpa [#allocation5], 0  ;;  %s3748_s18 = smov [#allocation6]   ;;  %s3608_s22 = scalar_lea.hbm %s5135_s3, 3072 }
   0x6   :  { %s45_s19 = sshll.u32 %s3748_s18, 4  ;;  %p3609_p0 = scmp.ne.s32.totalorder %s5135_s3, %s3608_s22  ;;  %s46_s19 = int_to_ptr.vmem [resolvable:$true] %s45_s19 }
   0x7   :  { %p3612_p1 = scmp.lt.u32.totalorder %s3608_s22, %s5135_s3 }
   0x9   :  { %p3614_p2 = pnand %p3612_p1, %p3609_p0 }
   0xb   :  { %3617 = shalt.err (!%p3614_p2)
}
   0xc   :  { %s3618_s27 = scalar_lea.vmem %s46_s19, 3072  ;;  %p3623_p4 = scmp.lt.s32.totalorder %s46_s19, %s46_s19 }
   0xd   :  { %p3619_p3 = scmp.ne.s32.totalorder %s46_s19, %s3618_s27  ;;  %p3624_p5 = scmp.lt.s32.totalorder %s3618_s27, %s3618_s27 }
   0xf   :  { %p3625_p6 = por %p3624_p5, %p3623_p4 }
  0x11   :  { %p3626_p7 = pnand %p3625_p6, %p3619_p3 }
  0x13   :  { %3629 = shalt.err (!%p3626_p7)
}
  0x14   :  { %s3749_s28 = smov 192   ;;  %s3750_s29 = smov 12  }
  0x15   :  { %51 = dma.hbm_to_vmem [thread:$0]  %s5135_s3, 3072, %s46_s19, [#allocation7], %s3749_s28, %s3749_s28, %s3750_s29  }
  0x16   :  { %s3751_s17 = smov [#allocation9]   ;;  %s3752_s20 = smov [#allocation3]  }
  0x17   :  { %s77_s18 = sshll.u32 %s3751_s17, 4  ;;  %s29_s21 = sshll.u32 %s3752_s20, 4  ;;  %s78_s18 = int_to_ptr.vmem [resolvable:$true] %s77_s18  ;;  %s30_s21 = int_to_ptr.vmem [resolvable:$true] %s29_s21 }
  0x18   :  { %s3630_s24 = scalar_lea.hbm %s5141_s9, 1024 }
  0x19   :  { %p3631_p8 = scmp.ne.s32.totalorder %s5141_s9, %s3630_s24  ;;  %p3634_p9 = scmp.lt.u32.totalorder %s3630_s24, %s5141_s9 }
  0x1b   :  { %p3636_p10 = pnand %p3634_p9, %p3631_p8 }
  0x1d   :  { %3639 = shalt.err (!%p3636_p10)
}
  0x1e   :  { %s3640_s3 = scalar_lea.vmem %s78_s18, 1024  ;;  %p3645_p12 = scmp.lt.s32.totalorder %s78_s18, %s78_s18 }
  0x1f   :  { %p3641_p11 = scmp.ne.s32.totalorder %s78_s18, %s3640_s3  ;;  %p3646_p13 = scmp.lt.s32.totalorder %s3640_s3, %s3640_s3 }
  0x21   :  { %p3647_p0 = por %p3646_p13, %p3645_p12 }
  0x23   :  { %p3648_p1 = pnand %p3647_p0, %p3641_p11 }
  0x25   :  { %3651 = shalt.err (!%p3648_p1)
}
  0x26   :  { %s3753_s19 = smov 64   ;;  %s3754_s28 = smov 4  }
  0x27   :  { %83 = dma.hbm_to_vmem [thread:$0]  %s5141_s9, 1024, %s78_s18, [#allocation10], %s3753_s19, %s3753_s19, %s3754_s28  }
  0x28   :  { %s3652_s17 = scalar_lea.hbm %s5132_s0, 2048 }
  0x29   :  { %p3653_p2 = scmp.ne.s32.totalorder %s5132_s0, %s3652_s17  ;;  %p3656_p3 = scmp.lt.u32.totalorder %s3652_s17, %s5132_s0 }
  0x2b   :  { %p3658_p4 = pnand %p3656_p3, %p3653_p2 }
  0x2d   :  { %3661 = shalt.err (!%p3658_p4)
}
  0x2e   :  { %s3662_s25 = scalar_lea.vmem %s30_s21, 2048  ;;  %p3667_p6 = scmp.lt.s32.totalorder %s30_s21, %s30_s21 }
  0x2f   :  { %p3663_p5 = scmp.ne.s32.totalorder %s30_s21, %s3662_s25  ;;  %p3668_p7 = scmp.lt.s32.totalorder %s3662_s25, %s3662_s25 }
  0x31   :  { %p3669_p8 = por %p3668_p7, %p3667_p6 }
  0x33   :  { %p3670_p9 = pnand %p3669_p8, %p3663_p5 }
  0x35   :  { %3673 = shalt.err (!%p3670_p9)
}
  0x36   :  { %s3755_s9 = smov 128   ;;  %s3756_s18 = smov 8  }
  0x37   :  { %35 = dma.hbm_to_vmem [thread:$0]  %s5132_s0, 2048, %s30_s21, [#allocation4], %s3755_s9, %s3755_s9, %s3756_s18  }
  0x38   :  { %s3757_s3 = smov [#allocation8]   ;;  %s3758_s30 = smov [#allocation11]  }
  0x39   :  { %s59_s29 = sshll.u32 %s3757_s3, 4  ;;  %s95_s15 = sshll.u32 %s3758_s30, 4  ;;  %s60_s29 = int_to_ptr.vmem [resolvable:$true] %s59_s29  ;;  %s96_s15 = int_to_ptr.vmem [resolvable:$true] %s95_s15 }
  0x3a   :  { %s3674_s20 = scalar_lea.hbm %s5137_s5, 1024 }
  0x3b   :  { %p3675_p10 = scmp.ne.s32.totalorder %s5137_s5, %s3674_s20  ;;  %p3678_p11 = scmp.lt.u32.totalorder %s3674_s20, %s5137_s5 }
  0x3d   :  { %p3680_p12 = pnand %p3678_p11, %p3675_p10 }
  0x3f   :  { %3683 = shalt.err (!%p3680_p12)
}
  0x40   :  { %s3684_s0 = scalar_lea.vmem %s60_s29, 1024  ;;  %p3689_p0 = scmp.lt.s32.totalorder %s60_s29, %s60_s29 }
  0x41   :  { %p3685_p13 = scmp.ne.s32.totalorder %s60_s29, %s3684_s0  ;;  %p3690_p1 = scmp.lt.s32.totalorder %s3684_s0, %s3684_s0 }
  0x43   :  { %p3691_p2 = por %p3690_p1, %p3689_p0 }
  0x45   :  { %p3692_p3 = pnand %p3691_p2, %p3685_p13 }
  0x47   :  { %3695 = shalt.err (!%p3692_p3)
}
  0x48   :  { %65 = dma.hbm_to_vmem [thread:$0]  %s5137_s5, 1024, %s60_s29, [#allocation7], %s3753_s19, %s3753_s19, %s3754_s28  }
  0x49   :  { %s3696_s30 = scalar_lea.hbm %s5145_s13, 1024 }
  0x4a   :  { %p3697_p4 = scmp.ne.s32.totalorder %s5145_s13, %s3696_s30  ;;  %p3700_p5 = scmp.lt.u32.totalorder %s3696_s30, %s5145_s13 }
  0x4c   :  { %p3702_p6 = pnand %p3700_p5, %p3697_p4 }
  0x4e   :  { %3705 = shalt.err (!%p3702_p6)
}
  0x4f   :  { %s3706_s23 = scalar_lea.vmem %s96_s15, 1024  ;;  %p3711_p8 = scmp.lt.s32.totalorder %s96_s15, %s96_s15 }
  0x50   :  { %p3707_p7 = scmp.ne.s32.totalorder %s96_s15, %s3706_s23  ;;  %p3712_p9 = scmp.lt.s32.totalorder %s3706_s23, %s3706_s23 }
  0x52   :  { %p3713_p10 = por %p3712_p9, %p3711_p8 }
  0x54   :  { %p3714_p11 = pnand %p3713_p10, %p3707_p7 }
  0x56   :  { %3717 = shalt.err (!%p3714_p11)
}
  0x57   :  { %101 = dma.hbm_to_vmem [thread:$0]  %s5145_s13, 1024, %s96_s15, [#allocation10], %s3753_s19, %s3753_s19, %s3754_s28  }
  0x58   :  { %3740 = dma.done.wait [#allocation4], 2048  }
  0x59   :  { %3741 = vsyncadd [#allocation4], 4294965248 }
  0x5a   :  { %3742 = dma.done.wait [#allocation7], 4096  }
  0x5b   :  { %3743 = vsyncadd [#allocation7], 4294963200 }
  0x5c   :  { %3744 = dma.done.wait [#allocation10], 2048  }
  0x5d   :  { %3745 = vsyncadd [#allocation10], 4294965248  ;;  %v3914_v0 = vld [vmem:[#allocation3] sm:$0xff]  ;;  %v3916_v1 = vld [vmem:[#allocation3 + $0x8] sm:$0xff]  ;;  %v3759_v48 = vmov 0   ;;  %vm1060_vm0 = vcmask 523264  }
  0x5e   :  { %169 = vadd.xlane.f32.xlu0 %v3914_v0  ;;  %v201_v2 = vmul.f32 %v3914_v0, %v3914_v0  ;;  %v202_v3 = vmul.f32 %v3916_v1, %v3916_v1  ;;  %v3924_v4 = vld [vmem:[#allocation3 + $0x10] sm:$0xff]  ;;  %v3926_v5 = vld [vmem:[#allocation3 + $0x18] sm:$0xff]  ;;  %v3934_v9 = vld [vmem:[#allocation3 + $0x20] sm:$0xff]  ;;  %638 = vmatprep.mubr.bf16.mxu0 %v3759_v48 }
  0x5f   :  { %v3340_v6 = vld [vmem:[#allocation6 + $0x4] ss:$12 sps:$4 sm:$0xff]   ;;  %v203_v7 = vmul.f32 %v3924_v4, %v3924_v4  ;;  %v204_v8 = vmul.f32 %v3926_v5, %v3926_v5  ;;  %v3342_v10 = vld [vmem:[#allocation6] ss:$12 sps:$4 sm:$0xff]   ;;  %v3343_v12 = vld [vmem:[#allocation6 + $0x1c] ss:$12 sps:$4 sm:$0xff]   ;;  %v205_v13 = vmul.f32 %v3934_v9, %v3934_v9 }
  0x60   :  { %217 = vadd.xlane.f32.xlu1 %v201_v2  ;;  %606 = vmatprep.subr.bf16.mxu0 %v3340_v6  ;;  %v3936_v11 = vld [vmem:[#allocation3 + $0x28] sm:$0xff]  ;;  %v3345_v14 = vld [vmem:[#allocation6 + $0x18] ss:$12 sps:$4 sm:$0xff]   ;;  %v3944_v16 = vld [vmem:[#allocation3 + $0x30] sm:$0xff] }
  0x61   :  { %607 = vmatpush1.bf16.msra.mxu0 %v3342_v10  ;;  %v206_v15 = vmul.f32 %v3936_v11, %v3936_v11  ;;  %v3346_v17 = vld [vmem:[#allocation6 + $0x34] ss:$12 sps:$4 sm:$0xff]   ;;  %v3349_v19 = vld [vmem:[#allocation6 + $0x30] ss:$12 sps:$4 sm:$0xff]   ;;  %v3350_v21 = vld [vmem:[#allocation6 + $0x4c] ss:$12 sps:$4 sm:$0xff]   ;;  %v207_v23 = vmul.f32 %v3944_v16, %v3944_v16 }
  0x62   :  { %171 = vadd.xlane.f32.xlu0 %v3916_v1  ;;  %608 = vmatprep.subr.bf16.mxu0 %v3343_v12  ;;  %v3348_v18 = vld [vmem:[#allocation6 + $0x8] ss:$12 sps:$4 sm:$0xff]   ;;  %v3946_v20 = vld [vmem:[#allocation3 + $0x38] sm:$0xff]  ;;  %v3352_v22 = vld [vmem:[#allocation6 + $0x20] ss:$12 sps:$4 sm:$0xff]  }
  0x63   :  { %3102 = vmatprep.subr.bf16.mxu1 %v3348_v18  ;;  %v3353_v24 = vld [vmem:[#allocation6 + $0x48] ss:$12 sps:$4 sm:$0xff]   ;;  %v208_v25 = vmul.f32 %v3946_v20, %v3946_v20  ;;  %v3954_v26 = vld [vmem:[#allocation3 + $0x40] sm:$0xff]  ;;  %v3360_v33 = vld [vmem:[#allocation6 + $0x50] ss:$12 sps:$4 sm:$0xff]  }
  0x64   :  { %219 = vadd.xlane.f32.xlu1 %v202_v3  ;;  %3103 = vmatpush3.bf16.msra.mxu1 %v3348_v18  ;;  %v3354_v27 = vld [vmem:[#allocation6 + $0x64] ss:$12 sps:$4 sm:$0xff]   ;;  %v3357_v29 = vld [vmem:[#allocation6 + $0x60] ss:$12 sps:$4 sm:$0xff]   ;;  %v209_v31 = vmul.f32 %v3954_v26, %v3954_v26  ;;  %v3358_v32 = vld [vmem:[#allocation6 + $0x7c] ss:$12 sps:$4 sm:$0xff]  }
  0x65   :  { %609 = vmatpush1.bf16.msra.mxu0 %v3345_v14  ;;  %3104 = vmatprep.subr.bf16.mxu1 %v3352_v22  ;;  %v3356_v28 = vld [vmem:[#allocation6 + $0x38] ss:$12 sps:$4 sm:$0xff]   ;;  %v3956_v30 = vld [vmem:[#allocation3 + $0x48] sm:$0xff]  ;;  %v3362_v36 = vld [vmem:[#allocation6 + $0x94] ss:$12 sps:$4 sm:$0xff]  }
  0x66   :  { %173 = vadd.xlane.f32.xlu0 %v3924_v4  ;;  %610 = vmatprep.subr.bf16.mxu0 %v3346_v17  ;;  %v3361_v34 = vld [vmem:[#allocation6 + $0x78] ss:$12 sps:$4 sm:$0xff]   ;;  %v210_v35 = vmul.f32 %v3956_v30, %v3956_v30  ;;  %v3364_v37 = vld [vmem:[#allocation6 + $0x68] ss:$12 sps:$4 sm:$0xff]   ;;  %v3365_v39 = vld [vmem:[#allocation6 + $0x90] ss:$12 sps:$4 sm:$0xff]  }
  0x67   :  { %v3964_v38 = vld [vmem:[#allocation3 + $0x50] sm:$0xff]  ;;  %v3966_v40 = vld [vmem:[#allocation3 + $0x58] sm:$0xff]  ;;  %v3368_v43 = vld [vmem:[#allocation6 + $0x80] ss:$12 sps:$4 sm:$0xff]  }
  0x68   :  { %175 = vadd.xlane.f32.xlu1 %v3926_v5  ;;  %3105 = vmatpush3.bf16.msra.mxu1 %v3352_v22  ;;  %v211_v41 = vmul.f32 %v3964_v38, %v3964_v38  ;;  %v3366_v42 = vld [vmem:[#allocation6 + $0xac] ss:$12 sps:$4 sm:$0xff]   ;;  %v3369_v44 = vld [vmem:[#allocation6 + $0xa8] ss:$12 sps:$4 sm:$0xff]   ;;  %v212_v45 = vmul.f32 %v3966_v40, %v3966_v40  ;;  %v3974_v47 = vld [vmem:[#allocation3 + $0x60] sm:$0xff] }
  0x69   :  { %611 = vmatpush1.bf16.msra.mxu0 %v3349_v19  ;;  %3106 = vmatprep.subr.bf16.mxu1 %v3356_v28  ;;  %v3370_v46 = vld [vmem:[#allocation6 + $0x98] ss:$12 sps:$4 sm:$0xff]   ;;  %v3977_v49 = vld [vmem:[#allocation3 + $0x68] sm:$0xff]  ;;  %v213_v50 = vmul.f32 %v3974_v47, %v3974_v47  ;;  %v3371_v51 = vld [vmem:[#allocation6 + $0xb0] ss:$12 sps:$4 sm:$0xff]  }
  0x6a   :  { %221 = vadd.xlane.f32.xlu0 %v203_v7  ;;  %612 = vmatprep.subr.bf16.mxu0 %v3350_v21  ;;  %v214_v52 = vmul.f32 %v3977_v49, %v3977_v49  ;;  %v3985_v53 = vld [vmem:[#allocation3 + $0x70] sm:$0xff]  ;;  %v3987_v54 = vld [vmem:[#allocation3 + $0x78] sm:$0xff] }
  0x6b   :  { %v215_v55 = vmul.f32 %v3985_v53, %v3985_v53  ;;  %v216_v56 = vmul.f32 %v3987_v54, %v3987_v54 }
  0x6c   :  { %223 = vadd.xlane.f32.xlu1 %v204_v8  ;;  %3107 = vmatpush3.bf16.msra.mxu1 %v3356_v28 }
  0x6d   :  { %613 = vmatpush1.bf16.msra.mxu0 %v3353_v24  ;;  %3108 = vmatprep.subr.bf16.mxu1 %v3360_v33 }
  0x6e   :  { %177 = vadd.xlane.f32.xlu0 %v3934_v9  ;;  %614 = vmatprep.subr.bf16.mxu0 %v3354_v27 }
  0x70   :  { %179 = vadd.xlane.f32.xlu1 %v3936_v11  ;;  %3109 = vmatpush3.bf16.msra.mxu1 %v3360_v33 }
  0x71   :  { %615 = vmatpush1.bf16.msra.mxu0 %v3357_v29  ;;  %3110 = vmatprep.subr.bf16.mxu1 %v3364_v37 }
  0x72   :  { %225 = vadd.xlane.f32.xlu0 %v205_v13  ;;  %616 = vmatprep.subr.bf16.mxu0 %v3358_v32 }
  0x74   :  { %227 = vadd.xlane.f32.xlu1 %v206_v15  ;;  %3111 = vmatpush3.bf16.msra.mxu1 %v3364_v37 }
  0x75   :  { %617 = vmatpush1.bf16.msra.mxu0 %v3361_v34  ;;  %3112 = vmatprep.subr.bf16.mxu1 %v3368_v43 }
  0x76   :  { %181 = vadd.xlane.f32.xlu0 %v3944_v16  ;;  %618 = vmatprep.subr.bf16.mxu0 %v3362_v36 }
  0x78   :  { %183 = vadd.xlane.f32.xlu1 %v3946_v20  ;;  %3113 = vmatpush3.bf16.msra.mxu1 %v3368_v43  ;;  %v4005_v43 = vld [vmem:[%s5133_s1] ss:$0 sm:$0xff] }
  0x79   :  { %619 = vmatpush1.bf16.msra.mxu0 %v3365_v39  ;;  %3114 = vmatprep.subr.bf16.mxu1 %v3370_v46 }
  0x7a   :  { %229 = vadd.xlane.f32.xlu0 %v207_v23  ;;  %620 = vmatprep.subr.bf16.mxu0 %v3366_v42 }
  0x7c   :  { %231 = vadd.xlane.f32.xlu1 %v208_v25  ;;  %3115 = vmatpush3.bf16.msra.mxu1 %v3370_v46 }
  0x7d   :  { %621 = vmatpush1.bf16.msra.mxu0 %v3369_v44  ;;  %3116 = vmatprep.subr.bf16.mxu1 %v3371_v51 }
  0x7e   :  { %185 = vadd.xlane.f32.xlu0 %v3954_v26 }
  0x80   :  { %187 = vadd.xlane.f32.xlu1 %v3956_v30  ;;  %3117 = vmatpush3.bf16.msra.mxu1 %v3371_v51 }
  0x82   :  { %233 = vadd.xlane.f32.xlu0 %v209_v31 }
  0x84   :  { %235 = vadd.xlane.f32.xlu1 %v210_v35 }
  0x86   :  { %189 = vadd.xlane.f32.xlu0 %v3964_v38 }
  0x88   :  { %191 = vadd.xlane.f32.xlu1 %v3966_v40 }
  0x8a   :  { %237 = vadd.xlane.f32.xlu0 %v211_v41 }
  0x8c   :  { %239 = vadd.xlane.f32.xlu1 %v212_v45 }
  0x8e   :  { %193 = vadd.xlane.f32.xlu0 %v3974_v47 }
  0x90   :  { %195 = vadd.xlane.f32.xlu1 %v3977_v49 }
  0x92   :  { %241 = vadd.xlane.f32.xlu0 %v213_v50 }
  0x94   :  { %243 = vadd.xlane.f32.xlu1 %v214_v52 }
  0x96   :  { %197 = vadd.xlane.f32.xlu0 %v3985_v53 }
  0x98   :  { %199 = vadd.xlane.f32.xlu1 %v3987_v54 }
  0x9a   :  { %245 = vadd.xlane.f32.xlu0 %v215_v55 }
  0x9c   :  { %247 = vadd.xlane.f32.xlu1 %v216_v56 }
  0xeb   :  { %v170_v57 = vpop.xlane.xlu0 %169 }
  0xec   :  { %v250_v58 = vmul.f32 0.03125, %v170_v57 }
  0xed   :  { %v218_v59 = vpop.xlane.xlu1 %217 }
  0xee   :  { %v282_v60 = vmul.f32 %v250_v58, %v250_v58  ;;  %v266_v61 = vmul.f32 0.03125, %v218_v59  ;;  %v314_v32 = vsub.f32 %v3914_v0, %v250_v58 }
  0xef   :  { %v172_v62 = vpop.xlane.xlu0 %171 }
  0xf0   :  { %v298_v63 = vsub.f32 %v266_v61, %v282_v60  ;;  %v251_v2 = vmul.f32 0.03125, %v172_v62  ;;  %v4016_v60 = vld [vmem:[%s5134_s2] ss:$0 sm:$0xff] }
  0xf1   :  { %v220_v3 = vpop.xlane.xlu1 %219 }
  0xf2   :  { %v330_v6 = vadd.f32 1e-05, %v298_v63  ;;  %v283_v7 = vmul.f32 %v251_v2, %v251_v2  ;;  %v267_v8 = vmul.f32 0.03125, %v220_v3  ;;  %v315_v0 = vsub.f32 %v3916_v1, %v251_v2 }
  0xf3   :  { %v174_v10 = vpop.xlane.xlu0 %173 }
  0xf4   :  { %3396 = vrsqrt.f32 %v330_v6  ;;  %v299_v12 = vsub.f32 %v267_v8, %v283_v7  ;;  %v252_v13 = vmul.f32 0.03125, %v174_v10 }
  0xf5   :  { %v176_v14 = vpop.xlane.xlu1 %175 }
  0xf6   :  { %v331_v15 = vadd.f32 1e-05, %v299_v12  ;;  %v284_v17 = vmul.f32 %v252_v13, %v252_v13  ;;  %v253_v18 = vmul.f32 0.03125, %v176_v14  ;;  %v316_v2 = vsub.f32 %v3924_v4, %v252_v13 }
  0xf7   :  { %v222_v19 = vpop.xlane.xlu0 %221 }
  0xf8   :  { %3398 = vrsqrt.f32 %v331_v15  ;;  %v268_v21 = vmul.f32 0.03125, %v222_v19  ;;  %v285_v23 = vmul.f32 %v253_v18, %v253_v18  ;;  %v317_v14 = vsub.f32 %v3926_v5, %v253_v18 }
  0xf9   :  { %v224_v22 = vpop.xlane.xlu1 %223 }
  0xfa   :  { %v300_v24 = vsub.f32 %v268_v21, %v284_v17  ;;  %v269_v25 = vmul.f32 0.03125, %v224_v22 }
  0xfb   :  { %v178_v27 = vpop.xlane.xlu0 %177 }
  0xfc   :  { %v332_v28 = vadd.f32 1e-05, %v300_v24  ;;  %v301_v29 = vsub.f32 %v269_v25, %v285_v23  ;;  %v3995_v31 = vmul.f32 0.03125, %v178_v27 }
  0xfd   :  { %v180_v33 = vpop.xlane.xlu1 %179 }
  0xfe   :  { %v3397_v34 = vpop.eup %3396  ;;  %3400 = vrsqrt.f32 %v332_v28  ;;  %v333_v35 = vadd.f32 1e-05, %v301_v29  ;;  %v286_v36 = vmul.f32 %v3995_v31, %v3995_v31  ;;  %v4000_v37 = vmul.f32 0.03125, %v180_v33 }
  0xff   :  { %v226_v39 = vpop.xlane.xlu0 %225  ;;  %v362_v41 = vmul.f32 %v3397_v34, %v314_v32  ;;  %v318_v34 = vsub.f32 %v3934_v9, %v3995_v31 }
 0x100   :  { %3402 = vrsqrt.f32 %v333_v35  ;;  %v270_v42 = vmul.f32 0.03125, %v226_v39  ;;  %v287_v46 = vmul.f32 %v4000_v37, %v4000_v37 }
 0x101   :  { %v228_v44 = vpop.xlane.xlu1 %227  ;;  %v384_v56 = vmul.f32 %v4005_v43, %v362_v41 }
 0x102   :  { %v3399_v45 = vpop.eup %3398  ;;  %v302_v50 = vsub.f32 %v270_v42, %v286_v36  ;;  %v271_v51 = vmul.f32 0.03125, %v228_v44  ;;  %v319_v44 = vsub.f32 %v3936_v11, %v4000_v37 }
 0x103   :  { %v182_v52 = vpop.xlane.xlu0 %181  ;;  %v363_v55 = vmul.f32 %v3399_v45, %v315_v0  ;;  %v406_v7 = vadd.f32 %v4016_v60, %v384_v56 }
 0x104   :  { %v334_v57 = vadd.f32 1e-05, %v302_v50  ;;  %v303_v58 = vsub.f32 %v271_v51, %v287_v46  ;;  %v4011_v59 = vmul.f32 0.03125, %v182_v52 }
 0x105   :  { %v184_v1 = vpop.xlane.xlu1 %183  ;;  %v385_v61 = vmul.f32 %v4005_v43, %v363_v55 }
 0x106   :  { %3404 = vrsqrt.f32 %v334_v57  ;;  %v335_v62 = vadd.f32 1e-05, %v303_v58  ;;  %v288_v63 = vmul.f32 %v4011_v59, %v4011_v59  ;;  %v4022_v3 = vmul.f32 0.03125, %v184_v1 }
 0x107   :  { %v230_v6 = vpop.xlane.xlu0 %229  ;;  %v407_v8 = vadd.f32 %v4016_v60, %v385_v61 }
 0x108   :  { %v3401_v10 = vpop.eup %3400  ;;  %3406 = vrsqrt.f32 %v335_v62  ;;  %v272_v12 = vmul.f32 0.03125, %v230_v6  ;;  %v289_v22 = vmul.f32 %v4022_v3, %v4022_v3 }
 0x109   :  { %v232_v15 = vpop.xlane.xlu1 %231  ;;  %v422_v17 = vpack.c.bf16 %v407_v8, %v406_v7  ;;  %v364_v19 = vmul.f32 %v3401_v10, %v316_v2  ;;  %v320_v2 = vsub.f32 %v3944_v16, %v4011_v59 }
 0x10a   :  { %v3403_v21 = vpop.eup %3402  ;;  %v304_v4 = vsub.f32 %v272_v12, %v288_v63  ;;  %v273_v13 = vmul.f32 0.03125, %v232_v15  ;;  %v321_v15 = vsub.f32 %v3946_v20, %v4022_v3 }
 0x10b   :  { %v186_v23 = vpop.xlane.xlu0 %185  ;;  %639 = vmatmul.mubr.bf16.vlgmr.msra.gmra.mrb[0].mxu0 %v422_v17  ;;  %3118 = vmatprep.mubr.bf16.mxu1 %v422_v17  ;;  %v365_v24 = vmul.f32 %v3403_v21, %v317_v14  ;;  %v386_v25 = vmul.f32 %v4005_v43, %v364_v19 }
 0x10c   :  { %v336_v27 = vadd.f32 1e-05, %v304_v4  ;;  %v305_v28 = vsub.f32 %v273_v13, %v289_v22  ;;  %v4030_v29 = vmul.f32 0.03125, %v186_v23  ;;  %648 = vmatprep.mubr.bf16.mxu0 %v3759_v48 }
 0x10d   :  { %v188_v5 = vpop.xlane.xlu1 %187  ;;  %v387_v18 = vmul.f32 %v4005_v43, %v365_v24  ;;  %v408_v39 = vadd.f32 %v4016_v60, %v386_v25 }
 0x10e   :  { %3408 = vrsqrt.f32 %v336_v27  ;;  %v337_v32 = vadd.f32 1e-05, %v305_v28  ;;  %v290_v33 = vmul.f32 %v4030_v29, %v4030_v29  ;;  %v4038_v35 = vmul.f32 0.03125, %v188_v5 }
 0x10f   :  { %v234_v36 = vpop.xlane.xlu0 %233  ;;  %v409_v41 = vadd.f32 %v4016_v60, %v387_v18 }
 0x110   :  { %v3405_v42 = vpop.eup %3404  ;;  %3410 = vrsqrt.f32 %v337_v32  ;;  %v274_v0 = vmul.f32 0.03125, %v234_v36  ;;  %v291_v9 = vmul.f32 %v4038_v35, %v4038_v35  ;;  %v322_v32 = vsub.f32 %v3954_v26, %v4030_v29 }
 0x111   :  { %v236_v45 = vpop.xlane.xlu1 %235  ;;  %v423_v46 = vpack.c.bf16 %v409_v41, %v408_v39  ;;  %v366_v50 = vmul.f32 %v3405_v42, %v318_v34 }
 0x112   :  { %v3407_v51 = vpop.eup %3406  ;;  %v306_v31 = vsub.f32 %v274_v0, %v290_v33  ;;  %v275_v52 = vmul.f32 0.03125, %v236_v45  ;;  %v323_v0 = vsub.f32 %v3956_v30, %v4038_v35 }
 0x113   :  { %v190_v55 = vpop.xlane.xlu0 %189  ;;  %649 = vmatmul.mubr.bf16.gmra.mrb[4].mxu0 %v423_v46  ;;  %3119 = vmatmul.mubr.bf16.vlgmr.msra.gmra.mrb[0].mxu1 %v423_v46  ;;  %v367_v56 = vmul.f32 %v3407_v51, %v319_v44  ;;  %v388_v57 = vmul.f32 %v4005_v43, %v366_v50 }
 0x114   :  { %v338_v58 = vadd.f32 1e-05, %v306_v31  ;;  %v307_v1 = vsub.f32 %v275_v52, %v291_v9  ;;  %v4047_v61 = vmul.f32 0.03125, %v190_v55  ;;  %658 = vmatprep.mubr.bf16.mxu0 %v3759_v48 }
 0x115   :  { %v192_v11 = vpop.xlane.xlu1 %191  ;;  %v389_v37 = vmul.f32 %v4005_v43, %v367_v56  ;;  %v410_v8 = vadd.f32 %v4016_v60, %v388_v57 }
 0x116   :  { %3412 = vrsqrt.f32 %v338_v58  ;;  %v339_v62 = vadd.f32 1e-05, %v307_v1  ;;  %v292_v63 = vmul.f32 %v4047_v61, %v4047_v61  ;;  %v4055_v6 = vmul.f32 0.03125, %v192_v11 }
 0x117   :  { %v238_v7 = vpop.xlane.xlu0 %237  ;;  %v411_v10 = vadd.f32 %v4016_v60, %v389_v37  ;;  %v324_v11 = vsub.f32 %v3964_v38, %v4047_v61 }
 0x118   :  { %v3409_v12 = vpop.eup %3408  ;;  %3414 = vrsqrt.f32 %v339_v62  ;;  %v276_v14 = vmul.f32 0.03125, %v238_v7  ;;  %v293_v16 = vmul.f32 %v4055_v6, %v4055_v6 }
 0x119   :  { %v240_v17 = vpop.xlane.xlu1 %239  ;;  %v424_v19 = vpack.c.bf16 %v411_v10, %v410_v8  ;;  %v368_v21 = vmul.f32 %v3409_v12, %v320_v2  ;;  %v325_v10 = vsub.f32 %v3966_v40, %v4055_v6 }
 0x11a   :  { %v3411_v22 = vpop.eup %3410  ;;  %v308_v59 = vsub.f32 %v276_v14, %v292_v63  ;;  %v277_v4 = vmul.f32 0.03125, %v240_v17 }
 0x11b   :  { %v194_v13 = vpop.xlane.xlu0 %193  ;;  %659 = vmatmul.mubr.bf16.gmra.mrb[8].mxu0 %v424_v19  ;;  %3122 = vmatprep.mubr.bf16.mxu1 %v424_v19  ;;  %v369_v23 = vmul.f32 %v3411_v22, %v321_v15  ;;  %v390_v24 = vmul.f32 %v4005_v43, %v368_v21 }
 0x11c   :  { %v340_v25 = vadd.f32 1e-05, %v308_v59  ;;  %v309_v27 = vsub.f32 %v277_v4, %v293_v16  ;;  %v4064_v28 = vmul.f32 0.03125, %v194_v13  ;;  %668 = vmatprep.mubr.bf16.mxu0 %v3759_v48 }
 0x11d   :  { %v196_v20 = vpop.xlane.xlu1 %195  ;;  %v391_v3 = vmul.f32 %v4005_v43, %v369_v23  ;;  %v412_v36 = vadd.f32 %v4016_v60, %v390_v24 }
 0x11e   :  { %3416 = vrsqrt.f32 %v340_v25  ;;  %v341_v5 = vadd.f32 1e-05, %v309_v27  ;;  %v294_v18 = vmul.f32 %v4064_v28, %v4064_v28  ;;  %v4072_v33 = vmul.f32 0.03125, %v196_v20 }
 0x11f   :  { %v242_v34 = vpop.xlane.xlu0 %241  ;;  %v413_v39 = vadd.f32 %v4016_v60, %v391_v3  ;;  %v326_v6 = vsub.f32 %v3974_v47, %v4064_v28 }
 0x120   :  { %v3413_v41 = vpop.eup %3412  ;;  %3418 = vrsqrt.f32 %v341_v5  ;;  %v278_v42 = vmul.f32 0.03125, %v242_v34  ;;  %v295_v26 = vmul.f32 %v4072_v33, %v4072_v33  ;;  %v327_v25 = vsub.f32 %v3977_v49, %v4072_v33 }
 0x121   :  { %v244_v44 = vpop.xlane.xlu1 %243  ;;  %v425_v45 = vpack.c.bf16 %v413_v39, %v412_v36  ;;  %v370_v46 = vmul.f32 %v3413_v41, %v322_v32 }
 0x122   :  { %v3415_v50 = vpop.eup %3414  ;;  %v310_v29 = vsub.f32 %v278_v42, %v294_v18  ;;  %v279_v51 = vmul.f32 0.03125, %v244_v44 }
 0x123   :  { %v198_v9 = vpop.xlane.xlu0 %197  ;;  %669 = vmatmul.mubr.bf16.gmra.mrb[12].mxu0 %v425_v45  ;;  %3123 = vmatmul.mubr.bf16.gmra.mrb[4].mxu1 %v425_v45  ;;  %v371_v31 = vmul.f32 %v3415_v50, %v323_v0  ;;  %v392_v52 = vmul.f32 %v4005_v43, %v370_v46 }
 0x124   :  { %v342_v55 = vadd.f32 1e-05, %v310_v29  ;;  %v311_v56 = vsub.f32 %v279_v51, %v295_v26  ;;  %v264_v57 = vmul.f32 0.03125, %v198_v9  ;;  %678 = vmatprep.mubr.bf16.mxu0 %v3759_v48 }
 0x125   :  { %v200_v30 = vpop.xlane.xlu1 %199  ;;  %v393_v35 = vmul.f32 %v4005_v43, %v371_v31  ;;  %v414_v63 = vadd.f32 %v4016_v60, %v392_v52 }
 0x126   :  { %3420 = vrsqrt.f32 %v342_v55  ;;  %v343_v58 = vadd.f32 1e-05, %v311_v56  ;;  %v296_v1 = vmul.f32 %v264_v57, %v264_v57  ;;  %v265_v37 = vmul.f32 0.03125, %v200_v30 }
 0x127   :  { %v246_v62 = vpop.xlane.xlu0 %245  ;;  %v415_v2 = vadd.f32 %v4016_v60, %v393_v35  ;;  %v328_v28 = vsub.f32 %v3985_v53, %v264_v57 }
 0x128   :  { %v3417_v7 = vpop.eup %3416  ;;  %3422 = vrsqrt.f32 %v343_v58  ;;  %v280_v8 = vmul.f32 0.03125, %v246_v62  ;;  %v297_v19 = vmul.f32 %v265_v37, %v265_v37  ;;  %v329_v49 = vsub.f32 %v3987_v54, %v265_v37 }
 0x129   :  { %v248_v12 = vpop.xlane.xlu1 %247  ;;  %v426_v14 = vpack.c.bf16 %v415_v2, %v414_v63  ;;  %v372_v15 = vmul.f32 %v3417_v7, %v324_v11  ;;  %v463_v54 = vlaneseq }
 0x12a   :  { %v3419_v17 = vpop.eup %3418  ;;  %v312_v21 = vsub.f32 %v280_v8, %v296_v1  ;;  %v281_v22 = vmul.f32 0.03125, %v248_v12 }
 0x12b   :  { %679 = vmatmul.mubr.bf16.gmra.mrb[16].mxu0 %v426_v14  ;;  %3126 = vmatprep.mubr.bf16.mxu1 %v426_v14  ;;  %v373_v38 = vmul.f32 %v3419_v17, %v325_v10  ;;  %v394_v61 = vmul.f32 %v4005_v43, %v372_v15  ;;  %v4110_v50 = vshrl.u32 %v463_v54, 7 }
 0x12c   :  { %v344_v16 = vadd.f32 1e-05, %v312_v21  ;;  %v313_v59 = vsub.f32 %v281_v22, %v297_v19  ;;  %688 = vmatprep.mubr.bf16.mxu0 %v3759_v48 }
 0x12d   :  { %v395_v4 = vmul.f32 %v4005_v43, %v373_v38  ;;  %v416_v13 = vadd.f32 %v4016_v60, %v394_v61  ;;  %v465_v29 = vsub.s32 0, %v4110_v50 }
 0x12e   :  { %3424 = vrsqrt.f32 %v344_v16  ;;  %v345_v40 = vadd.f32 1e-05, %v313_v59 }
 0x12f   :  { %v417_v23 = vadd.f32 %v4016_v60, %v395_v4 }
 0x130   :  { %v3421_v24 = vpop.eup %3420  ;;  %3426 = vrsqrt.f32 %v345_v40 }
 0x131   :  { %v427_v27 = vpack.c.bf16 %v417_v23, %v416_v13  ;;  %v374_v20 = vmul.f32 %v3421_v24, %v326_v6 }
 0x132   :  { %v3423_v3 = vpop.eup %3422 }
 0x133   :  { %689 = vmatmul.mubr.bf16.gmra.mrb[20].mxu0 %v427_v27  ;;  %3127 = vmatmul.mubr.bf16.gmra.mrb[8].mxu1 %v427_v27  ;;  %v375_v5 = vmul.f32 %v3423_v3, %v327_v25  ;;  %v396_v18 = vmul.f32 %v4005_v43, %v374_v20 }
 0x134   :  { %698 = vmatprep.mubr.bf16.mxu0 %v3759_v48 }
 0x135   :  { %v397_v47 = vmul.f32 %v4005_v43, %v375_v5  ;;  %v418_v32 = vadd.f32 %v4016_v60, %v396_v18 }
 0x137   :  { %v419_v34 = vadd.f32 %v4016_v60, %v397_v47 }
 0x138   :  { %v3425_v36 = vpop.eup %3424 }
 0x139   :  { %v428_v33 = vpack.c.bf16 %v419_v34, %v418_v32  ;;  %v376_v39 = vmul.f32 %v3425_v36, %v328_v28 }
 0x13a   :  { %v3427_v41 = vpop.eup %3426 }
 0x13b   :  { %699 = vmatmul.mubr.bf16.gmra.mrb[24].mxu0 %v428_v33  ;;  %3130 = vmatprep.mubr.bf16.mxu1 %v428_v33  ;;  %v377_v42 = vmul.f32 %v3427_v41, %v329_v49  ;;  %v398_v0 = vmul.f32 %v4005_v43, %v376_v39 }
 0x13c   :  { %708 = vmatprep.mubr.bf16.mxu0 %v3759_v48  ;;  %v4118_v48 = vld [vmem:[%s5136_s4] sm:$0x7] }
 0x13d   :  { %v399_v44 = vmul.f32 %v4005_v43, %v377_v42  ;;  %v420_v53 = vadd.f32 %v4016_v60, %v398_v0  ;;  %v4126_v31 = vrot.slane %v4118_v48, %v465_v29 }
 0x13f   :  { %v421_v45 = vadd.f32 %v4016_v60, %v399_v44  ;;  %v473_v60 = vsub.s32 2, %v4110_v50 }
 0x141   :  { %v429_v46 = vpack.c.bf16 %v421_v45, %v420_v53  ;;  %v4131_v52 = vrot.slane %v4118_v48, %v473_v60 }
 0x143   :  { %709 = vmatmul.mubr.bf16.gmra.mrb[28].mxu0 %v429_v46  ;;  %3131 = vmatmul.mubr.bf16.gmra.mrb[12].mxu1 %v429_v46 }
 0x1de   :  { %v640_v26 = vpop.f32.mrb[0].mxu0 }
 0x1df   :  { %v4113_v51 = vpop.f32.mrb[1].mxu0  ;;  %v4134_v57 = vadd.f32 %v640_v26, %v4126_v31 }
 0x1e0   :  { %v644_v43 = vpop.f32.mrb[2].mxu0 }
 0x1e1   :  { %v4120_v9 = vpop.f32.mrb[3].mxu0  ;;  %v4142_v1 = vadd.f32 %v644_v43, %v4126_v31 }
 0x1e6   :  { %v650_v55 = vpop.f32.mrb[4].mxu0  ;;  %v3120_v56 = vpop.f32.mrb[0].mxu1 }
 0x1e7   :  { %v4137_v30 = vadd.f32 %v650_v55, %v4126_v31  ;;  %v4139_v35 = vpop.f32.mrb[5].mxu0  ;;  %v753_v58 = vpop.f32.mrb[1].mxu1  ;;  %v762_v63 = vadd.f32 %v3120_v56, %v4131_v52 }
 0x1e8   :  { %v654_v11 = vpop.f32.mrb[6].mxu0  ;;  %v3121_v37 = vpop.f32.mrb[2].mxu1  ;;  %v754_v12 = vadd.f32 %v753_v58, %v4131_v52 }
 0x1e9   :  { %v816_v62 = vmax.f32 %v4134_v57, %v4137_v30  ;;  %v4148_v2 = vadd.f32 %v654_v11, %v4126_v31  ;;  %v765_v7 = vadd.f32 %v3121_v37, %v4131_v52  ;;  %v4151_v8 = vpop.f32.mrb[7].mxu0  ;;  %v756_v10 = vpop.f32.mrb[3].mxu1 }
 0x1ea   :  { %v757_v14 = vadd.f32 %v756_v10, %v4131_v52 }
 0x1eb   :  { %v817_v15 = vmax.f32 %v4142_v1, %v4148_v2  ;;  %v1037_v17 = vpack.c.bf16 %v765_v7, %v762_v63 }
 0x1ec   :  { %v1036_v19 = vpack.c.bf16 %v757_v14, %v754_v12 }
 0x1ee   :  { %v660_v21 = vpop.f32.mrb[8].mxu0  ;;  %3134 = vmatprep.subr.bf16.mxu1 %v1036_v19 }
 0x1ef   :  { %v4158_v22 = vadd.f32 %v660_v21, %v4126_v31  ;;  %v4160_v38 = vpop.f32.mrb[9].mxu0  ;;  %3135 = vmatpush3.bf16.msra.mxu1 %v1036_v19 }
 0x1f0   :  { %v664_v61 = vpop.f32.mrb[10].mxu0  ;;  %3136 = vmatprep.subr.bf16.mxu1 %v1037_v17 }
 0x1f1   :  { %v818_v16 = vmax.f32 %v816_v62, %v4158_v22  ;;  %v4164_v59 = vadd.f32 %v664_v61, %v4126_v31  ;;  %v4166_v4 = vpop.f32.mrb[11].mxu0 }
 0x1f3   :  { %v819_v40 = vmax.f32 %v817_v15, %v4164_v59  ;;  %3137 = vmatpush3.bf16.msra.mxu1 %v1037_v17 }
 0x1f6   :  { %v670_v6 = vpop.f32.mrb[12].mxu0  ;;  %v3124_v13 = vpop.f32.mrb[4].mxu1 }
 0x1f7   :  { %v4170_v23 = vadd.f32 %v670_v6, %v4126_v31  ;;  %v4172_v24 = vpop.f32.mrb[13].mxu0  ;;  %v769_v25 = vpop.f32.mrb[5].mxu1  ;;  %v778_v5 = vadd.f32 %v3124_v13, %v4131_v52 }
 0x1f8   :  { %v674_v27 = vpop.f32.mrb[14].mxu0  ;;  %v3125_v20 = vpop.f32.mrb[6].mxu1  ;;  %v770_v34 = vadd.f32 %v769_v25, %v4131_v52 }
 0x1f9   :  { %v820_v3 = vmax.f32 %v818_v16, %v4170_v23  ;;  %v675_v18 = vadd.f32 %v674_v27, %v4126_v31  ;;  %v781_v47 = vadd.f32 %v3125_v20, %v4131_v52  ;;  %v4178_v28 = vpop.f32.mrb[15].mxu0  ;;  %v772_v32 = vpop.f32.mrb[7].mxu1 }
 0x1fa   :  { %v773_v36 = vadd.f32 %v772_v32, %v4131_v52 }
 0x1fb   :  { %v821_v49 = vmax.f32 %v819_v40, %v675_v18  ;;  %v1039_v33 = vpack.c.bf16 %v781_v47, %v778_v5 }
 0x1fc   :  { %v1038_v39 = vpack.c.bf16 %v773_v36, %v770_v34 }
 0x1fd   :  { %v822_v41 = vmax.f32 %v820_v3, %v821_v49 }
 0x1fe   :  { %v680_v42 = vpop.f32.mrb[16].mxu0  ;;  %3138 = vmatprep.subr.bf16.mxu1 %v1038_v39 }
 0x1ff   :  { %v823_v0 = vrot.slane %v822_v41, 4  ;;  %v4182_v44 = vpop.f32.mrb[17].mxu0  ;;  %3139 = vmatpush3.bf16.msra.mxu1 %v1038_v39  ;;  %v4187_v58 = vadd.f32 %v680_v42, %v4126_v31 }
 0x200   :  { %v684_v53 = vpop.f32.mrb[18].mxu0  ;;  %3140 = vmatprep.subr.bf16.mxu1 %v1039_v33 }
 0x201   :  { %v824_v45 = vmax.f32 %v822_v41, %v823_v0  ;;  %v4184_v46 = vpop.f32.mrb[19].mxu0  ;;  %v4203_v21 = vadd.f32 %v684_v53, %v4126_v31 }
 0x203   :  { %v825_v54 = vrot.slane %v824_v45, 2  ;;  %3141 = vmatpush3.bf16.msra.mxu1 %v1039_v33 }
 0x205   :  { %v826_v26 = vmax.f32 %v824_v45, %v825_v54 }
 0x206   :  { %v690_v43 = vpop.f32.mrb[20].mxu0  ;;  %v3128_v55 = vpop.f32.mrb[8].mxu1 }
 0x207   :  { %v827_v56 = vrot.slane %v826_v26, 1  ;;  %v4190_v11 = vadd.f32 %v690_v43, %v4126_v31  ;;  %v4192_v37 = vpop.f32.mrb[21].mxu0  ;;  %v785_v62 = vpop.f32.mrb[9].mxu1  ;;  %v794_v61 = vadd.f32 %v3128_v55, %v4131_v52 }
 0x208   :  { %v694_v63 = vpop.f32.mrb[22].mxu0  ;;  %v3129_v7 = vpop.f32.mrb[10].mxu1  ;;  %v786_v16 = vadd.f32 %v785_v62, %v4131_v52 }
 0x209   :  { %v828_v10 = vmax.f32 %v826_v26, %v827_v56  ;;  %v829_v12 = vmax.f32 %v4187_v58, %v4190_v11  ;;  %v4197_v14 = vadd.f32 %v694_v63, %v4126_v31  ;;  %v797_v15 = vadd.f32 %v3129_v7, %v4131_v52  ;;  %v4200_v17 = vpop.f32.mrb[23].mxu0  ;;  %v788_v19 = vpop.f32.mrb[11].mxu1 }
 0x20a   :  { %v789_v40 = vadd.f32 %v788_v19, %v4131_v52 }
 0x20b   :  { %v844_v6 = vsub.f32 %v4137_v30, %v828_v10  ;;  %v845_v13 = vsub.f32 %v4148_v2, %v828_v10  ;;  %v846_v25 = vsub.f32 %v4158_v22, %v828_v10  ;;  %v847_v27 = vsub.f32 %v4164_v59, %v828_v10 }
 0x20c   :  { %v848_v20 = vsub.f32 %v4170_v23, %v828_v10  ;;  %v849_v3 = vsub.f32 %v675_v18, %v828_v10  ;;  %v830_v5 = vmax.f32 %v4203_v21, %v4197_v14  ;;  %v1041_v47 = vpack.c.bf16 %v797_v15, %v794_v61 }
 0x20d   :  { %v862_v32 = vmul.f32 1.442695, %v844_v6  ;;  %v864_v34 = vmul.f32 1.442695, %v845_v13  ;;  %v866_v36 = vmul.f32 1.442695, %v846_v25  ;;  %v1040_v49 = vpack.c.bf16 %v789_v40, %v786_v16 }
 0x20e   :  { %v868_v33 = vmul.f32 1.442695, %v847_v27  ;;  %v842_v30 = vsub.f32 %v4134_v57, %v828_v10  ;;  %v870_v2 = vmul.f32 1.442695, %v848_v20  ;;  %v700_v39 = vpop.f32.mrb[24].mxu0  ;;  %v843_v22 = vsub.f32 %v4142_v1, %v828_v10 }
 0x20f   :  { %3428 = vpow2.f32 %v862_v32  ;;  %3158 = vmatprep.subr.bf16.mxu0 %v1040_v49  ;;  %v872_v59 = vmul.f32 1.442695, %v849_v3  ;;  %v4218_v23 = vadd.f32 %v700_v39, %v4126_v31  ;;  %v4220_v18 = vpop.f32.mrb[25].mxu0 }
 0x210   :  { %3430 = vpow2.f32 %v864_v34  ;;  %3159 = vmatpush3.bf16.msra.mxu0 %v1040_v49  ;;  %v704_v41 = vpop.f32.mrb[26].mxu0  ;;  %v858_v42 = vmul.f32 1.442695, %v842_v30  ;;  %v860_v1 = vmul.f32 1.442695, %v843_v22 }
 0x211   :  { %3432 = vpow2.f32 %v866_v36  ;;  %3160 = vmatprep.subr.bf16.mxu0 %v1041_v47  ;;  %v831_v57 = vmax.f32 %v829_v12, %v4218_v23  ;;  %v4224_v0 = vadd.f32 %v704_v41, %v4126_v31  ;;  %v4226_v53 = vpop.f32.mrb[27].mxu0 }
 0x212   :  { %3434 = vpow2.f32 %v868_v33 }
 0x213   :  { %3436 = vpow2.f32 %v870_v2  ;;  %v832_v45 = vmax.f32 %v830_v5, %v4224_v0 }
 0x214   :  { %3438 = vpow2.f32 %v872_v59  ;;  %3161 = vmatpush3.bf16.msra.mxu0 %v1041_v47 }
 0x215   :  { %3440 = vpow2.f32 %v858_v42 }
 0x216   :  { %v710_v54 = vpop.f32.mrb[28].mxu0  ;;  %v3132_v26 = vpop.f32.mrb[12].mxu1  ;;  %3442 = vpow2.f32 %v860_v1 }
 0x217   :  { %v711_v43 = vadd.f32 %v710_v54, %v4126_v31  ;;  %v4230_v55 = vpop.f32.mrb[29].mxu0  ;;  %v801_v56 = vpop.f32.mrb[13].mxu1  ;;  %v810_v12 = vadd.f32 %v3132_v26, %v4131_v52 }
 0x218   :  { %v714_v62 = vpop.f32.mrb[30].mxu0  ;;  %v3133_v63 = vpop.f32.mrb[14].mxu1  ;;  %v802_v6 = vadd.f32 %v801_v56, %v4131_v52 }
 0x219   :  { %v3429_v7 = vpop.eup %3428  ;;  %v833_v10 = vmax.f32 %v831_v57, %v711_v43  ;;  %v715_v15 = vadd.f32 %v714_v62, %v4126_v31  ;;  %v813_v19 = vadd.f32 %v3133_v63, %v4131_v52  ;;  %v4235_v61 = vpop.f32.mrb[31].mxu0 }
 0x21a   :  { %v804_v16 = vpop.f32.mrb[15].mxu1  ;;  %v3431_v40 = vpop.eup %3430 }
 0x21b   :  { %v805_v13 = vadd.f32 %v804_v16, %v4131_v52  ;;  %v3433_v25 = vpop.eup %3432  ;;  %v834_v27 = vmax.f32 %v832_v45, %v715_v15  ;;  %v1043_v20 = vpack.c.bf16 %v813_v19, %v810_v12  ;;  %v1029_v3 = vpack.c.bf16 %v3431_v40, %v3429_v7 }
 0x21c   :  { %v3435_v5 = vpop.eup %3434 }
 0x21d   :  { %v1042_v47 = vpack.c.bf16 %v805_v13, %v802_v6  ;;  %v3437_v32 = vpop.eup %3436  ;;  %v835_v34 = vmax.f32 %v833_v10, %v834_v27  ;;  %v1030_v36 = vpack.c.bf16 %v3435_v5, %v3433_v25 }
 0x21e   :  { %v3439_v31 = vpop.eup %3438 }
 0x21f   :  { %3162 = vmatprep.subr.bf16.mxu0 %v1042_v47  ;;  %v3441_v49 = vpop.eup %3440  ;;  %v836_v33 = vrot.slane %v835_v34, 4  ;;  %v1031_v30 = vpack.c.bf16 %v3439_v31, %v3437_v32 }
 0x220   :  { %3163 = vmatpush3.bf16.msra.mxu0 %v1042_v47  ;;  %v3443_v2 = vpop.eup %3442 }
 0x221   :  { %3164 = vmatprep.subr.bf16.mxu0 %v1043_v20  ;;  %v837_v39 = vmax.f32 %v835_v34, %v836_v33  ;;  %v1028_v22 = vpack.c.bf16 %v3443_v2, %v3441_v49  ;;  %v890_v52 = vadd.f32 %v3443_v2, %v3441_v49 }
 0x223   :  { %v838_v59 = vrot.slane %v837_v39, 2  ;;  %1044 = vxpose.xlu0.c.b16.start [1/4] (short) %v1028_v22, 128  ;;  %v891_v41 = vadd.f32 %v3429_v7, %v890_v52 }
 0x224   :  { %3165 = vmatpush3.bf16.msra.mxu0 %v1043_v20 }
 0x225   :  { %v839_v42 = vmax.f32 %v837_v39, %v838_v59  ;;  %v892_v57 = vadd.f32 %v3431_v40, %v891_v41 }
 0x227   :  { %v840_v1 = vrot.slane %v839_v42, 1  ;;  %v893_v45 = vadd.f32 %v3433_v25, %v892_v57  ;;  %1045 = vxpose.xlu0.c.b16.cont [2/4] (short) %v1029_v3, 128 }
 0x229   :  { %v841_v54 = vmax.f32 %v839_v42, %v840_v1  ;;  %v894_v26 = vadd.f32 %v3435_v5, %v893_v45 }
 0x22b   :  { %v852_v56 = vsub.f32 %v4190_v11, %v841_v54  ;;  %v853_v62 = vsub.f32 %v4197_v14, %v841_v54  ;;  %v854_v63 = vsub.f32 %v4218_v23, %v841_v54  ;;  %v855_v10 = vsub.f32 %v4224_v0, %v841_v54  ;;  %1046 = vxpose.xlu0.c.b16.cont [3/4] (short) %v1030_v36, 128 }
 0x22c   :  { %v856_v12 = vsub.f32 %v711_v43, %v841_v54  ;;  %v857_v19 = vsub.f32 %v715_v15, %v841_v54  ;;  %v895_v7 = vadd.f32 %v3437_v32, %v894_v26  ;;  %v850_v16 = vsub.f32 %v4187_v58, %v841_v54 }
 0x22d   :  { %v878_v40 = vmul.f32 1.442695, %v852_v56  ;;  %v880_v6 = vmul.f32 1.442695, %v853_v62  ;;  %v882_v13 = vmul.f32 1.442695, %v854_v63  ;;  %v851_v25 = vsub.f32 %v4203_v21, %v841_v54 }
 0x22e   :  { %v884_v27 = vmul.f32 1.442695, %v855_v10  ;;  %v4245_v20 = vadd.f32 %v3439_v31, %v895_v7  ;;  %v886_v11 = vmul.f32 1.442695, %v856_v12  ;;  %v888_v14 = vmul.f32 1.442695, %v857_v19 }
 0x22f   :  { %3444 = vpow2.f32 %v878_v40  ;;  %1047 = vxpose.xlu0.c.b16.end [4/4] (short) %v1031_v30, 128  ;;  %v874_v23 = vmul.f32 1.442695, %v850_v16  ;;  %v876_v0 = vmul.f32 1.442695, %v851_v25  ;;  %v469_v30 = vsub.s32 1, %v4110_v50 }
 0x230   :  { %3446 = vpow2.f32 %v880_v6 }
 0x231   :  { %3448 = vpow2.f32 %v882_v13  ;;  %v470_v22 = vrot.slane %v4118_v48, %v469_v30  ;;  %v897_v13 = vrot.slane %v4245_v20, 4 }
 0x232   :  { %3450 = vpow2.f32 %v884_v27 }
 0x233   :  { %3452 = vpow2.f32 %v886_v11  ;;  %v4252_v41 = vadd.f32 %v4113_v51, %v470_v22  ;;  %v4258_v1 = vadd.f32 %v4139_v35, %v470_v22  ;;  %v4262_v48 = vadd.f32 %v4160_v38, %v470_v22 }
 0x234   :  { %3454 = vpow2.f32 %v888_v14  ;;  %v4266_v51 = vadd.f32 %v4172_v24, %v470_v22  ;;  %v4270_v45 = vadd.f32 %v4182_v44, %v470_v22  ;;  %v4274_v35 = vadd.f32 %v4192_v37, %v470_v22 }
 0x235   :  { %3456 = vpow2.f32 %v874_v23  ;;  %v4278_v38 = vadd.f32 %v4220_v18, %v470_v22  ;;  %v4282_v24 = vadd.f32 %v4230_v55, %v470_v22  ;;  %v4286_v44 = vadd.f32 %v4120_v9, %v470_v22 }
 0x236   :  { %3458 = vpow2.f32 %v876_v0  ;;  %v4290_v37 = vadd.f32 %v4151_v8, %v470_v22  ;;  %v4294_v18 = vadd.f32 %v4166_v4, %v470_v22  ;;  %v4298_v55 = vadd.f32 %v4178_v28, %v470_v22 }
 0x237   :  { %v4302_v9 = vadd.f32 %v4184_v46, %v470_v22  ;;  %v4306_v8 = vadd.f32 %v4200_v17, %v470_v22  ;;  %v4310_v4 = vadd.f32 %v4226_v53, %v470_v22  ;;  %v4314_v28 = vadd.f32 %v4235_v61, %v470_v22 }
 0x238   :  { %v898_v25 = vadd.f32 %v897_v13, %v4245_v20 }
 0x239   :  { %v3445_v58 = vpop.eup %3444 }
 0x23a   :  { %v3447_v43 = vpop.eup %3446  ;;  %v899_v27 = vrot.slane %v898_v25, 2 }
 0x23b   :  { %v3449_v15 = vpop.eup %3448  ;;  %v1033_v21 = vpack.c.bf16 %v3447_v43, %v3445_v58 }
 0x23c   :  { %v3451_v3 = vpop.eup %3450  ;;  %v900_v11 = vadd.f32 %v899_v27, %v898_v25 }
 0x23d   :  { %v3453_v5 = vpop.eup %3452  ;;  %v1034_v47 = vpack.c.bf16 %v3451_v3, %v3449_v15 }
 0x23e   :  { %v3455_v32 = vpop.eup %3454  ;;  %v901_v14 = vrot.slane %v900_v11, 1 }
 0x23f   :  { %v3457_v34 = vpop.eup %3456  ;;  %v1035_v36 = vpack.c.bf16 %v3455_v32, %v3453_v5 }
 0x240   :  { %v3459_v31 = vpop.eup %3458 }
 0x241   :  { %v1032_v49 = vpack.c.bf16 %v3459_v31, %v3457_v34  ;;  %v903_v33 = vadd.f32 %v3459_v31, %v3457_v34 }
 0x243   :  { %1182 = vxpose.xlu1.c.b16.start [1/4] (short) %v1032_v49, 128  ;;  %v904_v2 = vadd.f32 %v3445_v58, %v903_v33 }
 0x245   :  { %v905_v39 = vadd.f32 %v3447_v43, %v904_v2 }
 0x247   :  { %v906_v52 = vadd.f32 %v3449_v15, %v905_v39  ;;  %1183 = vxpose.xlu1.c.b16.cont [2/4] (short) %v1033_v21, 128  ;;  %v902_v15 = vadd.f32 %v901_v14, %v900_v11 }
 0x249   :  { %v907_v59 = vadd.f32 %v3451_v3, %v906_v52 }
 0x24b   :  { %v908_v42 = vadd.f32 %v3453_v5, %v907_v59  ;;  %1184 = vxpose.xlu1.c.b16.cont [3/4] (short) %v1034_v47, 128 }
 0x24c   :  { %916 = vmax.xlane.f32.xlu0 %v4252_v41 }
 0x24d   :  { %v4255_v57 = vadd.f32 %v3455_v32, %v908_v42 }
 0x24f   :  { %1185 = vxpose.xlu1.c.b16.end [4/4] (short) %v1035_v36, 128  ;;  %v910_v23 = vrot.slane %v4255_v57, 4 }
 0x250   :  { %920 = vmax.xlane.f32.xlu0 %v4258_v1 }
 0x251   :  { %v911_v21 = vadd.f32 %v910_v23, %v4255_v57 }
 0x253   :  { %v912_v32 = vrot.slane %v911_v21, 2 }
 0x254   :  { %924 = vmax.xlane.f32.xlu0 %v4262_v48 }
 0x255   :  { %v913_v31 = vadd.f32 %v912_v32, %v911_v21 }
 0x257   :  { %v914_v22 = vrot.slane %v913_v31, 1 }
 0x258   :  { %928 = vmax.xlane.f32.xlu0 %v4266_v51 }
 0x25c   :  { %932 = vmax.xlane.f32.xlu0 %v4270_v45 }
 0x260   :  { %936 = vmax.xlane.f32.xlu0 %v4274_v35 }
 0x264   :  { %940 = vmax.xlane.f32.xlu0 %v4278_v38 }
 0x268   :  { %944 = vmax.xlane.f32.xlu0 %v4282_v24 }
 0x26c   :  { %918 = vmax.xlane.f32.xlu1 %v4286_v44 }
 0x270   :  { %922 = vmax.xlane.f32.xlu1 %v4290_v37 }
 0x274   :  { %926 = vmax.xlane.f32.xlu1 %v4294_v18 }
 0x278   :  { %930 = vmax.xlane.f32.xlu1 %v4298_v55 }
 0x27c   :  { %934 = vmax.xlane.f32.xlu1 %v4302_v9 }
 0x280   :  { %938 = vmax.xlane.f32.xlu1 %v4306_v8 }
 0x284   :  { %942 = vmax.xlane.f32.xlu1 %v4310_v4 }
 0x288   :  { %946 = vmax.xlane.f32.xlu1 %v4314_v28 }
 0x289   :  { %v1052_v46 = vpop.trf.xlu0 }
 0x28a   :  { %3142 = vmatprep.mubr.msk.bf16.mxu1 %vm1060_vm0, %v1052_v46 }
 0x28d   :  { %v1053_v54 = vpop.trf.xlu0 }
 0x28e   :  { %3143 = vmatmul.mubr.msk.bf16.vlgmr.msra.gmra.mrb[16].mxu1 %vm1060_vm0, %v1053_v54 }
 0x291   :  { %v1054_v17 = vpop.trf.xlu0 }
 0x292   :  { %3146 = vmatprep.mubr.msk.bf16.mxu1 %vm1060_vm0, %v1054_v17 }
 0x295   :  { %v1055_v26 = vpop.trf.xlu0 }
 0x296   :  { %3147 = vmatmul.mubr.msk.bf16.gmra.mrb[20].mxu1 %vm1060_vm0, %v1055_v26 }
 0x299   :  { %v1056_v53 = vpop.trf.xlu0 }
 0x29a   :  { %3150 = vmatprep.mubr.msk.bf16.mxu1 %vm1060_vm0, %v1056_v53 }
 0x29d   :  { %v1057_v61 = vpop.trf.xlu0 }
 0x29e   :  { %3151 = vmatmul.mubr.msk.bf16.gmra.mrb[24].mxu1 %vm1060_vm0, %v1057_v61 }
 0x2a1   :  { %v1058_v56 = vpop.trf.xlu0 }
 0x2a2   :  { %3154 = vmatprep.mubr.msk.bf16.mxu1 %vm1060_vm0, %v1058_v56 }
 0x2a5   :  { %v1059_v62 = vpop.trf.xlu0 }
 0x2a6   :  { %3155 = vmatmul.mubr.msk.bf16.gmra.mrb[28].mxu1 %vm1060_vm0, %v1059_v62 }
 0x2a9   :  { %v1190_v63 = vpop.trf.xlu1 }
 0x2aa   :  { %3166 = vmatprep.mubr.msk.bf16.mxu0 %vm1060_vm0, %v1190_v63 }
 0x2ad   :  { %v1191_v10 = vpop.trf.xlu1 }
 0x2ae   :  { %3167 = vmatmul.mubr.msk.bf16.vlgmr.msra.gmra.mrb[32].mxu0 %vm1060_vm0, %v1191_v10 }
 0x2b1   :  { %v1192_v12 = vpop.trf.xlu1 }
 0x2b2   :  { %3170 = vmatprep.mubr.msk.bf16.mxu0 %vm1060_vm0, %v1192_v12 }
 0x2b5   :  { %v1193_v19 = vpop.trf.xlu1 }
 0x2b6   :  { %3171 = vmatmul.mubr.msk.bf16.gmra.mrb[36].mxu0 %vm1060_vm0, %v1193_v19 }
 0x2b9   :  { %v1194_v7 = vpop.trf.xlu1 }
 0x2ba   :  { %3174 = vmatprep.mubr.msk.bf16.mxu0 %vm1060_vm0, %v1194_v7 }
 0x2bd   :  { %v1195_v16 = vpop.trf.xlu1 }
 0x2be   :  { %3175 = vmatmul.mubr.msk.bf16.gmra.mrb[40].mxu0 %vm1060_vm0, %v1195_v16 }
 0x2c1   :  { %v1196_v40 = vpop.trf.xlu1 }
 0x2c2   :  { %3178 = vmatprep.mubr.msk.bf16.mxu0 %vm1060_vm0, %v1196_v40 }
 0x2c5   :  { %v1197_v6 = vpop.trf.xlu1 }
 0x2c6   :  { %3179 = vmatmul.mubr.msk.bf16.gmra.mrb[44].mxu0 %vm1060_vm0, %v1197_v6 }
 0x2d9   :  { %v917_v0 = vpop.xlane.xlu0 %916 }
 0x2da   :  { %v948_v58 = vsub.f32 %v4252_v41, %v917_v0 }
 0x2dc   :  { %v964_v43 = vmul.f32 1.442695, %v948_v58 }
 0x2dd   :  { %v921_v3 = vpop.xlane.xlu0 %920 }
 0x2de   :  { %3460 = vpow2.f32 %v964_v43  ;;  %v950_v5 = vsub.f32 %v4258_v1, %v921_v3  ;;  %v915_v1 = vadd.f32 %v914_v22, %v913_v31 }
 0x2df   :  { %3462 = vrcp.f32 %v902_v15 }
 0x2e0   :  { %v968_v47 = vmul.f32 1.442695, %v950_v5 }
 0x2e1   :  { %v925_v20 = vpop.xlane.xlu0 %924 }
 0x2e2   :  { %3464 = vpow2.f32 %v968_v47  ;;  %v952_v34 = vsub.f32 %v4262_v48, %v925_v20 }
 0x2e4   :  { %v972_v36 = vmul.f32 1.442695, %v952_v34 }
 0x2e5   :  { %v929_v49 = vpop.xlane.xlu0 %928 }
 0x2e6   :  { %3466 = vpow2.f32 %v972_v36  ;;  %v954_v33 = vsub.f32 %v4266_v51, %v929_v49 }
 0x2e8   :  { %v4341_v2 = vpop.eup %3460  ;;  %v976_v39 = vmul.f32 1.442695, %v954_v33 }
 0x2e9   :  { %996 = vadd.xlane.f32.xlu0 %v4341_v2  ;;  %v933_v52 = vpop.xlane.xlu0 %932  ;;  %v4345_v41 = vpop.eup %3462 }
 0x2ea   :  { %3468 = vpow2.f32 %v976_v39  ;;  %v956_v59 = vsub.f32 %v4270_v45, %v933_v52  ;;  %v1321_v5 = vmul.f32 %v4345_v41, %v4341_v2 }
 0x2ec   :  { %v3465_v42 = vpop.eup %3464  ;;  %v980_v57 = vmul.f32 1.442695, %v956_v59 }
 0x2ed   :  { %v4348_v48 = vmul.f32 %v3465_v42, %v4345_v41  ;;  %1000 = vadd.xlane.f32.xlu0 %v3465_v42  ;;  %v937_v51 = vpop.xlane.xlu0 %936 }
 0x2ee   :  { %3470 = vpow2.f32 %v980_v57  ;;  %v958_v46 = vsub.f32 %v4274_v35, %v937_v51 }
 0x2ef   :  { %3472 = vrcp.f32 %v915_v1 }
 0x2f0   :  { %v3467_v54 = vpop.eup %3466  ;;  %v984_v17 = vmul.f32 1.442695, %v958_v46 }
 0x2f1   :  { %1004 = vadd.xlane.f32.xlu0 %v3467_v54  ;;  %v941_v26 = vpop.xlane.xlu0 %940  ;;  %v4352_v45 = vmul.f32 %v3467_v54, %v4345_v41 }
 0x2f2   :  { %3474 = vpow2.f32 %v984_v17  ;;  %v960_v53 = vsub.f32 %v4278_v38, %v941_v26 }
 0x2f4   :  { %v3469_v61 = vpop.eup %3468  ;;  %v988_v56 = vmul.f32 1.442695, %v960_v53 }
 0x2f5   :  { %1008 = vadd.xlane.f32.xlu0 %v3469_v61  ;;  %v945_v62 = vpop.xlane.xlu0 %944  ;;  %v4356_v63 = vmul.f32 %v3469_v61, %v4345_v41 }
 0x2f6   :  { %3476 = vpow2.f32 %v988_v56  ;;  %v962_v35 = vsub.f32 %v4282_v24, %v945_v62 }
 0x2f8   :  { %v4359_v10 = vpop.eup %3470  ;;  %v992_v12 = vmul.f32 1.442695, %v962_v35 }
 0x2f9   :  { %v919_v19 = vpop.xlane.xlu1 %918  ;;  %1012 = vadd.xlane.f32.xlu0 %v4359_v10  ;;  %v4363_v38 = vpop.eup %3472 }
 0x2fa   :  { %3478 = vpow2.f32 %v992_v12  ;;  %v949_v7 = vsub.f32 %v4286_v44, %v919_v19 }
 0x2fc   :  { %v3475_v16 = vpop.eup %3474  ;;  %v966_v40 = vmul.f32 1.442695, %v949_v7 }
 0x2fd   :  { %v4366_v6 = vmul.f32 %v3475_v16, %v4363_v38  ;;  %v923_v13 = vpop.xlane.xlu1 %922  ;;  %1016 = vadd.xlane.f32.xlu0 %v3475_v16 }
 0x2fe   :  { %3480 = vpow2.f32 %v966_v40  ;;  %v951_v24 = vsub.f32 %v4290_v37, %v923_v13 }
 0x300   :  { %v3477_v25 = vpop.eup %3476  ;;  %v970_v27 = vmul.f32 1.442695, %v951_v24 }
 0x301   :  { %v927_v11 = vpop.xlane.xlu1 %926  ;;  %1020 = vadd.xlane.f32.xlu0 %v3477_v25  ;;  %v4370_v14 = vmul.f32 %v3477_v25, %v4363_v38 }
 0x302   :  { %3482 = vpow2.f32 %v970_v27  ;;  %v953_v44 = vsub.f32 %v4294_v18, %v927_v11 }
 0x304   :  { %v3479_v23 = vpop.eup %3478  ;;  %v974_v0 = vmul.f32 1.442695, %v953_v44 }
 0x305   :  { %v931_v58 = vpop.xlane.xlu1 %930  ;;  %1024 = vadd.xlane.f32.xlu0 %v3479_v23  ;;  %v4374_v43 = vmul.f32 %v3479_v23, %v4363_v38 }
 0x306   :  { %3484 = vpow2.f32 %v974_v0  ;;  %v955_v37 = vsub.f32 %v4298_v55, %v931_v58 }
 0x308   :  { %v3481_v15 = vpop.eup %3480  ;;  %v978_v21 = vmul.f32 1.442695, %v955_v37 }
 0x309   :  { %998 = vadd.xlane.f32.xlu1 %v3481_v15  ;;  %v935_v3 = vpop.xlane.xlu1 %934  ;;  %v1322_v47 = vmul.f32 %v3481_v15, %v4345_v41 }
 0x30a   :  { %3486 = vpow2.f32 %v978_v21  ;;  %v957_v18 = vsub.f32 %v4302_v9, %v935_v3 }
 0x30b   :  { %v1337_v32 = vpack.c.bf16 %v1322_v47, %v1321_v5 }
 0x30c   :  { %v3483_v20 = vpop.eup %3482  ;;  %v982_v34 = vmul.f32 1.442695, %v957_v18 }
 0x30d   :  { %v4382_v36 = vmul.f32 %v3483_v20, %v4345_v41  ;;  %1002 = vadd.xlane.f32.xlu1 %v3483_v20  ;;  %v939_v55 = vpop.xlane.xlu1 %938  ;;  %3198 = vmatprep.mubr.bf16.mxu1 %v1337_v32 }
 0x30e   :  { %3488 = vpow2.f32 %v982_v34  ;;  %v959_v31 = vsub.f32 %v4306_v8, %v939_v55 }
 0x30f   :  { %v1338_v49 = vpack.c.bf16 %v4382_v36, %v4348_v48  ;;  %v3375_v48 = vld [vmem:[#allocation8 + $0x18] sm:$0xff]  }
 0x310   :  { %v3485_v33 = vpop.eup %3484  ;;  %v986_v2 = vmul.f32 1.442695, %v959_v31  ;;  %v3372_v31 = vld [vmem:[#allocation8] sm:$0xff]  }
 0x311   :  { %1006 = vadd.xlane.f32.xlu1 %v3485_v33  ;;  %v943_v39 = vpop.xlane.xlu1 %942  ;;  %v4388_v9 = vmul.f32 %v3485_v33, %v4345_v41 }
 0x312   :  { %3490 = vpow2.f32 %v986_v2  ;;  %v961_v22 = vsub.f32 %v4310_v4, %v943_v39  ;;  %v1329_v4 = vmul.f32 %v4363_v38, %v4359_v10 }
 0x313   :  { %v1339_v52 = vpack.c.bf16 %v4388_v9, %v4352_v45 }
 0x314   :  { %v3487_v59 = vpop.eup %3486  ;;  %v990_v42 = vmul.f32 1.442695, %v961_v22 }
 0x315   :  { %1010 = vadd.xlane.f32.xlu1 %v3487_v59  ;;  %v947_v8 = vpop.xlane.xlu1 %946  ;;  %v4394_v57 = vmul.f32 %v3487_v59, %v4345_v41 }
 0x316   :  { %3492 = vpow2.f32 %v990_v42  ;;  %v963_v1 = vsub.f32 %v4314_v28, %v947_v8  ;;  %v3373_v42 = vld [vmem:[#allocation8 + $0x8] sm:$0xff]  }
 0x317   :  { %v1340_v51 = vpack.c.bf16 %v4394_v57, %v4356_v63 }
 0x318   :  { %v3489_v46 = vpop.eup %3488  ;;  %v994_v54 = vmul.f32 1.442695, %v963_v1 }
 0x319   :  { %1014 = vadd.xlane.f32.xlu1 %v3489_v46  ;;  %v1330_v17 = vmul.f32 %v3489_v46, %v4363_v38  ;;  %v3374_v46 = vld [vmem:[#allocation8 + $0x10] sm:$0xff]  }
 0x31a   :  { %3494 = vpow2.f32 %v994_v54 }
 0x31b   :  { %v1341_v26 = vpack.c.bf16 %v1330_v17, %v1329_v4 }
 0x31c   :  { %v3491_v53 = vpop.eup %3490 }
 0x31d   :  { %v4403_v41 = vmul.f32 %v3491_v53, %v4363_v38  ;;  %1018 = vadd.xlane.f32.xlu1 %v3491_v53  ;;  %3222 = vmatprep.mubr.bf16.mxu0 %v1341_v26 }
 0x31f   :  { %v1342_v28 = vpack.c.bf16 %v4403_v41, %v4366_v6 }
 0x320   :  { %v3493_v61 = vpop.eup %3492 }
 0x321   :  { %1022 = vadd.xlane.f32.xlu1 %v3493_v61  ;;  %v4408_v56 = vmul.f32 %v3493_v61, %v4363_v38 }
 0x323   :  { %v1343_v62 = vpack.c.bf16 %v4408_v56, %v4370_v14 }
 0x324   :  { %v3495_v35 = vpop.eup %3494 }
 0x325   :  { %1026 = vadd.xlane.f32.xlu1 %v3495_v35  ;;  %v4413_v10 = vmul.f32 %v3495_v35, %v4363_v38  ;;  %v3377_v35 = vld [vmem:[#allocation8 + $0x28] sm:$0xff]  }
 0x327   :  { %v1344_v12 = vpack.c.bf16 %v4413_v10, %v4374_v43 }
 0x361   :  { %v3144_v19 = vpop.f32.mrb[16].mxu1 }
 0x362   :  { %v1119_v7 = vpop.f32.mrb[17].mxu1 }
 0x363   :  { %v3145_v16 = vpop.f32.mrb[18].mxu1 }
 0x364   :  { %v1346_v40 = vpack.c.bf16 %v3145_v16, %v3144_v19  ;;  %v1122_v13 = vpop.f32.mrb[19].mxu1 }
 0x365   :  { %v1345_v24 = vpack.c.bf16 %v1122_v13, %v1119_v7  ;;  %v3379_v13 = vld [vmem:[#allocation8 + $0x38] sm:$0xff]  }
 0x367   :  { %3182 = vmatprep.subr.bf16.mxu1 %v1345_v24 }
 0x368   :  { %3183 = vmatpush3.bf16.msra.mxu1 %v1345_v24 }
 0x369   :  { %v3148_v25 = vpop.f32.mrb[20].mxu1  ;;  %3184 = vmatprep.subr.bf16.mxu1 %v1346_v40 }
 0x36a   :  { %v1135_v27 = vpop.f32.mrb[21].mxu1 }
 0x36b   :  { %v3149_v11 = vpop.f32.mrb[22].mxu1 }
 0x36c   :  { %v1348_v44 = vpack.c.bf16 %v3149_v11, %v3148_v25  ;;  %v1138_v23 = vpop.f32.mrb[23].mxu1  ;;  %3185 = vmatpush3.bf16.msra.mxu1 %v1346_v40  ;;  %v3378_v40 = vld [vmem:[#allocation8 + $0x30] sm:$0xff]  }
 0x36d   :  { %v1347_v38 = vpack.c.bf16 %v1138_v23, %v1135_v27 }
 0x36f   :  { %3186 = vmatprep.subr.bf16.mxu1 %v1347_v38 }
 0x370   :  { %3187 = vmatpush3.bf16.msra.mxu1 %v1347_v38 }
 0x371   :  { %v3152_v0 = vpop.f32.mrb[24].mxu1  ;;  %3188 = vmatprep.subr.bf16.mxu1 %v1348_v44 }
 0x372   :  { %v1151_v58 = vpop.f32.mrb[25].mxu1 }
 0x373   :  { %v3153_v37 = vpop.f32.mrb[26].mxu1 }
 0x374   :  { %v1350_v15 = vpack.c.bf16 %v3153_v37, %v3152_v0  ;;  %v1154_v21 = vpop.f32.mrb[27].mxu1  ;;  %3189 = vmatpush3.bf16.msra.mxu1 %v1348_v44 }
 0x375   :  { %v1349_v3 = vpack.c.bf16 %v1154_v21, %v1151_v58 }
 0x376   :  { %v997_v24 = vpop.xlane.xlu0 %996 }
 0x377   :  { %3190 = vmatprep.subr.bf16.mxu1 %v1349_v3  ;;  %3496 = vrcp.f32 %v997_v24 }
 0x378   :  { %3191 = vmatpush3.bf16.msra.mxu1 %v1349_v3 }
 0x379   :  { %v3156_v5 = vpop.f32.mrb[28].mxu1  ;;  %3192 = vmatprep.subr.bf16.mxu1 %v1350_v15 }
 0x37a   :  { %v1167_v47 = vpop.f32.mrb[29].mxu1  ;;  %v1001_v27 = vpop.xlane.xlu0 %1000 }
 0x37b   :  { %v3157_v18 = vpop.f32.mrb[30].mxu1  ;;  %3498 = vrcp.f32 %v1001_v27 }
 0x37c   :  { %v1352_v32 = vpack.c.bf16 %v3157_v18, %v3156_v5  ;;  %v1170_v20 = vpop.f32.mrb[31].mxu1  ;;  %3193 = vmatpush3.bf16.msra.mxu1 %v1350_v15 }
 0x37d   :  { %v1351_v34 = vpack.c.bf16 %v1170_v20, %v1167_v47 }
 0x37e   :  { %v1005_v6 = vpop.xlane.xlu0 %1004 }
 0x37f   :  { %3194 = vmatprep.subr.bf16.mxu1 %v1351_v34 }
 0x380   :  { %3195 = vmatpush3.bf16.msra.mxu1 %v1351_v34 }
 0x381   :  { %v3168_v55 = vpop.f32.mrb[32].mxu0  ;;  %3196 = vmatprep.subr.bf16.mxu1 %v1352_v32  ;;  %v3497_v43 = vpop.eup %3496 }
 0x382   :  { %v1256_v33 = vpop.f32.mrb[33].mxu0  ;;  %v1009_v14 = vpop.xlane.xlu0 %1008 }
 0x383   :  { %v3169_v2 = vpop.f32.mrb[34].mxu0 }
 0x384   :  { %v1354_v39 = vpack.c.bf16 %v3169_v2, %v3168_v55  ;;  %v1259_v22 = vpop.f32.mrb[35].mxu0  ;;  %3197 = vmatpush3.bf16.msra.mxu1 %v1352_v32 }
 0x385   :  { %v1353_v59 = vpack.c.bf16 %v1259_v22, %v1256_v33  ;;  %3230 = vmatprep.subr.bf16.mxu1 %v3372_v31 }
 0x386   :  { %v1013_v34 = vpop.xlane.xlu0 %1012 }
 0x387   :  { %3199 = vmatmul.mubr.bf16.vlgmr.msra.gmra.mrb[32].mxu1 %v1338_v49  ;;  %3206 = vmatprep.subr.bf16.mxu0 %v1353_v59  ;;  %v3376_v49 = vld [vmem:[#allocation8 + $0x20] sm:$0xff]  }
 0x388   :  { %3202 = vmatprep.mubr.bf16.mxu1 %v1339_v52  ;;  %3207 = vmatpush3.bf16.msra.mxu0 %v1353_v59 }
 0x389   :  { %v3172_v8 = vpop.f32.mrb[36].mxu0  ;;  %3208 = vmatprep.subr.bf16.mxu0 %v1354_v39  ;;  %3231 = vmatpush3.bf16.msra.mxu1 %v3372_v31 }
 0x38a   :  { %v1272_v1 = vpop.f32.mrb[37].mxu0  ;;  %3232 = vmatprep.subr.bf16.mxu1 %v3373_v42 }
 0x38b   :  { %v3173_v54 = vpop.f32.mrb[38].mxu0 }
 0x38c   :  { %v1356_v4 = vpack.c.bf16 %v3173_v54, %v3172_v8  ;;  %v1275_v17 = vpop.f32.mrb[39].mxu0  ;;  %3209 = vmatpush3.bf16.msra.mxu0 %v1354_v39 }
 0x38d   :  { %v1355_v26 = vpack.c.bf16 %v1275_v17, %v1272_v1  ;;  %3233 = vmatpush3.bf16.msra.mxu1 %v3373_v42 }
 0x38e   :  { %3234 = vmatprep.subr.bf16.mxu1 %v3374_v46 }
 0x38f   :  { %3203 = vmatmul.mubr.bf16.gmra.mrb[36].mxu1 %v1340_v51  ;;  %3210 = vmatprep.subr.bf16.mxu0 %v1355_v26 }
 0x390   :  { %3211 = vmatpush3.bf16.msra.mxu0 %v1355_v26 }
 0x391   :  { %v3176_v45 = vpop.f32.mrb[40].mxu0  ;;  %3212 = vmatprep.subr.bf16.mxu0 %v1356_v4  ;;  %3235 = vmatpush3.bf16.msra.mxu1 %v3374_v46  ;;  %v1017_v46 = vpop.xlane.xlu0 %1016 }
 0x392   :  { %v1288_v36 = vpop.f32.mrb[41].mxu0  ;;  %3236 = vmatprep.subr.bf16.mxu1 %v3375_v48 }
 0x393   :  { %v3177_v9 = vpop.f32.mrb[42].mxu0 }
 0x394   :  { %v1358_v52 = vpack.c.bf16 %v3177_v9, %v3176_v45  ;;  %v1291_v53 = vpop.f32.mrb[43].mxu0  ;;  %3213 = vmatpush3.bf16.msra.mxu0 %v1356_v4 }
 0x395   :  { %v1357_v61 = vpack.c.bf16 %v1291_v53, %v1288_v36  ;;  %3237 = vmatpush3.bf16.msra.mxu1 %v3375_v48  ;;  %v1021_v4 = vpop.xlane.xlu0 %1020 }
 0x396   :  { %3238 = vmatprep.subr.bf16.mxu1 %v3376_v49  ;;  %v999_v25 = vpop.xlane.xlu1 %998 }
 0x397   :  { %3214 = vmatprep.subr.bf16.mxu0 %v1357_v61 }
 0x398   :  { %3215 = vmatpush3.bf16.msra.mxu0 %v1357_v61 }
 0x399   :  { %v3180_v63 = vpop.f32.mrb[44].mxu0  ;;  %3216 = vmatprep.subr.bf16.mxu0 %v1358_v52  ;;  %3239 = vmatpush3.bf16.msra.mxu1 %v3376_v49  ;;  %v1025_v26 = vpop.xlane.xlu0 %1024 }
 0x39a   :  { %v1304_v57 = vpop.f32.mrb[45].mxu0  ;;  %3240 = vmatprep.subr.bf16.mxu1 %v3377_v35  ;;  %v1003_v11 = vpop.xlane.xlu1 %1002 }
 0x39b   :  { %v3181_v51 = vpop.f32.mrb[46].mxu0  ;;  %3500 = vrcp.f32 %v1003_v11 }
 0x39c   :  { %v1360_v19 = vpack.c.bf16 %v3181_v51, %v3180_v63  ;;  %v1307_v7 = vpop.f32.mrb[47].mxu0  ;;  %3217 = vmatpush3.bf16.msra.mxu0 %v1358_v52  ;;  %3502 = vrcp.f32 %v999_v25 }
 0x39d   :  { %v1359_v16 = vpack.c.bf16 %v1307_v7, %v1304_v57  ;;  %3241 = vmatpush3.bf16.msra.mxu1 %v3377_v35  ;;  %3504 = vrcp.f32 %v1005_v6 }
 0x39e   :  { %3242 = vmatprep.subr.bf16.mxu1 %v3378_v40  ;;  %v1007_v41 = vpop.xlane.xlu1 %1006  ;;  %3506 = vrcp.f32 %v1009_v14 }
 0x39f   :  { %3218 = vmatprep.subr.bf16.mxu0 %v1359_v16 }
 0x3a0   :  { %3219 = vmatpush3.bf16.msra.mxu0 %v1359_v16 }
 0x3a1   :  { %3220 = vmatprep.subr.bf16.mxu0 %v1360_v19  ;;  %3243 = vmatpush3.bf16.msra.mxu1 %v3378_v40 }
 0x3a2   :  { %3244 = vmatprep.subr.bf16.mxu1 %v3379_v13 }
 0x3a4   :  { %3221 = vmatpush3.bf16.msra.mxu0 %v1360_v19 }
 0x3a5   :  { %3245 = vmatpush3.bf16.msra.mxu1 %v3379_v13 }
 0x3a7   :  { %3223 = vmatmul.mubr.bf16.vlgmr.msra.gmra.mrb[48].mxu0 %v1342_v28  ;;  %v1011_v28 = vpop.xlane.xlu1 %1010 }
 0x3a8   :  { %3226 = vmatprep.mubr.bf16.mxu0 %v1343_v62  ;;  %3508 = vrcp.f32 %v1011_v28  ;;  %v3499_v62 = vpop.eup %3498 }
 0x3a9   :  { %3510 = vrcp.f32 %v1007_v41 }
 0x3aa   :  { %3512 = vrcp.f32 %v1013_v34 }
 0x3ab   :  { %v1015_v33 = vpop.xlane.xlu1 %1014  ;;  %3514 = vrcp.f32 %v1017_v46 }
 0x3af   :  { %3227 = vmatmul.mubr.bf16.gmra.mrb[52].mxu0 %v1344_v12  ;;  %v3501_v12 = vpop.eup %3500  ;;  %v1019_v54 = vpop.xlane.xlu1 %1018 }
 0x3b0   :  { %v3503_v23 = vpop.eup %3502  ;;  %3516 = vrcp.f32 %v1019_v54  ;;  %v3596_v54 = vld [vmem:[#allocation3 + $0x30] sm:$0xff] }
 0x3b1   :  { %v3505_v5 = vpop.eup %3504  ;;  %3518 = vrcp.f32 %v1015_v33 }
 0x3b2   :  { %v3507_v18 = vpop.eup %3506  ;;  %3520 = vrcp.f32 %v1021_v4 }
 0x3b3   :  { %v3509_v20 = vpop.eup %3508  ;;  %v1023_v17 = vpop.xlane.xlu1 %1022  ;;  %3522 = vrcp.f32 %v1025_v26  ;;  %v3597_v26 = vld [vmem:[#allocation3 + $0x38] sm:$0xff] }
 0x3b4   :  { %v3511_v31 = vpop.eup %3510 }
 0x3b5   :  { %v3513_v45 = vpop.eup %3512 }
 0x3b6   :  { %v3515_v49 = vpop.eup %3514 }
 0x3b7   :  { %v1027_v48 = vpop.xlane.xlu1 %1026 }
 0x3b8   :  { %3524 = vrcp.f32 %v1027_v48 }
 0x3b9   :  { %3526 = vrcp.f32 %v1023_v17 }
 0x3ba   :  { %v3517_v52 = vpop.eup %3516 }
 0x3bb   :  { %v3519_v61 = vpop.eup %3518 }
 0x3bc   :  { %v3521_v40 = vpop.eup %3520 }
 0x3bd   :  { %v3523_v24 = vpop.eup %3522 }
 0x3c2   :  { %v3525_v27 = vpop.eup %3524 }
 0x3c3   :  { %v3527_v6 = vpop.eup %3526 }
 0x45a   :  { %v3200_v56 = vpop.f32.mrb[32].mxu1 }
 0x45b   :  { %v1395_v10 = vpop.f32.mrb[33].mxu1  ;;  %v1509_v38 = vmul.f32 %v3499_v62, %v3200_v56 }
 0x45c   :  { %v3201_v44 = vpop.f32.mrb[34].mxu1  ;;  %v1507_v37 = vmul.f32 %v3497_v43, %v1395_v10 }
 0x45d   :  { %v1510_v0 = vmul.f32 %v3501_v12, %v3201_v44  ;;  %v1398_v58 = vpop.f32.mrb[35].mxu1  ;;  %v4438_v12 = vld [vmem:[%s5138_s6] ss:$0 sm:$0xff] }
 0x45e   :  { %v1508_v15 = vmul.f32 %v3503_v23, %v1398_v58  ;;  %v3592_v58 = vld [vmem:[#allocation3 + $0x10] sm:$0xff] }
 0x45f   :  { %v1524_v21 = vpack.c.bf16 %v1510_v0, %v1509_v38 }
 0x460   :  { %v1523_v3 = vpack.c.bf16 %v1508_v15, %v1507_v37 }
 0x462   :  { %v3204_v47 = vpop.f32.mrb[36].mxu1  ;;  %3246 = vmatprep.mubr.bf16.mxu1 %v1523_v3 }
 0x463   :  { %v1411_v32 = vpop.f32.mrb[37].mxu1  ;;  %3247 = vmatmul.mubr.bf16.vlgmr.msra.gmra.mrb[40].mxu1 %v1524_v21  ;;  %v1513_v2 = vmul.f32 %v3507_v18, %v3204_v47 }
 0x464   :  { %v3205_v55 = vpop.f32.mrb[38].mxu1  ;;  %v1511_v59 = vmul.f32 %v3505_v5, %v1411_v32  ;;  %v3593_v5 = vld [vmem:[#allocation3 + $0x18] sm:$0xff]  ;;  %v3594_v32 = vld [vmem:[#allocation3] sm:$0xff] }
 0x465   :  { %v1514_v39 = vmul.f32 %v3509_v20, %v3205_v55  ;;  %v1414_v22 = vpop.f32.mrb[39].mxu1  ;;  %v3595_v55 = vld [vmem:[#allocation3 + $0x8] sm:$0xff] }
 0x466   :  { %v1512_v42 = vmul.f32 %v3511_v31, %v1414_v22 }
 0x467   :  { %v1526_v8 = vpack.c.bf16 %v1514_v39, %v1513_v2 }
 0x468   :  { %v1525_v1 = vpack.c.bf16 %v1512_v42, %v1511_v59 }
 0x46a   :  { %3250 = vmatprep.mubr.bf16.mxu1 %v1525_v1 }
 0x46b   :  { %3251 = vmatmul.mubr.bf16.gmra.mrb[44].mxu1 %v1526_v8 }
 0x47a   :  { %v3224_v36 = vpop.f32.mrb[48].mxu0 }
 0x47b   :  { %v1460_v9 = vpop.f32.mrb[49].mxu0  ;;  %v1517_v35 = vmul.f32 %v3515_v49, %v3224_v36  ;;  %v3598_v36 = vld [vmem:[#allocation3 + $0x20] sm:$0xff] }
 0x47c   :  { %v3225_v53 = vpop.f32.mrb[50].mxu0  ;;  %v1515_v51 = vmul.f32 %v3513_v45, %v1460_v9  ;;  %v3599_v9 = vld [vmem:[#allocation3 + $0x28] sm:$0xff] }
 0x47d   :  { %v1518_v63 = vmul.f32 %v3517_v52, %v3225_v53  ;;  %v1463_v57 = vpop.f32.mrb[51].mxu0  ;;  %v3380_v53 = vld [vmem:[#allocation9] sm:$0xff]  }
 0x47e   :  { %v1516_v19 = vmul.f32 %v3519_v61, %v1463_v57  ;;  %3262 = vmatprep.subr.bf16.mxu0 %v3380_v53 }
 0x47f   :  { %v1528_v7 = vpack.c.bf16 %v1518_v63, %v1517_v35  ;;  %3263 = vmatpush3.bf16.msra.mxu0 %v3380_v53  ;;  %v3381_v63 = vld [vmem:[#allocation9 + $0x8] sm:$0xff]  }
 0x480   :  { %v1527_v16 = vpack.c.bf16 %v1516_v19, %v1515_v51  ;;  %3264 = vmatprep.subr.bf16.mxu0 %v3381_v63 }
 0x482   :  { %v3228_v13 = vpop.f32.mrb[52].mxu0  ;;  %3254 = vmatprep.mubr.bf16.mxu1 %v1527_v16 }
 0x483   :  { %v1476_v25 = vpop.f32.mrb[53].mxu0  ;;  %3255 = vmatmul.mubr.bf16.gmra.mrb[48].mxu1 %v1528_v7  ;;  %v1521_v41 = vmul.f32 %v3523_v24, %v3228_v13  ;;  %3265 = vmatpush3.bf16.msra.mxu0 %v3381_v63  ;;  %v3382_v13 = vld [vmem:[#allocation9 + $0x10] sm:$0xff]  }
 0x484   :  { %v3229_v11 = vpop.f32.mrb[54].mxu0  ;;  %v1519_v43 = vmul.f32 %v3521_v40, %v1476_v25  ;;  %v3600_v24 = vld [vmem:[#allocation3 + $0x50] sm:$0xff]  ;;  %3266 = vmatprep.subr.bf16.mxu0 %v3382_v13 }
 0x485   :  { %v1522_v14 = vmul.f32 %v3525_v27, %v3229_v11  ;;  %v1479_v28 = vpop.f32.mrb[55].mxu0 }
 0x486   :  { %v1520_v56 = vmul.f32 %v3527_v6, %v1479_v28 }
 0x487   :  { %v1530_v62 = vpack.c.bf16 %v1522_v14, %v1521_v41  ;;  %v3601_v41 = vld [vmem:[#allocation3 + $0x58] sm:$0xff]  ;;  %3267 = vmatpush3.bf16.msra.mxu0 %v3382_v13 }
 0x488   :  { %v1529_v10 = vpack.c.bf16 %v1520_v56, %v1519_v43  ;;  %v3383_v43 = vld [vmem:[#allocation9 + $0x18] sm:$0xff]   ;;  %v3602_v56 = vld [vmem:[#allocation3 + $0x40] sm:$0xff] }
 0x489   :  { %3268 = vmatprep.subr.bf16.mxu0 %v3383_v43 }
 0x48a   :  { %3258 = vmatprep.mubr.bf16.mxu1 %v1529_v10 }
 0x48b   :  { %3259 = vmatmul.mubr.bf16.gmra.mrb[52].mxu1 %v1530_v62  ;;  %3269 = vmatpush3.bf16.msra.mxu0 %v3383_v43 }
 0x536   :  { %v3248_v44 = vpop.f32.mrb[40].mxu1 }
 0x537   :  { %v1644_v23 = vadd.f32 %v3248_v44, %v4438_v12  ;;  %v1635_v38 = vpop.f32.mrb[41].mxu1  ;;  %v3603_v44 = vld [vmem:[#allocation3 + $0x48] sm:$0xff] }
 0x538   :  { %v3249_v0 = vpop.f32.mrb[42].mxu1  ;;  %v1636_v15 = vadd.f32 %v4438_v12, %v1635_v38 }
 0x539   :  { %v4441_v37 = vadd.f32 %v3592_v58, %v1644_v23  ;;  %v1647_v21 = vadd.f32 %v3249_v0, %v4438_v12  ;;  %v1638_v3 = vpop.f32.mrb[43].mxu1  ;;  %v3384_v58 = vld [vmem:[#allocation9 + $0x20] sm:$0xff]  }
 0x53a   :  { %v1639_v18 = vadd.f32 %v4438_v12, %v1638_v3  ;;  %v4449_v20 = vadd.f32 %v3594_v32, %v1636_v15  ;;  %3270 = vmatprep.subr.bf16.mxu0 %v3384_v58 }
 0x53b   :  { %v4445_v47 = vadd.f32 %v3593_v5, %v1647_v21  ;;  %1718 = vadd.xlane.f32.xlu0 %v4441_v37  ;;  %v1748_v22 = vmul.f32 %v4441_v37, %v4441_v37  ;;  %3271 = vmatpush3.bf16.msra.mxu0 %v3384_v58  ;;  %v3385_v5 = vld [vmem:[#allocation9 + $0x28] sm:$0xff]  }
 0x53c   :  { %v4452_v31 = vadd.f32 %v3595_v55, %v1639_v18  ;;  %v1746_v8 = vmul.f32 %v4449_v20, %v4449_v20  ;;  %3272 = vmatprep.subr.bf16.mxu0 %v3385_v5 }
 0x53d   :  { %1720 = vadd.xlane.f32.xlu1 %v4445_v47  ;;  %v1749_v59 = vmul.f32 %v4445_v47, %v4445_v47 }
 0x53e   :  { %v3252_v34 = vpop.f32.mrb[44].mxu1  ;;  %v1747_v46 = vmul.f32 %v4452_v31, %v4452_v31 }
 0x53f   :  { %1714 = vadd.xlane.f32.xlu0 %v4449_v20  ;;  %v1651_v33 = vpop.f32.mrb[45].mxu1  ;;  %v1660_v42 = vadd.f32 %v3252_v34, %v4438_v12  ;;  %3273 = vmatpush3.bf16.msra.mxu0 %v3385_v5 }
 0x540   :  { %v3253_v2 = vpop.f32.mrb[46].mxu1  ;;  %v1652_v17 = vadd.f32 %v4438_v12, %v1651_v33  ;;  %v3386_v33 = vld [vmem:[#allocation9 + $0x30] sm:$0xff]  }
 0x541   :  { %1716 = vadd.xlane.f32.xlu1 %v4452_v31  ;;  %v1654_v39 = vpop.f32.mrb[47].mxu1  ;;  %v1663_v1 = vadd.f32 %v3253_v2, %v4438_v12  ;;  %v4466_v4 = vadd.f32 %v3596_v54, %v1660_v42  ;;  %v3604_v2 = vld [vmem:[#allocation3 + $0x70] sm:$0xff]  ;;  %3274 = vmatprep.subr.bf16.mxu0 %v3386_v33 }
 0x542   :  { %v1655_v45 = vadd.f32 %v4438_v12, %v1654_v39  ;;  %v4473_v49 = vadd.f32 %v3598_v36, %v1652_v17  ;;  %v3607_v17 = vld [vmem:[#allocation3 + $0x68] sm:$0xff] }
 0x543   :  { %1766 = vadd.xlane.f32.xlu0 %v1748_v22  ;;  %v4469_v48 = vadd.f32 %v3597_v26, %v1663_v1  ;;  %v1752_v61 = vmul.f32 %v4466_v4, %v4466_v4  ;;  %3275 = vmatpush3.bf16.msra.mxu0 %v3386_v33  ;;  %v3387_v1 = vld [vmem:[#allocation9 + $0x38] sm:$0xff]  }
 0x544   :  { %5162 = vst [vmem:[#allocation18_spill] sm:$0xff] %v4473_v49  ;;  %v4476_v52 = vadd.f32 %v3599_v9, %v1655_v45  ;;  %v1750_v57 = vmul.f32 %v4473_v49, %v4473_v49  ;;  %3276 = vmatprep.subr.bf16.mxu0 %v3387_v1 }
 0x545   :  { %1768 = vadd.xlane.f32.xlu1 %v1749_v59  ;;  %5161 = vst [vmem:[#allocation17_spill] sm:$0xff] %v4469_v48  ;;  %v1753_v35 = vmul.f32 %v4469_v48, %v4469_v48  ;;  %v3605_v59 = vld [vmem:[#allocation3 + $0x78] sm:$0xff] }
 0x546   :  { %5163 = vst [vmem:[#allocation19_spill] sm:$0xff] %v4476_v52  ;;  %v1751_v16 = vmul.f32 %v4476_v52, %v4476_v52 }
 0x547   :  { %1762 = vadd.xlane.f32.xlu0 %v1746_v8  ;;  %3277 = vmatpush3.bf16.msra.mxu0 %v3387_v1 }
 0x549   :  { %1764 = vadd.xlane.f32.xlu1 %v1747_v46  ;;  %v3606_v46 = vld [vmem:[#allocation3 + $0x60] sm:$0xff] }
 0x54b   :  { %1726 = vadd.xlane.f32.xlu0 %v4466_v4 }
 0x54d   :  { %1728 = vadd.xlane.f32.xlu1 %v4469_v48 }
 0x54f   :  { %1722 = vadd.xlane.f32.xlu0 %v4473_v49 }
 0x551   :  { %1724 = vadd.xlane.f32.xlu1 %v4476_v52 }
 0x553   :  { %1774 = vadd.xlane.f32.xlu0 %v1752_v61 }
 0x555   :  { %1776 = vadd.xlane.f32.xlu1 %v1753_v35 }
 0x556   :  { %v3256_v51 = vpop.f32.mrb[48].mxu1 }
 0x557   :  { %v1676_v19 = vadd.f32 %v3256_v51, %v4438_v12  ;;  %v1667_v7 = vpop.f32.mrb[49].mxu1  ;;  %1770 = vadd.xlane.f32.xlu0 %v1750_v57 }
 0x558   :  { %v3257_v40 = vpop.f32.mrb[50].mxu1  ;;  %v1668_v27 = vadd.f32 %v4438_v12, %v1667_v7 }
 0x559   :  { %v4489_v25 = vadd.f32 %v3600_v24, %v1676_v19  ;;  %v1679_v11 = vadd.f32 %v3257_v40, %v4438_v12  ;;  %v1670_v6 = vpop.f32.mrb[51].mxu1  ;;  %1772 = vadd.xlane.f32.xlu1 %v1751_v16 }
 0x55a   :  { %v1671_v28 = vadd.f32 %v4438_v12, %v1670_v6  ;;  %v4497_v62 = vadd.f32 %v3602_v56, %v1668_v27 }
 0x55b   :  { %5164 = vst [vmem:[#allocation20_spill] sm:$0xff] %v4489_v25  ;;  %v4493_v14 = vadd.f32 %v3601_v41, %v1679_v11  ;;  %1734 = vadd.xlane.f32.xlu0 %v4489_v25  ;;  %v1756_v21 = vmul.f32 %v4489_v25, %v4489_v25 }
 0x55c   :  { %5166 = vst [vmem:[#allocation22_spill] sm:$0xff] %v4497_v62  ;;  %v4500_v23 = vadd.f32 %v3603_v44, %v1671_v28  ;;  %v1754_v32 = vmul.f32 %v4497_v62, %v4497_v62 }
 0x55d   :  { %5165 = vst [vmem:[#allocation21_spill] sm:$0xff] %v4493_v14  ;;  %1736 = vadd.xlane.f32.xlu1 %v4493_v14  ;;  %v1757_v3 = vmul.f32 %v4493_v14, %v4493_v14 }
 0x55e   :  { %v3260_v10 = vpop.f32.mrb[52].mxu1  ;;  %5167 = vst [vmem:[#allocation23_spill] sm:$0xff] %v4500_v23  ;;  %v1755_v55 = vmul.f32 %v4500_v23, %v4500_v23 }
 0x55f   :  { %v1683_v38 = vpop.f32.mrb[53].mxu1  ;;  %1730 = vadd.xlane.f32.xlu0 %v4497_v62  ;;  %v1692_v18 = vadd.f32 %v3260_v10, %v4438_v12 }
 0x560   :  { %v3261_v0 = vpop.f32.mrb[54].mxu1  ;;  %v1684_v22 = vadd.f32 %v4438_v12, %v1683_v38 }
 0x561   :  { %v1686_v15 = vpop.f32.mrb[55].mxu1  ;;  %1732 = vadd.xlane.f32.xlu1 %v4500_v23  ;;  %v1695_v34 = vadd.f32 %v3261_v0, %v4438_v12  ;;  %v4514_v39 = vadd.f32 %v3604_v2, %v1692_v18 }
 0x562   :  { %v1687_v8 = vadd.f32 %v4438_v12, %v1686_v15  ;;  %v4521_v54 = vadd.f32 %v3606_v46, %v1684_v22 }
 0x563   :  { %1782 = vadd.xlane.f32.xlu0 %v1756_v21  ;;  %5168 = vst [vmem:[#allocation24_spill] sm:$0xff] %v4514_v39  ;;  %v4517_v42 = vadd.f32 %v3605_v59, %v1695_v34  ;;  %v1760_v36 = vmul.f32 %v4514_v39, %v4514_v39 }
 0x564   :  { %5170 = vst [vmem:[#allocation26_spill] sm:$0xff] %v4521_v54  ;;  %v4524_v26 = vadd.f32 %v3607_v17, %v1687_v8  ;;  %v1758_v12 = vmul.f32 %v4521_v54, %v4521_v54 }
 0x565   :  { %1784 = vadd.xlane.f32.xlu1 %v1757_v3  ;;  %5169 = vst [vmem:[#allocation25_spill] sm:$0xff] %v4517_v42  ;;  %v1761_v9 = vmul.f32 %v4517_v42, %v4517_v42 }
 0x566   :  { %5171 = vst [vmem:[#allocation27_spill] sm:$0xff] %v4524_v26  ;;  %v1759_v45 = vmul.f32 %v4524_v26, %v4524_v26 }
 0x567   :  { %1778 = vadd.xlane.f32.xlu0 %v1754_v32 }
 0x569   :  { %1780 = vadd.xlane.f32.xlu1 %v1755_v55 }
 0x56b   :  { %1742 = vadd.xlane.f32.xlu0 %v4514_v39 }
 0x56d   :  { %1744 = vadd.xlane.f32.xlu1 %v4517_v42 }
 0x56f   :  { %1738 = vadd.xlane.f32.xlu0 %v4521_v54 }
 0x571   :  { %1740 = vadd.xlane.f32.xlu1 %v4524_v26 }
 0x573   :  { %1786 = vadd.xlane.f32.xlu0 %v1758_v12 }
 0x575   :  { %1788 = vadd.xlane.f32.xlu1 %v1759_v45 }
 0x577   :  { %1790 = vadd.xlane.f32.xlu0 %v1760_v36 }
 0x579   :  { %1792 = vadd.xlane.f32.xlu1 %v1761_v9 }
 0x5c8   :  { %v1719_v53 = vpop.xlane.xlu0 %1718 }
 0x5c9   :  { %v1796_v63 = vmul.f32 0.03125, %v1719_v53 }
 0x5ca   :  { %v1721_v61 = vpop.xlane.xlu1 %1720 }
 0x5cb   :  { %v1797_v51 = vmul.f32 0.03125, %v1721_v61  ;;  %v1828_v7 = vmul.f32 %v1796_v63, %v1796_v63  ;;  %v1860_v9 = vsub.f32 %v4441_v37, %v1796_v63 }
 0x5cc   :  { %v1715_v35 = vpop.xlane.xlu0 %1714 }
 0x5cd   :  { %v1794_v16 = vmul.f32 0.03125, %v1715_v35  ;;  %v1829_v24 = vmul.f32 %v1797_v51, %v1797_v51  ;;  %v1861_v17 = vsub.f32 %v4445_v47, %v1797_v51 }
 0x5ce   :  { %v1717_v57 = vpop.xlane.xlu1 %1716 }
 0x5cf   :  { %v1795_v27 = vmul.f32 0.03125, %v1717_v57  ;;  %v1826_v28 = vmul.f32 %v1794_v16, %v1794_v16  ;;  %v1858_v57 = vsub.f32 %v4449_v20, %v1794_v16  ;;  %v4559_v16 = vld [vmem:[%s5139_s7] ss:$0 sm:$0xff] }
 0x5d0   :  { %v1767_v19 = vpop.xlane.xlu0 %1766 }
 0x5d1   :  { %v1812_v40 = vmul.f32 0.03125, %v1767_v19  ;;  %v1827_v38 = vmul.f32 %v1795_v27, %v1795_v27 }
 0x5d2   :  { %v1769_v13 = vpop.xlane.xlu1 %1768 }
 0x5d3   :  { %v1844_v11 = vsub.f32 %v1812_v40, %v1828_v7  ;;  %v1813_v6 = vmul.f32 0.03125, %v1769_v13 }
 0x5d4   :  { %v1763_v41 = vpop.xlane.xlu0 %1762 }
 0x5d5   :  { %v1876_v43 = vadd.f32 1e-05, %v1844_v11  ;;  %v1845_v56 = vsub.f32 %v1813_v6, %v1829_v24  ;;  %v1810_v10 = vmul.f32 0.03125, %v1763_v41  ;;  %v1859_v41 = vsub.f32 %v4452_v31, %v1795_v27 }
 0x5d6   :  { %v1765_v44 = vpop.xlane.xlu1 %1764 }
 0x5d7   :  { %v1877_v0 = vadd.f32 1e-05, %v1845_v56  ;;  %v1842_v58 = vsub.f32 %v1810_v10, %v1826_v28  ;;  %v1811_v15 = vmul.f32 0.03125, %v1765_v44  ;;  %3528 = vrsqrt.f32 %v1876_v43 }
 0x5d8   :  { %v1727_v21 = vpop.xlane.xlu0 %1726 }
 0x5d9   :  { %3530 = vrsqrt.f32 %v1877_v0  ;;  %v1874_v3 = vadd.f32 1e-05, %v1842_v58  ;;  %v1843_v5 = vsub.f32 %v1811_v15, %v1827_v38  ;;  %v4536_v55 = vmul.f32 0.03125, %v1727_v21 }
 0x5da   :  { %v1729_v18 = vpop.xlane.xlu1 %1728 }
 0x5db   :  { %3532 = vrsqrt.f32 %v1874_v3  ;;  %v1875_v32 = vadd.f32 1e-05, %v1843_v5  ;;  %v4538_v2 = vmul.f32 0.03125, %v1729_v18  ;;  %v1832_v8 = vmul.f32 %v4536_v55, %v4536_v55 }
 0x5dc   :  { %v1723_v34 = vpop.xlane.xlu0 %1722 }
 0x5dd   :  { %3534 = vrsqrt.f32 %v1875_v32  ;;  %v4540_v22 = vmul.f32 0.03125, %v1723_v34  ;;  %v1833_v53 = vmul.f32 %v4538_v2, %v4538_v2  ;;  %v4567_v32 = vld [vmem:[%s5140_s8] ss:$0 sm:$0xff] }
 0x5de   :  { %v1725_v33 = vpop.xlane.xlu1 %1724 }
 0x5df   :  { %v4545_v12 = vmul.f32 0.03125, %v1725_v33  ;;  %v1830_v7 = vmul.f32 %v4540_v22, %v4540_v22 }
 0x5e0   :  { %v1775_v59 = vpop.xlane.xlu0 %1774 }
 0x5e1   :  { %v1816_v1 = vmul.f32 0.03125, %v1775_v59  ;;  %v3529_v46 = vpop.eup %3528  ;;  %v1831_v63 = vmul.f32 %v4545_v12, %v4545_v12 }
 0x5e2   :  { %v1777_v45 = vpop.xlane.xlu1 %1776  ;;  %v1908_v51 = vmul.f32 %v3529_v46, %v1860_v9 }
 0x5e3   :  { %v3531_v36 = vpop.eup %3530  ;;  %v1848_v61 = vsub.f32 %v1816_v1, %v1832_v8  ;;  %v1817_v35 = vmul.f32 0.03125, %v1777_v45 }
 0x5e4   :  { %v1909_v19 = vmul.f32 %v3531_v36, %v1861_v17  ;;  %v1771_v40 = vpop.xlane.xlu0 %1770  ;;  %v1930_v5 = vmul.f32 %v4559_v16, %v1908_v51 }
 0x5e5   :  { %v3533_v13 = vpop.eup %3532  ;;  %v1880_v24 = vadd.f32 1e-05, %v1848_v61  ;;  %v1849_v11 = vsub.f32 %v1817_v35, %v1833_v53  ;;  %v1814_v6 = vmul.f32 0.03125, %v1771_v40 }
 0x5e6   :  { %v1773_v28 = vpop.xlane.xlu1 %1772  ;;  %v1906_v43 = vmul.f32 %v3533_v13, %v1858_v57  ;;  %v1931_v0 = vmul.f32 %v4559_v16, %v1909_v19  ;;  %v1952_v45 = vadd.f32 %v4567_v32, %v1930_v5  ;;  %v1865_v13 = vsub.f32 %v4469_v48, %v4538_v2 }
 0x5e7   :  { %v3535_v56 = vpop.eup %3534  ;;  %v1881_v10 = vadd.f32 1e-05, %v1849_v11  ;;  %v1846_v44 = vsub.f32 %v1814_v6, %v1830_v7  ;;  %v1815_v38 = vmul.f32 0.03125, %v1773_v28  ;;  %3536 = vrsqrt.f32 %v1880_v24 }
 0x5e8   :  { %v1735_v58 = vpop.xlane.xlu0 %1734  ;;  %v1907_v15 = vmul.f32 %v3535_v56, %v1859_v41  ;;  %v1928_v27 = vmul.f32 %v4559_v16, %v1906_v43  ;;  %v1953_v59 = vadd.f32 %v4567_v32, %v1931_v0  ;;  %v1864_v6 = vsub.f32 %v4466_v4, %v4536_v55 }
 0x5e9   :  { %3538 = vrsqrt.f32 %v1881_v10  ;;  %v1878_v21 = vadd.f32 1e-05, %v1846_v44  ;;  %v1847_v3 = vsub.f32 %v1815_v38, %v1831_v63  ;;  %v4573_v17 = vmul.f32 0.03125, %v1735_v58 }
 0x5ea   :  { %v1737_v18 = vpop.xlane.xlu1 %1736  ;;  %v1929_v34 = vmul.f32 %v4559_v16, %v1907_v15  ;;  %v1950_v1 = vadd.f32 %v4567_v32, %v1928_v27  ;;  %v1967_v61 = vpack.c.bf16 %v1953_v59, %v1952_v45  ;;  %v1862_v43 = vsub.f32 %v4473_v49, %v4540_v22 }
 0x5eb   :  { %3540 = vrsqrt.f32 %v1878_v21  ;;  %v1879_v33 = vadd.f32 1e-05, %v1847_v3  ;;  %v4576_v53 = vmul.f32 0.03125, %v1737_v18  ;;  %v1836_v19 = vmul.f32 %v4573_v17, %v4573_v17 }
 0x5ec   :  { %v1731_v8 = vpop.xlane.xlu0 %1730  ;;  %v1951_v46 = vadd.f32 %v4567_v32, %v1929_v34  ;;  %v1863_v55 = vsub.f32 %v4476_v52, %v4545_v12 }
 0x5ed   :  { %3542 = vrsqrt.f32 %v1879_v33  ;;  %v4578_v35 = vmul.f32 0.03125, %v1731_v8  ;;  %v1837_v41 = vmul.f32 %v4576_v53, %v4576_v53 }
 0x5ee   :  { %v1733_v36 = vpop.xlane.xlu1 %1732  ;;  %v1966_v9 = vpack.c.bf16 %v1951_v46, %v1950_v1 }
 0x5ef   :  { %v4584_v51 = vmul.f32 0.03125, %v1733_v36  ;;  %v1834_v56 = vmul.f32 %v4578_v35, %v4578_v35 }
 0x5f0   :  { %3278 = vmatprep.mubr.bf16.mxu0 %v1966_v9  ;;  %v1783_v57 = vpop.xlane.xlu0 %1782 }
 0x5f1   :  { %v1820_v7 = vmul.f32 0.03125, %v1783_v57  ;;  %3279 = vmatmul.mubr.bf16.vlgmr.msra.gmra.mrb[56].mxu0 %v1967_v61  ;;  %v3537_v40 = vpop.eup %3536  ;;  %v1835_v27 = vmul.f32 %v4584_v51, %v4584_v51 }
 0x5f2   :  { %v1785_v24 = vpop.xlane.xlu1 %1784  ;;  %v1912_v15 = vmul.f32 %v3537_v40, %v1864_v6 }
 0x5f3   :  { %v3539_v11 = vpop.eup %3538  ;;  %v1852_v63 = vsub.f32 %v1820_v7, %v1836_v19  ;;  %v1821_v28 = vmul.f32 0.03125, %v1785_v24 }
 0x5f4   :  { %v1779_v10 = vpop.xlane.xlu0 %1778  ;;  %v1913_v2 = vmul.f32 %v3539_v11, %v1865_v13  ;;  %v1934_v12 = vmul.f32 %v4559_v16, %v1912_v15  ;;  %v1868_v15 = vsub.f32 %v4489_v25, %v4573_v17 }
 0x5f5   :  { %v3541_v44 = vpop.eup %3540  ;;  %v1884_v38 = vadd.f32 1e-05, %v1852_v63  ;;  %v1853_v0 = vsub.f32 %v1821_v28, %v1837_v41  ;;  %v1818_v58 = vmul.f32 0.03125, %v1779_v10 }
 0x5f6   :  { %v1781_v21 = vpop.xlane.xlu1 %1780  ;;  %v1910_v3 = vmul.f32 %v3541_v44, %v1862_v43  ;;  %v1935_v33 = vmul.f32 %v4559_v16, %v1913_v2  ;;  %v1956_v24 = vadd.f32 %v4567_v32, %v1934_v12  ;;  %v1869_v44 = vsub.f32 %v4493_v14, %v4576_v53 }
 0x5f7   :  { %v3543_v5 = vpop.eup %3542  ;;  %v1885_v22 = vadd.f32 1e-05, %v1853_v0  ;;  %v1850_v18 = vsub.f32 %v1818_v58, %v1834_v56  ;;  %v1819_v34 = vmul.f32 0.03125, %v1781_v21  ;;  %3544 = vrsqrt.f32 %v1884_v38 }
 0x5f8   :  { %v1743_v59 = vpop.xlane.xlu0 %1742  ;;  %v1911_v8 = vmul.f32 %v3543_v5, %v1863_v55  ;;  %v1932_v1 = vmul.f32 %v4559_v16, %v1910_v3  ;;  %v1957_v57 = vadd.f32 %v4567_v32, %v1935_v33  ;;  %v1866_v3 = vsub.f32 %v4497_v62, %v4578_v35 }
 0x5f9   :  { %3546 = vrsqrt.f32 %v1885_v22  ;;  %v1882_v46 = vadd.f32 1e-05, %v1850_v18  ;;  %v1851_v45 = vsub.f32 %v1819_v34, %v1835_v27  ;;  %v4606_v28 = vmul.f32 0.03125, %v1743_v59 }
 0x5fa   :  { %v1745_v36 = vpop.xlane.xlu1 %1744  ;;  %v1933_v9 = vmul.f32 %v4559_v16, %v1911_v8  ;;  %v1954_v7 = vadd.f32 %v4567_v32, %v1932_v1  ;;  %v1969_v63 = vpack.c.bf16 %v1957_v57, %v1956_v24  ;;  %v1867_v1 = vsub.f32 %v4500_v23, %v4584_v51 }
 0x5fb   :  { %3548 = vrsqrt.f32 %v1882_v46  ;;  %v1883_v61 = vadd.f32 1e-05, %v1851_v45  ;;  %v1809_v38 = vmul.f32 0.03125, %v1745_v36  ;;  %v1840_v5 = vmul.f32 %v4606_v28, %v4606_v28 }
 0x5fc   :  { %v1739_v19 = vpop.xlane.xlu0 %1738  ;;  %v1955_v40 = vadd.f32 %v4567_v32, %v1933_v9 }
 0x5fd   :  { %3550 = vrsqrt.f32 %v1883_v61  ;;  %v1806_v13 = vmul.f32 0.03125, %v1739_v19  ;;  %v1841_v17 = vmul.f32 %v1809_v38, %v1809_v38 }
 0x5fe   :  { %v1741_v11 = vpop.xlane.xlu1 %1740  ;;  %v1968_v6 = vpack.c.bf16 %v1955_v40, %v1954_v7 }
 0x5ff   :  { %v1807_v41 = vmul.f32 0.03125, %v1741_v11  ;;  %v1838_v56 = vmul.f32 %v1806_v13, %v1806_v13 }
 0x600   :  { %3282 = vmatprep.mubr.bf16.mxu0 %v1968_v6  ;;  %v1787_v43 = vpop.xlane.xlu0 %1786 }
 0x601   :  { %v1822_v10 = vmul.f32 0.03125, %v1787_v43  ;;  %3283 = vmatmul.mubr.bf16.gmra.mrb[60].mxu0 %v1969_v63  ;;  %v3545_v2 = vpop.eup %3544  ;;  %v1839_v55 = vmul.f32 %v1807_v41, %v1807_v41 }
 0x602   :  { %v1789_v0 = vpop.xlane.xlu1 %1788  ;;  %v1916_v8 = vmul.f32 %v3545_v2, %v1868_v15 }
 0x603   :  { %v3547_v58 = vpop.eup %3546  ;;  %v1854_v27 = vsub.f32 %v1822_v10, %v1838_v56  ;;  %v1823_v21 = vmul.f32 0.03125, %v1789_v0 }
 0x604   :  { %v1791_v22 = vpop.xlane.xlu0 %1790  ;;  %v1917_v18 = vmul.f32 %v3547_v58, %v1869_v44  ;;  %v1938_v24 = vmul.f32 %v4559_v16, %v1916_v8  ;;  %v1870_v44 = vsub.f32 %v4521_v54, %v1806_v13  ;;  %v1871_v58 = vsub.f32 %v4524_v26, %v1807_v41 }
 0x605   :  { %v3549_v34 = vpop.eup %3548  ;;  %v1886_v33 = vadd.f32 1e-05, %v1854_v27  ;;  %v1855_v53 = vsub.f32 %v1823_v21, %v1839_v55  ;;  %v1824_v59 = vmul.f32 0.03125, %v1791_v22  ;;  %v1872_v27 = vsub.f32 %v4514_v39, %v4606_v28 }
 0x606   :  { %v1793_v46 = vpop.xlane.xlu1 %1792  ;;  %v1914_v45 = vmul.f32 %v3549_v34, %v1866_v3  ;;  %v1939_v12 = vmul.f32 %v4559_v16, %v1917_v18  ;;  %v1960_v56 = vadd.f32 %v4567_v32, %v1938_v24  ;;  %v1873_v22 = vsub.f32 %v4517_v42, %v1809_v38  ;;  %v4653_v24 = vld [vmem:[%s5142_s10] ss:$0 sm:$0xff] }
 0x607   :  { %v3551_v36 = vpop.eup %3550  ;;  %3552 = vrsqrt.f32 %v1886_v33  ;;  %v1887_v35 = vadd.f32 1e-05, %v1855_v53  ;;  %v1856_v9 = vsub.f32 %v1824_v59, %v1840_v5  ;;  %v1825_v61 = vmul.f32 0.03125, %v1793_v46 }
 0x608   :  { %v1915_v57 = vmul.f32 %v3551_v36, %v1867_v1  ;;  %v1936_v19 = vmul.f32 %v4559_v16, %v1914_v45  ;;  %v1961_v6 = vadd.f32 %v4567_v32, %v1939_v12  ;;  %v3760_v46 = vmov 0.0   ;;  %v3390_v45 = vld [vmem:[#allocation11 + $0x10] sm:$0xff]   ;;  %v3391_v12 = vld [vmem:[#allocation11 + $0x18] sm:$0xff]   ;;  %v3392_v36 = vld [vmem:[#allocation11 + $0x20] sm:$0xff]  }
 0x609   :  { %3554 = vrsqrt.f32 %v1887_v35  ;;  %v1888_v7 = vadd.f32 1e-05, %v1856_v9  ;;  %v1857_v40 = vsub.f32 %v1825_v61, %v1841_v17  ;;  %139 = vst [vmem:[#allocation2 + $0x30] sm:$0x1] %v3760_v46  ;;  %147 = vst [vmem:[#allocation2 + $0x39] sm:$0x1] %v3760_v46 }
 0x60a   :  { %v1937_v51 = vmul.f32 %v4559_v16, %v1915_v57  ;;  %v1958_v63 = vadd.f32 %v4567_v32, %v1936_v19  ;;  %v1971_v2 = vpack.c.bf16 %v1961_v6, %v1960_v56  ;;  %131 = vst [vmem:[#allocation2] sm:$0xff] %v3760_v46  ;;  %132 = vst [vmem:[#allocation2 + $0x8] sm:$0x3] %v3760_v46  ;;  %v3393_v35 = vld [vmem:[#allocation11 + $0x28] sm:$0xff]   ;;  %v3394_v9 = vld [vmem:[#allocation11 + $0x30] sm:$0xff]  }
 0x60b   :  { %3556 = vrsqrt.f32 %v1888_v7  ;;  %v1889_v11 = vadd.f32 1e-05, %v1857_v40  ;;  %134 = vst [vmem:[#allocation2 + $0x90] sm:$0xff] %v3760_v46  ;;  %135 = vst [vmem:[#allocation2 + $0x98] sm:$0x3] %v3760_v46  ;;  %v3395_v61 = vld [vmem:[#allocation11 + $0x38] sm:$0xff]  }
 0x60c   :  { %v1959_v43 = vadd.f32 %v4567_v32, %v1937_v51  ;;  %137 = vst [vmem:[#allocation2 + $0x10] sm:$0x1] %v3760_v46  ;;  %138 = vst [vmem:[#allocation2 + $0x20] sm:$0x1] %v3760_v46  ;;  %v128_v57 = vld [vmem:[%s5143_s11] sm:$0xff] }
 0x60d   :  { %3558 = vrsqrt.f32 %v1889_v11  ;;  %140 = vst [vmem:[#allocation2 + $0x40] sm:$0x1] %v3760_v46  ;;  %141 = vst [vmem:[#allocation2 + $0x50] sm:$0x1] %v3760_v46  ;;  %v4644_v19 = vrot.slane %v128_v57, %v465_v29  ;;  %v4648_v40 = vrot.slane %v128_v57, %v469_v30  ;;  %v4657_v51 = vrot.slane %v128_v57, %v473_v60 }
 0x60e   :  { %v1970_v10 = vpack.c.bf16 %v1959_v43, %v1958_v63  ;;  %142 = vst [vmem:[#allocation2 + $0x60] sm:$0x1] %v3760_v46  ;;  %143 = vst [vmem:[#allocation2 + $0x70] sm:$0x1] %v3760_v46  ;;  %v2253_v63 = vsub.s32 4, %v4110_v50  ;;  %v2233_v60 = vsub.s32 3, %v4110_v50 }
 0x60f   :  { %144 = vst [vmem:[#allocation2 + $0x80] sm:$0x1] %v3760_v46  ;;  %145 = vst [vmem:[#allocation2 + $0x19] sm:$0x1] %v3760_v46  ;;  %v2183_v11 = vmul.f32 0.0, %v4644_v19 }
 0x610   :  { %3286 = vmatprep.mubr.bf16.mxu0 %v1970_v10  ;;  %146 = vst [vmem:[#allocation2 + $0x29] sm:$0x1] %v3760_v46  ;;  %148 = vst [vmem:[#allocation2 + $0x49] sm:$0x1] %v3760_v46  ;;  %v2293_v10 = vsub.s32 6, %v4110_v50 }
 0x611   :  { %v3553_v0 = vpop.eup %3552  ;;  %3287 = vmatmul.mubr.bf16.gmra.mrb[64].mxu0 %v1971_v2  ;;  %149 = vst [vmem:[#allocation2 + $0x59] sm:$0x1] %v3760_v46  ;;  %150 = vst [vmem:[#allocation2 + $0x69] sm:$0x1] %v3760_v46  ;;  %v2159_v7 = vld [vmem:[#allocation2 + $0x1] sm:$0xff]  ;;  %v2313_v2 = vsub.s32 7, %v4110_v50 }
 0x612   :  { %v1918_v15 = vmul.f32 %v3553_v0, %v1870_v44  ;;  %151 = vst [vmem:[#allocation2 + $0x79] sm:$0x1] %v3760_v46  ;;  %152 = vst [vmem:[#allocation2 + $0x89] sm:$0x1] %v3760_v46  ;;  %v2195_v6 = vmul.f32 %v4648_v40, %v2159_v7  ;;  %v2169_v43 = vld [vmem:[#allocation2 + $0x2] sm:$0xff] }
 0x613   :  { %v3555_v55 = vpop.eup %3554 }
 0x614   :  { %v1919_v21 = vmul.f32 %v3555_v55, %v1871_v58  ;;  %v1940_v3 = vmul.f32 %v4559_v16, %v1918_v15  ;;  %v2273_v58 = vsub.s32 5, %v4110_v50  ;;  %v4677_v50 = vrot.slane %v128_v57, %v2233_v60 }
 0x615   :  { %v3557_v5 = vpop.eup %3556 }
 0x616   :  { %v1941_v18 = vmul.f32 %v4559_v16, %v1919_v21  ;;  %v1920_v34 = vmul.f32 %v3557_v5, %v1872_v27  ;;  %v1962_v33 = vadd.f32 %v4567_v32, %v1940_v3  ;;  %v2203_v27 = vadd.f32 %v2195_v6, %v2183_v11 }
 0x617   :  { %v3559_v13 = vpop.eup %3558  ;;  %v2215_v21 = vmul.f32 %v4657_v51, %v2169_v43  ;;  %v4671_v5 = vrot.slane %v128_v57, %v2253_v63 }
 0x618   :  { %v1963_v53 = vadd.f32 %v4567_v32, %v1941_v18  ;;  %v1921_v41 = vmul.f32 %v3559_v13, %v1873_v22  ;;  %v1942_v59 = vmul.f32 %v4559_v16, %v1920_v34  ;;  %v2168_v22 = vld [vmem:[#allocation2 + $0x91] sm:$0xff]  ;;  %v4673_v34 = vrot.slane %v128_v57, %v2293_v10 }
 0x619   :  { %v2178_v18 = vld [vmem:[#allocation2 + $0x92] sm:$0xff]  ;;  %v4675_v13 = vrot.slane %v128_v57, %v2313_v2 }
 0x61a   :  { %v1972_v8 = vpack.c.bf16 %v1963_v53, %v1962_v33  ;;  %v1943_v28 = vmul.f32 %v4559_v16, %v1921_v41  ;;  %v1964_v1 = vadd.f32 %v4567_v32, %v1942_v59  ;;  %v3388_v16 = vld [vmem:[#allocation11] sm:$0xff]   ;;  %v4679_v33 = vrot.slane %v128_v57, %v2273_v58  ;;  %v4684_v53 = vld [vmem:[%s5143_s11 + $0x8] ss:$0 sm:$0xff] }
 0x61b   :  { %3294 = vmatprep.subr.bf16.mxu1 %v3388_v16  ;;  %v4686_v41 = vadd.f32 %v2215_v21, %v2203_v27  ;;  %v4689_v59 = vmul.f32 0.0, %v4673_v34 }
 0x61c   :  { %3290 = vmatprep.mubr.bf16.mxu0 %v1972_v8  ;;  %v1965_v17 = vadd.f32 %v4567_v32, %v1943_v28  ;;  %3295 = vmatpush3.bf16.msra.mxu1 %v3388_v16  ;;  %v3389_v32 = vld [vmem:[#allocation11 + $0x8] sm:$0xff]   ;;  %v4692_v8 = vmul.f32 %v4675_v13, %v2168_v22  ;;  %v4695_v28 = vmul.f32 %v4684_v53, %v2178_v18 }
 0x61d   :  { %3296 = vmatprep.subr.bf16.mxu1 %v3389_v32 }
 0x61e   :  { %v1973_v38 = vpack.c.bf16 %v1965_v17, %v1964_v1 }
 0x620   :  { %3291 = vmatmul.mubr.bf16.gmra.mrb[68].mxu0 %v1973_v38  ;;  %3297 = vmatpush3.bf16.msra.mxu1 %v3389_v32 }
 0x621   :  { %3298 = vmatprep.subr.bf16.mxu1 %v3390_v45 }
 0x624   :  { %3299 = vmatpush3.bf16.msra.mxu1 %v3390_v45 }
 0x625   :  { %3300 = vmatprep.subr.bf16.mxu1 %v3391_v12 }
 0x628   :  { %3301 = vmatpush3.bf16.msra.mxu1 %v3391_v12 }
 0x629   :  { %3302 = vmatprep.subr.bf16.mxu1 %v3392_v36 }
 0x62c   :  { %3303 = vmatpush3.bf16.msra.mxu1 %v3392_v36 }
 0x62d   :  { %3304 = vmatprep.subr.bf16.mxu1 %v3393_v35 }
 0x630   :  { %3305 = vmatpush3.bf16.msra.mxu1 %v3393_v35 }
 0x631   :  { %3306 = vmatprep.subr.bf16.mxu1 %v3394_v9 }
 0x634   :  { %3307 = vmatpush3.bf16.msra.mxu1 %v3394_v9 }
 0x635   :  { %3308 = vmatprep.subr.bf16.mxu1 %v3395_v61 }
 0x638   :  { %3309 = vmatpush3.bf16.msra.mxu1 %v3395_v61 }
 0x6c4   :  { %v3280_v29 = vpop.f32.mrb[56].mxu0 }
 0x6c5   :  { %v2087_v30 = vadd.f32 %v3280_v29, %v4653_v24  ;;  %v2078_v56 = vpop.f32.mrb[57].mxu0 }
 0x6c6   :  { %v2079_v44 = vadd.f32 %v4653_v24, %v2078_v56  ;;  %v3281_v0 = vpop.f32.mrb[58].mxu0 }
 0x6c7   :  { %2143 = vst [vmem:[#allocation2 + $0x31] sm:$0xff] %v2087_v30  ;;  %v2090_v15 = vadd.f32 %v3281_v0, %v4653_v24  ;;  %v2081_v55 = vpop.f32.mrb[59].mxu0  ;;  %v2198_v1 = vmul.f32 %v4648_v40, %v2087_v30  ;;  %v4699_v17 = vmul.f32 %v4671_v5, %v2087_v30  ;;  %v4707_v32 = vmul.f32 %v4675_v13, %v2087_v30 }
 0x6c8   :  { %2141 = vst [vmem:[#allocation2 + $0x11] sm:$0xff] %v2079_v44  ;;  %v2082_v3 = vadd.f32 %v4653_v24, %v2081_v55  ;;  %v2196_v38 = vmul.f32 %v4648_v40, %v2079_v44  ;;  %v2255_v16 = vmul.f32 %v4671_v5, %v2079_v44 }
 0x6c9   :  { %2144 = vst [vmem:[#allocation2 + $0x41] sm:$0xff] %v2090_v15  ;;  %v4703_v46 = vmul.f32 %v4648_v40, %v2090_v15  ;;  %v2258_v36 = vmul.f32 %v4671_v5, %v2090_v15  ;;  %v4713_v61 = vmul.f32 %v4675_v13, %v2090_v15 }
 0x6ca   :  { %2142 = vst [vmem:[#allocation2 + $0x21] sm:$0xff] %v2082_v3  ;;  %v2197_v35 = vmul.f32 %v4648_v40, %v2082_v3  ;;  %v2256_v9 = vmul.f32 %v4671_v5, %v2082_v3  ;;  %v2315_v63 = vmul.f32 %v4675_v13, %v2082_v3 }
 0x6ce   :  { %v2152_v45 = vld [vmem:[#allocation2 + $0x30] sm:$0xff] }
 0x6cf   :  { %v2172_v12 = vld [vmem:[#allocation2 + $0x32] sm:$0xff]  ;;  %v2186_v57 = vmul.f32 %v4644_v19, %v2152_v45  ;;  %v2237_v11 = vmul.f32 %v4677_v50, %v2152_v45 }
 0x6d0   :  { %v2218_v7 = vmul.f32 %v4657_v51, %v2172_v12  ;;  %v2150_v6 = vld [vmem:[#allocation2 + $0x10] sm:$0xff]  ;;  %v2277_v43 = vmul.f32 %v4679_v33, %v2172_v12  ;;  %v2153_v10 = vld [vmem:[#allocation2 + $0x40] sm:$0xff]  ;;  %v2336_v48 = vmul.f32 %v4684_v53, %v2172_v12 }
 0x6d1   :  { %v2170_v29 = vld [vmem:[#allocation2 + $0x12] sm:$0xff]  ;;  %v2184_v30 = vmul.f32 %v4644_v19, %v2150_v6  ;;  %v2173_v2 = vld [vmem:[#allocation2 + $0x42] sm:$0xff]  ;;  %v2235_v44 = vmul.f32 %v4677_v50, %v2150_v6  ;;  %v2206_v0 = vadd.f32 %v2198_v1, %v2186_v57  ;;  %v2187_v60 = vmul.f32 %v4644_v19, %v2153_v10 }
 0x6d2   :  { %v2216_v56 = vmul.f32 %v4657_v51, %v2170_v29  ;;  %v2238_v58 = vmul.f32 %v4677_v50, %v2153_v10  ;;  %v2151_v15 = vld [vmem:[#allocation2 + $0x20] sm:$0xff]  ;;  %v2275_v27 = vmul.f32 %v4679_v33, %v2170_v29  ;;  %v2278_v21 = vmul.f32 %v4679_v33, %v2173_v2 }
 0x6d3   :  { %v2171_v55 = vld [vmem:[#allocation2 + $0x22] sm:$0xff]  ;;  %v2185_v3 = vmul.f32 %v4644_v19, %v2151_v15  ;;  %v2204_v18 = vadd.f32 %v2196_v38, %v2184_v30  ;;  %v2226_v26 = vadd.f32 %v2218_v7, %v2206_v0  ;;  %v2236_v42 = vmul.f32 %v4677_v50, %v2151_v15 }
 0x6d4   :  { %v2217_v22 = vmul.f32 %v4657_v51, %v2171_v55  ;;  %v2243_v1 = vadd.f32 %v2235_v44, %v4686_v41  ;;  %v2276_v57 = vmul.f32 %v4679_v33, %v2171_v55  ;;  %v3284_v6 = vpop.f32.mrb[60].mxu0  ;;  %v2295_v23 = vmul.f32 %v4673_v34, %v2151_v15 }
 0x6d5   :  { %v2205_v54 = vadd.f32 %v2197_v35, %v2185_v3  ;;  %v2224_v39 = vadd.f32 %v2216_v56, %v2204_v18  ;;  %v2296_v29 = vmul.f32 %v4673_v34, %v2152_v45  ;;  %v2103_v14 = vadd.f32 %v3284_v6, %v4653_v24  ;;  %v2094_v62 = vpop.f32.mrb[61].mxu0 }
 0x6d6   :  { %v2246_v25 = vadd.f32 %v2238_v58, %v2226_v26  ;;  %v2263_v52 = vadd.f32 %v2255_v16, %v2243_v1  ;;  %v2335_v38 = vmul.f32 %v4684_v53, %v2171_v55  ;;  %v2095_v7 = vadd.f32 %v4653_v24, %v2094_v62  ;;  %v3285_v30 = vpop.f32.mrb[62].mxu0 }
 0x6d7   :  { %v2225_v44 = vadd.f32 %v2217_v22, %v2205_v54  ;;  %v2244_v0 = vadd.f32 %v2236_v42, %v2224_v39  ;;  %2147 = vst [vmem:[#allocation2 + $0x71] sm:$0xff] %v2103_v14  ;;  %v2106_v35 = vadd.f32 %v3285_v30, %v4653_v24  ;;  %v2097_v56 = vpop.f32.mrb[63].mxu0  ;;  %v2297_v3 = vmul.f32 %v4673_v34, %v2153_v10 }
 0x6d8   :  { %v2283_v15 = vadd.f32 %v2275_v27, %v2263_v52  ;;  %v2266_v45 = vadd.f32 %v2258_v36, %v2246_v25  ;;  %2145 = vst [vmem:[#allocation2 + $0x51] sm:$0xff] %v2095_v7  ;;  %v2098_v26 = vadd.f32 %v4653_v24, %v2097_v56  ;;  %v4742_v16 = vmul.f32 %v4648_v40, %v2103_v14 }
 0x6d9   :  { %v2264_v62 = vadd.f32 %v2256_v9, %v2244_v0  ;;  %v2245_v58 = vadd.f32 %v2237_v11, %v2225_v44  ;;  %2148 = vst [vmem:[#allocation2 + $0x81] sm:$0xff] %v2106_v35  ;;  %v2200_v39 = vmul.f32 %v4648_v40, %v2095_v7  ;;  %v2318_v12 = vmul.f32 %v4675_v13, %v2095_v7 }
 0x6da   :  { %v2303_v42 = vadd.f32 %v2295_v23, %v2283_v15  ;;  %v2286_v54 = vadd.f32 %v2278_v21, %v2266_v45  ;;  %2146 = vst [vmem:[#allocation2 + $0x61] sm:$0xff] %v2098_v26  ;;  %v2337_v36 = vmul.f32 %v4684_v53, %v2173_v2  ;;  %v2207_v10 = vadd.f32 %v4703_v46, %v2187_v60  ;;  %v4757_v23 = vld [vmem:[%s5144_s12] ss:$0 sm:$0xff] }
 0x6db   :  { %v2284_v52 = vadd.f32 %v2276_v57, %v2264_v62  ;;  %v2265_v25 = vadd.f32 %v4699_v17, %v2245_v58  ;;  %v4750_v55 = vmul.f32 %v4648_v40, %v2098_v26  ;;  %v2219_v11 = vmul.f32 %v4657_v51, %v2173_v2 }
 0x6dc   :  { %v2323_v9 = vadd.f32 %v2315_v63, %v2303_v42  ;;  %v2259_v27 = vmul.f32 %v4671_v5, %v2095_v7  ;;  %v4760_v17 = vmul.f32 %v4671_v5, %v2098_v26  ;;  %v4763_v46 = vmul.f32 %v4675_v13, %v2098_v26 }
 0x6dd   :  { %v2304_v21 = vadd.f32 %v2296_v29, %v2284_v52  ;;  %v2285_v22 = vadd.f32 %v2277_v43, %v2265_v25  ;;  %v2227_v18 = vadd.f32 %v2219_v11, %v2207_v10  ;;  %v4766_v63 = vmul.f32 %v4675_v13, %v2103_v14 }
 0x6de   :  { %v2343_v60 = vadd.f32 %v2335_v38, %v2323_v9  ;;  %v4769_v2 = vmul.f32 %v4671_v5, %v2103_v14  ;;  %v4771_v1 = vld [vmem:[#allocation2 + $0x70] sm:$0xff]  ;;  %v4777_v29 = vmul.f32 %v4671_v5, %v2106_v35  ;;  %v4780_v7 = vmul.f32 %v4675_v13, %v2106_v35 }
 0x6df   :  { %v4773_v57 = vld [vmem:[#allocation2 + $0x72] sm:$0xff]  ;;  %v2324_v43 = vadd.f32 %v4707_v32, %v2304_v21  ;;  %v2305_v6 = vadd.f32 %v2297_v3, %v2285_v22  ;;  %v4784_v38 = vmul.f32 %v4644_v19, %v4771_v1  ;;  %v4791_v0 = vmul.f32 %v4673_v34, %v4771_v1 }
 0x6e0   :  { %v2154_v30 = vld [vmem:[#allocation2 + $0x50] sm:$0xff]  ;;  %v4787_v44 = vadd.f32 %v4757_v23, %v2343_v60  ;;  %v4795_v32 = vmul.f32 %v4684_v53, %v4773_v57 }
 0x6e1   :  { %v2174_v14 = vld [vmem:[#allocation2 + $0x52] sm:$0xff]  ;;  %v2188_v35 = vmul.f32 %v4644_v19, %v2154_v30  ;;  %v2344_v56 = vadd.f32 %v2336_v48, %v2324_v43  ;;  %v2298_v15 = vmul.f32 %v4673_v34, %v2154_v30  ;;  %v2325_v45 = vadd.f32 %v4713_v61, %v2305_v6  ;;  %v2155_v3 = vld [vmem:[#allocation2 + $0x60] sm:$0xff] }
 0x6e2   :  { %v2365_v26 = vmul.f32 %v4787_v44, %v4787_v44  ;;  %v2338_v62 = vmul.f32 %v4684_v53, %v2174_v14  ;;  %v2220_v58 = vmul.f32 %v4657_v51, %v2174_v14  ;;  %v2239_v42 = vmul.f32 %v4677_v50, %v2154_v30  ;;  %v2175_v60 = vld [vmem:[#allocation2 + $0x62] sm:$0xff] }
 0x6e3   :  { %v2189_v52 = vmul.f32 %v4644_v19, %v2155_v3  ;;  %v4807_v25 = vadd.f32 %v4757_v23, %v2344_v56  ;;  %v2306_v48 = vadd.f32 %v2298_v15, %v2286_v54  ;;  %v2345_v10 = vadd.f32 %v2337_v36, %v2325_v45 }
 0x6e4   :  { %v2373_v9 = vmul.f32 %v2365_v26, %v4787_v44  ;;  %v2208_v61 = vadd.f32 %v2200_v39, %v2188_v35  ;;  %v2240_v11 = vmul.f32 %v4677_v50, %v2155_v3  ;;  %v2247_v21 = vadd.f32 %v2239_v42, %v2227_v18  ;;  %v3288_v22 = vpop.f32.mrb[64].mxu0 }
 0x6e5   :  { %v2366_v43 = vmul.f32 %v4807_v25, %v4807_v25  ;;  %v2326_v6 = vadd.f32 %v2318_v12, %v2306_v48  ;;  %v4814_v30 = vadd.f32 %v4757_v23, %v2345_v10  ;;  %v2279_v56 = vmul.f32 %v4679_v33, %v2174_v14  ;;  %v2110_v36 = vpop.f32.mrb[65].mxu0 }
 0x6e6   :  { %v4818_v54 = vadd.f32 %v3288_v22, %v4653_v24  ;;  %v2381_v15 = vmul.f32 0.044715, %v2373_v9  ;;  %v2228_v39 = vadd.f32 %v2220_v58, %v2208_v61  ;;  %v2267_v35 = vadd.f32 %v2259_v27, %v2247_v21  ;;  %v3289_v45 = vpop.f32.mrb[66].mxu0 }
 0x6e7   :  { %v4821_v18 = vadd.f32 %v4653_v24, %v2110_v36  ;;  %v2374_v26 = vmul.f32 %v2366_v43, %v4807_v25  ;;  %v2346_v42 = vadd.f32 %v2338_v62, %v2326_v6  ;;  %v2367_v12 = vmul.f32 %v4814_v30, %v4814_v30  ;;  %v2113_v48 = vpop.f32.mrb[67].mxu0 }
 0x6e8   :  { %2439 = vst [vmem:[#allocation2 + $0x31] sm:$0xff] %v4818_v54  ;;  %v4828_v14 = vadd.f32 %v3289_v45, %v4653_v24  ;;  %v2389_v10 = vadd.f32 %v2381_v15, %v4787_v44  ;;  %v2248_v58 = vadd.f32 %v2240_v11, %v2228_v39  ;;  %v2280_v27 = vmul.f32 %v4679_v33, %v2175_v60 }
 0x6e9   :  { %2437 = vst [vmem:[#allocation2 + $0x11] sm:$0xff] %v4821_v18  ;;  %v4834_v9 = vadd.f32 %v4653_v24, %v2113_v48  ;;  %v2382_v62 = vmul.f32 0.044715, %v2374_v26  ;;  %v4837_v61 = vadd.f32 %v4757_v23, %v2346_v42  ;;  %v2375_v21 = vmul.f32 %v2367_v12, %v4814_v30 }
 0x6ea   :  { %2440 = vst [vmem:[#allocation2 + $0x41] sm:$0xff] %v4828_v14  ;;  %v2397_v22 = vmul.f32 0.7978846, %v2389_v10  ;;  %v2268_v43 = vadd.f32 %v4760_v17, %v2248_v58  ;;  %v2287_v6 = vadd.f32 %v2279_v56, %v2267_v35  ;;  %v2299_v11 = vmul.f32 %v4673_v34, %v2155_v3  ;;  %v2157_v35 = vld [vmem:[#allocation2 + $0x80] sm:$0xff] }
 0x6eb   :  { %2438 = vst [vmem:[#allocation2 + $0x21] sm:$0xff] %v4834_v9  ;;  %v2390_v36 = vadd.f32 %v2382_v62, %v4807_v25  ;;  %v2368_v15 = vmul.f32 %v4837_v61, %v4837_v61  ;;  %v2383_v39 = vmul.f32 0.044715, %v2375_v21  ;;  %v2339_v45 = vmul.f32 %v4684_v53, %v2175_v60  ;;  %v2177_v21 = vld [vmem:[#allocation2 + $0x82] sm:$0xff] }
 0x6ec   :  { %3560 = vtanh.f32 %v2397_v22  ;;  %v2288_v26 = vadd.f32 %v2280_v27, %v2268_v43  ;;  %v2307_v42 = vadd.f32 %v2299_v11, %v2287_v6  ;;  %v2209_v12 = vadd.f32 %v4750_v55, %v2189_v52 }
 0x6ed   :  { %v2398_v48 = vmul.f32 0.7978846, %v2390_v36  ;;  %v2376_v17 = vmul.f32 %v2368_v15, %v4837_v61  ;;  %v2391_v3 = vadd.f32 %v2383_v39, %v4814_v30  ;;  %v2210_v56 = vadd.f32 %v4742_v16, %v4784_v38 }
 0x6ee   :  { %v2308_v10 = vadd.f32 %v4791_v0, %v2288_v26  ;;  %v2327_v58 = vadd.f32 %v4763_v46, %v2307_v42  ;;  %v2221_v62 = vmul.f32 %v4657_v51, %v2175_v60  ;;  %v2222_v27 = vmul.f32 %v4657_v51, %v4773_v57 }
 0x6ef   :  { %3562 = vtanh.f32 %v2398_v48  ;;  %v2384_v55 = vmul.f32 0.044715, %v2376_v17  ;;  %v2399_v52 = vmul.f32 0.7978846, %v2391_v3  ;;  %v2241_v22 = vmul.f32 %v4677_v50, %v4771_v1  ;;  %v4882_v3 = vld [vmem:[#allocation2 + $0x30] sm:$0xff] }
 0x6f0   :  { %v2328_v43 = vadd.f32 %v4766_v63, %v2308_v10  ;;  %v2347_v16 = vadd.f32 %v2339_v45, %v2327_v58  ;;  %v2229_v38 = vadd.f32 %v2221_v62, %v2209_v12  ;;  %v2230_v6 = vadd.f32 %v2222_v27, %v2210_v56  ;;  %v4865_v11 = vld [vmem:[#allocation2 + $0x10] sm:$0xff] }
 0x6f1   :  { %v2392_v0 = vadd.f32 %v2384_v55, %v4837_v61  ;;  %3564 = vtanh.f32 %v2399_v52  ;;  %v2242_v46 = vmul.f32 %v4677_v50, %v2157_v35  ;;  %v2281_v60 = vmul.f32 %v4679_v33, %v4773_v57  ;;  %v2468_v49 = vld [vmem:[#allocation2 + $0x32] sm:$0xff] }
 0x6f2   :  { %v2348_v36 = vadd.f32 %v4795_v32, %v2328_v43  ;;  %v4869_v15 = vadd.f32 %v4757_v23, %v2347_v16  ;;  %v2249_v1 = vadd.f32 %v2241_v22, %v2229_v38  ;;  %v2282_v63 = vmul.f32 %v4679_v33, %v2177_v21  ;;  %v4872_v39 = vld [vmem:[#allocation2 + $0x20] sm:$0xff] }
 0x6f3   :  { %v2400_v45 = vmul.f32 0.7978846, %v2392_v0  ;;  %v2250_v26 = vadd.f32 %v2242_v46, %v2230_v6  ;;  %v2301_v42 = vmul.f32 %v4673_v34, %v2157_v35  ;;  %v2341_v12 = vmul.f32 %v4684_v53, %v2177_v21  ;;  %v3292_v48 = vpop.f32.mrb[68].mxu0 }
 0x6f4   :  { %v4877_v57 = vadd.f32 %v4757_v23, %v2348_v36  ;;  %v2369_v32 = vmul.f32 %v4869_v15, %v4869_v15  ;;  %v2269_v17 = vadd.f32 %v4769_v2, %v2249_v1  ;;  %v2476_v56 = vmul.f32 %v4865_v11, %v4644_v19  ;;  %v2126_v35 = vpop.f32.mrb[69].mxu0 }
 0x6f5   :  { %v4887_v10 = vadd.f32 %v3292_v48, %v4653_v24  ;;  %3566 = vtanh.f32 %v2400_v45  ;;  %v2270_v58 = vadd.f32 %v4777_v29, %v2250_v26  ;;  %v2477_v62 = vmul.f32 %v4872_v39, %v4644_v19  ;;  %v3293_v2 = vpop.f32.mrb[70].mxu0 }
 0x6f6   :  { %v3561_v27 = vpop.eup %3560  ;;  %v4893_v21 = vadd.f32 %v4653_v24, %v2126_v35  ;;  %v2370_v55 = vmul.f32 %v4877_v57, %v4877_v57  ;;  %v2377_v52 = vmul.f32 %v2369_v32, %v4869_v15  ;;  %v2289_v22 = vadd.f32 %v2281_v60, %v2269_v17  ;;  %v2129_v29 = vpop.f32.mrb[71].mxu0 }
 0x6f7   :  { %2443 = vst [vmem:[#allocation2 + $0x71] sm:$0xff] %v4887_v10  ;;  %v4900_v43 = vadd.f32 %v3293_v2, %v4653_v24  ;;  %v2413_v16 = vadd.f32 1.0, %v3561_v27  ;;  %v2290_v38 = vadd.f32 %v2282_v63, %v2270_v58  ;;  %v2478_v6 = vmul.f32 %v4882_v3, %v4644_v19 }
 0x6f8   :  { %2441 = vst [vmem:[#allocation2 + $0x51] sm:$0xff] %v4893_v21  ;;  %v4906_v0 = vadd.f32 %v4653_v24, %v2129_v29  ;;  %v2378_v46 = vmul.f32 %v2370_v55, %v4877_v57  ;;  %v2385_v36 = vmul.f32 0.044715, %v2377_v52  ;;  %v2309_v60 = vadd.f32 %v2301_v42, %v2289_v22 }
 0x6f9   :  { %v3563_v1 = vpop.eup %3562  ;;  %2444 = vst [vmem:[#allocation2 + $0x81] sm:$0xff] %v4900_v43  ;;  %v2421_v45 = vmul.f32 0.5, %v2413_v16  ;;  %v2310_v26 = vadd.f32 %v4689_v59, %v2290_v38  ;;  %v2484_v63 = vmul.f32 %v4648_v40, %v4821_v18  ;;  %v2485_v48 = vmul.f32 %v4648_v40, %v4834_v9  ;;  %v2466_v38 = vld [vmem:[#allocation2 + $0x12] sm:$0xff] }
 0x6fa   :  { %2442 = vst [vmem:[#allocation2 + $0x61] sm:$0xff] %v4906_v0  ;;  %v2414_v24 = vadd.f32 1.0, %v3563_v1  ;;  %v2386_v32 = vmul.f32 0.044715, %v2378_v46  ;;  %v2393_v17 = vadd.f32 %v2385_v36, %v4869_v15  ;;  %v2329_v42 = vadd.f32 %v4780_v7, %v2309_v60  ;;  %v4923_v46 = vld [vmem:[#allocation2 + $0x22] sm:$0xff] }
 0x6fb   :  { %v3565_v35 = vpop.eup %3564  ;;  %v2429_v58 = vmul.f32 %v2421_v45, %v4787_v44  ;;  %v2330_v27 = vadd.f32 %v4692_v8, %v2310_v26  ;;  %v2486_v2 = vmul.f32 %v4648_v40, %v4818_v54  ;;  %v2492_v55 = vadd.f32 %v2484_v63, %v2476_v56 }
 0x6fc   :  { %v2422_v52 = vmul.f32 0.5, %v2414_v24  ;;  %v2415_v22 = vadd.f32 1.0, %v3565_v35  ;;  %v2394_v29 = vadd.f32 %v2386_v32, %v4877_v57  ;;  %v2401_v16 = vmul.f32 0.7978846, %v2393_v17 }
 0x6fd   :  { %v2349_v36 = vadd.f32 %v2341_v12, %v2329_v42  ;;  %v2350_v7 = vadd.f32 %v4695_v28, %v2330_v27  ;;  %v2493_v60 = vadd.f32 %v2485_v48, %v2477_v62  ;;  %v2494_v1 = vadd.f32 %v2486_v2, %v2478_v6 }
 0x6fe   :  { %v2430_v44 = vmul.f32 %v2422_v52, %v4807_v25  ;;  %v2423_v45 = vmul.f32 0.5, %v2415_v22  ;;  %v2402_v26 = vmul.f32 0.7978846, %v2394_v29  ;;  %3568 = vtanh.f32 %v2401_v16 }
 0x6ff   :  { %v3567_v56 = vpop.eup %3566  ;;  %v4928_v63 = vadd.f32 %v4757_v23, %v2349_v36  ;;  %v4931_v24 = vadd.f32 %v4757_v23, %v2350_v7  ;;  %v2500_v32 = vmul.f32 %v2466_v38, %v4657_v51  ;;  %v2501_v12 = vmul.f32 %v4923_v46, %v4657_v51 }
 0x700   :  { %v2691_v62 = vpack.c.bf16 %v2430_v44, %v2429_v58  ;;  %v2416_v6 = vadd.f32 1.0, %v3567_v56  ;;  %v2431_v25 = vmul.f32 %v2423_v45, %v4814_v30  ;;  %3570 = vtanh.f32 %v2402_v26 }
 0x701   :  { %v2371_v48 = vmul.f32 %v4928_v63, %v4928_v63  ;;  %v2372_v17 = vmul.f32 %v4931_v24, %v4931_v24  ;;  %v2502_v42 = vmul.f32 %v2468_v49, %v4657_v51  ;;  %v2508_v35 = vadd.f32 %v2500_v32, %v2492_v55 }
 0x702   :  { %3310 = vmatprep.mubr.bf16.mxu1 %v2691_v62  ;;  %v2424_v27 = vmul.f32 0.5, %v2416_v6  ;;  %v4942_v2 = vadd.f32 %v2501_v12, %v2493_v60  ;;  %v2515_v58 = vmul.f32 %v4865_v11, %v4677_v50  ;;  %v2516_v30 = vmul.f32 %v4872_v39, %v4677_v50 }
 0x703   :  { %v2379_v52 = vmul.f32 %v2371_v48, %v4928_v63  ;;  %v2380_v22 = vmul.f32 %v2372_v17, %v4931_v24  ;;  %v4950_v29 = vadd.f32 %v2502_v42, %v2494_v1  ;;  %v2517_v16 = vmul.f32 %v4882_v3, %v4677_v50  ;;  %v2449_v42 = vld [vmem:[#allocation2 + $0x40] sm:$0xff] }
 0x704   :  { %v2432_v55 = vmul.f32 %v2424_v27, %v4837_v61  ;;  %v2523_v36 = vadd.f32 %v2515_v58, %v4686_v41  ;;  %v2524_v7 = vadd.f32 %v2516_v30, %v2508_v35  ;;  %v2531_v11 = vmul.f32 %v4671_v5, %v4821_v18 }
 0x705   :  { %v2387_v60 = vmul.f32 0.044715, %v2379_v52  ;;  %v2388_v44 = vmul.f32 0.044715, %v2380_v22  ;;  %v2532_v45 = vmul.f32 %v4671_v5, %v4834_v9  ;;  %v2533_v1 = vmul.f32 %v4671_v5, %v4818_v54  ;;  %v2450_v52 = vld [vmem:[#allocation2 + $0x50] sm:$0xff] }
 0x706   :  { %v2692_v26 = vpack.c.bf16 %v2432_v55, %v2431_v25  ;;  %v2539_v56 = vadd.f32 %v2531_v11, %v2523_v36  ;;  %v2547_v32 = vmul.f32 %v2466_v38, %v4679_v33  ;;  %v2548_v61 = vmul.f32 %v4923_v46, %v4679_v33 }
 0x707   :  { %v2395_v41 = vadd.f32 %v2387_v60, %v4928_v63  ;;  %v2396_v12 = vadd.f32 %v2388_v44, %v4931_v24  ;;  %v2540_v18 = vadd.f32 %v2532_v45, %v2524_v7  ;;  %v4968_v62 = vmul.f32 %v2468_v49, %v4679_v33  ;;  %v2469_v60 = vld [vmem:[#allocation2 + $0x42] sm:$0xff]  ;;  %v2470_v44 = vld [vmem:[#allocation2 + $0x52] sm:$0xff] }
 0x708   :  { %v3569_v6 = vpop.eup %3568  ;;  %3311 = vmatmul.mubr.bf16.vlgmr.msra.gmra.mrb[56].mxu1 %v2692_v26  ;;  %v2555_v48 = vadd.f32 %v2547_v32, %v2539_v56  ;;  %v2563_v25 = vmul.f32 %v4872_v39, %v4673_v34  ;;  %v2564_v38 = vmul.f32 %v4882_v3, %v4673_v34  ;;  %v2579_v17 = vmul.f32 %v4675_v13, %v4834_v9 }
 0x709   :  { %v2417_v35 = vadd.f32 1.0, %v3569_v6  ;;  %v2403_v27 = vmul.f32 0.7978846, %v2395_v41  ;;  %v2404_v58 = vmul.f32 0.7978846, %v2396_v12  ;;  %v2556_v30 = vadd.f32 %v2548_v61, %v2540_v18 }
 0x70a   :  { %v3571_v22 = vpop.eup %3570  ;;  %v2571_v55 = vadd.f32 %v2563_v25, %v2555_v48  ;;  %v2580_v36 = vmul.f32 %v4675_v13, %v4818_v54  ;;  %v2595_v39 = vmul.f32 %v4684_v53, %v4923_v46  ;;  %v2596_v7 = vmul.f32 %v4684_v53, %v2468_v49 }
 0x70b   :  { %v2418_v3 = vadd.f32 1.0, %v3571_v22  ;;  %v2425_v11 = vmul.f32 0.5, %v2417_v35  ;;  %3572 = vtanh.f32 %v2403_v27  ;;  %v2572_v9 = vadd.f32 %v2564_v38, %v2556_v30 }
 0x70c   :  { %3574 = vtanh.f32 %v2404_v58  ;;  %v2587_v45 = vadd.f32 %v2579_v17, %v2571_v55  ;;  %v2479_v26 = vmul.f32 %v2449_v42, %v4644_v19  ;;  %v2480_v56 = vmul.f32 %v2450_v52, %v4644_v19 }
 0x70d   :  { %v2426_v32 = vmul.f32 0.5, %v2418_v3  ;;  %v2433_v54 = vmul.f32 %v2425_v11, %v4869_v15  ;;  %v2588_v61 = vadd.f32 %v2580_v36, %v2572_v9  ;;  %v2487_v46 = vmul.f32 %v4648_v40, %v4828_v14 }
 0x70e   :  { %v2603_v49 = vadd.f32 %v2595_v39, %v2587_v45  ;;  %v2488_v41 = vmul.f32 %v4648_v40, %v4893_v21  ;;  %v2503_v12 = vmul.f32 %v2469_v60, %v4657_v51  ;;  %v2504_v18 = vmul.f32 %v2470_v44, %v4657_v51 }
 0x70f   :  { %v2434_v6 = vmul.f32 %v2426_v32, %v4877_v57  ;;  %v2604_v48 = vadd.f32 %v2596_v7, %v2588_v61  ;;  %v2495_v25 = vadd.f32 %v2487_v46, %v2479_v26  ;;  %v2518_v38 = vmul.f32 %v2449_v42, %v4677_v50  ;;  %v2451_v46 = vld [vmem:[#allocation2 + $0x60] sm:$0xff] }
 0x710   :  { %v4993_v15 = vadd.f32 %v4757_v23, %v2603_v49  ;;  %v2496_v17 = vadd.f32 %v2488_v41, %v2480_v56  ;;  %v4996_v35 = vmul.f32 %v2450_v52, %v4677_v50  ;;  %v2525_v27 = vadd.f32 %v2517_v16, %v4942_v2 }
 0x711   :  { %v2693_v58 = vpack.c.bf16 %v2434_v6, %v2433_v54  ;;  %v5000_v30 = vadd.f32 %v4757_v23, %v2604_v48  ;;  %v5002_v22 = vadd.f32 %v2503_v12, %v2495_v25  ;;  %v2526_v57 = vadd.f32 %v2518_v38, %v4950_v29  ;;  %v2452_v6 = vld [vmem:[#allocation2 + $0x70] sm:$0xff] }
 0x712   :  { %v2619_v55 = vmul.f32 %v4993_v15, %v4993_v15  ;;  %v5007_v36 = vadd.f32 %v2504_v18, %v2496_v17  ;;  %v2534_v39 = vmul.f32 %v4671_v5, %v4828_v14  ;;  %v5013_v7 = vmul.f32 %v4671_v5, %v4893_v21 }
 0x713   :  { %3314 = vmatprep.mubr.bf16.mxu1 %v2693_v58  ;;  %v2620_v2 = vmul.f32 %v5000_v30, %v5000_v30  ;;  %v2541_v16 = vadd.f32 %v2533_v1, %v2525_v27  ;;  %v2550_v3 = vmul.f32 %v2469_v60, %v4679_v33  ;;  %v5019_v29 = vmul.f32 %v2470_v44, %v4679_v33 }
 0x714   :  { %v2627_v11 = vmul.f32 %v2619_v55, %v4993_v15  ;;  %v2542_v9 = vadd.f32 %v2534_v39, %v2526_v57  ;;  %v2565_v45 = vmul.f32 %v2449_v42, %v4673_v34  ;;  %v2566_v26 = vmul.f32 %v2450_v52, %v4673_v34  ;;  %v2471_v55 = vld [vmem:[#allocation2 + $0x62] sm:$0xff] }
 0x715   :  { %v3573_v56 = vpop.eup %3572  ;;  %v2628_v32 = vmul.f32 %v2620_v2, %v5000_v30  ;;  %v2557_v54 = vadd.f32 %v4968_v62, %v2541_v16  ;;  %v2581_v1 = vmul.f32 %v4675_v13, %v4828_v14  ;;  %v2582_v61 = vmul.f32 %v4675_v13, %v4893_v21 }
 0x716   :  { %v3575_v49 = vpop.eup %3574  ;;  %v2419_v41 = vadd.f32 1.0, %v3573_v56  ;;  %v2635_v12 = vmul.f32 0.044715, %v2627_v11  ;;  %v2558_v18 = vadd.f32 %v2550_v3, %v2542_v9  ;;  %v2597_v42 = vmul.f32 %v4684_v53, %v2469_v60 }
 0x717   :  { %v2420_v52 = vadd.f32 1.0, %v3575_v49  ;;  %v2636_v48 = vmul.f32 0.044715, %v2628_v32  ;;  %v2573_v25 = vadd.f32 %v2565_v45, %v2557_v54  ;;  %v2598_v38 = vmul.f32 %v4684_v53, %v2470_v44  ;;  %v2472_v45 = vld [vmem:[#allocation2 + $0x72] sm:$0xff] }
 0x718   :  { %v2427_v62 = vmul.f32 0.5, %v2419_v41  ;;  %v2643_v17 = vadd.f32 %v2635_v12, %v4993_v15  ;;  %v2574_v14 = vadd.f32 %v2566_v26, %v2558_v18  ;;  %v2481_v27 = vmul.f32 %v2451_v46, %v4644_v19 }
 0x719   :  { %v2428_v21 = vmul.f32 0.5, %v2420_v52  ;;  %v2644_v58 = vadd.f32 %v2636_v48, %v5000_v30  ;;  %v2589_v57 = vadd.f32 %v2581_v1, %v2573_v25  ;;  %v2482_v39 = vmul.f32 %v2452_v6, %v4644_v19 }
 0x71a   :  { %v2435_v60 = vmul.f32 %v2427_v62, %v4928_v63  ;;  %v2651_v2 = vmul.f32 0.7978846, %v2643_v17  ;;  %v2590_v16 = vadd.f32 %v2582_v61, %v2574_v14  ;;  %v2489_v44 = vmul.f32 %v4648_v40, %v4906_v0 }
 0x71b   :  { %v2436_v3 = vmul.f32 %v2428_v21, %v4931_v24  ;;  %v2652_v11 = vmul.f32 0.7978846, %v2644_v58  ;;  %v2605_v9 = vadd.f32 %v2597_v42, %v2589_v57  ;;  %v2490_v26 = vmul.f32 %v4648_v40, %v4887_v10  ;;  %v2453_v58 = vld [vmem:[#allocation2 + $0x80] sm:$0xff] }
 0x71c   :  { %3576 = vtanh.f32 %v2651_v2  ;;  %v2606_v56 = vadd.f32 %v2598_v38, %v2590_v16  ;;  %v2497_v32 = vadd.f32 %v2489_v44, %v2481_v27  ;;  %v2505_v19 = vmul.f32 %v2471_v55, %v4657_v51 }
 0x71d   :  { %v2694_v54 = vpack.c.bf16 %v2436_v3, %v2435_v60  ;;  %3578 = vtanh.f32 %v2652_v11  ;;  %v5044_v63 = vadd.f32 %v4757_v23, %v2605_v9  ;;  %v2498_v1 = vadd.f32 %v2490_v26, %v2482_v39  ;;  %v2473_v60 = vld [vmem:[#allocation2 + $0x82] sm:$0xff] }
 0x71e   :  { %v5047_v61 = vadd.f32 %v4757_v23, %v2606_v56  ;;  %v2506_v24 = vmul.f32 %v2472_v45, %v4657_v51  ;;  %v2513_v49 = vadd.f32 %v2505_v19, %v2497_v32  ;;  %v2520_v41 = vmul.f32 %v2451_v46, %v4677_v50 }
 0x71f   :  { %3315 = vmatmul.mubr.bf16.gmra.mrb[60].mxu1 %v2694_v54  ;;  %v2621_v40 = vmul.f32 %v5044_v63, %v5044_v63  ;;  %v2521_v12 = vmul.f32 %v2452_v6, %v4677_v50  ;;  %v2527_v18 = vadd.f32 %v4996_v35, %v5002_v22  ;;  %v2536_v42 = vmul.f32 %v4671_v5, %v4906_v0 }
 0x720   :  { %v2622_v52 = vmul.f32 %v5047_v61, %v5047_v61  ;;  %v2514_v48 = vadd.f32 %v2506_v24, %v2498_v1  ;;  %v2528_v51 = vadd.f32 %v2520_v41, %v5007_v36  ;;  %v2537_v25 = vmul.f32 %v4671_v5, %v4887_v10 }
 0x721   :  { %v2629_v38 = vmul.f32 %v2621_v40, %v5044_v63  ;;  %v2543_v62 = vadd.f32 %v5013_v7, %v2527_v18  ;;  %v2552_v17 = vmul.f32 %v2471_v55, %v4679_v33  ;;  %v2553_v35 = vmul.f32 %v2472_v45, %v4679_v33 }
 0x722   :  { %v2630_v22 = vmul.f32 %v2622_v52, %v5047_v61  ;;  %v2544_v14 = vadd.f32 %v2536_v42, %v2528_v51  ;;  %v2567_v27 = vmul.f32 %v2451_v46, %v4673_v34  ;;  %v2568_v21 = vmul.f32 %v2452_v6, %v4673_v34 }
 0x723   :  { %v2637_v36 = vmul.f32 0.044715, %v2629_v38  ;;  %v2559_v57 = vadd.f32 %v5019_v29, %v2543_v62  ;;  %v2583_v39 = vmul.f32 %v4675_v13, %v4906_v0  ;;  %v2584_v7 = vmul.f32 %v4675_v13, %v4887_v10 }
 0x724   :  { %v2638_v2 = vmul.f32 0.044715, %v2630_v22  ;;  %v2560_v16 = vadd.f32 %v2552_v17, %v2544_v14  ;;  %v2599_v44 = vmul.f32 %v4684_v53, %v2471_v55  ;;  %v2600_v3 = vmul.f32 %v4684_v53, %v2472_v45 }
 0x725   :  { %v2645_v46 = vadd.f32 %v2637_v36, %v5044_v63  ;;  %v2575_v6 = vadd.f32 %v2567_v27, %v2559_v57  ;;  %v2522_v11 = vmul.f32 %v2453_v58, %v4677_v50  ;;  %v2529_v9 = vadd.f32 %v2521_v12, %v2513_v49 }
 0x726   :  { %v3577_v29 = vpop.eup %3576  ;;  %v2646_v26 = vadd.f32 %v2638_v2, %v5047_v61  ;;  %v2576_v0 = vadd.f32 %v2568_v21, %v2560_v16  ;;  %v2538_v10 = vmul.f32 %v4671_v5, %v4900_v43  ;;  %v2554_v56 = vmul.f32 %v2473_v60, %v4679_v33 }
 0x727   :  { %v3579_v32 = vpop.eup %3578  ;;  %v2667_v19 = vadd.f32 1.0, %v3577_v29  ;;  %v2653_v55 = vmul.f32 0.7978846, %v2645_v46  ;;  %v2591_v54 = vadd.f32 %v2583_v39, %v2575_v6  ;;  %v2530_v45 = vadd.f32 %v2522_v11, %v2514_v48 }
 0x728   :  { %v2668_v1 = vadd.f32 1.0, %v3579_v32  ;;  %v2654_v24 = vmul.f32 0.7978846, %v2646_v26  ;;  %v2592_v41 = vadd.f32 %v2584_v7, %v2576_v0  ;;  %v2545_v40 = vadd.f32 %v2537_v25, %v2529_v9 }
 0x729   :  { %v2675_v50 = vmul.f32 0.5, %v2667_v19  ;;  %3580 = vtanh.f32 %v2653_v55  ;;  %v2607_v49 = vadd.f32 %v2599_v44, %v2591_v54  ;;  %v2546_v12 = vadd.f32 %v2538_v10, %v2530_v45 }
 0x72a   :  { %v2676_v18 = vmul.f32 0.5, %v2668_v1  ;;  %3582 = vtanh.f32 %v2654_v24  ;;  %v2608_v42 = vadd.f32 %v2600_v3, %v2592_v41  ;;  %v2561_v52 = vadd.f32 %v2553_v35, %v2545_v40 }
 0x72b   :  { %v2615_v5 = vadd.f32 %v4757_v23, %v2607_v49  ;;  %v2562_v33 = vadd.f32 %v2554_v56, %v2546_v12  ;;  %v2569_v51 = vmul.f32 %v2453_v58, %v4673_v34  ;;  %v2683_v38 = vmul.f32 %v2675_v50, %v4993_v15 }
 0x72c   :  { %v2684_v48 = vmul.f32 %v2676_v18, %v5000_v30  ;;  %v2616_v62 = vadd.f32 %v4757_v23, %v2608_v42  ;;  %v2585_v14 = vmul.f32 %v4675_v13, %v4900_v43  ;;  %v2601_v34 = vmul.f32 %v4684_v53, %v2473_v60 }
 0x72d   :  { %v2623_v25 = vmul.f32 %v2615_v5, %v2615_v5  ;;  %v2577_v17 = vadd.f32 %v2569_v51, %v2561_v52  ;;  %v2578_v22 = vadd.f32 %v2562_v33, %v4689_v59 }
 0x72e   :  { %v2695_v27 = vpack.c.bf16 %v2684_v48, %v2683_v38  ;;  %v2624_v35 = vmul.f32 %v2616_v62, %v2616_v62 }
 0x72f   :  { %v2631_v21 = vmul.f32 %v2623_v25, %v2615_v5  ;;  %v2593_v36 = vadd.f32 %v2585_v14, %v2577_v17  ;;  %v2594_v57 = vadd.f32 %v2578_v22, %v4692_v8  ;;  %v2981_v17 = vld [vmem:[%s5146_s14] ss:$0 sm:$0xff]  ;;  %s3761_s14 = smov [#allocation12]  }
 0x730   :  { %3318 = vmatprep.mubr.bf16.mxu1 %v2695_v27  ;;  %v2632_v15 = vmul.f32 %v2624_v35, %v2616_v62  ;;  %s2903_s17 = sshll.u32 %s3761_s14, 4  ;;  %s2904_s17 = int_to_ptr.vmem [resolvable:$true] %s2903_s17 }
 0x731   :  { %v2639_v30 = vmul.f32 0.044715, %v2631_v21  ;;  %v2609_v58 = vadd.f32 %v2601_v34, %v2593_v36  ;;  %v2610_v39 = vadd.f32 %v2594_v57, %v4695_v28  ;;  %s3718_s20 = scalar_lea.vmem %s2904_s17, 2048  ;;  %p3723_p13 = scmp.lt.s32.totalorder %s2904_s17, %s2904_s17 }
 0x732   :  { %v2640_v7 = vmul.f32 0.044715, %v2632_v15  ;;  %p3719_p12 = scmp.ne.s32.totalorder %s2904_s17, %s3718_s20  ;;  %p3724_p0 = scmp.lt.s32.totalorder %s3718_s20, %s3718_s20 }
 0x733   :  { %v3581_v2 = vpop.eup %3580  ;;  %v2647_v59 = vadd.f32 %v2639_v30, %v2615_v5  ;;  %v2617_v16 = vadd.f32 %v4757_v23, %v2609_v58  ;;  %v2618_v13 = vadd.f32 %v4757_v23, %v2610_v39 }
 0x734   :  { %v3583_v43 = vpop.eup %3582  ;;  %v2669_v44 = vadd.f32 1.0, %v3581_v2  ;;  %v2648_v3 = vadd.f32 %v2640_v7, %v2616_v62  ;;  %p3725_p1 = por %p3724_p0, %p3723_p13 }
 0x735   :  { %v2670_v46 = vadd.f32 1.0, %v3583_v43  ;;  %v2655_v8 = vmul.f32 0.7978846, %v2647_v59  ;;  %v2625_v6 = vmul.f32 %v2617_v16, %v2617_v16  ;;  %v2626_v53 = vmul.f32 %v2618_v13, %v2618_v13  ;;  %v5172_v43 = vld [vmem:[#allocation18_spill] sm:$0xff] }
 0x736   :  { %v2677_v60 = vmul.f32 0.5, %v2669_v44  ;;  %v2656_v11 = vmul.f32 0.7978846, %v2648_v3  ;;  %v5173_v3 = vld [vmem:[#allocation17_spill] sm:$0xff]  ;;  %p3726_p2 = pnand %p3725_p1, %p3719_p12 }
 0x737   :  { %v2678_v9 = vmul.f32 0.5, %v2670_v46  ;;  %3584 = vtanh.f32 %v2655_v8  ;;  %v2633_v29 = vmul.f32 %v2625_v6, %v2617_v16  ;;  %v2634_v28 = vmul.f32 %v2626_v53, %v2618_v13  ;;  %v5174_v46 = vld [vmem:[#allocation19_spill] sm:$0xff] }
 0x738   :  { %3586 = vtanh.f32 %v2656_v11  ;;  %v2685_v26 = vmul.f32 %v2677_v60, %v5044_v63 }
 0x739   :  { %v2686_v0 = vmul.f32 %v2678_v9, %v5047_v61  ;;  %v2641_v10 = vmul.f32 0.044715, %v2633_v29  ;;  %v2642_v23 = vmul.f32 0.044715, %v2634_v28  ;;  %v5175_v9 = vld [vmem:[#allocation20_spill] sm:$0xff] }
 0x73b   :  { %v2696_v56 = vpack.c.bf16 %v2686_v0, %v2685_v26  ;;  %v2649_v32 = vadd.f32 %v2641_v10, %v2617_v16  ;;  %v2650_v19 = vadd.f32 %v2642_v23, %v2618_v13  ;;  %v5176_v26 = vld [vmem:[#allocation22_spill] sm:$0xff]  ;;  %v5177_v23 = vld [vmem:[#allocation21_spill] sm:$0xff] }
 0x73d   :  { %3319 = vmatmul.mubr.bf16.gmra.mrb[64].mxu1 %v2696_v56  ;;  %v2657_v55 = vmul.f32 0.7978846, %v2649_v32  ;;  %v2658_v54 = vmul.f32 0.7978846, %v2650_v19  ;;  %v5178_v32 = vld [vmem:[#allocation23_spill] sm:$0xff] }
 0x73f   :  { %3588 = vtanh.f32 %v2657_v55 }
 0x740   :  { %3590 = vtanh.f32 %v2658_v54 }
 0x741   :  { %v3585_v45 = vpop.eup %3584 }
 0x742   :  { %v3587_v1 = vpop.eup %3586  ;;  %v2671_v24 = vadd.f32 1.0, %v3585_v45 }
 0x743   :  { %v2672_v41 = vadd.f32 1.0, %v3587_v1 }
 0x744   :  { %v2679_v40 = vmul.f32 0.5, %v2671_v24 }
 0x745   :  { %v2680_v50 = vmul.f32 0.5, %v2672_v41  ;;  %v5179_v41 = vld [vmem:[#allocation24_spill] sm:$0xff] }
 0x746   :  { %v2687_v49 = vmul.f32 %v2679_v40, %v2615_v5 }
 0x747   :  { %v2688_v63 = vmul.f32 %v2680_v50, %v2616_v62 }
 0x749   :  { %v3589_v12 = vpop.eup %3588  ;;  %v2697_v61 = vpack.c.bf16 %v2688_v63, %v2687_v49  ;;  %v5180_v63 = vld [vmem:[#allocation26_spill] sm:$0xff] }
 0x74a   :  { %v3591_v18 = vpop.eup %3590  ;;  %v2673_v42 = vadd.f32 1.0, %v3589_v12 }
 0x74b   :  { %3322 = vmatprep.mubr.bf16.mxu1 %v2697_v61  ;;  %v2674_v52 = vadd.f32 1.0, %v3591_v18  ;;  %v5181_v18 = vld [vmem:[#allocation25_spill] sm:$0xff] }
 0x74c   :  { %v2681_v33 = vmul.f32 0.5, %v2673_v42 }
 0x74d   :  { %v2682_v51 = vmul.f32 0.5, %v2674_v52  ;;  %v5182_v52 = vld [vmem:[#allocation27_spill] sm:$0xff] }
 0x74e   :  { %v2689_v38 = vmul.f32 %v2681_v33, %v2617_v16 }
 0x74f   :  { %v2690_v48 = vmul.f32 %v2682_v51, %v2618_v13 }
 0x751   :  { %v2698_v25 = vpack.c.bf16 %v2690_v48, %v2689_v38 }
 0x753   :  { %3323 = vmatmul.mubr.bf16.gmra.mrb[68].mxu1 %v2698_v25 }
 0x7db   :  { %v3312_v22 = vpop.f32.mrb[56].mxu1 }
 0x7dc   :  { %v2812_v14 = vadd.f32 %v3312_v22, %v2981_v17  ;;  %v2803_v5 = vpop.f32.mrb[57].mxu1 }
 0x7dd   :  { %v2804_v62 = vadd.f32 %v2981_v17, %v2803_v5  ;;  %v3313_v27 = vpop.f32.mrb[58].mxu1 }
 0x7de   :  { %v2868_v35 = vadd.f32 %v2812_v14, %v4441_v37  ;;  %v2815_v21 = vadd.f32 %v3313_v27, %v2981_v17  ;;  %v2806_v36 = vpop.f32.mrb[59].mxu1 }
 0x7df   :  { %v2866_v57 = vadd.f32 %v2804_v62, %v4449_v20  ;;  %v2807_v34 = vadd.f32 %v2981_v17, %v2806_v36 }
 0x7e0   :  { %2884 = vst [vmem:[#allocation12 + $0x10] sm:$0xff] %v2868_v35  ;;  %v2869_v15 = vadd.f32 %v2815_v21, %v4445_v47 }
 0x7e1   :  { %2882 = vst [vmem:[#allocation12] sm:$0xff] %v2866_v57  ;;  %v2867_v30 = vadd.f32 %v2807_v34, %v4452_v31 }
 0x7e2   :  { %2885 = vst [vmem:[#allocation12 + $0x18] sm:$0xff] %v2869_v15 }
 0x7e3   :  { %2883 = vst [vmem:[#allocation12 + $0x8] sm:$0xff] %v2867_v30 }
 0x7f2   :  { %v3316_v58 = vpop.f32.mrb[60].mxu1 }
 0x7f3   :  { %v2828_v39 = vadd.f32 %v3316_v58, %v2981_v17  ;;  %v2819_v7 = vpop.f32.mrb[61].mxu1 }
 0x7f4   :  { %v2820_v2 = vadd.f32 %v2981_v17, %v2819_v7  ;;  %v3317_v59 = vpop.f32.mrb[62].mxu1 }
 0x7f5   :  { %v2872_v37 = vadd.f32 %v2828_v39, %v4466_v4  ;;  %v2831_v16 = vadd.f32 %v3317_v59, %v2981_v17  ;;  %v2822_v13 = vpop.f32.mrb[63].mxu1 }
 0x7f6   :  { %v2870_v20 = vadd.f32 %v2820_v2, %v5172_v43  ;;  %v2823_v44 = vadd.f32 %v2981_v17, %v2822_v13 }
 0x7f7   :  { %2888 = vst [vmem:[#allocation12 + $0x30] sm:$0xff] %v2872_v37  ;;  %v2873_v47 = vadd.f32 %v2831_v16, %v5173_v3 }
 0x7f8   :  { %2886 = vst [vmem:[#allocation12 + $0x20] sm:$0xff] %v2870_v20  ;;  %v2871_v31 = vadd.f32 %v2823_v44, %v5174_v46 }
 0x7f9   :  { %2889 = vst [vmem:[#allocation12 + $0x38] sm:$0xff] %v2873_v47 }
 0x7fa   :  { %2887 = vst [vmem:[#allocation12 + $0x28] sm:$0xff] %v2871_v31 }
 0x810   :  { %v3320_v8 = vpop.f32.mrb[64].mxu1 }
 0x811   :  { %v2844_v6 = vadd.f32 %v3320_v8, %v2981_v17  ;;  %v2835_v53 = vpop.f32.mrb[65].mxu1 }
 0x812   :  { %v2836_v60 = vadd.f32 %v2981_v17, %v2835_v53  ;;  %v3321_v11 = vpop.f32.mrb[66].mxu1 }
 0x813   :  { %v2876_v4 = vadd.f32 %v2844_v6, %v5175_v9  ;;  %v2847_v29 = vadd.f32 %v3321_v11, %v2981_v17  ;;  %v2838_v28 = vpop.f32.mrb[67].mxu1 }
 0x814   :  { %v2874_v0 = vadd.f32 %v2836_v60, %v5176_v26  ;;  %v2839_v10 = vadd.f32 %v2981_v17, %v2838_v28 }
 0x815   :  { %2892 = vst [vmem:[#allocation12 + $0x50] sm:$0xff] %v2876_v4  ;;  %v2877_v56 = vadd.f32 %v2847_v29, %v5177_v23 }
 0x816   :  { %2890 = vst [vmem:[#allocation12 + $0x40] sm:$0xff] %v2874_v0  ;;  %v2875_v19 = vadd.f32 %v2839_v10, %v5178_v32 }
 0x817   :  { %2893 = vst [vmem:[#allocation12 + $0x58] sm:$0xff] %v2877_v56 }
 0x818   :  { %2891 = vst [vmem:[#allocation12 + $0x48] sm:$0xff] %v2875_v19 }
 0x826   :  { %v3324_v55 = vpop.f32.mrb[68].mxu1 }
 0x827   :  { %v2860_v54 = vadd.f32 %v3324_v55, %v2981_v17  ;;  %v2851_v45 = vpop.f32.mrb[69].mxu1 }
 0x828   :  { %v2852_v1 = vadd.f32 %v2981_v17, %v2851_v45  ;;  %v3325_v24 = vpop.f32.mrb[70].mxu1 }
 0x829   :  { %v2880_v40 = vadd.f32 %v2860_v54, %v5179_v41  ;;  %v2863_v50 = vadd.f32 %v3325_v24, %v2981_v17  ;;  %v2854_v49 = vpop.f32.mrb[71].mxu1 }
 0x82a   :  { %v2878_v12 = vadd.f32 %v2852_v1, %v5180_v63  ;;  %v2855_v61 = vadd.f32 %v2981_v17, %v2854_v49 }
 0x82b   :  { %2896 = vst [vmem:[#allocation12 + $0x70] sm:$0xff] %v2880_v40  ;;  %v2881_v42 = vadd.f32 %v2863_v50, %v5181_v18 }
 0x82c   :  { %2894 = vst [vmem:[#allocation12 + $0x60] sm:$0xff] %v2878_v12  ;;  %v2879_v33 = vadd.f32 %v2855_v61, %v5182_v52 }
 0x82d   :  { %2897 = vst [vmem:[#allocation12 + $0x78] sm:$0xff] %v2881_v42 }
 0x82e   :  { %2895 = vst [vmem:[#allocation12 + $0x68] sm:$0xff] %v2879_v33 }
 0x82f   :  { %3729 = shalt.err (!%p3726_p2)
}
 0x830   :  { %s5183_s5 = sld [smem:[#allocation28_spill]] }
 0x836   :  { %s3730_s29 = scalar_lea.hbm %s5183_s5, 2048 }
 0x837   :  { %p3731_p3 = scmp.ne.s32.totalorder %s5183_s5, %s3730_s29  ;;  %p3734_p4 = scmp.lt.u32.totalorder %s3730_s29, %s5183_s5 }
 0x839   :  { %p3736_p5 = pnand %p3734_p4, %p3731_p3 }
 0x83b   :  { %3739 = shalt.err (!%p3736_p5)
}
 0x83c   :  { %2909 = dma.vmem_to_hbm [thread:$0]  %s2904_s17, 2048, %s5183_s5, [#allocation5], %s3755_s9, %s3755_s9, %s3756_s18  }
 0x83d   :  { %3746 = dma.done.wait [#allocation5], 2048  }
 0x83e   :  { %3747 = vsyncadd [#allocation5], 4294965248 }
 0x83f   :  { %2913 = vsyncpa [#allocation4], 1 }
 0x840   :  { %2914 = vsyncpa [#allocation7], 1 }
 0x841   :  { %2915 = vsyncpa [#allocation10], 1 }
 0x842   :  { %2916 = vsyncpa [#allocation5], 1 }

</bundles_post_ra>
